<compile_context>
chip_gen: v7x
topology: tpu7x:2x2x1
jax: 0.10.0
libtpu: 0.0.40
codegen_flags: <defaults>
</compile_context>

<pallas_src>
import math

import jax
import jax.numpy as jnp
from jax.experimental import pallas as pl
from jax.experimental.pallas import tpu as pltpu

HIDDEN = 132                      # FCBlock hidden width from the module
H_PAD = 144                       # round_up(132, 16): bf16 sublane tile

_BLOCK_NAMES = (
    "spatial_feature",
    "scale_decoder",
    "angle_decoder",
    "shift_decoder",
    "concept_decoder",
)


def _round_up(x, m):
    return ((x + m - 1) // m) * m


# ---------------------------------------------------------------------------
# Parameter construction (deterministic, mimics torch.nn.Linear default init)
# ---------------------------------------------------------------------------
def _fcblock_dims(in_f, out_f, num_hidden_layers):
    return [(in_f, HIDDEN)] + [(HIDDEN, HIDDEN)] * num_hidden_layers + [(HIDDEN, out_f)]


def _init_linear(key, in_f, out_f):
    kw, kb = jax.random.split(key)
    bound = 1.0 / math.sqrt(in_f)
    w = jax.random.uniform(kw, (in_f, out_f), jnp.float32, -bound, bound)
    b = jax.random.uniform(kb, (1, out_f), jnp.float32, -bound, bound)
    return w, b


def init_patch_decoder_params(key, latent_dim, space_dim, concept_dim):
    block_dims = {
        "spatial_feature": _fcblock_dims(latent_dim, latent_dim, 2),
        "scale_decoder": _fcblock_dims(latent_dim, 1, 3),
        "angle_decoder": _fcblock_dims(latent_dim, 1, 3),
        "shift_decoder": _fcblock_dims(latent_dim, space_dim, 3),
        "concept_decoder": _fcblock_dims(latent_dim, concept_dim, 3),
    }
    params = {}
    for name in _BLOCK_NAMES:
        layers = []
        for (i, o) in block_dims[name]:
            key, sub = jax.random.split(key)
            layers.append(_init_linear(sub, i, o))
        params[name] = layers
    return params


# ---------------------------------------------------------------------------
# Parameter packing: 3 blobs (hidden-width weights, final/linear weights,
# biases).  Hidden width padded only to 144; latent only to a multiple of 16.
# ---------------------------------------------------------------------------
def pack_params(params, latent_dim, space_dim, concept_dim):
    L = latent_dim
    LP = _round_up(L, 16)
    out_w = concept_dim + 2 + space_dim          # entity | scale | angle | shift
    OUT_PAD = _round_up(out_w, 128)
    CWF = max(OUT_PAD, LP)                       # cols of the final/linear blob
    CB = max(H_PAD, CWF)                         # cols of the bias blob
    bf16 = jnp.bfloat16

    sp = params["spatial_feature"]    # 4 layers
    co = params["concept_decoder"]    # 5 layers
    sc = params["scale_decoder"]      # 5 layers
    an = params["angle_decoder"]      # 5 layers
    sh = params["shift_decoder"]      # 5 layers
    heads = (co, sc, an, sh)

    def seg(w, rows, cols, col_off=0):
        r, c = w.shape
        return jnp.pad(w, ((0, rows - r), (col_off, cols - col_off - c)))

    # --- blob H: all layers whose output width is the hidden width (132) ----
    # order: [sp0, co0, sc0, an0, sh0] (LP rows each), sp_h1, sp_h2,
    #        then hidden layers 1..3 of [concept, scale, angle, shift].
    hsegs = [seg(sp[0][0], LP, H_PAD), seg(co[0][0], LP, H_PAD),
             seg(sc[0][0], LP, H_PAD), seg(an[0][0], LP, H_PAD),
             seg(sh[0][0], LP, H_PAD),
             seg(sp[1][0], H_PAD, H_PAD), seg(sp[2][0], H_PAD, H_PAD)]
    for head in heads:
        for l in (1, 2, 3):
            hsegs.append(seg(head[l][0], H_PAD, H_PAD))
    wh = jnp.concatenate(hsegs, axis=0).astype(bf16)

    # --- blob F: spatial final (cols 0:L) + four head finals placed into ----
    # --- disjoint output-slab columns. ---------------------------------------
    offs = (0, concept_dim, concept_dim + 1, concept_dim + 2)
    fsegs = [seg(sp[3][0], H_PAD, CWF)]
    for k, head in enumerate(heads):
        fsegs.append(seg(head[4][0], H_PAD, CWF, col_off=offs[k]))
    wf = jnp.concatenate(fsegs, axis=0).astype(bf16)

    # --- bias blob: one f32 row per layer -----------------------------------
    def brow(b, col_off=0):
        return jnp.pad(b, ((0, 0), (col_off, CB - col_off - b.shape[1])))

    brows = [brow(sp[0][1]), brow(co[0][1]), brow(sc[0][1]), brow(an[0][1]),
             brow(sh[0][1]), brow(sp[1][1]), brow(sp[2][1])]
    for head in heads:
        for l in (1, 2, 3):
            brows.append(brow(head[l][1]))
    brows.append(brow(sp[3][1]))                          # spatial final bias
    bfin = jnp.zeros((1, CB), jnp.float32)
    for k, head in enumerate(heads):
        bfin = bfin + brow(head[4][1], col_off=offs[k])   # combined slab bias
    brows.append(bfin)
    bb = jnp.concatenate(brows, axis=0).astype(jnp.float32)

    return wh, wf, bb, LP, OUT_PAD, CWF


# ---------------------------------------------------------------------------
# Pallas kernel: one batch tile; the 3 parameter blobs stay VMEM-resident
# across grid steps (constant index_maps -> fetched once).
# ---------------------------------------------------------------------------
def _make_kernel(LP, OUT_PAD, concept_dim, space_dim):
    H = H_PAD
    two_pi = 2.0 * math.pi
    scale_col = concept_dim
    angle_col = concept_dim + 1
    shift_lo = concept_dim + 2
    shift_hi = shift_lo + space_dim

    # Row offsets inside the blobs (must match pack_params ordering); all are
    # multiples of 16, so static slices stay on sublane-tile boundaries.
    row_l0 = [k * LP for k in range(5)]               # sp0, co0, sc0, an0, sh0
    row_sph = [5 * LP, 5 * LP + H]                    # spatial hidden 1, 2
    row_hid = [[5 * LP + (2 + 3 * k + l) * H for l in range(3)] for k in range(4)]
    b_l0 = [0, 1, 2, 3, 4]
    b_sph = [5, 6]
    b_hid = [[7 + 3 * k + l for l in range(3)] for k in range(4)]
    b_spf = 19
    b_fin = 20

    def kernel(z_ref, wh_ref, wf_ref, b_ref, out_ref):
        f32, bf16 = jnp.float32, jnp.bfloat16

        def hlayer(x_bf16, wrow, nrows, brow):
            w = wh_ref[wrow:wrow + nrows, :]                       # (nrows, H) bf16
            b = b_ref[brow:brow + 1, :H]                           # (1, H) f32
            y = jnp.dot(x_bf16, w, preferred_element_type=f32) + b
            return jnp.maximum(y, 0.0)                             # ReLU, f32

        z = z_ref[...]                                             # (TM, LP) bf16

        # ---- spatial_feature: layer0 + 2 hidden (ReLU) + final linear ------
        h = hlayer(z, row_l0[0], LP, b_l0[0])
        h = hlayer(h.astype(bf16), row_sph[0], H, b_sph[0])
        h = hlayer(h.astype(bf16), row_sph[1], H, b_sph[1])
        sl = (jnp.dot(h.astype(bf16), wf_ref[0:H, :LP], preferred_element_type=f32)
              + b_ref[b_spf:b_spf + 1, :LP])                       # (TM, LP) f32
        sl16 = sl.astype(bf16)

        # ---- four heads [concept, scale, angle, shift] ----------------------
        # concept consumes z; the others consume spatial_latent.  Each final
        # layer targets disjoint output-slab columns, so the four (TM, OUT_PAD)
        # results simply accumulate.
        head_x0 = (z, sl16, sl16, sl16)
        raw = b_ref[b_fin:b_fin + 1, :OUT_PAD]                     # (1, OUT_PAD) f32
        for k in range(4):
            hh = hlayer(head_x0[k], row_l0[1 + k], LP, b_l0[1 + k])
            for l in range(3):
                hh = hlayer(hh.astype(bf16), row_hid[k][l], H, b_hid[k][l])
            wfin = wf_ref[(1 + k) * H:(2 + k) * H, :OUT_PAD]       # (H, OUT_PAD)
            raw = raw + jnp.dot(hh.astype(bf16), wfin, preferred_element_type=f32)
        # NOTE: not fused into one K=4*H dot — concatenating 144-lane
        # activations puts head boundaries at non-128 lane offsets (relayout
        # copies); 4 dots + 3 f32 adds are cheaper.

        # Per-column epilogue on the lane-dense slab: sigmoid(3x) on the scale
        # column, *2*pi on angle, *0.5 on shift, identity on entity / padding.
        # (Full-slab sigmoid runs on the EUP slot and hides under MXU/DMA.)
        col = jax.lax.broadcasted_iota(jnp.int32, (1, OUT_PAD), 1)
        mult = jnp.where(col == angle_col, two_pi,
                         jnp.where((col >= shift_lo) & (col < shift_hi), 0.5, 1.0)
                         ).astype(f32)
        out = jnp.where(col == scale_col, jax.nn.sigmoid(raw * 3.0), raw * mult)
        out_ref[...] = out.astype(out_ref.dtype)

    return kernel


def patch_decoder_forward(z, params, space_dim, concept_dim, *, tm=512,
                          out_dtype=jnp.float32):
    """z: (B, latent_dim) f32. Returns dict matching the PyTorch forward.

    tm: max batch tile (multiple of 16). All weights are VMEM-resident, so a
    large tile amortizes per-grid-step overhead on every TPU generation; the
    grid is kept at >= 2 steps when possible so both v7x TensorCores get work.
    out_dtype: pass jnp.bfloat16 for large-B deployments to halve output HBM.
    """
    B, L = z.shape
    wh, wf, bb, LP, OUT_PAD, _ = pack_params(params, L, space_dim, concept_dim)

    TM = max(16, min(_round_up(max(tm, 16), 16), _round_up(B, 16)))
    if _round_up(B, 16) >= 32 and _round_up(B, TM) // TM < 2:
        TM = max(16, _round_up((B + 1) // 2, 16))     # >= 2 grid steps (v7x)
    B_PAD = _round_up(B, TM)

    z_p = jnp.pad(z, ((0, B_PAD - B), (0, LP - L))).astype(jnp.bfloat16)

    def const_spec(a):
        return pl.BlockSpec(a.shape, lambda i: (0, 0))

    slab = pl.pallas_call(
        _make_kernel(LP, OUT_PAD, concept_dim, space_dim),
        out_shape=jax.ShapeDtypeStruct((B_PAD, OUT_PAD), out_dtype),
        grid=(B_PAD // TM,),
        in_specs=[pl.BlockSpec((TM, LP), lambda i: (i, 0)),
                  const_spec(wh), const_spec(wf), const_spec(bb)],
        out_specs=pl.BlockSpec((TM, OUT_PAD), lambda i: (i, 0)),
        compiler_params=pltpu.CompilerParams(
            dimension_semantics=("parallel",),
            vmem_limit_bytes=32 * 1024 * 1024,
        ),
    )(z_p, wh, wf, bb)

    entity = slab[:B, :concept_dim]
    scale = slab[:B, concept_dim:concept_dim + 1]
    angle = slab[:B, concept_dim + 1:concept_dim + 2]
    shift = slab[:B, concept_dim + 2:concept_dim + 2 + space_dim]
    # NOTE: make_grid(self.config.im_size) in the reference forward is computed
    # but never used in the returned dict, so it is omitted here.
    return {"entity": entity, "scale": scale, "angle": angle, "shift": shift}


# ---------------------------------------------------------------------------
# Pure-JAX reference (same bf16 weight/activation quantization, f32 accumulate)
# ---------------------------------------------------------------------------
def _ref_forward(z, params):
    bf16 = jnp.bfloat16

    def mlp(x, layers):
        n = len(layers)
        for i, (w, b) in enumerate(layers):
            x = jnp.dot(x.astype(bf16), w.astype(bf16),
                        preferred_element_type=jnp.float32) + b
            if i < n - 1:
                x = jnp.maximum(x, 0.0)
        return x

    spatial_latent = mlp(z, params["spatial_feature"])
    scale = jax.nn.sigmoid(mlp(spatial_latent, params["scale_decoder"]) * 3.0)
    angle = mlp(spatial_latent, params["angle_decoder"]) * (2.0 * math.pi)
    shift = mlp(spatial_latent, params["shift_decoder"]) * 0.5
    entity = mlp(z, params["concept_decoder"])
    return {"entity": entity, "scale": scale, "angle": angle, "shift": shift}


if __name__ == "__main__":
    LATENT_DIM = 32
    SPACE_DIM = 2
    CONCEPT_DIM = 16
    B = 300  # exercises a 2-step grid plus ragged-batch padding

    key = jax.random.PRNGKey(0)
    key_p, key_z = jax.random.split(key)
    params = init_patch_decoder_params(key_p, LATENT_DIM, SPACE_DIM, CONCEPT_DIM)
    z = jax.random.normal(key_z, (B, LATENT_DIM), dtype=jnp.float32)

    out = patch_decoder_forward(z, params, SPACE_DIM, CONCEPT_DIM)
    jax.block_until_ready(out)

    ref = _ref_forward(z, params)
    for k in ("entity", "scale", "angle", "shift"):
        assert out[k].shape == ref[k].shape, (k, out[k].shape, ref[k].shape)
        err = float(jnp.max(jnp.abs(out[k] - ref[k])))
        assert jnp.allclose(out[k], ref[k], atol=2e-3, rtol=2e-3), (k, err)

    print("KERNEL_OK")
</pallas_src>

<mosaic_0001>
module attributes {stable_mosaic.version = 11 : i64} {
  func.func @kernel(%arg0: i32, %arg1: memref<160x32xbf16, #tpu.memory_space<vmem>>, %arg2: memref<2176x144xbf16, #tpu.memory_space<vmem>>, %arg3: memref<720x128xbf16, #tpu.memory_space<vmem>>, %arg4: memref<21x144xf32, #tpu.memory_space<vmem>>, %arg5: memref<160x128xf32, #tpu.memory_space<vmem>>) attributes {dimension_semantics = [#tpu.dimension_semantics<parallel>], iteration_bounds = array<i64: 2>, scalar_prefetch = 0 : i64, scratch_operands = 0 : i64, tpu.core_type = #tpu.core_type<tc>, window_params = [{transform_indices = @transform_0, window_bounds = array<i64: 160, 32>}, {pipeline_mode = #tpu.pipeline_mode<synchronous>, transform_indices = @transform_1, window_bounds = array<i64: 2176, 144>}, {pipeline_mode = #tpu.pipeline_mode<synchronous>, transform_indices = @transform_2, window_bounds = array<i64: 720, 128>}, {pipeline_mode = #tpu.pipeline_mode<synchronous>, transform_indices = @transform_3, window_bounds = array<i64: 21, 144>}, {transform_indices = @transform_4, window_bounds = array<i64: 160, 128>}]} {
    %c0 = arith.constant 0 : index
    %c0_0 = arith.constant 0 : index
    %0 = vector.load %arg1[%c0, %c0_0] : memref<160x32xbf16, #tpu.memory_space<vmem>>, vector<160x32xbf16>
    %c0_1 = arith.constant 0 : index
    %c0_2 = arith.constant 0 : index
    %1 = vector.load %arg2[%c0_1, %c0_2] : memref<2176x144xbf16, #tpu.memory_space<vmem>>, vector<32x144xbf16>
    %c0_3 = arith.constant 0 : index
    %c0_4 = arith.constant 0 : index
    %2 = vector.load %arg4[%c0_3, %c0_4] : memref<21x144xf32, #tpu.memory_space<vmem>>, vector<1x144xf32>
    %cst = arith.constant dense<0.000000e+00> : vector<160x144xf32>
    %3 = tpu.matmul %0, %1, %cst {dimension_numbers = #tpu.dot_dimension_numbers<[1], [0], [0], [1], [0, 0, 1, 1], [], []>} : vector<160x32xbf16>, vector<32x144xbf16>, vector<160x144xf32> -> vector<160x144xf32>
    %4 = vector.broadcast %2 : vector<1x144xf32> to vector<160x144xf32>
    %5 = arith.addf %3, %4 : vector<160x144xf32>
    %cst_5 = arith.constant 0.000000e+00 : f32
    %6 = vector.broadcast %cst_5 : f32 to vector<160x144xf32>
    %7 = arith.maximumf %5, %6 : vector<160x144xf32>
    %8 = arith.truncf %7 : vector<160x144xf32> to vector<160x144xbf16>
    %c160 = arith.constant 160 : index
    %c0_6 = arith.constant 0 : index
    %9 = vector.load %arg2[%c160, %c0_6] : memref<2176x144xbf16, #tpu.memory_space<vmem>>, vector<144x144xbf16>
    %c5 = arith.constant 5 : index
    %c0_7 = arith.constant 0 : index
    %10 = vector.load %arg4[%c5, %c0_7] : memref<21x144xf32, #tpu.memory_space<vmem>>, vector<1x144xf32>
    %cst_8 = arith.constant dense<0.000000e+00> : vector<160x144xf32>
    %11 = tpu.matmul %8, %9, %cst_8 {dimension_numbers = #tpu.dot_dimension_numbers<[1], [0], [0], [1], [0, 0, 1, 1], [], []>} : vector<160x144xbf16>, vector<144x144xbf16>, vector<160x144xf32> -> vector<160x144xf32>
    %12 = vector.broadcast %10 : vector<1x144xf32> to vector<160x144xf32>
    %13 = arith.addf %11, %12 : vector<160x144xf32>
    %cst_9 = arith.constant 0.000000e+00 : f32
    %14 = vector.broadcast %cst_9 : f32 to vector<160x144xf32>
    %15 = arith.maximumf %13, %14 : vector<160x144xf32>
    %16 = arith.truncf %15 : vector<160x144xf32> to vector<160x144xbf16>
    %c304 = arith.constant 304 : index
    %c0_10 = arith.constant 0 : index
    %17 = vector.load %arg2[%c304, %c0_10] : memref<2176x144xbf16, #tpu.memory_space<vmem>>, vector<144x144xbf16>
    %c6 = arith.constant 6 : index
    %c0_11 = arith.constant 0 : index
    %18 = vector.load %arg4[%c6, %c0_11] : memref<21x144xf32, #tpu.memory_space<vmem>>, vector<1x144xf32>
    %cst_12 = arith.constant dense<0.000000e+00> : vector<160x144xf32>
    %19 = tpu.matmul %16, %17, %cst_12 {dimension_numbers = #tpu.dot_dimension_numbers<[1], [0], [0], [1], [0, 0, 1, 1], [], []>} : vector<160x144xbf16>, vector<144x144xbf16>, vector<160x144xf32> -> vector<160x144xf32>
    %20 = vector.broadcast %18 : vector<1x144xf32> to vector<160x144xf32>
    %21 = arith.addf %19, %20 : vector<160x144xf32>
    %cst_13 = arith.constant 0.000000e+00 : f32
    %22 = vector.broadcast %cst_13 : f32 to vector<160x144xf32>
    %23 = arith.maximumf %21, %22 : vector<160x144xf32>
    %24 = arith.truncf %23 : vector<160x144xf32> to vector<160x144xbf16>
    %c0_14 = arith.constant 0 : index
    %c0_15 = arith.constant 0 : index
    %25 = vector.load %arg3[%c0_14, %c0_15] : memref<720x128xbf16, #tpu.memory_space<vmem>>, vector<144x32xbf16>
    %cst_16 = arith.constant dense<0.000000e+00> : vector<160x32xf32>
    %26 = tpu.matmul %24, %25, %cst_16 {dimension_numbers = #tpu.dot_dimension_numbers<[1], [0], [0], [1], [0, 0, 1, 1], [], []>} : vector<160x144xbf16>, vector<144x32xbf16>, vector<160x32xf32> -> vector<160x32xf32>
    %c19 = arith.constant 19 : index
    %c0_17 = arith.constant 0 : index
    %27 = vector.load %arg4[%c19, %c0_17] : memref<21x144xf32, #tpu.memory_space<vmem>>, vector<1x32xf32>
    %28 = vector.broadcast %27 : vector<1x32xf32> to vector<160x32xf32>
    %29 = arith.addf %26, %28 : vector<160x32xf32>
    %30 = arith.truncf %29 : vector<160x32xf32> to vector<160x32xbf16>
    %c20 = arith.constant 20 : index
    %c0_18 = arith.constant 0 : index
    %31 = vector.load %arg4[%c20, %c0_18] : memref<21x144xf32, #tpu.memory_space<vmem>>, vector<1x128xf32>
    %c32 = arith.constant 32 : index
    %c0_19 = arith.constant 0 : index
    %32 = vector.load %arg2[%c32, %c0_19] : memref<2176x144xbf16, #tpu.memory_space<vmem>>, vector<32x144xbf16>
    %c1 = arith.constant 1 : index
    %c0_20 = arith.constant 0 : index
    %33 = vector.load %arg4[%c1, %c0_20] : memref<21x144xf32, #tpu.memory_space<vmem>>, vector<1x144xf32>
    %cst_21 = arith.constant dense<0.000000e+00> : vector<160x144xf32>
    %34 = tpu.matmul %0, %32, %cst_21 {dimension_numbers = #tpu.dot_dimension_numbers<[1], [0], [0], [1], [0, 0, 1, 1], [], []>} : vector<160x32xbf16>, vector<32x144xbf16>, vector<160x144xf32> -> vector<160x144xf32>
    %35 = vector.broadcast %33 : vector<1x144xf32> to vector<160x144xf32>
    %36 = arith.addf %34, %35 : vector<160x144xf32>
    %cst_22 = arith.constant 0.000000e+00 : f32
    %37 = vector.broadcast %cst_22 : f32 to vector<160x144xf32>
    %38 = arith.maximumf %36, %37 : vector<160x144xf32>
    %39 = arith.truncf %38 : vector<160x144xf32> to vector<160x144xbf16>
    %c448 = arith.constant 448 : index
    %c0_23 = arith.constant 0 : index
    %40 = vector.load %arg2[%c448, %c0_23] : memref<2176x144xbf16, #tpu.memory_space<vmem>>, vector<144x144xbf16>
    %c7 = arith.constant 7 : index
    %c0_24 = arith.constant 0 : index
    %41 = vector.load %arg4[%c7, %c0_24] : memref<21x144xf32, #tpu.memory_space<vmem>>, vector<1x144xf32>
    %cst_25 = arith.constant dense<0.000000e+00> : vector<160x144xf32>
    %42 = tpu.matmul %39, %40, %cst_25 {dimension_numbers = #tpu.dot_dimension_numbers<[1], [0], [0], [1], [0, 0, 1, 1], [], []>} : vector<160x144xbf16>, vector<144x144xbf16>, vector<160x144xf32> -> vector<160x144xf32>
    %43 = vector.broadcast %41 : vector<1x144xf32> to vector<160x144xf32>
    %44 = arith.addf %42, %43 : vector<160x144xf32>
    %cst_26 = arith.constant 0.000000e+00 : f32
    %45 = vector.broadcast %cst_26 : f32 to vector<160x144xf32>
    %46 = arith.maximumf %44, %45 : vector<160x144xf32>
    %47 = arith.truncf %46 : vector<160x144xf32> to vector<160x144xbf16>
    %c592 = arith.constant 592 : index
    %c0_27 = arith.constant 0 : index
    %48 = vector.load %arg2[%c592, %c0_27] : memref<2176x144xbf16, #tpu.memory_space<vmem>>, vector<144x144xbf16>
    %c8 = arith.constant 8 : index
    %c0_28 = arith.constant 0 : index
    %49 = vector.load %arg4[%c8, %c0_28] : memref<21x144xf32, #tpu.memory_space<vmem>>, vector<1x144xf32>
    %cst_29 = arith.constant dense<0.000000e+00> : vector<160x144xf32>
    %50 = tpu.matmul %47, %48, %cst_29 {dimension_numbers = #tpu.dot_dimension_numbers<[1], [0], [0], [1], [0, 0, 1, 1], [], []>} : vector<160x144xbf16>, vector<144x144xbf16>, vector<160x144xf32> -> vector<160x144xf32>
    %51 = vector.broadcast %49 : vector<1x144xf32> to vector<160x144xf32>
    %52 = arith.addf %50, %51 : vector<160x144xf32>
    %cst_30 = arith.constant 0.000000e+00 : f32
    %53 = vector.broadcast %cst_30 : f32 to vector<160x144xf32>
    %54 = arith.maximumf %52, %53 : vector<160x144xf32>
    %55 = arith.truncf %54 : vector<160x144xf32> to vector<160x144xbf16>
    %c736 = arith.constant 736 : index
    %c0_31 = arith.constant 0 : index
    %56 = vector.load %arg2[%c736, %c0_31] : memref<2176x144xbf16, #tpu.memory_space<vmem>>, vector<144x144xbf16>
    %c9 = arith.constant 9 : index
    %c0_32 = arith.constant 0 : index
    %57 = vector.load %arg4[%c9, %c0_32] : memref<21x144xf32, #tpu.memory_space<vmem>>, vector<1x144xf32>
    %cst_33 = arith.constant dense<0.000000e+00> : vector<160x144xf32>
    %58 = tpu.matmul %55, %56, %cst_33 {dimension_numbers = #tpu.dot_dimension_numbers<[1], [0], [0], [1], [0, 0, 1, 1], [], []>} : vector<160x144xbf16>, vector<144x144xbf16>, vector<160x144xf32> -> vector<160x144xf32>
    %59 = vector.broadcast %57 : vector<1x144xf32> to vector<160x144xf32>
    %60 = arith.addf %58, %59 : vector<160x144xf32>
    %cst_34 = arith.constant 0.000000e+00 : f32
    %61 = vector.broadcast %cst_34 : f32 to vector<160x144xf32>
    %62 = arith.maximumf %60, %61 : vector<160x144xf32>
    %c144 = arith.constant 144 : index
    %c0_35 = arith.constant 0 : index
    %63 = vector.load %arg3[%c144, %c0_35] : memref<720x128xbf16, #tpu.memory_space<vmem>>, vector<144x128xbf16>
    %64 = arith.truncf %62 : vector<160x144xf32> to vector<160x144xbf16>
    %cst_36 = arith.constant dense<0.000000e+00> : vector<160x128xf32>
    %65 = tpu.matmul %64, %63, %cst_36 {dimension_numbers = #tpu.dot_dimension_numbers<[1], [0], [0], [1], [0, 0, 1, 1], [], []>} : vector<160x144xbf16>, vector<144x128xbf16>, vector<160x128xf32> -> vector<160x128xf32>
    %66 = vector.broadcast %31 : vector<1x128xf32> to vector<160x128xf32>
    %67 = arith.addf %66, %65 : vector<160x128xf32>
    %c64 = arith.constant 64 : index
    %c0_37 = arith.constant 0 : index
    %68 = vector.load %arg2[%c64, %c0_37] : memref<2176x144xbf16, #tpu.memory_space<vmem>>, vector<32x144xbf16>
    %c2 = arith.constant 2 : index
    %c0_38 = arith.constant 0 : index
    %69 = vector.load %arg4[%c2, %c0_38] : memref<21x144xf32, #tpu.memory_space<vmem>>, vector<1x144xf32>
    %cst_39 = arith.constant dense<0.000000e+00> : vector<160x144xf32>
    %70 = tpu.matmul %30, %68, %cst_39 {dimension_numbers = #tpu.dot_dimension_numbers<[1], [0], [0], [1], [0, 0, 1, 1], [], []>} : vector<160x32xbf16>, vector<32x144xbf16>, vector<160x144xf32> -> vector<160x144xf32>
    %71 = vector.broadcast %69 : vector<1x144xf32> to vector<160x144xf32>
    %72 = arith.addf %70, %71 : vector<160x144xf32>
    %cst_40 = arith.constant 0.000000e+00 : f32
    %73 = vector.broadcast %cst_40 : f32 to vector<160x144xf32>
    %74 = arith.maximumf %72, %73 : vector<160x144xf32>
    %75 = arith.truncf %74 : vector<160x144xf32> to vector<160x144xbf16>
    %c880 = arith.constant 880 : index
    %c0_41 = arith.constant 0 : index
    %76 = vector.load %arg2[%c880, %c0_41] : memref<2176x144xbf16, #tpu.memory_space<vmem>>, vector<144x144xbf16>
    %c10 = arith.constant 10 : index
    %c0_42 = arith.constant 0 : index
    %77 = vector.load %arg4[%c10, %c0_42] : memref<21x144xf32, #tpu.memory_space<vmem>>, vector<1x144xf32>
    %cst_43 = arith.constant dense<0.000000e+00> : vector<160x144xf32>
    %78 = tpu.matmul %75, %76, %cst_43 {dimension_numbers = #tpu.dot_dimension_numbers<[1], [0], [0], [1], [0, 0, 1, 1], [], []>} : vector<160x144xbf16>, vector<144x144xbf16>, vector<160x144xf32> -> vector<160x144xf32>
    %79 = vector.broadcast %77 : vector<1x144xf32> to vector<160x144xf32>
    %80 = arith.addf %78, %79 : vector<160x144xf32>
    %cst_44 = arith.constant 0.000000e+00 : f32
    %81 = vector.broadcast %cst_44 : f32 to vector<160x144xf32>
    %82 = arith.maximumf %80, %81 : vector<160x144xf32>
    %83 = arith.truncf %82 : vector<160x144xf32> to vector<160x144xbf16>
    %c1024 = arith.constant 1024 : index
    %c0_45 = arith.constant 0 : index
    %84 = vector.load %arg2[%c1024, %c0_45] : memref<2176x144xbf16, #tpu.memory_space<vmem>>, vector<144x144xbf16>
    %c11 = arith.constant 11 : index
    %c0_46 = arith.constant 0 : index
    %85 = vector.load %arg4[%c11, %c0_46] : memref<21x144xf32, #tpu.memory_space<vmem>>, vector<1x144xf32>
    %cst_47 = arith.constant dense<0.000000e+00> : vector<160x144xf32>
    %86 = tpu.matmul %83, %84, %cst_47 {dimension_numbers = #tpu.dot_dimension_numbers<[1], [0], [0], [1], [0, 0, 1, 1], [], []>} : vector<160x144xbf16>, vector<144x144xbf16>, vector<160x144xf32> -> vector<160x144xf32>
    %87 = vector.broadcast %85 : vector<1x144xf32> to vector<160x144xf32>
    %88 = arith.addf %86, %87 : vector<160x144xf32>
    %cst_48 = arith.constant 0.000000e+00 : f32
    %89 = vector.broadcast %cst_48 : f32 to vector<160x144xf32>
    %90 = arith.maximumf %88, %89 : vector<160x144xf32>
    %91 = arith.truncf %90 : vector<160x144xf32> to vector<160x144xbf16>
    %c1168 = arith.constant 1168 : index
    %c0_49 = arith.constant 0 : index
    %92 = vector.load %arg2[%c1168, %c0_49] : memref<2176x144xbf16, #tpu.memory_space<vmem>>, vector<144x144xbf16>
    %c12 = arith.constant 12 : index
    %c0_50 = arith.constant 0 : index
    %93 = vector.load %arg4[%c12, %c0_50] : memref<21x144xf32, #tpu.memory_space<vmem>>, vector<1x144xf32>
    %cst_51 = arith.constant dense<0.000000e+00> : vector<160x144xf32>
    %94 = tpu.matmul %91, %92, %cst_51 {dimension_numbers = #tpu.dot_dimension_numbers<[1], [0], [0], [1], [0, 0, 1, 1], [], []>} : vector<160x144xbf16>, vector<144x144xbf16>, vector<160x144xf32> -> vector<160x144xf32>
    %95 = vector.broadcast %93 : vector<1x144xf32> to vector<160x144xf32>
    %96 = arith.addf %94, %95 : vector<160x144xf32>
    %cst_52 = arith.constant 0.000000e+00 : f32
    %97 = vector.broadcast %cst_52 : f32 to vector<160x144xf32>
    %98 = arith.maximumf %96, %97 : vector<160x144xf32>
    %c288 = arith.constant 288 : index
    %c0_53 = arith.constant 0 : index
    %99 = vector.load %arg3[%c288, %c0_53] : memref<720x128xbf16, #tpu.memory_space<vmem>>, vector<144x128xbf16>
    %100 = arith.truncf %98 : vector<160x144xf32> to vector<160x144xbf16>
    %cst_54 = arith.constant dense<0.000000e+00> : vector<160x128xf32>
    %101 = tpu.matmul %100, %99, %cst_54 {dimension_numbers = #tpu.dot_dimension_numbers<[1], [0], [0], [1], [0, 0, 1, 1], [], []>} : vector<160x144xbf16>, vector<144x128xbf16>, vector<160x128xf32> -> vector<160x128xf32>
    %102 = arith.addf %67, %101 : vector<160x128xf32>
    %c96 = arith.constant 96 : index
    %c0_55 = arith.constant 0 : index
    %103 = vector.load %arg2[%c96, %c0_55] : memref<2176x144xbf16, #tpu.memory_space<vmem>>, vector<32x144xbf16>
    %c3 = arith.constant 3 : index
    %c0_56 = arith.constant 0 : index
    %104 = vector.load %arg4[%c3, %c0_56] : memref<21x144xf32, #tpu.memory_space<vmem>>, vector<1x144xf32>
    %cst_57 = arith.constant dense<0.000000e+00> : vector<160x144xf32>
    %105 = tpu.matmul %30, %103, %cst_57 {dimension_numbers = #tpu.dot_dimension_numbers<[1], [0], [0], [1], [0, 0, 1, 1], [], []>} : vector<160x32xbf16>, vector<32x144xbf16>, vector<160x144xf32> -> vector<160x144xf32>
    %106 = vector.broadcast %104 : vector<1x144xf32> to vector<160x144xf32>
    %107 = arith.addf %105, %106 : vector<160x144xf32>
    %cst_58 = arith.constant 0.000000e+00 : f32
    %108 = vector.broadcast %cst_58 : f32 to vector<160x144xf32>
    %109 = arith.maximumf %107, %108 : vector<160x144xf32>
    %110 = arith.truncf %109 : vector<160x144xf32> to vector<160x144xbf16>
    %c1312 = arith.constant 1312 : index
    %c0_59 = arith.constant 0 : index
    %111 = vector.load %arg2[%c1312, %c0_59] : memref<2176x144xbf16, #tpu.memory_space<vmem>>, vector<144x144xbf16>
    %c13 = arith.constant 13 : index
    %c0_60 = arith.constant 0 : index
    %112 = vector.load %arg4[%c13, %c0_60] : memref<21x144xf32, #tpu.memory_space<vmem>>, vector<1x144xf32>
    %cst_61 = arith.constant dense<0.000000e+00> : vector<160x144xf32>
    %113 = tpu.matmul %110, %111, %cst_61 {dimension_numbers = #tpu.dot_dimension_numbers<[1], [0], [0], [1], [0, 0, 1, 1], [], []>} : vector<160x144xbf16>, vector<144x144xbf16>, vector<160x144xf32> -> vector<160x144xf32>
    %114 = vector.broadcast %112 : vector<1x144xf32> to vector<160x144xf32>
    %115 = arith.addf %113, %114 : vector<160x144xf32>
    %cst_62 = arith.constant 0.000000e+00 : f32
    %116 = vector.broadcast %cst_62 : f32 to vector<160x144xf32>
    %117 = arith.maximumf %115, %116 : vector<160x144xf32>
    %118 = arith.truncf %117 : vector<160x144xf32> to vector<160x144xbf16>
    %c1456 = arith.constant 1456 : index
    %c0_63 = arith.constant 0 : index
    %119 = vector.load %arg2[%c1456, %c0_63] : memref<2176x144xbf16, #tpu.memory_space<vmem>>, vector<144x144xbf16>
    %c14 = arith.constant 14 : index
    %c0_64 = arith.constant 0 : index
    %120 = vector.load %arg4[%c14, %c0_64] : memref<21x144xf32, #tpu.memory_space<vmem>>, vector<1x144xf32>
    %cst_65 = arith.constant dense<0.000000e+00> : vector<160x144xf32>
    %121 = tpu.matmul %118, %119, %cst_65 {dimension_numbers = #tpu.dot_dimension_numbers<[1], [0], [0], [1], [0, 0, 1, 1], [], []>} : vector<160x144xbf16>, vector<144x144xbf16>, vector<160x144xf32> -> vector<160x144xf32>
    %122 = vector.broadcast %120 : vector<1x144xf32> to vector<160x144xf32>
    %123 = arith.addf %121, %122 : vector<160x144xf32>
    %cst_66 = arith.constant 0.000000e+00 : f32
    %124 = vector.broadcast %cst_66 : f32 to vector<160x144xf32>
    %125 = arith.maximumf %123, %124 : vector<160x144xf32>
    %126 = arith.truncf %125 : vector<160x144xf32> to vector<160x144xbf16>
    %c1600 = arith.constant 1600 : index
    %c0_67 = arith.constant 0 : index
    %127 = vector.load %arg2[%c1600, %c0_67] : memref<2176x144xbf16, #tpu.memory_space<vmem>>, vector<144x144xbf16>
    %c15 = arith.constant 15 : index
    %c0_68 = arith.constant 0 : index
    %128 = vector.load %arg4[%c15, %c0_68] : memref<21x144xf32, #tpu.memory_space<vmem>>, vector<1x144xf32>
    %cst_69 = arith.constant dense<0.000000e+00> : vector<160x144xf32>
    %129 = tpu.matmul %126, %127, %cst_69 {dimension_numbers = #tpu.dot_dimension_numbers<[1], [0], [0], [1], [0, 0, 1, 1], [], []>} : vector<160x144xbf16>, vector<144x144xbf16>, vector<160x144xf32> -> vector<160x144xf32>
    %130 = vector.broadcast %128 : vector<1x144xf32> to vector<160x144xf32>
    %131 = arith.addf %129, %130 : vector<160x144xf32>
    %cst_70 = arith.constant 0.000000e+00 : f32
    %132 = vector.broadcast %cst_70 : f32 to vector<160x144xf32>
    %133 = arith.maximumf %131, %132 : vector<160x144xf32>
    %c432 = arith.constant 432 : index
    %c0_71 = arith.constant 0 : index
    %134 = vector.load %arg3[%c432, %c0_71] : memref<720x128xbf16, #tpu.memory_space<vmem>>, vector<144x128xbf16>
    %135 = arith.truncf %133 : vector<160x144xf32> to vector<160x144xbf16>
    %cst_72 = arith.constant dense<0.000000e+00> : vector<160x128xf32>
    %136 = tpu.matmul %135, %134, %cst_72 {dimension_numbers = #tpu.dot_dimension_numbers<[1], [0], [0], [1], [0, 0, 1, 1], [], []>} : vector<160x144xbf16>, vector<144x128xbf16>, vector<160x128xf32> -> vector<160x128xf32>
    %137 = arith.addf %102, %136 : vector<160x128xf32>
    %c128 = arith.constant 128 : index
    %c0_73 = arith.constant 0 : index
    %138 = vector.load %arg2[%c128, %c0_73] : memref<2176x144xbf16, #tpu.memory_space<vmem>>, vector<32x144xbf16>
    %c4 = arith.constant 4 : index
    %c0_74 = arith.constant 0 : index
    %139 = vector.load %arg4[%c4, %c0_74] : memref<21x144xf32, #tpu.memory_space<vmem>>, vector<1x144xf32>
    %cst_75 = arith.constant dense<0.000000e+00> : vector<160x144xf32>
    %140 = tpu.matmul %30, %138, %cst_75 {dimension_numbers = #tpu.dot_dimension_numbers<[1], [0], [0], [1], [0, 0, 1, 1], [], []>} : vector<160x32xbf16>, vector<32x144xbf16>, vector<160x144xf32> -> vector<160x144xf32>
    %141 = vector.broadcast %139 : vector<1x144xf32> to vector<160x144xf32>
    %142 = arith.addf %140, %141 : vector<160x144xf32>
    %cst_76 = arith.constant 0.000000e+00 : f32
    %143 = vector.broadcast %cst_76 : f32 to vector<160x144xf32>
    %144 = arith.maximumf %142, %143 : vector<160x144xf32>
    %145 = arith.truncf %144 : vector<160x144xf32> to vector<160x144xbf16>
    %c1744 = arith.constant 1744 : index
    %c0_77 = arith.constant 0 : index
    %146 = vector.load %arg2[%c1744, %c0_77] : memref<2176x144xbf16, #tpu.memory_space<vmem>>, vector<144x144xbf16>
    %c16 = arith.constant 16 : index
    %c0_78 = arith.constant 0 : index
    %147 = vector.load %arg4[%c16, %c0_78] : memref<21x144xf32, #tpu.memory_space<vmem>>, vector<1x144xf32>
    %cst_79 = arith.constant dense<0.000000e+00> : vector<160x144xf32>
    %148 = tpu.matmul %145, %146, %cst_79 {dimension_numbers = #tpu.dot_dimension_numbers<[1], [0], [0], [1], [0, 0, 1, 1], [], []>} : vector<160x144xbf16>, vector<144x144xbf16>, vector<160x144xf32> -> vector<160x144xf32>
    %149 = vector.broadcast %147 : vector<1x144xf32> to vector<160x144xf32>
    %150 = arith.addf %148, %149 : vector<160x144xf32>
    %cst_80 = arith.constant 0.000000e+00 : f32
    %151 = vector.broadcast %cst_80 : f32 to vector<160x144xf32>
    %152 = arith.maximumf %150, %151 : vector<160x144xf32>
    %153 = arith.truncf %152 : vector<160x144xf32> to vector<160x144xbf16>
    %c1888 = arith.constant 1888 : index
    %c0_81 = arith.constant 0 : index
    %154 = vector.load %arg2[%c1888, %c0_81] : memref<2176x144xbf16, #tpu.memory_space<vmem>>, vector<144x144xbf16>
    %c17 = arith.constant 17 : index
    %c0_82 = arith.constant 0 : index
    %155 = vector.load %arg4[%c17, %c0_82] : memref<21x144xf32, #tpu.memory_space<vmem>>, vector<1x144xf32>
    %cst_83 = arith.constant dense<0.000000e+00> : vector<160x144xf32>
    %156 = tpu.matmul %153, %154, %cst_83 {dimension_numbers = #tpu.dot_dimension_numbers<[1], [0], [0], [1], [0, 0, 1, 1], [], []>} : vector<160x144xbf16>, vector<144x144xbf16>, vector<160x144xf32> -> vector<160x144xf32>
    %157 = vector.broadcast %155 : vector<1x144xf32> to vector<160x144xf32>
    %158 = arith.addf %156, %157 : vector<160x144xf32>
    %cst_84 = arith.constant 0.000000e+00 : f32
    %159 = vector.broadcast %cst_84 : f32 to vector<160x144xf32>
    %160 = arith.maximumf %158, %159 : vector<160x144xf32>
    %161 = arith.truncf %160 : vector<160x144xf32> to vector<160x144xbf16>
    %c2032 = arith.constant 2032 : index
    %c0_85 = arith.constant 0 : index
    %162 = vector.load %arg2[%c2032, %c0_85] : memref<2176x144xbf16, #tpu.memory_space<vmem>>, vector<144x144xbf16>
    %c18 = arith.constant 18 : index
    %c0_86 = arith.constant 0 : index
    %163 = vector.load %arg4[%c18, %c0_86] : memref<21x144xf32, #tpu.memory_space<vmem>>, vector<1x144xf32>
    %cst_87 = arith.constant dense<0.000000e+00> : vector<160x144xf32>
    %164 = tpu.matmul %161, %162, %cst_87 {dimension_numbers = #tpu.dot_dimension_numbers<[1], [0], [0], [1], [0, 0, 1, 1], [], []>} : vector<160x144xbf16>, vector<144x144xbf16>, vector<160x144xf32> -> vector<160x144xf32>
    %165 = vector.broadcast %163 : vector<1x144xf32> to vector<160x144xf32>
    %166 = arith.addf %164, %165 : vector<160x144xf32>
    %cst_88 = arith.constant 0.000000e+00 : f32
    %167 = vector.broadcast %cst_88 : f32 to vector<160x144xf32>
    %168 = arith.maximumf %166, %167 : vector<160x144xf32>
    %c576 = arith.constant 576 : index
    %c0_89 = arith.constant 0 : index
    %169 = vector.load %arg3[%c576, %c0_89] : memref<720x128xbf16, #tpu.memory_space<vmem>>, vector<144x128xbf16>
    %170 = arith.truncf %168 : vector<160x144xf32> to vector<160x144xbf16>
    %cst_90 = arith.constant dense<0.000000e+00> : vector<160x128xf32>
    %171 = tpu.matmul %170, %169, %cst_90 {dimension_numbers = #tpu.dot_dimension_numbers<[1], [0], [0], [1], [0, 0, 1, 1], [], []>} : vector<160x144xbf16>, vector<144x128xbf16>, vector<160x128xf32> -> vector<160x128xf32>
    %172 = arith.addf %137, %171 : vector<160x128xf32>
    %173 = tpu.iota {dimensions = array<i32: 1>} : vector<1x128xi32>
    %c17_i32 = arith.constant 17 : i32
    %174 = vector.broadcast %c17_i32 : i32 to vector<1x128xi32>
    %175 = arith.cmpi eq, %173, %174 : vector<1x128xi32>
    %c18_i32 = arith.constant 18 : i32
    %176 = vector.broadcast %c18_i32 : i32 to vector<1x128xi32>
    %177 = arith.cmpi sge, %173, %176 : vector<1x128xi32>
    %c20_i32 = arith.constant 20 : i32
    %178 = vector.broadcast %c20_i32 : i32 to vector<1x128xi32>
    %179 = arith.cmpi slt, %173, %178 : vector<1x128xi32>
    %180 = arith.andi %177, %179 : vector<1x128xi1>
    %cst_91 = arith.constant 5.000000e-01 : f32
    %cst_92 = arith.constant 1.000000e+00 : f32
    %181 = vector.broadcast %cst_91 : f32 to vector<1x128xf32>
    %182 = vector.broadcast %cst_92 : f32 to vector<1x128xf32>
    %183 = arith.select %180, %181, %182 : vector<1x128xi1>, vector<1x128xf32>
    %cst_93 = arith.constant 6.28318548 : f32
    %184 = vector.broadcast %cst_93 : f32 to vector<1x128xf32>
    %185 = arith.select %175, %184, %183 : vector<1x128xi1>, vector<1x128xf32>
    %c16_i32 = arith.constant 16 : i32
    %186 = vector.broadcast %c16_i32 : i32 to vector<1x128xi32>
    %187 = arith.cmpi eq, %173, %186 : vector<1x128xi32>
    %cst_94 = arith.constant 3.000000e+00 : f32
    %188 = vector.broadcast %cst_94 : f32 to vector<160x128xf32>
    %189 = arith.mulf %172, %188 : vector<160x128xf32>
    %190 = arith.negf %189 : vector<160x128xf32>
    %191 = math.exp %190 : vector<160x128xf32>
    %cst_95 = arith.constant 1.000000e+00 : f32
    %192 = vector.broadcast %cst_95 : f32 to vector<160x128xf32>
    %193 = arith.addf %192, %191 : vector<160x128xf32>
    %194 = arith.divf %192, %193 : vector<160x128xf32>
    %195 = vector.broadcast %185 : vector<1x128xf32> to vector<160x128xf32>
    %196 = arith.mulf %172, %195 : vector<160x128xf32>
    %197 = vector.shape_cast %187 : vector<1x128xi1> to vector<1x128xi1>
    %198 = vector.broadcast %197 : vector<1x128xi1> to vector<160x128xi1>
    %199 = arith.select %198, %194, %196 : vector<160x128xi1>, vector<160x128xf32>
    %c0_96 = arith.constant 0 : index
    %c0_97 = arith.constant 0 : index
    %200 = vector.load %arg5[%c0_96, %c0_97] : memref<160x128xf32, #tpu.memory_space<vmem>>, vector<160x128xf32>
    tpu.vector_store %arg5[%c0_96, %c0_97], %199 {strides = array<i32>} : memref<160x128xf32, #tpu.memory_space<vmem>>, vector<160x128xf32>,
    return
  }
  func.func @transform_0(%arg0: i32) -> (i32, i32) {
    %c0_i32 = arith.constant 0 : i32
    %c0_i32_0 = arith.constant 0 : i32
    return %arg0, %c0_i32 : i32, i32
  }
  func.func @transform_1(%arg0: i32) -> (i32, i32) {
    %c0_i32 = arith.constant 0 : i32
    %c0_i32_0 = arith.constant 0 : i32
    %c0_i32_1 = arith.constant 0 : i32
    return %c0_i32, %c0_i32_0 : i32, i32
  }
  func.func @transform_2(%arg0: i32) -> (i32, i32) {
    %c0_i32 = arith.constant 0 : i32
    %c0_i32_0 = arith.constant 0 : i32
    %c0_i32_1 = arith.constant 0 : i32
    return %c0_i32, %c0_i32_0 : i32, i32
  }
  func.func @transform_3(%arg0: i32) -> (i32, i32) {
    %c0_i32 = arith.constant 0 : i32
    %c0_i32_0 = arith.constant 0 : i32
    %c0_i32_1 = arith.constant 0 : i32
    return %c0_i32, %c0_i32_0 : i32, i32
  }
  func.func @transform_4(%arg0: i32) -> (i32, i32) {
    %c0_i32 = arith.constant 0 : i32
    %c0_i32_0 = arith.constant 0 : i32
    return %arg0, %c0_i32 : i32, i32
  }
}

</mosaic_0001>

<bundles_post_ra>
// kernel: tpu_custom_call.1
= control target key start
LH: loop header
LB: loop body
LE: loop exit
PB: predicated region body
PF: predicated region fallthrough
CT: control target
= control target key end

     0   :  { %9 = vsyncpa [#allocation3], 0  ;;  %s11936_s0 = inlined_call_operand.vmem [shape: bf16[320,32], index: 0, kind: input, shape index: {}]   ;;  %s11937_s1 = inlined_call_operand.vmem [shape: bf16[2176,144], index: 1, kind: input, shape index: {}]   ;;  %s11938_s2 = inlined_call_operand.vmem [shape: bf16[720,128], index: 2, kind: input, shape index: {}]   ;;  %s11939_s3 = inlined_call_operand.vmem [shape: f32[21,144], index: 3, kind: input, shape index: {}]   ;;  %s11940_s4 = inlined_call_operand.hbm [shape: f32[320,128], index: 4, kind: output, shape index: {}]  }
   0x1   :  { %11 = vsyncpa [#allocation3 + $0x1], 0  ;;  %s9214_s15 = smov 0   ;;  %s9216_s16 = smov 0  }
   0x2   :  { %s9218_s17 = smov 0   ;;  %s9220_s18 = smov 0  }
   0x3 LB: > { %s9235_s19 = sadd.s32 4294967295, %s9182_s18   ;;  %s7751_s20 = sadd.s32 4294967294, %s9182_s18   ;;  %s9182_s18 = sphi %s9220_s18, %s11946_s18   ;;  %s9178_s17 = sphi %s9218_s17, %s11945_s17   ;;  %s9174_s16 = sphi %s9216_s16, %s11944_s16   ;;  %s9170_s15 = sphi %s9214_s15, %s11943_s15  }
   0x4   : > { %s9239_s21 = sadd.s32 1, %s9182_s18   ;;  %s113_s22 = sadd.s32 1, %s9178_s17 }
   0x5   : > { %s110_s23 = ssub.s32 %s9182_s18, %s9239_s21  ;;  %p123_p0 = scmp.ne.s32.totalorder %s9178_s17, %s9174_s16 }
   0x6   : > { %p111_p1 = scmp.eq.s32.totalorder %s110_s23, 0  ;;  %p124_p2 = scmp.eq.s32.totalorder %s9235_s19, 1 }
   0x7   : > { %p129_p3 = scmp.ne.s32.totalorder %s9174_s16, %s9170_s15  ;;  %p130_p4 = scmp.eq.s32.totalorder %s7751_s20, 1 }
   0x8   : > { %s9250_s24 = scalar_select %p111_p1, %s9178_s17, %s113_s22  }
   0x9   : > { %p9252_p5 = por %p124_p2, %p123_p0  ;;  %p9256_p6 = por %p130_p4, %p129_p3 }
   0xa   : > { %p7754_p7 = scmp.ge.s32.totalorder %s9182_s18, 1  ;;  %p166_p8 = scmp.lt.s32.totalorder %s9182_s18, 3 }
   0xc   : > { %p167_p9 = pnand %p7754_p7, %p166_p8 }
   0xd   : > { %v8567_v0 = vld [vmem:[%s11937_s1 + $0x4] ss:$8 sps:$4 sm:$0xff] (!%p167_p9)   ;;  %s192_s29 = smul.u32 (!%p167_p9), 20, %s9235_s19  ;;  %v8569_v1 = vld [vmem:[%s11937_s1] ss:$8 sps:$4 sm:$0xff] (!%p167_p9)   ;;  %v9184_v2 = vmov (!%p167_p9), 0   ;;  %v226_v49 = vlaneseq (!%p167_p9) }
   0xe   : > { %170 = sbr.rel (%p167_p9) target bundleno = 3785 (0xec9), region = 36  ;;  %369 = vmatprep.mubr.bf16.mxu0 (!%p167_p9), %v9184_v2  ;;  %337 = vmatprep.subr.bf16.mxu0 (!%p167_p9), %v8567_v0  ;;  %v8570_v3 = vld [vmem:[%s11937_s1 + $0x14] ss:$8 sps:$4 sm:$0xff] (!%p167_p9)   ;;  %v8572_v4 = vld [vmem:[%s11937_s1 + $0x10] ss:$8 sps:$4 sm:$0xff] (!%p167_p9)   ;;  %vm306_vm0 = vcmask (!%p167_p9), 261120  }
   0xf   : > { %p193_p10 = scmp.lt.s32.totalorder (!%p167_p9), %s192_s29, 39  ;;  %338 = vmatpush1.bf16.msra.mxu0 (!%p167_p9), %v8569_v1  ;;  %v8583_v5 = vld [vmem:[%s11937_s1 + $0xa4] ss:$8 sps:$4 sm:$0xff] (!%p167_p9)   ;;  %v8585_v6 = vld [vmem:[%s11937_s1 + $0xa0] ss:$8 sps:$4 sm:$0xff] (!%p167_p9)   ;;  %v227_v50 = vshrl.u32 (!%p167_p9), %v226_v49, 7 }
  0x10   : > { %339 = vmatprep.subr.bf16.mxu0 (!%p167_p9), %v8570_v3  ;;  %v8586_v7 = vld [vmem:[%s11937_s1 + $0xb4] ss:$8 sps:$4 sm:$0xff] (!%p167_p9)   ;;  %682 = vmatprep.subr.bf16.mxu1 (!%p167_p9), %v8583_v5  ;;  %v8588_v8 = vld [vmem:[%s11937_s1 + $0xb0] ss:$8 sps:$4 sm:$0xff] (!%p167_p9)   ;;  %v8589_v9 = vld [vmem:[%s11937_s1 + $0xc4] ss:$8 sps:$4 sm:$0xff] (!%p167_p9)  }
  0x11   : > { %683 = vmatpush1.bf16.msra.mxu1 (!%p167_p9), %v8585_v6  ;;  %v8591_v11 = vld [vmem:[%s11937_s1 + $0xc0] ss:$8 sps:$4 sm:$0xff] (!%p167_p9)   ;;  %v8592_v12 = vld [vmem:[%s11937_s1 + $0xd4] ss:$8 sps:$4 sm:$0xff] (!%p167_p9)   ;;  %v8594_v13 = vld [vmem:[%s11937_s1 + $0xd0] ss:$8 sps:$4 sm:$0xff] (!%p167_p9)  }
  0x12   : > { %684 = vmatprep.subr.bf16.mxu1 (!%p167_p9), %v8586_v7  ;;  %v8595_v15 = vld [vmem:[%s11937_s1 + $0xe4] ss:$8 sps:$4 sm:$0xff] (!%p167_p9)   ;;  %v8597_v16 = vld [vmem:[%s11937_s1 + $0xe0] ss:$8 sps:$4 sm:$0xff] (!%p167_p9)   ;;  %v8598_v18 = vld [vmem:[%s11937_s1 + $0xf4] ss:$8 sps:$4 sm:$0xff] (!%p167_p9)  }
  0x13   : > { %340 = vmatpush1.bf16.msra.mxu0 (!%p167_p9), %v8572_v4  ;;  %v8600_v19 = vld [vmem:[%s11937_s1 + $0xf0] ss:$8 sps:$4 sm:$0xff] (!%p167_p9)   ;;  %v8601_v20 = vld [vmem:[%s11937_s1 + $0x104] ss:$8 sps:$4 sm:$0xff] (!%p167_p9)   ;;  %v8603_v28 = vld [vmem:[%s11937_s1 + $0x100] ss:$8 sps:$4 sm:$0xff] (!%p167_p9)  }
  0x14   : > { %v8604_v29 = vld [vmem:[%s11937_s1 + $0x114] ss:$8 sps:$4 sm:$0xff] (!%p167_p9)   ;;  %v8606_v30 = vld [vmem:[%s11937_s1 + $0x110] ss:$8 sps:$4 sm:$0xff] (!%p167_p9)   ;;  %v8607_v31 = vld [vmem:[%s11937_s1 + $0x124] ss:$8 sps:$4 sm:$0xff] (!%p167_p9)  }
  0x15   : > { %s11948_s29 = smov (!%p193_p10, %s192_s29), 39  ;;  %685 = vmatpush1.bf16.msra.mxu1 %v8588_v8  ;;  %v8609_v32 = vld [vmem:[%s11937_s1 + $0x120] ss:$8 sps:$4 sm:$0xff]   ;;  %v9367_v33 = vld [vmem:[%s11937_s1 + $0x130] ss:$8 sps:$4 sm:$0xff]   ;;  %v9458_v51 = vsub.s32 0, %v227_v50 }
  0x16   : > { %s7755_s22 = sshll.u32 %s11948_s29, 2  ;;  %686 = vmatprep.subr.bf16.mxu1 %v8589_v9  ;;  %v8612_v34 = vld [vmem:[%s11937_s1 + $0x134] ss:$8 sps:$4 sm:$0xff]   ;;  %v9375_v35 = vld [vmem:[%s11937_s1 + $0x144] ss:$8 sps:$4 sm:$0xff]   ;;  %v9463_v53 = vsub.s32 1, %v227_v50 }
  0x17   : > { %s9291_s5 = scalar_lea.vmem %s11936_s0, %s7755_s22  ;;  %1026 = vmatprep.subr.bf16.mxu0 %v8612_v34  ;;  %v9381_v36 = vld [vmem:[%s11937_s1 + $0x140] ss:$8 sps:$4 sm:$0xff]   ;;  %v9387_v37 = vld [vmem:[%s11937_s1 + $0x154] ss:$8 sps:$4 sm:$0xff]   ;;  %v9393_v38 = vld [vmem:[%s11937_s1 + $0x150] ss:$8 sps:$4 sm:$0xff]  }
  0x18   : > { %v8573_v10 = vld [vmem:[%s9291_s5] sm:$0xff]   ;;  %v8574_v14 = vld [vmem:[%s9291_s5 + $0x8] sm:$0xff]   ;;  %v8575_v17 = vld [vmem:[%s9291_s5 + $0x10] sm:$0xff]   ;;  %vm651_vm1 = vcmask 130048   ;;  %s189_s29 = sand.u32 1, %s9174_s16   ;;  %s8364_s10 = smul.u32 2560, %s9235_s19 }
  0x19   : > { %7770 = vmatmul.mubr.msk.bf16.vlgmr.msra.gmra.mrb[0].mxu0 %vm306_vm0, %v8573_v10  ;;  %687 = vmatpush1.bf16.msra.mxu1 %v8591_v11  ;;  %v8576_v21 = vld [vmem:[%s9291_s5 + $0x18] sm:$0xff]   ;;  %v8577_v22 = vld [vmem:[%s9291_s5 + $0x20] sm:$0xff]   ;;  %v8578_v23 = vld [vmem:[%s9291_s5 + $0x28] sm:$0xff]   ;;  %s8523_s8 = smul.u32 160, %s189_s29  ;;  %s11895_s19 = scalar_lea.sflag [#allocation3], %s189_s29 }
  0x1a   : > { %379 = vmatprep.mubr.bf16.mxu0 %v9184_v2  ;;  %688 = vmatprep.subr.bf16.mxu1 %v8592_v12  ;;  %v8579_v24 = vld [vmem:[%s9291_s5 + $0x30] sm:$0xff]   ;;  %v8580_v25 = vld [vmem:[%s9291_s5 + $0x38] sm:$0xff]   ;;  %v8581_v26 = vld [vmem:[%s9291_s5 + $0x40] sm:$0xff]   ;;  %s11885_s14 = scalar_lea.hbm %s11940_s4, %s8364_s10  ;;  %s9186_s22 = smov [#allocation2]  }
  0x1b   : > { %v8582_v27 = vld [vmem:[%s9291_s5 + $0x48] sm:$0xff]   ;;  %1027 = vmatpush1.bf16.msra.mxu0 %v9367_v33  ;;  %v9411_v41 = vld [vmem:[%s11937_s1 + $0x174] ss:$8 sps:$4 sm:$0xff]   ;;  %v9417_v42 = vld [vmem:[%s11937_s1 + $0x170] ss:$8 sps:$4 sm:$0xff]   ;;  %s11748_s9 = scalar_lea.vmem [#allocation2], %s8523_s8 }
  0x1c   : > { %1028 = vmatprep.subr.bf16.mxu0 %v9375_v35  ;;  %v9399_v39 = vld [vmem:[%s11937_s1 + $0x164] ss:$8 sps:$4 sm:$0xff]   ;;  %v9405_v40 = vld [vmem:[%s11937_s1 + $0x160] ss:$8 sps:$4 sm:$0xff]   ;;  %v9435_v45 = vld [vmem:[%s11937_s1 + $0x194] ss:$8 sps:$4 sm:$0xff]  }
  0x1d   : > { %689 = vmatpush1.bf16.msra.mxu1 %v8594_v13  ;;  %v9423_v43 = vld [vmem:[%s11937_s1 + $0x184] ss:$8 sps:$4 sm:$0xff]   ;;  %v9429_v44 = vld [vmem:[%s11937_s1 + $0x180] ss:$8 sps:$4 sm:$0xff]   ;;  %v9441_v46 = vld [vmem:[%s11937_s1 + $0x190] ss:$8 sps:$4 sm:$0xff]  }
  0x1e   : > { %690 = vmatprep.subr.bf16.mxu1 %v8595_v15  ;;  %v9447_v47 = vld [vmem:[%s11937_s1 + $0x1a4] ss:$8 sps:$4 sm:$0xff]   ;;  %v9453_v48 = vld [vmem:[%s11937_s1 + $0x1a0] ss:$8 sps:$4 sm:$0xff]   ;;  %s7689_s11 = sshll.u32 %s11748_s9, 4  ;;  %s9124_s23 = sshll.u32 %s9186_s22, 4  ;;  %s11887_s11 = int_to_ptr.vmem [resolvable:$true] %s7689_s11  ;;  %s9125_s23 = int_to_ptr.vmem [resolvable:$false] %s9124_s23 }
  0x1f   : > { %1029 = vmatpush1.bf16.msra.mxu0 %v9381_v36  ;;  %v224_v52 = vld [vmem:[%s11939_s3] ss:$8 sm:$0x3]  ;;  %s9120_s20 = scalar_lea.vmem %s11887_s11, 2560  ;;  %s9126_s27 = scalar_lea.vmem %s9125_s23, 5120 }
  0x20   : > { %1030 = vmatprep.subr.bf16.mxu0 %v9387_v37  ;;  %v9466_v54 = vrot.slane %v224_v52, %v9458_v51  ;;  %v9469_v55 = vrot.slane %v224_v52, %v9463_v53  ;;  %p9121_p11 = scmp.ne.s32.totalorder %s11887_s11, %s9120_s20  ;;  %p9127_p0 = scmp.lt.s32.totalorder %s11887_s11, %s9125_s23 }
  0x21   : > { %7771 = vmatmul.mubr.msk.bf16.gmra.mrb[4].mxu0 %vm306_vm0, %v8574_v14  ;;  %691 = vmatpush1.bf16.msra.mxu1 %v8597_v16  ;;  %p9128_p1 = scmp.lt.s32.totalorder %s9126_s27, %s9120_s20 }
  0x22   : > { %389 = vmatprep.mubr.bf16.mxu0 %v9184_v2  ;;  %692 = vmatprep.subr.bf16.mxu1 %v8598_v18  ;;  %p9122_p12 = pnand %p9121_p11, %p9252_p5 }
  0x23   : > { %1031 = vmatpush1.bf16.msra.mxu0 %v9393_v38  ;;  %p9129_p2 = por %p9128_p1, %p9127_p0 }
  0x24   : > { %1032 = vmatprep.subr.bf16.mxu0 %v9399_v39  ;;  %p9123_p13 = pneg %p9122_p12 }
  0x25   : > { %693 = vmatpush1.bf16.msra.mxu1 %v8600_v19 }
  0x26   : > { %694 = vmatprep.subr.bf16.mxu1 %v8601_v20  ;;  %p9130_p3 = pnand %p9129_p2, %p9123_p13 }
  0x27   : > { %1033 = vmatpush1.bf16.msra.mxu0 %v9405_v40 }
  0x28   : > { %1034 = vmatprep.subr.bf16.mxu0 %v9411_v41 }
  0x29   : > { %7772 = vmatmul.mubr.msk.bf16.gmra.mrb[8].mxu0 %vm306_vm0, %v8575_v17  ;;  %695 = vmatpush1.bf16.msra.mxu1 %v8603_v28 }
  0x2a   : > { %399 = vmatprep.mubr.bf16.mxu0 %v9184_v2  ;;  %696 = vmatprep.subr.bf16.mxu1 %v8604_v29 }
  0x2b   : > { %1035 = vmatpush1.bf16.msra.mxu0 %v9417_v42 }
  0x2c   : > { %1036 = vmatprep.subr.bf16.mxu0 %v9423_v43 }
  0x2d   : > { %697 = vmatpush1.bf16.msra.mxu1 %v8606_v30 }
  0x2e   : > { %698 = vmatprep.subr.bf16.mxu1 %v8607_v31 }
  0x2f   : > { %1037 = vmatpush1.bf16.msra.mxu0 %v9429_v44 }
  0x30   : > { %1038 = vmatprep.subr.bf16.mxu0 %v9435_v45 }
  0x31   : > { %7773 = vmatmul.mubr.msk.bf16.gmra.mrb[12].mxu0 %vm306_vm0, %v8576_v21  ;;  %699 = vmatpush1.bf16.msra.mxu1 %v8609_v32 }
  0x32   : > { %409 = vmatprep.mubr.bf16.mxu0 %v9184_v2  ;;  %8365 = vmatprep.subr.bf16.mxu1 %v8612_v34 }
  0x33   : > { %1039 = vmatpush1.bf16.msra.mxu0 %v9441_v46 }
  0x34   : > { %1040 = vmatprep.subr.bf16.mxu0 %v9447_v47 }
  0x37   : > { %1041 = vmatpush1.bf16.msra.mxu0 %v9453_v48 }
  0x39   : > { %7774 = vmatmul.mubr.msk.bf16.gmra.mrb[16].mxu0 %vm306_vm0, %v8577_v22 }
  0x3a   : > { %419 = vmatprep.mubr.bf16.mxu0 %v9184_v2 }
  0x41   : > { %7775 = vmatmul.mubr.msk.bf16.gmra.mrb[20].mxu0 %vm306_vm0, %v8578_v23 }
  0x42   : > { %429 = vmatprep.mubr.bf16.mxu0 %v9184_v2 }
  0x49   : > { %7776 = vmatmul.mubr.msk.bf16.gmra.mrb[24].mxu0 %vm306_vm0, %v8579_v24 }
  0x4a   : > { %439 = vmatprep.mubr.bf16.mxu0 %v9184_v2 }
  0x51   : > { %7777 = vmatmul.mubr.msk.bf16.gmra.mrb[28].mxu0 %vm306_vm0, %v8580_v25 }
  0x52   : > { %449 = vmatprep.mubr.bf16.mxu0 %v9184_v2 }
  0x59   : > { %7778 = vmatmul.mubr.msk.bf16.gmra.mrb[32].mxu0 %vm306_vm0, %v8581_v26 }
  0x5a   : > { %459 = vmatprep.mubr.bf16.mxu0 %v9184_v2 }
  0x61   : > { %7779 = vmatmul.mubr.msk.bf16.gmra.mrb[36].mxu0 %vm306_vm0, %v8582_v27 }
  0xec   : > { %v371_v56 = vpop.f32.mrb[0].mxu0 }
  0xed   : > { %v372_v57 = vadd.f32 %v371_v56, %v9466_v54  ;;  %v373_v58 = vpop.f32.mrb[1].mxu0 }
  0xee   : > { %v374_v59 = vadd.f32 %v373_v58, %v9469_v55  ;;  %v375_v60 = vpop.f32.mrb[2].mxu0 }
  0xef   : > { %v376_v61 = vadd.f32 %v375_v60, %v9466_v54  ;;  %v377_v62 = vpop.f32.mrb[3].mxu0  ;;  %v470_v0 = vmax.f32 %v372_v57, 0.0 }
  0xf0   : > { %v378_v63 = vadd.f32 %v377_v62, %v9469_v55  ;;  %v471_v3 = vmax.f32 %v374_v59, 0.0 }
  0xf1   : > { %v472_v1 = vmax.f32 %v376_v61, 0.0 }
  0xf2   : > { %v473_v4 = vmax.f32 %v378_v63, 0.0 }
  0xf3   : > { %v510_v5 = vpack.c.bf16 %v472_v1, %v470_v0 }
  0xf4   : > { %v381_v6 = vpop.f32.mrb[4].mxu0  ;;  %v511_v7 = vpack.c.bf16 %v473_v4, %v471_v3 }
  0xf5   : > { %v382_v8 = vadd.f32 %v381_v6, %v9466_v54  ;;  %v383_v9 = vpop.f32.mrb[5].mxu0 }
  0xf6   : > { %v384_v10 = vadd.f32 %v383_v9, %v9469_v55  ;;  %v385_v11 = vpop.f32.mrb[6].mxu0  ;;  %7799 = vmatprep.mubr.msk.bf16.mxu1 %vm651_vm1, %v511_v7 }
  0xf7   : > { %v386_v12 = vadd.f32 %v385_v11, %v9466_v54  ;;  %v387_v13 = vpop.f32.mrb[7].mxu0  ;;  %715 = vmatmul.mubr.bf16.vlgmr.msra.gmra.mrb[0].mxu1 %v510_v5  ;;  %v474_v15 = vmax.f32 %v382_v8, 0.0 }
  0xf8   : > { %v388_v14 = vadd.f32 %v387_v13, %v9469_v55  ;;  %8374 = vmatpush1.bf16.msra.mxu1 %v9367_v33  ;;  %v475_v17 = vmax.f32 %v384_v10, 0.0 }
  0xf9   : > { %v476_v16 = vmax.f32 %v386_v12, 0.0  ;;  %8366 = vmatprep.subr.bf16.mxu1 %v9375_v35 }
  0xfa   : > { %v477_v18 = vmax.f32 %v388_v14, 0.0 }
  0xfb   : > { %v512_v19 = vpack.c.bf16 %v476_v16, %v474_v15 }
  0xfc   : > { %v513_v20 = vpack.c.bf16 %v477_v18, %v475_v17  ;;  %v391_v21 = vpop.f32.mrb[8].mxu0  ;;  %8375 = vmatpush1.bf16.msra.mxu1 %v9381_v36 }
  0xfd   : > { %v392_v22 = vadd.f32 %v391_v21, %v9466_v54  ;;  %v393_v23 = vpop.f32.mrb[9].mxu0  ;;  %8367 = vmatprep.subr.bf16.mxu1 %v9387_v37 }
  0xfe   : > { %v394_v24 = vadd.f32 %v393_v23, %v9469_v55  ;;  %v395_v25 = vpop.f32.mrb[10].mxu0  ;;  %7800 = vmatprep.mubr.msk.bf16.mxu1 %vm651_vm1, %v513_v20 }
  0xff   : > { %v396_v26 = vadd.f32 %v395_v25, %v9466_v54  ;;  %v397_v27 = vpop.f32.mrb[11].mxu0  ;;  %725 = vmatmul.mubr.bf16.gmra.mrb[4].mxu1 %v512_v19  ;;  %v478_v29 = vmax.f32 %v392_v22, 0.0 }
 0x100   : > { %v398_v28 = vadd.f32 %v397_v27, %v9469_v55  ;;  %8376 = vmatpush1.bf16.msra.mxu1 %v9393_v38  ;;  %v479_v31 = vmax.f32 %v394_v24, 0.0 }
 0x101   : > { %v480_v30 = vmax.f32 %v396_v26, 0.0  ;;  %8368 = vmatprep.subr.bf16.mxu1 %v9399_v39 }
 0x102   : > { %v481_v32 = vmax.f32 %v398_v28, 0.0 }
 0x103   : > { %v514_v33 = vpack.c.bf16 %v480_v30, %v478_v29 }
 0x104   : > { %v515_v34 = vpack.c.bf16 %v481_v32, %v479_v31  ;;  %v401_v35 = vpop.f32.mrb[12].mxu0  ;;  %8377 = vmatpush1.bf16.msra.mxu1 %v9405_v40 }
 0x105   : > { %v402_v36 = vadd.f32 %v401_v35, %v9466_v54  ;;  %v403_v37 = vpop.f32.mrb[13].mxu0  ;;  %8369 = vmatprep.subr.bf16.mxu1 %v9411_v41 }
 0x106   : > { %v404_v50 = vadd.f32 %v403_v37, %v9469_v55  ;;  %v405_v52 = vpop.f32.mrb[14].mxu0  ;;  %7801 = vmatprep.mubr.msk.bf16.mxu1 %vm651_vm1, %v515_v34 }
 0x107   : > { %v406_v38 = vadd.f32 %v405_v52, %v9466_v54  ;;  %v407_v39 = vpop.f32.mrb[15].mxu0  ;;  %735 = vmatmul.mubr.bf16.gmra.mrb[8].mxu1 %v514_v33  ;;  %v482_v57 = vmax.f32 %v402_v36, 0.0 }
 0x108   : > { %v408_v56 = vadd.f32 %v407_v39, %v9469_v55  ;;  %8378 = vmatpush1.bf16.msra.mxu1 %v9417_v42  ;;  %v483_v58 = vmax.f32 %v404_v50, 0.0 }
 0x109   : > { %v484_v40 = vmax.f32 %v406_v38, 0.0  ;;  %8370 = vmatprep.subr.bf16.mxu1 %v9423_v43 }
 0x10a   : > { %v485_v59 = vmax.f32 %v408_v56, 0.0 }
 0x10b   : > { %v516_v41 = vpack.c.bf16 %v484_v40, %v482_v57 }
 0x10c   : > { %v517_v60 = vpack.c.bf16 %v485_v59, %v483_v58  ;;  %v411_v61 = vpop.f32.mrb[16].mxu0  ;;  %8379 = vmatpush1.bf16.msra.mxu1 %v9429_v44 }
 0x10d   : > { %v412_v62 = vadd.f32 %v411_v61, %v9466_v54  ;;  %v413_v63 = vpop.f32.mrb[17].mxu0  ;;  %8371 = vmatprep.subr.bf16.mxu1 %v9435_v45 }
 0x10e   : > { %v414_v0 = vadd.f32 %v413_v63, %v9469_v55  ;;  %v415_v1 = vpop.f32.mrb[18].mxu0  ;;  %7802 = vmatprep.mubr.msk.bf16.mxu1 %vm651_vm1, %v517_v60 }
 0x10f   : > { %v416_v42 = vadd.f32 %v415_v1, %v9466_v54  ;;  %v417_v43 = vpop.f32.mrb[19].mxu0  ;;  %745 = vmatmul.mubr.bf16.gmra.mrb[12].mxu1 %v516_v41  ;;  %v486_v4 = vmax.f32 %v412_v62, 0.0 }
 0x110   : > { %v418_v3 = vadd.f32 %v417_v43, %v9469_v55  ;;  %8380 = vmatpush1.bf16.msra.mxu1 %v9441_v46  ;;  %v487_v5 = vmax.f32 %v414_v0, 0.0 }
 0x111   : > { %v488_v44 = vmax.f32 %v416_v42, 0.0  ;;  %8372 = vmatprep.subr.bf16.mxu1 %v9447_v47 }
 0x112   : > { %v489_v6 = vmax.f32 %v418_v3, 0.0 }
 0x113   : > { %v518_v45 = vpack.c.bf16 %v488_v44, %v486_v4 }
 0x114   : > { %v519_v7 = vpack.c.bf16 %v489_v6, %v487_v5  ;;  %v421_v8 = vpop.f32.mrb[20].mxu0  ;;  %8381 = vmatpush1.bf16.msra.mxu1 %v9453_v48 }
 0x115   : > { %v422_v9 = vadd.f32 %v421_v8, %v9466_v54  ;;  %v423_v10 = vpop.f32.mrb[21].mxu0 }
 0x116   : > { %v424_v11 = vadd.f32 %v423_v10, %v9469_v55  ;;  %v425_v12 = vpop.f32.mrb[22].mxu0  ;;  %7803 = vmatprep.mubr.msk.bf16.mxu1 %vm651_vm1, %v519_v7 }
 0x117   : > { %v426_v46 = vadd.f32 %v425_v12, %v9466_v54  ;;  %v427_v13 = vpop.f32.mrb[23].mxu0  ;;  %755 = vmatmul.mubr.bf16.gmra.mrb[16].mxu1 %v518_v45  ;;  %v490_v14 = vmax.f32 %v422_v9, 0.0 }
 0x118   : > { %v428_v47 = vadd.f32 %v427_v13, %v9469_v55  ;;  %v491_v16 = vmax.f32 %v424_v11, 0.0 }
 0x119   : > { %v492_v15 = vmax.f32 %v426_v46, 0.0 }
 0x11a   : > { %v493_v17 = vmax.f32 %v428_v47, 0.0 }
 0x11b   : > { %v520_v18 = vpack.c.bf16 %v492_v15, %v490_v14 }
 0x11c   : > { %v521_v48 = vpack.c.bf16 %v493_v17, %v491_v16  ;;  %v431_v19 = vpop.f32.mrb[24].mxu0 }
 0x11d   : > { %v432_v20 = vadd.f32 %v431_v19, %v9466_v54  ;;  %v433_v21 = vpop.f32.mrb[25].mxu0 }
 0x11e   : > { %v434_v22 = vadd.f32 %v433_v21, %v9469_v55  ;;  %v435_v23 = vpop.f32.mrb[26].mxu0  ;;  %7804 = vmatprep.mubr.msk.bf16.mxu1 %vm651_vm1, %v521_v48  ;;  %v7780_v48 = vld [vmem:[%s11939_s3 + $0x5] ss:$8 sm:$0x3] }
 0x11f   : > { %v436_v24 = vadd.f32 %v435_v23, %v9466_v54  ;;  %v437_v25 = vpop.f32.mrb[27].mxu0  ;;  %765 = vmatmul.mubr.bf16.gmra.mrb[20].mxu1 %v520_v18  ;;  %v494_v27 = vmax.f32 %v432_v20, 0.0  ;;  %v8636_v18 = vld [vmem:[%s11937_s1 + $0x1b4] ss:$8 sps:$4 sm:$0xff]   ;;  %v9550_v19 = vrot.slane %v7780_v48, %v9458_v51  ;;  %v9553_v20 = vrot.slane %v7780_v48, %v9463_v53 }
 0x120   : > { %v438_v26 = vadd.f32 %v437_v25, %v9469_v55  ;;  %v495_v29 = vmax.f32 %v434_v22, 0.0  ;;  %1042 = vmatprep.subr.bf16.mxu0 %v8636_v18  ;;  %8373 = vmatprep.subr.bf16.mxu1 %v8636_v18 }
 0x121   : > { %v496_v28 = vmax.f32 %v436_v24, 0.0 }
 0x122   : > { %v497_v30 = vmax.f32 %v438_v26, 0.0 }
 0x123   : > { %v522_v31 = vpack.c.bf16 %v496_v28, %v494_v27 }
 0x124   : > { %v523_v32 = vpack.c.bf16 %v497_v30, %v495_v29  ;;  %v441_v33 = vpop.f32.mrb[28].mxu0 }
 0x125   : > { %v442_v34 = vadd.f32 %v441_v33, %v9466_v54  ;;  %v443_v35 = vpop.f32.mrb[29].mxu0 }
 0x126   : > { %v444_v36 = vadd.f32 %v443_v35, %v9469_v55  ;;  %v445_v37 = vpop.f32.mrb[30].mxu0  ;;  %7805 = vmatprep.mubr.msk.bf16.mxu1 %vm651_vm1, %v523_v32 }
 0x127   : > { %v446_v50 = vadd.f32 %v445_v37, %v9466_v54  ;;  %v447_v52 = vpop.f32.mrb[31].mxu0  ;;  %775 = vmatmul.mubr.bf16.gmra.mrb[24].mxu1 %v522_v31  ;;  %v498_v39 = vmax.f32 %v442_v34, 0.0 }
 0x128   : > { %v448_v38 = vadd.f32 %v447_v52, %v9469_v55  ;;  %v499_v57 = vmax.f32 %v444_v36, 0.0  ;;  %v8637_v36 = vld [vmem:[%s11937_s1 + $0x20] ss:$8 sps:$4 sm:$0xff]   ;;  %v8642_v52 = vld [vmem:[%s11937_s1 + $0x34] ss:$8 sps:$4 sm:$0xff]  }
 0x129   : > { %v500_v56 = vmax.f32 %v446_v50, 0.0 }
 0x12a   : > { %v501_v40 = vmax.f32 %v448_v38, 0.0 }
 0x12b   : > { %v524_v58 = vpack.c.bf16 %v500_v56, %v498_v39 }
 0x12c   : > { %v525_v59 = vpack.c.bf16 %v501_v40, %v499_v57  ;;  %v451_v41 = vpop.f32.mrb[32].mxu0 }
 0x12d   : > { %v452_v60 = vadd.f32 %v451_v41, %v9466_v54  ;;  %v453_v61 = vpop.f32.mrb[33].mxu0 }
 0x12e   : > { %v454_v62 = vadd.f32 %v453_v61, %v9469_v55  ;;  %v455_v63 = vpop.f32.mrb[34].mxu0  ;;  %7806 = vmatprep.mubr.msk.bf16.mxu1 %vm651_vm1, %v525_v59 }
 0x12f   : > { %v456_v0 = vadd.f32 %v455_v63, %v9466_v54  ;;  %v457_v1 = vpop.f32.mrb[35].mxu0  ;;  %785 = vmatmul.mubr.bf16.gmra.mrb[28].mxu1 %v524_v58  ;;  %v502_v43 = vmax.f32 %v452_v60, 0.0  ;;  %v8640_v58 = vld [vmem:[%s11937_s1 + $0x30] ss:$8 sps:$4 sm:$0xff]  }
 0x130   : > { %v458_v42 = vadd.f32 %v457_v1, %v9469_v55  ;;  %v503_v4 = vmax.f32 %v454_v62, 0.0 }
 0x131   : > { %v504_v3 = vmax.f32 %v456_v0, 0.0 }
 0x132   : > { %v505_v44 = vmax.f32 %v458_v42, 0.0 }
 0x133   : > { %v526_v5 = vpack.c.bf16 %v504_v3, %v502_v43 }
 0x134   : > { %v527_v6 = vpack.c.bf16 %v505_v44, %v503_v4  ;;  %v461_v45 = vpop.f32.mrb[36].mxu0 }
 0x135   : > { %v462_v7 = vadd.f32 %v461_v45, %v9466_v54  ;;  %v463_v8 = vpop.f32.mrb[37].mxu0 }
 0x136   : > { %v464_v9 = vadd.f32 %v463_v8, %v9469_v55  ;;  %v465_v10 = vpop.f32.mrb[38].mxu0  ;;  %7807 = vmatprep.mubr.msk.bf16.mxu1 %vm651_vm1, %v527_v6 }
 0x137   : > { %v466_v11 = vadd.f32 %v465_v10, %v9466_v54  ;;  %v467_v12 = vpop.f32.mrb[39].mxu0  ;;  %795 = vmatmul.mubr.bf16.gmra.mrb[32].mxu1 %v526_v5  ;;  %v506_v13 = vmax.f32 %v462_v7, 0.0  ;;  %v8634_v54 = vld [vmem:[%s11937_s1 + $0x1b0] ss:$8 sps:$4 sm:$0xff]  }
 0x138   : > { %v468_v46 = vadd.f32 %v467_v12, %v9469_v55  ;;  %v507_v14 = vmax.f32 %v464_v9, 0.0  ;;  %1043 = vmatpush1.bf16.msra.mxu0 %v8634_v54  ;;  %8382 = vmatpush1.bf16.msra.mxu1 %v8634_v54  ;;  %v8639_v55 = vld [vmem:[%s11937_s1 + $0x24] ss:$8 sps:$4 sm:$0xff]  }
 0x139   : > { %v508_v47 = vmax.f32 %v466_v11, 0.0  ;;  %1322 = vmatprep.subr.bf16.mxu1 %v9184_v2  ;;  %1483 = vmatprep.subr.bf16.mxu0 %v8639_v55  ;;  %v8643_v12 = vld [vmem:[%s11938_s2] sm:$0xff]   ;;  %v8644_v54 = vld [vmem:[%s11938_s2 + $0x8] sm:$0xff]  }
 0x13a   : > { %v509_v15 = vmax.f32 %v468_v46, 0.0 }
 0x13b   : > { %v528_v16 = vpack.c.bf16 %v508_v47, %v506_v13 }
 0x13c   : > { %v529_v17 = vpack.c.bf16 %v509_v15, %v507_v14 }
 0x13e   : > { %7808 = vmatprep.mubr.msk.bf16.mxu1 %vm651_vm1, %v529_v17  ;;  %v9110_v17 = vld [vmem:[%s9291_s5] sm:$0xff]  }
 0x13f   : > { %805 = vmatmul.mubr.bf16.gmra.mrb[36].mxu1 %v528_v16 }
 0x1ca   : > { %v716_v21 = vpop.f32.mrb[0].mxu1 }
 0x1cb   : > { %v717_v22 = vadd.f32 %v716_v21, %v9550_v19  ;;  %v718_v23 = vpop.f32.mrb[1].mxu1 }
 0x1cc   : > { %v719_v24 = vadd.f32 %v718_v23, %v9553_v20  ;;  %v720_v25 = vpop.f32.mrb[2].mxu1 }
 0x1cd   : > { %v721_v26 = vadd.f32 %v720_v25, %v9550_v19  ;;  %v722_v27 = vpop.f32.mrb[3].mxu1  ;;  %v815_v29 = vmax.f32 %v717_v22, 0.0 }
 0x1ce   : > { %v723_v28 = vadd.f32 %v722_v27, %v9553_v20  ;;  %v816_v31 = vmax.f32 %v719_v24, 0.0 }
 0x1cf   : > { %v817_v30 = vmax.f32 %v721_v26, 0.0  ;;  %v8645_v26 = vld [vmem:[%s11938_s2 + $0x10] sm:$0xff]  }
 0x1d0   : > { %v818_v32 = vmax.f32 %v723_v28, 0.0 }
 0x1d1   : > { %v855_v33 = vpack.c.bf16 %v817_v30, %v815_v29 }
 0x1d2   : > { %v856_v34 = vpack.c.bf16 %v818_v32, %v816_v31  ;;  %v726_v35 = vpop.f32.mrb[4].mxu1 }
 0x1d3   : > { %v727_v37 = vadd.f32 %v726_v35, %v9550_v19  ;;  %v728_v50 = vpop.f32.mrb[5].mxu1  ;;  %v8646_v35 = vld [vmem:[%s11938_s2 + $0x18] sm:$0xff]  }
 0x1d4   : > { %v729_v38 = vadd.f32 %v728_v50, %v9553_v20  ;;  %v730_v39 = vpop.f32.mrb[6].mxu1  ;;  %7828 = vmatprep.mubr.msk.bf16.mxu0 %vm651_vm1, %v856_v34 }
 0x1d5   : > { %v731_v56 = vadd.f32 %v730_v39, %v9550_v19  ;;  %v732_v57 = vpop.f32.mrb[7].mxu1  ;;  %1059 = vmatmul.mubr.bf16.vlgmr.msra.gmra.mrb[40].mxu0 %v855_v33  ;;  %v819_v59 = vmax.f32 %v727_v37, 0.0  ;;  %v9111_v33 = vld [vmem:[%s9291_s5 + $0x8] sm:$0xff]  }
 0x1d6   : > { %v733_v40 = vadd.f32 %v732_v57, %v9553_v20  ;;  %1484 = vmatpush1.bf16.msra.mxu0 %v8637_v36  ;;  %v820_v60 = vmax.f32 %v729_v38, 0.0  ;;  %v8647_v57 = vld [vmem:[%s11938_s2 + $0x20] sm:$0xff]  }
 0x1d7   : > { %v821_v41 = vmax.f32 %v731_v56, 0.0  ;;  %1485 = vmatprep.subr.bf16.mxu0 %v8642_v52 }
 0x1d8   : > { %v822_v61 = vmax.f32 %v733_v40, 0.0 }
 0x1d9   : > { %v857_v62 = vpack.c.bf16 %v821_v41, %v819_v59 }
 0x1da   : > { %v858_v63 = vpack.c.bf16 %v822_v61, %v820_v60  ;;  %v736_v0 = vpop.f32.mrb[8].mxu1  ;;  %1486 = vmatpush1.bf16.msra.mxu0 %v8640_v58 }
 0x1db   : > { %v737_v1 = vadd.f32 %v736_v0, %v9550_v19  ;;  %v738_v42 = vpop.f32.mrb[9].mxu1  ;;  %v8648_v0 = vld [vmem:[%s11938_s2 + $0x28] sm:$0xff]  }
 0x1dc   : > { %v739_v43 = vadd.f32 %v738_v42, %v9553_v20  ;;  %v740_v3 = vpop.f32.mrb[10].mxu1  ;;  %7829 = vmatprep.mubr.msk.bf16.mxu0 %vm651_vm1, %v858_v63 }
 0x1dd   : > { %v741_v4 = vadd.f32 %v740_v3, %v9550_v19  ;;  %v742_v44 = vpop.f32.mrb[11].mxu1  ;;  %1069 = vmatmul.mubr.bf16.gmra.mrb[44].mxu0 %v857_v62  ;;  %v823_v6 = vmax.f32 %v737_v1, 0.0  ;;  %v9112_v62 = vld [vmem:[%s9291_s5 + $0x10] sm:$0xff]  }
 0x1de   : > { %v743_v5 = vadd.f32 %v742_v44, %v9553_v20  ;;  %1515 = vmatprep.mubr.bf16.mxu0 %v9184_v2  ;;  %v824_v7 = vmax.f32 %v739_v43, 0.0 }
 0x1df   : > { %v825_v45 = vmax.f32 %v741_v4, 0.0 }
 0x1e0   : > { %v826_v8 = vmax.f32 %v743_v5, 0.0 }
 0x1e1   : > { %v859_v9 = vpack.c.bf16 %v825_v45, %v823_v6  ;;  %v8649_v6 = vld [vmem:[%s11938_s2 + $0x30] sm:$0xff]  }
 0x1e2   : > { %v860_v10 = vpack.c.bf16 %v826_v8, %v824_v7  ;;  %v746_v11 = vpop.f32.mrb[12].mxu1 }
 0x1e3   : > { %v747_v46 = vadd.f32 %v746_v11, %v9550_v19  ;;  %v748_v13 = vpop.f32.mrb[13].mxu1 }
 0x1e4   : > { %v749_v47 = vadd.f32 %v748_v13, %v9553_v20  ;;  %v750_v14 = vpop.f32.mrb[14].mxu1  ;;  %7830 = vmatprep.mubr.msk.bf16.mxu1 %vm651_vm1, %v860_v10  ;;  %v8650_v13 = vld [vmem:[%s11938_s2 + $0x38] sm:$0xff]  }
 0x1e5   : > { %v751_v15 = vadd.f32 %v750_v14, %v9550_v19  ;;  %v752_v16 = vpop.f32.mrb[15].mxu1  ;;  %1079 = vmatmul.mubr.bf16.vlgmr.msra.gmra.mrb[40].mxu1 %v859_v9  ;;  %7862 = vmatmul.mubr.msk.bf16.vlgmr.msra.gmra.mrb[48].mxu0 %vm306_vm0, %v9110_v17  ;;  %v827_v55 = vmax.f32 %v747_v46, 0.0 }
 0x1e6   : > { %v753_v18 = vadd.f32 %v752_v16, %v9553_v20  ;;  %1525 = vmatprep.mubr.bf16.mxu0 %v9184_v2  ;;  %1323 = vmatpush1.bf16.msra.mxu1 %v8643_v12  ;;  %v828_v21 = vmax.f32 %v749_v47, 0.0  ;;  %v9113_v12 = vld [vmem:[%s9291_s5 + $0x18] sm:$0xff]  }
 0x1e7   : > { %v829_v48 = vmax.f32 %v751_v15, 0.0  ;;  %1324 = vmatprep.subr.bf16.mxu1 %v9184_v2 }
 0x1e8   : > { %v830_v22 = vmax.f32 %v753_v18, 0.0 }
 0x1e9   : > { %v861_v23 = vpack.c.bf16 %v829_v48, %v827_v55 }
 0x1ea   : > { %v862_v24 = vpack.c.bf16 %v830_v22, %v828_v21  ;;  %v756_v25 = vpop.f32.mrb[16].mxu1  ;;  %1325 = vmatpush1.bf16.msra.mxu1 %v8644_v54 }
 0x1eb   : > { %v757_v27 = vadd.f32 %v756_v25, %v9550_v19  ;;  %v758_v28 = vpop.f32.mrb[17].mxu1  ;;  %1326 = vmatprep.subr.bf16.mxu1 %v9184_v2  ;;  %v9114_v25 = vld [vmem:[%s9291_s5 + $0x20] sm:$0xff]  }
 0x1ec   : > { %v759_v29 = vadd.f32 %v758_v28, %v9553_v20  ;;  %v760_v30 = vpop.f32.mrb[18].mxu1  ;;  %7831 = vmatprep.mubr.msk.bf16.mxu1 %vm651_vm1, %v862_v24 }
 0x1ed   : > { %v761_v31 = vadd.f32 %v760_v30, %v9550_v19  ;;  %v762_v32 = vpop.f32.mrb[19].mxu1  ;;  %1089 = vmatmul.mubr.bf16.gmra.mrb[44].mxu1 %v861_v23  ;;  %7863 = vmatmul.mubr.msk.bf16.gmra.mrb[52].mxu0 %vm306_vm0, %v9111_v33  ;;  %v831_v36 = vmax.f32 %v757_v27, 0.0 }
 0x1ee   : > { %v763_v34 = vadd.f32 %v762_v32, %v9553_v20  ;;  %1535 = vmatprep.mubr.bf16.mxu0 %v9184_v2  ;;  %1327 = vmatpush1.bf16.msra.mxu1 %v8645_v26  ;;  %v832_v50 = vmax.f32 %v759_v29, 0.0 }
 0x1ef   : > { %v833_v37 = vmax.f32 %v761_v31, 0.0  ;;  %1328 = vmatprep.subr.bf16.mxu1 %v9184_v2 }
 0x1f0   : > { %v834_v52 = vmax.f32 %v763_v34, 0.0 }
 0x1f1   : > { %v863_v38 = vpack.c.bf16 %v833_v37, %v831_v36 }
 0x1f2   : > { %v864_v39 = vpack.c.bf16 %v834_v52, %v832_v50  ;;  %v766_v56 = vpop.f32.mrb[20].mxu1  ;;  %1329 = vmatpush1.bf16.msra.mxu1 %v8646_v35 }
 0x1f3   : > { %v767_v40 = vadd.f32 %v766_v56, %v9550_v19  ;;  %v768_v58 = vpop.f32.mrb[21].mxu1  ;;  %1330 = vmatprep.subr.bf16.mxu1 %v9184_v2 }
 0x1f4   : > { %v769_v59 = vadd.f32 %v768_v58, %v9553_v20  ;;  %v770_v41 = vpop.f32.mrb[22].mxu1  ;;  %7832 = vmatprep.mubr.msk.bf16.mxu1 %vm651_vm1, %v864_v39 }
 0x1f5   : > { %v771_v60 = vadd.f32 %v770_v41, %v9550_v19  ;;  %v772_v61 = vpop.f32.mrb[23].mxu1  ;;  %1099 = vmatmul.mubr.bf16.gmra.mrb[48].mxu1 %v863_v38  ;;  %7864 = vmatmul.mubr.msk.bf16.gmra.mrb[56].mxu0 %vm306_vm0, %v9112_v62  ;;  %v835_v1 = vmax.f32 %v767_v40, 0.0  ;;  %v9115_v38 = vld [vmem:[%s9291_s5 + $0x28] sm:$0xff]  }
 0x1f6   : > { %v773_v63 = vadd.f32 %v772_v61, %v9553_v20  ;;  %1545 = vmatprep.mubr.bf16.mxu0 %v9184_v2  ;;  %1331 = vmatpush1.bf16.msra.mxu1 %v8647_v57  ;;  %v836_v43 = vmax.f32 %v769_v59, 0.0 }
 0x1f7   : > { %v837_v42 = vmax.f32 %v771_v60, 0.0  ;;  %1332 = vmatprep.subr.bf16.mxu1 %v9184_v2 }
 0x1f8   : > { %v838_v3 = vmax.f32 %v773_v63, 0.0 }
 0x1f9   : > { %v865_v4 = vpack.c.bf16 %v837_v42, %v835_v1 }
 0x1fa   : > { %v866_v44 = vpack.c.bf16 %v838_v3, %v836_v43  ;;  %v776_v5 = vpop.f32.mrb[24].mxu1  ;;  %1333 = vmatpush1.bf16.msra.mxu1 %v8648_v0  ;;  %v9116_v43 = vld [vmem:[%s9291_s5 + $0x30] sm:$0xff]  }
 0x1fb   : > { %v777_v45 = vadd.f32 %v776_v5, %v9550_v19  ;;  %v778_v7 = vpop.f32.mrb[25].mxu1  ;;  %1334 = vmatprep.subr.bf16.mxu1 %v9184_v2 }
 0x1fc   : > { %v779_v8 = vadd.f32 %v778_v7, %v9553_v20  ;;  %v780_v9 = vpop.f32.mrb[26].mxu1  ;;  %7833 = vmatprep.mubr.msk.bf16.mxu1 %vm651_vm1, %v866_v44 }
 0x1fd   : > { %v781_v10 = vadd.f32 %v780_v9, %v9550_v19  ;;  %v782_v11 = vpop.f32.mrb[27].mxu1  ;;  %1109 = vmatmul.mubr.bf16.gmra.mrb[52].mxu1 %v865_v4  ;;  %7865 = vmatmul.mubr.msk.bf16.gmra.mrb[60].mxu0 %vm306_vm0, %v9113_v12  ;;  %v839_v47 = vmax.f32 %v777_v45, 0.0  ;;  %v8651_v9 = vld [vmem:[%s11938_s2 + $0x40] sm:$0xff]  }
 0x1fe   : > { %v783_v46 = vadd.f32 %v782_v11, %v9553_v20  ;;  %1555 = vmatprep.mubr.bf16.mxu0 %v9184_v2  ;;  %1335 = vmatpush1.bf16.msra.mxu1 %v8649_v6  ;;  %v840_v15 = vmax.f32 %v779_v8, 0.0  ;;  %v9118_v8 = vld [vmem:[%s9291_s5 + $0x40] sm:$0xff]  }
 0x1ff   : > { %v841_v14 = vmax.f32 %v781_v10, 0.0  ;;  %1336 = vmatprep.subr.bf16.mxu1 %v9184_v2  ;;  %v8654_v10 = vld [vmem:[%s11937_s1 + $0x1c4] ss:$8 sps:$4 sm:$0xff]  }
 0x200   : > { %v842_v16 = vmax.f32 %v783_v46, 0.0  ;;  %v7809_v11 = vld [vmem:[%s11939_s3 + $0x6] ss:$8 sm:$0x3] }
 0x201   : > { %v867_v17 = vpack.c.bf16 %v841_v14, %v839_v47  ;;  %v9686_v12 = vrot.slane %v7809_v11, %v9458_v51  ;;  %v9689_v46 = vrot.slane %v7809_v11, %v9463_v53 }
 0x202   : > { %v868_v18 = vpack.c.bf16 %v842_v16, %v840_v15  ;;  %v786_v54 = vpop.f32.mrb[28].mxu1  ;;  %1337 = vmatpush1.bf16.msra.mxu1 %v8650_v13 }
 0x203   : > { %v787_v55 = vadd.f32 %v786_v54, %v9550_v19  ;;  %v788_v48 = vpop.f32.mrb[29].mxu1  ;;  %1338 = vmatprep.subr.bf16.mxu1 %v9184_v2 }
 0x204   : > { %v789_v21 = vadd.f32 %v788_v48, %v9553_v20  ;;  %v790_v22 = vpop.f32.mrb[30].mxu1  ;;  %7834 = vmatprep.mubr.msk.bf16.mxu1 %vm651_vm1, %v868_v18 }
 0x205   : > { %v791_v23 = vadd.f32 %v790_v22, %v9550_v19  ;;  %v792_v24 = vpop.f32.mrb[31].mxu1  ;;  %1119 = vmatmul.mubr.bf16.gmra.mrb[56].mxu1 %v867_v17  ;;  %7866 = vmatmul.mubr.msk.bf16.gmra.mrb[64].mxu0 %vm306_vm0, %v9114_v25  ;;  %v843_v27 = vmax.f32 %v787_v55, 0.0 }
 0x206   : > { %v793_v26 = vadd.f32 %v792_v24, %v9553_v20  ;;  %1565 = vmatprep.mubr.bf16.mxu0 %v9184_v2  ;;  %v844_v29 = vmax.f32 %v789_v21, 0.0  ;;  %1339 = vmatpush1.bf16.msra.mxu1 %v8651_v9 }
 0x207   : > { %v845_v28 = vmax.f32 %v791_v23, 0.0  ;;  %1827 = vmatprep.subr.bf16.mxu1 %v8654_v10 }
 0x208   : > { %v846_v30 = vmax.f32 %v793_v26, 0.0  ;;  %v8652_v26 = vld [vmem:[%s11937_s1 + $0x1c0] ss:$8 sps:$4 sm:$0xff]  }
 0x209   : > { %v869_v31 = vpack.c.bf16 %v845_v28, %v843_v27 }
 0x20a   : > { %v870_v32 = vpack.c.bf16 %v846_v30, %v844_v29  ;;  %v796_v33 = vpop.f32.mrb[32].mxu1  ;;  %v8657_v29 = vld [vmem:[%s11937_s1 + $0x1d4] ss:$8 sps:$4 sm:$0xff]  }
 0x20b   : > { %v797_v34 = vadd.f32 %v796_v33, %v9550_v19  ;;  %v798_v35 = vpop.f32.mrb[33].mxu1 }
 0x20c   : > { %v799_v36 = vadd.f32 %v798_v35, %v9553_v20  ;;  %v800_v37 = vpop.f32.mrb[34].mxu1  ;;  %7835 = vmatprep.mubr.msk.bf16.mxu1 %vm651_vm1, %v870_v32  ;;  %v7857_v32 = vld [vmem:[%s11939_s3 + $0x1] ss:$8 sm:$0x3] }
 0x20d   : > { %v801_v50 = vadd.f32 %v800_v37, %v9550_v19  ;;  %v802_v52 = vpop.f32.mrb[35].mxu1  ;;  %1129 = vmatmul.mubr.bf16.gmra.mrb[60].mxu1 %v869_v31  ;;  %7867 = vmatmul.mubr.msk.bf16.gmra.mrb[68].mxu0 %vm306_vm0, %v9115_v38  ;;  %v847_v56 = vmax.f32 %v797_v34, 0.0  ;;  %v9716_v38 = vrot.slane %v7857_v32, %v9458_v51 }
 0x20e   : > { %v803_v39 = vadd.f32 %v802_v52, %v9553_v20  ;;  %1575 = vmatprep.mubr.bf16.mxu0 %v9184_v2  ;;  %v848_v40 = vmax.f32 %v799_v36, 0.0  ;;  %v8655_v36 = vld [vmem:[%s11937_s1 + $0x1d0] ss:$8 sps:$4 sm:$0xff]   ;;  %v8660_v52 = vld [vmem:[%s11937_s1 + $0x1e4] ss:$8 sps:$4 sm:$0xff]  }
 0x20f   : > { %v849_v57 = vmax.f32 %v801_v50, 0.0 }
 0x210   : > { %v850_v58 = vmax.f32 %v803_v39, 0.0 }
 0x211   : > { %v871_v59 = vpack.c.bf16 %v849_v57, %v847_v56  ;;  %v9719_v57 = vrot.slane %v7857_v32, %v9463_v53 }
 0x212   : > { %v872_v41 = vpack.c.bf16 %v850_v58, %v848_v40  ;;  %v806_v60 = vpop.f32.mrb[36].mxu1 }
 0x213   : > { %v807_v61 = vadd.f32 %v806_v60, %v9550_v19  ;;  %v808_v62 = vpop.f32.mrb[37].mxu1 }
 0x214   : > { %v809_v63 = vadd.f32 %v808_v62, %v9553_v20  ;;  %v810_v0 = vpop.f32.mrb[38].mxu1  ;;  %7836 = vmatprep.mubr.msk.bf16.mxu1 %vm651_vm1, %v872_v41  ;;  %v8658_v41 = vld [vmem:[%s11937_s1 + $0x1e0] ss:$8 sps:$4 sm:$0xff]  }
 0x215   : > { %v811_v1 = vadd.f32 %v810_v0, %v9550_v19  ;;  %v812_v42 = vpop.f32.mrb[39].mxu1  ;;  %1139 = vmatmul.mubr.bf16.gmra.mrb[64].mxu1 %v871_v59  ;;  %7868 = vmatmul.mubr.msk.bf16.gmra.mrb[72].mxu0 %vm306_vm0, %v9116_v43  ;;  %v851_v4 = vmax.f32 %v807_v61, 0.0  ;;  %v9117_v19 = vld [vmem:[%s9291_s5 + $0x38] sm:$0xff]  }
 0x216   : > { %v813_v3 = vadd.f32 %v812_v42, %v9553_v20  ;;  %1585 = vmatprep.mubr.bf16.mxu0 %v9184_v2  ;;  %v852_v5 = vmax.f32 %v809_v63, 0.0  ;;  %v9119_v20 = vld [vmem:[%s9291_s5 + $0x48] sm:$0xff]   ;;  %v8663_v63 = vld [vmem:[%s11937_s1 + $0x1f4] ss:$8 sps:$4 sm:$0xff]  }
 0x217   : > { %v853_v44 = vmax.f32 %v811_v1, 0.0 }
 0x218   : > { %v854_v6 = vmax.f32 %v813_v3, 0.0 }
 0x219   : > { %v873_v45 = vpack.c.bf16 %v853_v44, %v851_v4 }
 0x21a   : > { %v874_v7 = vpack.c.bf16 %v854_v6, %v852_v5 }
 0x21c   : > { %7837 = vmatprep.mubr.msk.bf16.mxu1 %vm651_vm1, %v874_v7 }
 0x21d   : > { %1149 = vmatmul.mubr.bf16.gmra.mrb[68].mxu1 %v873_v45  ;;  %7869 = vmatmul.mubr.msk.bf16.gmra.mrb[76].mxu0 %vm306_vm0, %v9117_v19 }
 0x21e   : > { %1595 = vmatprep.mubr.bf16.mxu0 %v9184_v2 }
 0x225   : > { %7870 = vmatmul.mubr.msk.bf16.gmra.mrb[80].mxu0 %vm306_vm0, %v9118_v8  ;;  %v8661_v8 = vld [vmem:[%s11937_s1 + $0x1f0] ss:$8 sps:$4 sm:$0xff]  }
 0x226   : > { %1605 = vmatprep.mubr.bf16.mxu0 %v9184_v2 }
 0x22d   : > { %7871 = vmatmul.mubr.msk.bf16.gmra.mrb[84].mxu0 %vm306_vm0, %v9119_v20 }
 0x2a8   : > { %v1060_v13 = vpop.f32.mrb[40].mxu0 }
 0x2a9   : > { %v1061_v47 = vadd.f32 %v1060_v13, %v9686_v12  ;;  %v1062_v14 = vpop.f32.mrb[41].mxu0  ;;  %v8666_v13 = vld [vmem:[%s11937_s1 + $0x204] ss:$8 sps:$4 sm:$0xff]  }
 0x2aa   : > { %v1063_v15 = vadd.f32 %v1062_v14, %v9689_v46  ;;  %v1064_v16 = vpop.f32.mrb[42].mxu0 }
 0x2ab   : > { %v1065_v17 = vadd.f32 %v1064_v16, %v9686_v12  ;;  %v1066_v18 = vpop.f32.mrb[43].mxu0  ;;  %v1159_v55 = vmax.f32 %v1061_v47, 0.0 }
 0x2ac   : > { %v1067_v54 = vadd.f32 %v1066_v18, %v9689_v46  ;;  %v1160_v21 = vmax.f32 %v1063_v15, 0.0 }
 0x2ad   : > { %v1161_v48 = vmax.f32 %v1065_v17, 0.0 }
 0x2ae   : > { %v1162_v22 = vmax.f32 %v1067_v54, 0.0 }
 0x2af   : > { %v1199_v23 = vpack.c.bf16 %v1161_v48, %v1159_v55  ;;  %v8664_v48 = vld [vmem:[%s11937_s1 + $0x200] ss:$8 sps:$4 sm:$0xff]  }
 0x2b0   : > { %v1200_v24 = vpack.c.bf16 %v1162_v22, %v1160_v21  ;;  %v1070_v25 = vpop.f32.mrb[44].mxu0 }
 0x2b1   : > { %v1071_v27 = vadd.f32 %v1070_v25, %v9686_v12  ;;  %v1072_v28 = vpop.f32.mrb[45].mxu0  ;;  %v8669_v25 = vld [vmem:[%s11937_s1 + $0x214] ss:$8 sps:$4 sm:$0xff]  }
 0x2b2   : > { %v1073_v30 = vadd.f32 %v1072_v28, %v9689_v46  ;;  %v1074_v31 = vpop.f32.mrb[46].mxu0  ;;  %7847 = vmatprep.mubr.msk.bf16.mxu1 %vm651_vm1, %v1200_v24 }
 0x2b3   : > { %v1075_v33 = vadd.f32 %v1074_v31, %v9686_v12  ;;  %v1076_v34 = vpop.f32.mrb[47].mxu0  ;;  %1355 = vmatmul.mubr.bf16.vlgmr.msra.gmra.mrb[72].mxu1 %v1199_v23  ;;  %v1163_v37 = vmax.f32 %v1071_v27, 0.0 }
 0x2b4   : > { %v1077_v35 = vadd.f32 %v1076_v34, %v9689_v46  ;;  %1828 = vmatpush1.bf16.msra.mxu1 %v8652_v26  ;;  %v1164_v39 = vmax.f32 %v1073_v30, 0.0 }
 0x2b5   : > { %v1165_v50 = vmax.f32 %v1075_v33, 0.0  ;;  %1829 = vmatprep.subr.bf16.mxu1 %v8657_v29 }
 0x2b6   : > { %v1166_v56 = vmax.f32 %v1077_v35, 0.0 }
 0x2b7   : > { %v1201_v40 = vpack.c.bf16 %v1165_v50, %v1163_v37  ;;  %v8667_v50 = vld [vmem:[%s11937_s1 + $0x210] ss:$8 sps:$4 sm:$0xff]  }
 0x2b8   : > { %v1202_v58 = vpack.c.bf16 %v1166_v56, %v1164_v39  ;;  %v1080_v59 = vpop.f32.mrb[40].mxu1  ;;  %1830 = vmatpush1.bf16.msra.mxu1 %v8655_v36  ;;  %v1517_v60 = vpop.f32.mrb[48].mxu0 }
 0x2b9   : > { %v1081_v61 = vadd.f32 %v1080_v59, %v9686_v12  ;;  %v1082_v62 = vpop.f32.mrb[41].mxu1  ;;  %1831 = vmatprep.subr.bf16.mxu1 %v8660_v52  ;;  %v1518_v0 = vadd.f32 %v1517_v60, %v9716_v38  ;;  %v1519_v1 = vpop.f32.mrb[49].mxu0 }
 0x2ba   : > { %v1083_v42 = vadd.f32 %v1082_v62, %v9689_v46  ;;  %v1084_v43 = vpop.f32.mrb[42].mxu1  ;;  %7848 = vmatprep.mubr.msk.bf16.mxu1 %vm651_vm1, %v1202_v58  ;;  %v1520_v3 = vadd.f32 %v1519_v1, %v9719_v57  ;;  %v1521_v4 = vpop.f32.mrb[50].mxu0  ;;  %v8672_v58 = vld [vmem:[%s11937_s1 + $0x224] ss:$8 sps:$4 sm:$0xff]  }
 0x2bb   : > { %v1085_v44 = vadd.f32 %v1084_v43, %v9686_v12  ;;  %v1086_v5 = vpop.f32.mrb[43].mxu1  ;;  %1363 = vmatmul.mubr.bf16.gmra.mrb[76].mxu1 %v1201_v40  ;;  %v1616_v6 = vmax.f32 %v1518_v0, 0.0  ;;  %v1522_v45 = vadd.f32 %v1521_v4, %v9716_v38  ;;  %v1523_v7 = vpop.f32.mrb[51].mxu0  ;;  %v1167_v10 = vmax.f32 %v1081_v61, 0.0 }
 0x2bc   : > { %v1087_v19 = vadd.f32 %v1086_v5, %v9689_v46  ;;  %1832 = vmatpush1.bf16.msra.mxu1 %v8658_v41  ;;  %v1617_v20 = vmax.f32 %v1520_v3, 0.0  ;;  %v1524_v9 = vadd.f32 %v1523_v7, %v9719_v57  ;;  %v1168_v14 = vmax.f32 %v1083_v42, 0.0  ;;  %v8670_v42 = vld [vmem:[%s11937_s1 + $0x220] ss:$8 sps:$4 sm:$0xff]   ;;  %v8675_v5 = vld [vmem:[%s11937_s1 + $0x234] ss:$8 sps:$4 sm:$0xff]  }
 0x2bd   : > { %v1169_v11 = vmax.f32 %v1085_v44, 0.0  ;;  %1833 = vmatprep.subr.bf16.mxu1 %v8663_v63  ;;  %v1618_v47 = vmax.f32 %v1522_v45, 0.0 }
 0x2be   : > { %v1170_v15 = vmax.f32 %v1087_v19, 0.0  ;;  %v1619_v16 = vmax.f32 %v1524_v9, 0.0 }
 0x2bf   : > { %v1203_v17 = vpack.c.bf16 %v1169_v11, %v1167_v10  ;;  %v9742_v18 = vpack.c.bf16 %v1618_v47, %v1616_v6 }
 0x2c0   : > { %v1204_v54 = vpack.c.bf16 %v1170_v15, %v1168_v14  ;;  %v1090_v55 = vpop.f32.mrb[44].mxu1  ;;  %1834 = vmatpush1.bf16.msra.mxu1 %v8661_v8  ;;  %v9747_v21 = vpack.c.bf16 %v1619_v16, %v1617_v20  ;;  %v1527_v22 = vpop.f32.mrb[52].mxu0  ;;  %v8673_v15 = vld [vmem:[%s11937_s1 + $0x230] ss:$8 sps:$4 sm:$0xff]  }
 0x2c1   : > { %v1091_v23 = vadd.f32 %v1090_v55, %v9686_v12  ;;  %v1092_v24 = vpop.f32.mrb[45].mxu1  ;;  %1835 = vmatprep.subr.bf16.mxu1 %v8666_v13  ;;  %v1528_v26 = vadd.f32 %v1527_v22, %v9716_v38  ;;  %v1529_v27 = vpop.f32.mrb[53].mxu0 }
 0x2c2   : > { %v1093_v28 = vadd.f32 %v1092_v24, %v9689_v46  ;;  %v1094_v29 = vpop.f32.mrb[46].mxu1  ;;  %7849 = vmatprep.mubr.msk.bf16.mxu1 %vm651_vm1, %v1204_v54  ;;  %v1530_v30 = vadd.f32 %v1529_v27, %v9719_v57  ;;  %v1531_v31 = vpop.f32.mrb[54].mxu0 }
 0x2c3   : > { %v1095_v32 = vadd.f32 %v1094_v29, %v9686_v12  ;;  %v1096_v33 = vpop.f32.mrb[47].mxu1  ;;  %1371 = vmatmul.mubr.bf16.gmra.mrb[80].mxu1 %v1203_v17  ;;  %v1620_v34 = vmax.f32 %v1528_v26, 0.0  ;;  %v1532_v35 = vadd.f32 %v1531_v31, %v9716_v38  ;;  %v1533_v36 = vpop.f32.mrb[55].mxu0  ;;  %v1171_v56 = vmax.f32 %v1091_v23, 0.0 }
 0x2c4   : > { %v1097_v37 = vadd.f32 %v1096_v33, %v9689_v46  ;;  %1836 = vmatpush1.bf16.msra.mxu1 %v8664_v48  ;;  %v1621_v52 = vmax.f32 %v1530_v30, 0.0  ;;  %v1534_v39 = vadd.f32 %v1533_v36, %v9719_v57  ;;  %v1172_v41 = vmax.f32 %v1093_v28, 0.0  ;;  %v8678_v48 = vld [vmem:[%s11937_s1 + $0x244] ss:$8 sps:$4 sm:$0xff]   ;;  %v8676_v30 = vld [vmem:[%s11937_s1 + $0x240] ss:$8 sps:$4 sm:$0xff]  }
 0x2c5   : > { %v1173_v40 = vmax.f32 %v1095_v32, 0.0  ;;  %1837 = vmatprep.subr.bf16.mxu1 %v8669_v25  ;;  %v1622_v59 = vmax.f32 %v1532_v35, 0.0 }
 0x2c6   : > { %v1174_v60 = vmax.f32 %v1097_v37, 0.0  ;;  %v1623_v61 = vmax.f32 %v1534_v39, 0.0 }
 0x2c7   : > { %v1205_v62 = vpack.c.bf16 %v1173_v40, %v1171_v56  ;;  %v9767_v63 = vpack.c.bf16 %v1622_v59, %v1620_v34 }
 0x2c8   : > { %v1206_v0 = vpack.c.bf16 %v1174_v60, %v1172_v41  ;;  %v1100_v1 = vpop.f32.mrb[48].mxu1  ;;  %1838 = vmatpush1.bf16.msra.mxu1 %v8667_v50  ;;  %v9772_v43 = vpack.c.bf16 %v1623_v61, %v1621_v52  ;;  %v1537_v3 = vpop.f32.mrb[56].mxu0 }
 0x2c9   : > { %v1101_v4 = vadd.f32 %v1100_v1, %v9686_v12  ;;  %v1102_v44 = vpop.f32.mrb[49].mxu1  ;;  %1839 = vmatprep.subr.bf16.mxu1 %v8672_v58  ;;  %v1538_v6 = vadd.f32 %v1537_v3, %v9716_v38  ;;  %v1539_v45 = vpop.f32.mrb[57].mxu0 }
 0x2ca   : > { %v1103_v7 = vadd.f32 %v1102_v44, %v9689_v46  ;;  %v1104_v19 = vpop.f32.mrb[50].mxu1  ;;  %7850 = vmatprep.mubr.msk.bf16.mxu1 %vm651_vm1, %v1206_v0  ;;  %v1540_v8 = vadd.f32 %v1539_v45, %v9719_v57  ;;  %v1541_v20 = vpop.f32.mrb[58].mxu0 }
 0x2cb   : > { %v1105_v9 = vadd.f32 %v1104_v19, %v9686_v12  ;;  %v1106_v10 = vpop.f32.mrb[51].mxu1  ;;  %1379 = vmatmul.mubr.bf16.gmra.mrb[84].mxu1 %v1205_v62  ;;  %v1624_v11 = vmax.f32 %v1538_v6, 0.0  ;;  %v1542_v13 = vadd.f32 %v1541_v20, %v9716_v38  ;;  %v1543_v47 = vpop.f32.mrb[59].mxu0  ;;  %v1175_v54 = vmax.f32 %v1101_v4, 0.0 }
 0x2cc   : > { %v1107_v14 = vadd.f32 %v1106_v10, %v9689_v46  ;;  %1840 = vmatpush1.bf16.msra.mxu1 %v8670_v42  ;;  %v1625_v16 = vmax.f32 %v1540_v8, 0.0  ;;  %v1544_v17 = vadd.f32 %v1543_v47, %v9719_v57  ;;  %v1176_v23 = vmax.f32 %v1103_v7, 0.0 }
 0x2cd   : > { %v1177_v55 = vmax.f32 %v1105_v9, 0.0  ;;  %1841 = vmatprep.subr.bf16.mxu1 %v8675_v5  ;;  %v1626_v22 = vmax.f32 %v1542_v13, 0.0 }
 0x2ce   : > { %v1178_v24 = vmax.f32 %v1107_v14, 0.0  ;;  %v1627_v25 = vmax.f32 %v1544_v17, 0.0 }
 0x2cf   : > { %v1207_v26 = vpack.c.bf16 %v1177_v55, %v1175_v54  ;;  %v9792_v27 = vpack.c.bf16 %v1626_v22, %v1624_v11 }
 0x2d0   : > { %v1208_v28 = vpack.c.bf16 %v1178_v24, %v1176_v23  ;;  %v1110_v29 = vpop.f32.mrb[52].mxu1  ;;  %1842 = vmatpush1.bf16.msra.mxu1 %v8673_v15  ;;  %v9797_v31 = vpack.c.bf16 %v1627_v25, %v1625_v16  ;;  %v1547_v32 = vpop.f32.mrb[60].mxu0 }
 0x2d1   : > { %v1111_v33 = vadd.f32 %v1110_v29, %v9686_v12  ;;  %v1112_v34 = vpop.f32.mrb[53].mxu1  ;;  %1843 = vmatprep.subr.bf16.mxu1 %v8678_v48  ;;  %v1548_v35 = vadd.f32 %v1547_v32, %v9716_v38  ;;  %v1549_v36 = vpop.f32.mrb[61].mxu0 }
 0x2d2   : > { %v1113_v37 = vadd.f32 %v1112_v34, %v9689_v46  ;;  %v1114_v50 = vpop.f32.mrb[54].mxu1  ;;  %7851 = vmatprep.mubr.msk.bf16.mxu1 %vm651_vm1, %v1208_v28  ;;  %v1550_v52 = vadd.f32 %v1549_v36, %v9719_v57  ;;  %v1551_v39 = vpop.f32.mrb[62].mxu0 }
 0x2d3   : > { %v1115_v56 = vadd.f32 %v1114_v50, %v9686_v12  ;;  %v1116_v40 = vpop.f32.mrb[55].mxu1  ;;  %1387 = vmatmul.mubr.bf16.gmra.mrb[88].mxu1 %v1207_v26  ;;  %v1628_v58 = vmax.f32 %v1548_v35, 0.0  ;;  %v1552_v59 = vadd.f32 %v1551_v39, %v9716_v38  ;;  %v1553_v41 = vpop.f32.mrb[63].mxu0  ;;  %v1179_v0 = vmax.f32 %v1111_v33, 0.0 }
 0x2d4   : > { %v1117_v60 = vadd.f32 %v1116_v40, %v9689_v46  ;;  %1844 = vmatpush1.bf16.msra.mxu1 %v8676_v30  ;;  %v1629_v61 = vmax.f32 %v1550_v52, 0.0  ;;  %v1554_v62 = vadd.f32 %v1553_v41, %v9719_v57  ;;  %v1180_v3 = vmax.f32 %v1113_v37, 0.0 }
 0x2d5   : > { %v1181_v1 = vmax.f32 %v1115_v56, 0.0  ;;  %v1630_v42 = vmax.f32 %v1552_v59, 0.0 }
 0x2d6   : > { %v1182_v4 = vmax.f32 %v1117_v60, 0.0  ;;  %v1631_v44 = vmax.f32 %v1554_v62, 0.0 }
 0x2d7   : > { %v1209_v5 = vpack.c.bf16 %v1181_v1, %v1179_v0  ;;  %v9808_v6 = vpack.c.bf16 %v1630_v42, %v1628_v58 }
 0x2d8   : > { %v1210_v45 = vpack.c.bf16 %v1182_v4, %v1180_v3  ;;  %v1120_v7 = vpop.f32.mrb[56].mxu1  ;;  %v9810_v19 = vpack.c.bf16 %v1631_v44, %v1629_v61  ;;  %v1557_v8 = vpop.f32.mrb[64].mxu0 }
 0x2d9   : > { %v1121_v20 = vadd.f32 %v1120_v7, %v9686_v12  ;;  %v1122_v9 = vpop.f32.mrb[57].mxu1  ;;  %v1558_v10 = vadd.f32 %v1557_v8, %v9716_v38  ;;  %v1559_v11 = vpop.f32.mrb[65].mxu0 }
 0x2da   : > { %v1123_v13 = vadd.f32 %v1122_v9, %v9689_v46  ;;  %v1124_v47 = vpop.f32.mrb[58].mxu1  ;;  %7852 = vmatprep.mubr.msk.bf16.mxu1 %vm651_vm1, %v1210_v45  ;;  %v1560_v14 = vadd.f32 %v1559_v11, %v9719_v57  ;;  %v1561_v15 = vpop.f32.mrb[66].mxu0 }
 0x2db   : > { %v1125_v16 = vadd.f32 %v1124_v47, %v9686_v12  ;;  %v1126_v17 = vpop.f32.mrb[59].mxu1  ;;  %1395 = vmatmul.mubr.bf16.gmra.mrb[92].mxu1 %v1209_v5  ;;  %v1632_v54 = vmax.f32 %v1558_v10, 0.0  ;;  %v1562_v55 = vadd.f32 %v1561_v15, %v9716_v38  ;;  %v1563_v48 = vpop.f32.mrb[67].mxu0  ;;  %v1183_v25 = vmax.f32 %v1121_v20, 0.0 }
 0x2dc   : > { %v1127_v22 = vadd.f32 %v1126_v17, %v9689_v46  ;;  %v1633_v23 = vmax.f32 %v1560_v14, 0.0  ;;  %v1564_v24 = vadd.f32 %v1563_v48, %v9719_v57  ;;  %v1184_v29 = vmax.f32 %v1123_v13, 0.0 }
 0x2dd   : > { %v1185_v26 = vmax.f32 %v1125_v16, 0.0  ;;  %v1634_v28 = vmax.f32 %v1562_v55, 0.0 }
 0x2de   : > { %v1186_v30 = vmax.f32 %v1127_v22, 0.0  ;;  %v1635_v32 = vmax.f32 %v1564_v24, 0.0 }
 0x2df   : > { %v1211_v33 = vpack.c.bf16 %v1185_v26, %v1183_v25  ;;  %v9821_v34 = vpack.c.bf16 %v1634_v28, %v1632_v54 }
 0x2e0   : > { %v1212_v35 = vpack.c.bf16 %v1186_v30, %v1184_v29  ;;  %v1130_v36 = vpop.f32.mrb[60].mxu1  ;;  %v9823_v37 = vpack.c.bf16 %v1635_v32, %v1633_v23  ;;  %v1567_v50 = vpop.f32.mrb[68].mxu0 }
 0x2e1   : > { %v1131_v52 = vadd.f32 %v1130_v36, %v9686_v12  ;;  %v1132_v39 = vpop.f32.mrb[61].mxu1  ;;  %v1568_v56 = vadd.f32 %v1567_v50, %v9716_v38  ;;  %v1569_v40 = vpop.f32.mrb[69].mxu0 }
 0x2e2   : > { %v1133_v58 = vadd.f32 %v1132_v39, %v9689_v46  ;;  %v1134_v59 = vpop.f32.mrb[62].mxu1  ;;  %7853 = vmatprep.mubr.msk.bf16.mxu1 %vm651_vm1, %v1212_v35  ;;  %v1570_v41 = vadd.f32 %v1569_v40, %v9719_v57  ;;  %v1571_v60 = vpop.f32.mrb[70].mxu0 }
 0x2e3   : > { %v1135_v61 = vadd.f32 %v1134_v59, %v9686_v12  ;;  %v1136_v62 = vpop.f32.mrb[63].mxu1  ;;  %1403 = vmatmul.mubr.bf16.gmra.mrb[96].mxu1 %v1211_v33  ;;  %v1636_v0 = vmax.f32 %v1568_v56, 0.0  ;;  %v1572_v1 = vadd.f32 %v1571_v60, %v9716_v38  ;;  %v1573_v42 = vpop.f32.mrb[71].mxu0  ;;  %v1187_v5 = vmax.f32 %v1131_v52, 0.0 }
 0x2e4   : > { %v1137_v3 = vadd.f32 %v1136_v62, %v9689_v46  ;;  %v1637_v4 = vmax.f32 %v1570_v41, 0.0  ;;  %v1574_v44 = vadd.f32 %v1573_v42, %v9719_v57  ;;  %v1188_v8 = vmax.f32 %v1133_v58, 0.0 }
 0x2e5   : > { %v1189_v45 = vmax.f32 %v1135_v61, 0.0  ;;  %v1638_v7 = vmax.f32 %v1572_v1, 0.0 }
 0x2e6   : > { %v1190_v20 = vmax.f32 %v1137_v3, 0.0  ;;  %v1639_v9 = vmax.f32 %v1574_v44, 0.0 }
 0x2e7   : > { %v1213_v10 = vpack.c.bf16 %v1189_v45, %v1187_v5  ;;  %v9834_v11 = vpack.c.bf16 %v1638_v7, %v1636_v0 }
 0x2e8   : > { %v1214_v13 = vpack.c.bf16 %v1190_v20, %v1188_v8  ;;  %v1140_v47 = vpop.f32.mrb[64].mxu1  ;;  %v9836_v14 = vpack.c.bf16 %v1639_v9, %v1637_v4  ;;  %v1577_v15 = vpop.f32.mrb[72].mxu0 }
 0x2e9   : > { %v1141_v16 = vadd.f32 %v1140_v47, %v9686_v12  ;;  %v1142_v17 = vpop.f32.mrb[65].mxu1  ;;  %v1578_v54 = vadd.f32 %v1577_v15, %v9716_v38  ;;  %v1579_v55 = vpop.f32.mrb[73].mxu0 }
 0x2ea   : > { %v1143_v48 = vadd.f32 %v1142_v17, %v9689_v46  ;;  %v1144_v22 = vpop.f32.mrb[66].mxu1  ;;  %7854 = vmatprep.mubr.msk.bf16.mxu1 %vm651_vm1, %v1214_v13  ;;  %v1580_v23 = vadd.f32 %v1579_v55, %v9719_v57  ;;  %v1581_v24 = vpop.f32.mrb[74].mxu0 }
 0x2eb   : > { %v1145_v25 = vadd.f32 %v1144_v22, %v9686_v12  ;;  %v1146_v26 = vpop.f32.mrb[67].mxu1  ;;  %1411 = vmatmul.mubr.bf16.gmra.mrb[100].mxu1 %v1213_v10  ;;  %v1640_v28 = vmax.f32 %v1578_v54, 0.0  ;;  %v1582_v29 = vadd.f32 %v1581_v24, %v9716_v38  ;;  %v1583_v30 = vpop.f32.mrb[75].mxu0  ;;  %v1191_v36 = vmax.f32 %v1141_v16, 0.0 }
 0x2ec   : > { %v1147_v32 = vadd.f32 %v1146_v26, %v9689_v46  ;;  %v1641_v33 = vmax.f32 %v1580_v23, 0.0  ;;  %v1584_v35 = vadd.f32 %v1583_v30, %v9719_v57  ;;  %v1192_v39 = vmax.f32 %v1143_v48, 0.0 }
 0x2ed   : > { %v1193_v50 = vmax.f32 %v1145_v25, 0.0  ;;  %v1642_v52 = vmax.f32 %v1582_v29, 0.0 }
 0x2ee   : > { %v1194_v56 = vmax.f32 %v1147_v32, 0.0  ;;  %v1643_v40 = vmax.f32 %v1584_v35, 0.0 }
 0x2ef   : > { %v1215_v58 = vpack.c.bf16 %v1193_v50, %v1191_v36  ;;  %v9847_v59 = vpack.c.bf16 %v1642_v52, %v1640_v28 }
 0x2f0   : > { %v1216_v41 = vpack.c.bf16 %v1194_v56, %v1192_v39  ;;  %v1150_v60 = vpop.f32.mrb[68].mxu1  ;;  %v9849_v61 = vpack.c.bf16 %v1643_v40, %v1641_v33  ;;  %v1587_v62 = vpop.f32.mrb[76].mxu0 }
 0x2f1   : > { %v1151_v0 = vadd.f32 %v1150_v60, %v9686_v12  ;;  %v1152_v1 = vpop.f32.mrb[69].mxu1  ;;  %v1588_v42 = vadd.f32 %v1587_v62, %v9716_v38  ;;  %v1589_v3 = vpop.f32.mrb[77].mxu0 }
 0x2f2   : > { %v1153_v4 = vadd.f32 %v1152_v1, %v9689_v46  ;;  %v1154_v44 = vpop.f32.mrb[70].mxu1  ;;  %7855 = vmatprep.mubr.msk.bf16.mxu1 %vm651_vm1, %v1216_v41  ;;  %v1590_v5 = vadd.f32 %v1589_v3, %v9719_v57  ;;  %v1591_v45 = vpop.f32.mrb[78].mxu0 }
 0x2f3   : > { %v1155_v7 = vadd.f32 %v1154_v44, %v9686_v12  ;;  %v1156_v8 = vpop.f32.mrb[71].mxu1  ;;  %1419 = vmatmul.mubr.bf16.gmra.mrb[104].mxu1 %v1215_v58  ;;  %v1644_v20 = vmax.f32 %v1588_v42, 0.0  ;;  %v1592_v9 = vadd.f32 %v1591_v45, %v9716_v38  ;;  %v1593_v10 = vpop.f32.mrb[79].mxu0  ;;  %v1195_v16 = vmax.f32 %v1151_v0, 0.0 }
 0x2f4   : > { %v1157_v13 = vadd.f32 %v1156_v8, %v9689_v46  ;;  %v1645_v47 = vmax.f32 %v1590_v5, 0.0  ;;  %v1594_v15 = vadd.f32 %v1593_v10, %v9719_v57  ;;  %v1196_v55 = vmax.f32 %v1153_v4, 0.0  ;;  %v8702_v8 = vld [vmem:[%s11937_s1 + $0x2c4] ss:$8 sps:$4 sm:$0xff]   ;;  %v9957_v10 = vld [vmem:[%s11939_s3 + $0x23] ss:$0 sm:$0xff] }
 0x2f5   : > { %v1197_v17 = vmax.f32 %v1155_v7, 0.0  ;;  %v1646_v54 = vmax.f32 %v1592_v9, 0.0  ;;  %v8703_v9 = vld [vmem:[%s11937_s1 + $0x2d0] ss:$8 sps:$4 sm:$0xff]  }
 0x2f6   : > { %v1198_v48 = vmax.f32 %v1157_v13, 0.0  ;;  %v1647_v22 = vmax.f32 %v1594_v15, 0.0 }
 0x2f7   : > { %v1217_v23 = vpack.c.bf16 %v1197_v17, %v1195_v16  ;;  %v9860_v24 = vpack.c.bf16 %v1646_v54, %v1644_v20  ;;  %v8705_v20 = vld [vmem:[%s11937_s1 + $0x2d4] ss:$8 sps:$4 sm:$0xff]  }
 0x2f8   : > { %v1218_v12 = vpack.c.bf16 %v1198_v48, %v1196_v55  ;;  %v9862_v25 = vpack.c.bf16 %v1647_v22, %v1645_v47  ;;  %v1597_v26 = vpop.f32.mrb[80].mxu0 }
 0x2f9   : > { %v1598_v28 = vadd.f32 %v1597_v26, %v9716_v38  ;;  %v1599_v29 = vpop.f32.mrb[81].mxu0 }
 0x2fa   : > { %7856 = vmatprep.mubr.msk.bf16.mxu1 %vm651_vm1, %v1218_v12  ;;  %v1600_v46 = vadd.f32 %v1599_v29, %v9719_v57  ;;  %v1601_v30 = vpop.f32.mrb[82].mxu0 }
 0x2fb   : > { %1427 = vmatmul.mubr.bf16.gmra.mrb[108].mxu1 %v1217_v23  ;;  %v1648_v32 = vmax.f32 %v1598_v28, 0.0  ;;  %v1602_v33 = vadd.f32 %v1601_v30, %v9716_v38  ;;  %v1603_v35 = vpop.f32.mrb[83].mxu0 }
 0x2fc   : > { %7891 = vmatprep.mubr.msk.bf16.mxu1 %vm651_vm1, %v9747_v21  ;;  %v1649_v36 = vmax.f32 %v1600_v46, 0.0  ;;  %v1604_v50 = vadd.f32 %v1603_v35, %v9719_v57 }
 0x2fd   : > { %v1650_v52 = vmax.f32 %v1602_v33, 0.0 }
 0x2fe   : > { %v1651_v39 = vmax.f32 %v1604_v50, 0.0 }
 0x2ff   : > { %v1672_v56 = vpack.c.bf16 %v1650_v52, %v1648_v32 }
 0x300   : > { %v1673_v40 = vpack.c.bf16 %v1651_v39, %v1649_v36  ;;  %v1607_v58 = vpop.f32.mrb[84].mxu0 }
 0x301   : > { %v1608_v41 = vadd.f32 %v1607_v58, %v9716_v38  ;;  %v1609_v60 = vpop.f32.mrb[85].mxu0 }
 0x302   : > { %v1610_v62 = vadd.f32 %v1609_v60, %v9719_v57  ;;  %v1611_v0 = vpop.f32.mrb[86].mxu0 }
 0x303   : > { %1860 = vmatmul.mubr.bf16.vlgmr.msra.gmra.mrb[112].mxu1 %v9742_v18  ;;  %v1652_v1 = vmax.f32 %v1608_v41, 0.0  ;;  %v1612_v42 = vadd.f32 %v1611_v0, %v9716_v38  ;;  %v1613_v21 = vpop.f32.mrb[87].mxu0  ;;  %v8679_v38 = vld [vmem:[%s11937_s1 + $0x250] ss:$8 sps:$4 sm:$0xff]   ;;  %v8681_v18 = vld [vmem:[%s11937_s1 + $0x254] ss:$8 sps:$4 sm:$0xff]  }
 0x304   : > { %7892 = vmatprep.mubr.msk.bf16.mxu1 %vm651_vm1, %v9772_v43  ;;  %v1653_v3 = vmax.f32 %v1610_v62, 0.0  ;;  %v1614_v4 = vadd.f32 %v1613_v21, %v9719_v57  ;;  %2171 = vmatprep.subr.bf16.mxu0 %v8681_v18  ;;  %v8682_v57 = vld [vmem:[%s11937_s1 + $0x260] ss:$8 sps:$4 sm:$0xff]   ;;  %v8685_v43 = vld [vmem:[%s11937_s1 + $0x270] ss:$8 sps:$4 sm:$0xff]  }
 0x305   : > { %v1654_v44 = vmax.f32 %v1612_v42, 0.0  ;;  %2172 = vmatpush1.bf16.msra.mxu0 %v8679_v38  ;;  %v8706_v21 = vld [vmem:[%s11937_s1 + $0x2e0] ss:$8 sps:$4 sm:$0xff]  }
 0x306   : > { %v1655_v5 = vmax.f32 %v1614_v4, 0.0  ;;  %v8711_v4 = vld [vmem:[%s11937_s1 + $0x2f4] ss:$8 sps:$4 sm:$0xff]  }
 0x307   : > { %v1674_v45 = vpack.c.bf16 %v1654_v44, %v1652_v1 }
 0x308   : > { %v1675_v7 = vpack.c.bf16 %v1655_v5, %v1653_v3  ;;  %v8708_v3 = vld [vmem:[%s11937_s1 + $0x2e4] ss:$8 sps:$4 sm:$0xff]   ;;  %v8709_v5 = vld [vmem:[%s11937_s1 + $0x2f0] ss:$8 sps:$4 sm:$0xff]  }
 0x309   : > { %2515 = vmatprep.subr.bf16.mxu1 %v8708_v3 }
 0x30a   : > { %2516 = vmatpush1.bf16.msra.mxu1 %v8706_v21 }
 0x30b   : > { %1870 = vmatmul.mubr.bf16.gmra.mrb[116].mxu1 %v9767_v63  ;;  %v8684_v63 = vld [vmem:[%s11937_s1 + $0x264] ss:$8 sps:$4 sm:$0xff]   ;;  %2517 = vmatprep.subr.bf16.mxu1 %v8711_v4 }
 0x30c   : > { %7893 = vmatprep.mubr.msk.bf16.mxu1 %vm651_vm1, %v9797_v31  ;;  %2173 = vmatprep.subr.bf16.mxu0 %v8684_v63  ;;  %v8688_v31 = vld [vmem:[%s11937_s1 + $0x280] ss:$8 sps:$4 sm:$0xff]  }
 0x30d   : > { %2174 = vmatpush1.bf16.msra.mxu0 %v8682_v57  ;;  %v8712_v57 = vld [vmem:[%s11937_s1 + $0x300] ss:$8 sps:$4 sm:$0xff]  }
 0x30e   : > { %2518 = vmatpush1.bf16.msra.mxu1 %v8709_v5 }
 0x313   : > { %1880 = vmatmul.mubr.bf16.gmra.mrb[120].mxu1 %v9792_v27  ;;  %v8687_v27 = vld [vmem:[%s11937_s1 + $0x274] ss:$8 sps:$4 sm:$0xff]  }
 0x314   : > { %7894 = vmatprep.mubr.msk.bf16.mxu1 %vm651_vm1, %v9810_v19  ;;  %2175 = vmatprep.subr.bf16.mxu0 %v8687_v27  ;;  %v8691_v19 = vld [vmem:[%s11937_s1 + $0x290] ss:$8 sps:$4 sm:$0xff]  }
 0x315   : > { %2176 = vmatpush1.bf16.msra.mxu0 %v8685_v43 }
 0x31b   : > { %1890 = vmatmul.mubr.bf16.gmra.mrb[124].mxu1 %v9808_v6  ;;  %v8690_v6 = vld [vmem:[%s11937_s1 + $0x284] ss:$8 sps:$4 sm:$0xff]  }
 0x31c   : > { %7895 = vmatprep.mubr.msk.bf16.mxu1 %vm651_vm1, %v9823_v37  ;;  %2177 = vmatprep.subr.bf16.mxu0 %v8690_v6  ;;  %v8694_v37 = vld [vmem:[%s11937_s1 + $0x2a0] ss:$8 sps:$4 sm:$0xff]  }
 0x31d   : > { %2178 = vmatpush1.bf16.msra.mxu0 %v8688_v31  ;;  %v8717_v31 = vld [vmem:[%s11937_s1 + $0x314] ss:$8 sps:$4 sm:$0xff]  }
 0x323   : > { %1900 = vmatmul.mubr.bf16.gmra.mrb[128].mxu1 %v9821_v34  ;;  %v8693_v34 = vld [vmem:[%s11937_s1 + $0x294] ss:$8 sps:$4 sm:$0xff]  }
 0x324   : > { %7896 = vmatprep.mubr.msk.bf16.mxu1 %vm651_vm1, %v9836_v14  ;;  %2179 = vmatprep.subr.bf16.mxu0 %v8693_v34  ;;  %v8697_v14 = vld [vmem:[%s11937_s1 + $0x2b0] ss:$8 sps:$4 sm:$0xff]   ;;  %v8720_v34 = vld [vmem:[%s11937_s1 + $0x324] ss:$8 sps:$4 sm:$0xff]  }
 0x325   : > { %2180 = vmatpush1.bf16.msra.mxu0 %v8691_v19  ;;  %v8715_v19 = vld [vmem:[%s11937_s1 + $0x310] ss:$8 sps:$4 sm:$0xff]  }
 0x32b   : > { %1910 = vmatmul.mubr.bf16.gmra.mrb[132].mxu1 %v9834_v11  ;;  %v8696_v11 = vld [vmem:[%s11937_s1 + $0x2a4] ss:$8 sps:$4 sm:$0xff]  }
 0x32c   : > { %7897 = vmatprep.mubr.msk.bf16.mxu1 %vm651_vm1, %v9849_v61  ;;  %2181 = vmatprep.subr.bf16.mxu0 %v8696_v11  ;;  %v8700_v61 = vld [vmem:[%s11937_s1 + $0x2c0] ss:$8 sps:$4 sm:$0xff]  }
 0x32d   : > { %2182 = vmatpush1.bf16.msra.mxu0 %v8694_v37 }
 0x333   : > { %1920 = vmatmul.mubr.bf16.gmra.mrb[136].mxu1 %v9847_v59  ;;  %v8699_v59 = vld [vmem:[%s11937_s1 + $0x2b4] ss:$8 sps:$4 sm:$0xff]  }
 0x334   : > { %7898 = vmatprep.mubr.msk.bf16.mxu1 %vm651_vm1, %v9862_v25  ;;  %2183 = vmatprep.subr.bf16.mxu0 %v8699_v59  ;;  %v8718_v59 = vld [vmem:[%s11937_s1 + $0x320] ss:$8 sps:$4 sm:$0xff]  }
 0x335   : > { %2184 = vmatpush1.bf16.msra.mxu0 %v8697_v14 }
 0x336   : > { %2185 = vmatprep.subr.bf16.mxu0 %v8702_v8 }
 0x339   : > { %2186 = vmatpush1.bf16.msra.mxu0 %v8700_v61 }
 0x33a   : > { %2187 = vmatprep.subr.bf16.mxu0 %v8705_v20 }
 0x33b   : > { %1930 = vmatmul.mubr.bf16.gmra.mrb[140].mxu1 %v9860_v24 }
 0x33c   : > { %7899 = vmatprep.mubr.msk.bf16.mxu1 %vm651_vm1, %v1673_v40 }
 0x33d   : > { %2188 = vmatpush1.bf16.msra.mxu0 %v8703_v9  ;;  %v8723_v9 = vld [vmem:[%s11937_s1 + $0x334] ss:$8 sps:$4 sm:$0xff]  }
 0x33e   : > { %2810 = vmatprep.subr.bf16.mxu0 %v9184_v2 }
 0x343   : > { %1940 = vmatmul.mubr.bf16.gmra.mrb[144].mxu1 %v1672_v56 }
 0x344   : > { %7900 = vmatprep.mubr.msk.bf16.mxu1 %vm651_vm1, %v1675_v7 }
 0x34b   : > { %1950 = vmatmul.mubr.bf16.gmra.mrb[148].mxu1 %v1674_v45  ;;  %v8714_v45 = vld [vmem:[%s11937_s1 + $0x304] ss:$8 sps:$4 sm:$0xff]  }
 0x34c   : > { %2519 = vmatprep.subr.bf16.mxu1 %v8714_v45 }
 0x34d   : > { %2520 = vmatpush1.bf16.msra.mxu1 %v8712_v57 }
 0x34e   : > { %2521 = vmatprep.subr.bf16.mxu1 %v8717_v31 }
 0x351   : > { %2522 = vmatpush1.bf16.msra.mxu1 %v8715_v19 }
 0x352   : > { %2523 = vmatprep.subr.bf16.mxu1 %v8720_v34 }
 0x355   : > { %2524 = vmatpush1.bf16.msra.mxu1 %v8718_v59 }
 0x356   : > { %2525 = vmatprep.subr.bf16.mxu1 %v8723_v9 }
 0x386   : > { %v1356_v13 = vpop.f32.mrb[72].mxu1 }
 0x387   : > { %v1358_v47 = vpop.f32.mrb[73].mxu1  ;;  %v1357_v16 = vadd.f32 %v1356_v13, %v9957_v10 }
 0x388   : > { %v1359_v15 = vpop.f32.mrb[74].mxu1  ;;  %v8721_v47 = vld [vmem:[%s11937_s1 + $0x330] ss:$8 sps:$4 sm:$0xff]  }
 0x389   : > { %v1360_v17 = vadd.f32 %v1359_v15, %v9957_v10  ;;  %v1361_v54 = vpop.f32.mrb[75].mxu1  ;;  %v8726_v15 = vld [vmem:[%s11937_s1 + $0x344] ss:$8 sps:$4 sm:$0xff]   ;;  %2526 = vmatpush1.bf16.msra.mxu1 %v8721_v47 }
 0x38a   : > { %2527 = vmatprep.subr.bf16.mxu1 %v8726_v15 }
 0x38b   : > { %v9961_v55 = vpack.c.bf16 %v1360_v17, %v1357_v16 }
 0x38e   : > { %v1364_v48 = vpop.f32.mrb[76].mxu1 }
 0x38f   : > { %v1366_v22 = vpop.f32.mrb[77].mxu1  ;;  %v1365_v24 = vadd.f32 %v1364_v48, %v9957_v10  ;;  %v8724_v48 = vld [vmem:[%s11937_s1 + $0x340] ss:$8 sps:$4 sm:$0xff]  }
 0x390   : > { %v1367_v23 = vpop.f32.mrb[78].mxu1  ;;  %2528 = vmatpush1.bf16.msra.mxu1 %v8724_v48 }
 0x391   : > { %v1368_v12 = vadd.f32 %v1367_v23, %v9957_v10  ;;  %v1369_v25 = vpop.f32.mrb[79].mxu1 }
 0x393   : > { %v9965_v26 = vpack.c.bf16 %v1368_v12, %v1365_v24  ;;  %v8729_v12 = vld [vmem:[%s11937_s1 + $0x354] ss:$8 sps:$4 sm:$0xff]  }
 0x394   : > { %2529 = vmatprep.subr.bf16.mxu1 %v8729_v12 }
 0x396   : > { %v1372_v28 = vpop.f32.mrb[80].mxu1 }
 0x397   : > { %v1374_v29 = vpop.f32.mrb[81].mxu1  ;;  %v1373_v30 = vadd.f32 %v1372_v28, %v9957_v10  ;;  %v8727_v28 = vld [vmem:[%s11937_s1 + $0x350] ss:$8 sps:$4 sm:$0xff]  }
 0x398   : > { %v1375_v46 = vpop.f32.mrb[82].mxu1  ;;  %2530 = vmatpush1.bf16.msra.mxu1 %v8727_v28 }
 0x399   : > { %v1376_v32 = vadd.f32 %v1375_v46, %v9957_v10  ;;  %v1377_v33 = vpop.f32.mrb[83].mxu1 }
 0x39b   : > { %v9969_v35 = vpack.c.bf16 %v1376_v32, %v1373_v30 }
 0x39e   : > { %v1380_v36 = vpop.f32.mrb[84].mxu1 }
 0x39f   : > { %v1382_v50 = vpop.f32.mrb[85].mxu1  ;;  %v1381_v39 = vadd.f32 %v1380_v36, %v9957_v10 }
 0x3a0   : > { %v1383_v52 = vpop.f32.mrb[86].mxu1 }
 0x3a1   : > { %v1384_v56 = vadd.f32 %v1383_v52, %v9957_v10  ;;  %v1385_v40 = vpop.f32.mrb[87].mxu1 }
 0x3a2   : > { %v7872_v40 = vld [vmem:[%s11939_s3 + $0x7] ss:$8 sm:$0x3] }
 0x3a3   : > { %v9973_v58 = vpack.c.bf16 %v1384_v56, %v1381_v39 }
 0x3a6   : > { %v1388_v41 = vpop.f32.mrb[88].mxu1 }
 0x3a7   : > { %v1390_v60 = vpop.f32.mrb[89].mxu1  ;;  %v1389_v0 = vadd.f32 %v1388_v41, %v9957_v10 }
 0x3a8   : > { %v1391_v62 = vpop.f32.mrb[90].mxu1 }
 0x3a9   : > { %v1392_v1 = vadd.f32 %v1391_v62, %v9957_v10  ;;  %v1393_v42 = vpop.f32.mrb[91].mxu1 }
 0x3aa   : > { %v10054_v42 = vrot.slane %v7872_v40, %v9463_v53 }
 0x3ab   : > { %v9986_v44 = vpack.c.bf16 %v1392_v1, %v1389_v0  ;;  %v10051_v1 = vrot.slane %v7872_v40, %v9458_v51 }
 0x3ae   : > { %v1396_v7 = vpop.f32.mrb[92].mxu1 }
 0x3af   : > { %v1398_v38 = vpop.f32.mrb[93].mxu1  ;;  %v1397_v63 = vadd.f32 %v1396_v7, %v9957_v10 }
 0x3b0   : > { %v1399_v18 = vpop.f32.mrb[94].mxu1 }
 0x3b1   : > { %v1400_v43 = vadd.f32 %v1399_v18, %v9957_v10  ;;  %v1401_v27 = vpop.f32.mrb[95].mxu1 }
 0x3b3   : > { %v10002_v6 = vpack.c.bf16 %v1400_v43, %v1397_v63 }
 0x3b6   : > { %v1404_v37 = vpop.f32.mrb[96].mxu1 }
 0x3b7   : > { %v1406_v11 = vpop.f32.mrb[97].mxu1  ;;  %v1405_v61 = vadd.f32 %v1404_v37, %v9957_v10 }
 0x3b8   : > { %v1407_v14 = vpop.f32.mrb[98].mxu1 }
 0x3b9   : > { %v1408_v8 = vadd.f32 %v1407_v14, %v9957_v10  ;;  %v1409_v20 = vpop.f32.mrb[99].mxu1 }
 0x3bb   : > { %v10018_v13 = vpack.c.bf16 %v1408_v8, %v1405_v61 }
 0x3be   : > { %v1412_v16 = vpop.f32.mrb[100].mxu1 }
 0x3bf   : > { %v1414_v17 = vpop.f32.mrb[101].mxu1  ;;  %v1413_v22 = vadd.f32 %v1412_v16, %v9957_v10 }
 0x3c0   : > { %v1415_v54 = vpop.f32.mrb[102].mxu1 }
 0x3c1   : > { %v1416_v23 = vadd.f32 %v1415_v54, %v9957_v10  ;;  %v1417_v24 = vpop.f32.mrb[103].mxu1 }
 0x3c3   : > { %v10034_v25 = vpack.c.bf16 %v1416_v23, %v1413_v22 }
 0x3c6   : > { %v1420_v29 = vpop.f32.mrb[104].mxu1 }
 0x3c7   : > { %v1422_v46 = vpop.f32.mrb[105].mxu1  ;;  %v1421_v32 = vadd.f32 %v1420_v29, %v9957_v10 }
 0x3c8   : > { %v1423_v30 = vpop.f32.mrb[106].mxu1 }
 0x3c9   : > { %v1424_v33 = vadd.f32 %v1423_v30, %v9957_v10  ;;  %v1425_v36 = vpop.f32.mrb[107].mxu1 }
 0x3cb   : > { %v10041_v50 = vpack.c.bf16 %v1424_v33, %v1421_v32 }
 0x3ce   : > { %v1428_v52 = vpop.f32.mrb[108].mxu1 }
 0x3cf   : > { %v1430_v39 = vpop.f32.mrb[109].mxu1  ;;  %v1429_v41 = vadd.f32 %v1428_v52, %v9957_v10 }
 0x3d0   : > { %v1431_v56 = vpop.f32.mrb[110].mxu1 }
 0x3d1   : > { %v1432_v60 = vadd.f32 %v1431_v56, %v9957_v10  ;;  %v1433_v62 = vpop.f32.mrb[111].mxu1 }
 0x3d3   : > { %v10048_v0 = vpack.c.bf16 %v1432_v60, %v1429_v41 }
 0x3d6   : > { %v1861_v21 = vpop.f32.mrb[112].mxu1 }
 0x3d7   : > { %v1862_v3 = vadd.f32 %v1861_v21, %v10051_v1  ;;  %v1863_v4 = vpop.f32.mrb[113].mxu1 }
 0x3d8   : > { %v1864_v5 = vadd.f32 %v1863_v4, %v10054_v42  ;;  %v1865_v45 = vpop.f32.mrb[114].mxu1 }
 0x3d9   : > { %v1866_v7 = vadd.f32 %v1865_v45, %v10051_v1  ;;  %v1867_v38 = vpop.f32.mrb[115].mxu1  ;;  %v1960_v18 = vmax.f32 %v1862_v3, 0.0 }
 0x3da   : > { %v1868_v10 = vadd.f32 %v1867_v38, %v10054_v42  ;;  %v1961_v63 = vmax.f32 %v1864_v5, 0.0 }
 0x3db   : > { %v1962_v57 = vmax.f32 %v1866_v7, 0.0 }
 0x3dc   : > { %v1963_v43 = vmax.f32 %v1868_v10, 0.0 }
 0x3dd   : > { %v2000_v27 = vpack.c.bf16 %v1962_v57, %v1960_v18 }
 0x3de   : > { %v2001_v31 = vpack.c.bf16 %v1963_v43, %v1961_v63  ;;  %v1871_v19 = vpop.f32.mrb[116].mxu1 }
 0x3df   : > { %v1872_v34 = vadd.f32 %v1871_v19, %v10051_v1  ;;  %v1873_v37 = vpop.f32.mrb[117].mxu1 }
 0x3e0   : > { %v1874_v11 = vadd.f32 %v1873_v37, %v10054_v42  ;;  %v1875_v14 = vpop.f32.mrb[118].mxu1  ;;  %7920 = vmatprep.mubr.msk.bf16.mxu0 %vm651_vm1, %v2001_v31 }
 0x3e1   : > { %v1876_v59 = vadd.f32 %v1875_v14, %v10051_v1  ;;  %v1877_v61 = vpop.f32.mrb[119].mxu1  ;;  %2204 = vmatmul.mubr.bf16.vlgmr.msra.gmra.mrb[88].mxu0 %v2000_v27  ;;  %v1964_v20 = vmax.f32 %v1872_v34, 0.0 }
 0x3e2   : > { %v1878_v8 = vadd.f32 %v1877_v61, %v10054_v42  ;;  %v1965_v47 = vmax.f32 %v1874_v11, 0.0 }
 0x3e3   : > { %v1966_v9 = vmax.f32 %v1876_v59, 0.0 }
 0x3e4   : > { %v1967_v15 = vmax.f32 %v1878_v8, 0.0 }
 0x3e5   : > { %v2002_v16 = vpack.c.bf16 %v1966_v9, %v1964_v20 }
 0x3e6   : > { %v2003_v17 = vpack.c.bf16 %v1967_v15, %v1965_v47  ;;  %v1881_v54 = vpop.f32.mrb[120].mxu1 }
 0x3e7   : > { %v1882_v48 = vadd.f32 %v1881_v54, %v10051_v1  ;;  %v1883_v22 = vpop.f32.mrb[121].mxu1 }
 0x3e8   : > { %v1884_v23 = vadd.f32 %v1883_v22, %v10054_v42  ;;  %v1885_v24 = vpop.f32.mrb[122].mxu1  ;;  %7921 = vmatprep.mubr.msk.bf16.mxu0 %vm651_vm1, %v2003_v17 }
 0x3e9   : > { %v1886_v12 = vadd.f32 %v1885_v24, %v10051_v1  ;;  %v1887_v28 = vpop.f32.mrb[123].mxu1  ;;  %2214 = vmatmul.mubr.bf16.gmra.mrb[92].mxu0 %v2002_v16  ;;  %v1968_v46 = vmax.f32 %v1882_v48, 0.0 }
 0x3ea   : > { %v1888_v29 = vadd.f32 %v1887_v28, %v10054_v42  ;;  %v1969_v32 = vmax.f32 %v1884_v23, 0.0 }
 0x3eb   : > { %v1970_v30 = vmax.f32 %v1886_v12, 0.0 }
 0x3ec   : > { %v1971_v33 = vmax.f32 %v1888_v29, 0.0 }
 0x3ed   : > { %v2004_v36 = vpack.c.bf16 %v1970_v30, %v1968_v46 }
 0x3ee   : > { %v2005_v52 = vpack.c.bf16 %v1971_v33, %v1969_v32  ;;  %v1891_v39 = vpop.f32.mrb[124].mxu1 }
 0x3ef   : > { %v1892_v56 = vadd.f32 %v1891_v39, %v10051_v1  ;;  %v1893_v40 = vpop.f32.mrb[125].mxu1 }
 0x3f0   : > { %v1894_v41 = vadd.f32 %v1893_v40, %v10054_v42  ;;  %v1895_v60 = vpop.f32.mrb[126].mxu1  ;;  %7922 = vmatprep.mubr.msk.bf16.mxu0 %vm651_vm1, %v2005_v52 }
 0x3f1   : > { %v1896_v62 = vadd.f32 %v1895_v60, %v10051_v1  ;;  %v1897_v21 = vpop.f32.mrb[127].mxu1  ;;  %2224 = vmatmul.mubr.bf16.gmra.mrb[96].mxu0 %v2004_v36  ;;  %v1972_v4 = vmax.f32 %v1892_v56, 0.0 }
 0x3f2   : > { %v1898_v3 = vadd.f32 %v1897_v21, %v10054_v42  ;;  %v1973_v45 = vmax.f32 %v1894_v41, 0.0 }
 0x3f3   : > { %v1974_v5 = vmax.f32 %v1896_v62, 0.0 }
 0x3f4   : > { %v1975_v7 = vmax.f32 %v1898_v3, 0.0 }
 0x3f5   : > { %v2006_v38 = vpack.c.bf16 %v1974_v5, %v1972_v4 }
 0x3f6   : > { %v2007_v10 = vpack.c.bf16 %v1975_v7, %v1973_v45  ;;  %v1901_v18 = vpop.f32.mrb[128].mxu1 }
 0x3f7   : > { %v1902_v57 = vadd.f32 %v1901_v18, %v10051_v1  ;;  %v1903_v63 = vpop.f32.mrb[129].mxu1 }
 0x3f8   : > { %v1904_v43 = vadd.f32 %v1903_v63, %v10054_v42  ;;  %v1905_v27 = vpop.f32.mrb[130].mxu1  ;;  %7923 = vmatprep.mubr.msk.bf16.mxu0 %vm651_vm1, %v2007_v10 }
 0x3f9   : > { %v1906_v31 = vadd.f32 %v1905_v27, %v10051_v1  ;;  %v1907_v19 = vpop.f32.mrb[131].mxu1  ;;  %2234 = vmatmul.mubr.bf16.gmra.mrb[100].mxu0 %v2006_v38  ;;  %v1976_v37 = vmax.f32 %v1902_v57, 0.0 }
 0x3fa   : > { %v1908_v34 = vadd.f32 %v1907_v19, %v10054_v42  ;;  %v1977_v14 = vmax.f32 %v1904_v43, 0.0 }
 0x3fb   : > { %v1978_v11 = vmax.f32 %v1906_v31, 0.0 }
 0x3fc   : > { %v1979_v59 = vmax.f32 %v1908_v34, 0.0 }
 0x3fd   : > { %v2008_v61 = vpack.c.bf16 %v1978_v11, %v1976_v37 }
 0x3fe   : > { %v2009_v8 = vpack.c.bf16 %v1979_v59, %v1977_v14  ;;  %v1911_v20 = vpop.f32.mrb[132].mxu1 }
 0x3ff   : > { %v1912_v9 = vadd.f32 %v1911_v20, %v10051_v1  ;;  %v1913_v47 = vpop.f32.mrb[133].mxu1 }
 0x400   : > { %v1914_v15 = vadd.f32 %v1913_v47, %v10054_v42  ;;  %v1915_v16 = vpop.f32.mrb[134].mxu1  ;;  %7924 = vmatprep.mubr.msk.bf16.mxu0 %vm651_vm1, %v2009_v8 }
 0x401   : > { %v1916_v17 = vadd.f32 %v1915_v16, %v10051_v1  ;;  %v1917_v54 = vpop.f32.mrb[135].mxu1  ;;  %2244 = vmatmul.mubr.bf16.gmra.mrb[104].mxu0 %v2008_v61  ;;  %v1980_v22 = vmax.f32 %v1912_v9, 0.0 }
 0x402   : > { %v1918_v48 = vadd.f32 %v1917_v54, %v10054_v42  ;;  %v1981_v24 = vmax.f32 %v1914_v15, 0.0 }
 0x403   : > { %v1982_v23 = vmax.f32 %v1916_v17, 0.0 }
 0x404   : > { %v1983_v12 = vmax.f32 %v1918_v48, 0.0 }
 0x405   : > { %v2010_v28 = vpack.c.bf16 %v1982_v23, %v1980_v22 }
 0x406   : > { %v2011_v29 = vpack.c.bf16 %v1983_v12, %v1981_v24  ;;  %v1921_v46 = vpop.f32.mrb[136].mxu1 }
 0x407   : > { %v1922_v30 = vadd.f32 %v1921_v46, %v10051_v1  ;;  %v1923_v32 = vpop.f32.mrb[137].mxu1 }
 0x408   : > { %v1924_v33 = vadd.f32 %v1923_v32, %v10054_v42  ;;  %v1925_v36 = vpop.f32.mrb[138].mxu1  ;;  %7925 = vmatprep.mubr.msk.bf16.mxu0 %vm651_vm1, %v2011_v29 }
 0x409   : > { %v1926_v52 = vadd.f32 %v1925_v36, %v10051_v1  ;;  %v1927_v39 = vpop.f32.mrb[139].mxu1  ;;  %2254 = vmatmul.mubr.bf16.gmra.mrb[108].mxu0 %v2010_v28  ;;  %v1984_v40 = vmax.f32 %v1922_v30, 0.0 }
 0x40a   : > { %v1928_v56 = vadd.f32 %v1927_v39, %v10054_v42  ;;  %v1985_v60 = vmax.f32 %v1924_v33, 0.0 }
 0x40b   : > { %v1986_v41 = vmax.f32 %v1926_v52, 0.0 }
 0x40c   : > { %v1987_v62 = vmax.f32 %v1928_v56, 0.0 }
 0x40d   : > { %v2012_v21 = vpack.c.bf16 %v1986_v41, %v1984_v40  ;;  %v8732_v40 = vld [vmem:[%s11937_s1 + $0x364] ss:$8 sps:$4 sm:$0xff]   ;;  %v7901_v41 = vld [vmem:[%s11939_s3 + $0x10] ss:$8 sm:$0x3] }
 0x40e   : > { %v2013_v3 = vpack.c.bf16 %v1987_v62, %v1985_v60  ;;  %v1931_v4 = vpop.f32.mrb[140].mxu1  ;;  %2531 = vmatprep.subr.bf16.mxu1 %v8732_v40  ;;  %v10119_v60 = vrot.slane %v7901_v41, %v9458_v51  ;;  %v10122_v62 = vrot.slane %v7901_v41, %v9463_v53 }
 0x40f   : > { %v1932_v5 = vadd.f32 %v1931_v4, %v10051_v1  ;;  %v1933_v45 = vpop.f32.mrb[141].mxu1 }
 0x410   : > { %v1934_v7 = vadd.f32 %v1933_v45, %v10054_v42  ;;  %v1935_v38 = vpop.f32.mrb[142].mxu1  ;;  %7926 = vmatprep.mubr.msk.bf16.mxu0 %vm651_vm1, %v2013_v3 }
 0x411   : > { %v1936_v10 = vadd.f32 %v1935_v38, %v10051_v1  ;;  %v1937_v18 = vpop.f32.mrb[143].mxu1  ;;  %2264 = vmatmul.mubr.bf16.gmra.mrb[112].mxu0 %v2012_v21  ;;  %v1988_v63 = vmax.f32 %v1932_v5, 0.0 }
 0x412   : > { %v1938_v57 = vadd.f32 %v1937_v18, %v10054_v42  ;;  %v1989_v27 = vmax.f32 %v1934_v7, 0.0 }
 0x413   : > { %v1990_v43 = vmax.f32 %v1936_v10, 0.0 }
 0x414   : > { %v1991_v31 = vmax.f32 %v1938_v57, 0.0 }
 0x415   : > { %v2014_v19 = vpack.c.bf16 %v1990_v43, %v1988_v63 }
 0x416   : > { %v2015_v34 = vpack.c.bf16 %v1991_v31, %v1989_v27  ;;  %v1941_v37 = vpop.f32.mrb[144].mxu1 }
 0x417   : > { %v1942_v11 = vadd.f32 %v1941_v37, %v10051_v1  ;;  %v1943_v14 = vpop.f32.mrb[145].mxu1 }
 0x418   : > { %v1944_v59 = vadd.f32 %v1943_v14, %v10054_v42  ;;  %v1945_v61 = vpop.f32.mrb[146].mxu1  ;;  %7927 = vmatprep.mubr.msk.bf16.mxu0 %vm651_vm1, %v2015_v34  ;;  %v8733_v34 = vld [vmem:[%s11937_s1 + $0x40] ss:$8 sps:$4 sm:$0xff]   ;;  %v8738_v14 = vld [vmem:[%s11937_s1 + $0x54] ss:$8 sps:$4 sm:$0xff]  }
 0x419   : > { %v1946_v8 = vadd.f32 %v1945_v61, %v10051_v1  ;;  %v1947_v20 = vpop.f32.mrb[147].mxu1  ;;  %2274 = vmatmul.mubr.bf16.gmra.mrb[116].mxu0 %v2014_v19  ;;  %v1992_v47 = vmax.f32 %v1942_v11, 0.0 }
 0x41a   : > { %v1948_v9 = vadd.f32 %v1947_v20, %v10054_v42  ;;  %v1993_v16 = vmax.f32 %v1944_v59, 0.0 }
 0x41b   : > { %v1994_v15 = vmax.f32 %v1946_v8, 0.0 }
 0x41c   : > { %v1995_v17 = vmax.f32 %v1948_v9, 0.0 }
 0x41d   : > { %v2016_v54 = vpack.c.bf16 %v1994_v15, %v1992_v47  ;;  %v8736_v47 = vld [vmem:[%s11937_s1 + $0x50] ss:$8 sps:$4 sm:$0xff]  }
 0x41e   : > { %v2017_v48 = vpack.c.bf16 %v1995_v17, %v1993_v16  ;;  %v1951_v22 = vpop.f32.mrb[148].mxu1 }
 0x41f   : > { %v1952_v23 = vadd.f32 %v1951_v22, %v10051_v1  ;;  %v1953_v24 = vpop.f32.mrb[149].mxu1 }
 0x420   : > { %v1954_v12 = vadd.f32 %v1953_v24, %v10054_v42  ;;  %v1955_v28 = vpop.f32.mrb[150].mxu1  ;;  %7928 = vmatprep.mubr.msk.bf16.mxu0 %vm651_vm1, %v2017_v48 }
 0x421   : > { %v1956_v29 = vadd.f32 %v1955_v28, %v10051_v1  ;;  %v1957_v46 = vpop.f32.mrb[151].mxu1  ;;  %2284 = vmatmul.mubr.bf16.gmra.mrb[120].mxu0 %v2016_v54  ;;  %v1996_v32 = vmax.f32 %v1952_v23, 0.0  ;;  %v8730_v1 = vld [vmem:[%s11937_s1 + $0x360] ss:$8 sps:$4 sm:$0xff]  }
 0x422   : > { %v1958_v30 = vadd.f32 %v1957_v46, %v10054_v42  ;;  %v1997_v36 = vmax.f32 %v1954_v12, 0.0  ;;  %2532 = vmatpush1.bf16.msra.mxu1 %v8730_v1  ;;  %v8735_v42 = vld [vmem:[%s11937_s1 + $0x44] ss:$8 sps:$4 sm:$0xff]  }
 0x423   : > { %v1998_v33 = vmax.f32 %v1956_v29, 0.0  ;;  %3010 = vmatprep.subr.bf16.mxu1 %v8735_v42 }
 0x424   : > { %v1999_v52 = vmax.f32 %v1958_v30, 0.0 }
 0x425   : > { %v2018_v39 = vpack.c.bf16 %v1998_v33, %v1996_v32  ;;  %v8739_v32 = vld [vmem:[%s11938_s2 + $0x48] sm:$0xff]  }
 0x426   : > { %v2019_v56 = vpack.c.bf16 %v1999_v52, %v1997_v36  ;;  %2811 = vmatpush1.bf16.msra.mxu0 %v8739_v32 }
 0x427   : > { %2812 = vmatprep.subr.bf16.mxu0 %v9184_v2 }
 0x428   : > { %7929 = vmatprep.mubr.msk.bf16.mxu0 %vm651_vm1, %v2019_v56 }
 0x429   : > { %2294 = vmatmul.mubr.bf16.gmra.mrb[124].mxu0 %v2018_v39 }
 0x4b4   : > { %v2205_v21 = vpop.f32.mrb[88].mxu0 }
 0x4b5   : > { %v2206_v3 = vadd.f32 %v2205_v21, %v10119_v60  ;;  %v2207_v4 = vpop.f32.mrb[89].mxu0 }
 0x4b6   : > { %v2208_v5 = vadd.f32 %v2207_v4, %v10122_v62  ;;  %v2209_v45 = vpop.f32.mrb[90].mxu0 }
 0x4b7   : > { %v2210_v7 = vadd.f32 %v2209_v45, %v10119_v60  ;;  %v2211_v38 = vpop.f32.mrb[91].mxu0  ;;  %v2304_v18 = vmax.f32 %v2206_v3, 0.0 }
 0x4b8   : > { %v2212_v10 = vadd.f32 %v2211_v38, %v10122_v62  ;;  %v2305_v63 = vmax.f32 %v2208_v5, 0.0 }
 0x4b9   : > { %v2306_v57 = vmax.f32 %v2210_v7, 0.0  ;;  %v8740_v7 = vld [vmem:[%s11938_s2 + $0x50] sm:$0xff]  }
 0x4ba   : > { %v2307_v43 = vmax.f32 %v2212_v10, 0.0  ;;  %2813 = vmatpush1.bf16.msra.mxu0 %v8740_v7 }
 0x4bb   : > { %v2344_v27 = vpack.c.bf16 %v2306_v57, %v2304_v18  ;;  %2814 = vmatprep.subr.bf16.mxu0 %v9184_v2 }
 0x4bc   : > { %v2345_v31 = vpack.c.bf16 %v2307_v43, %v2305_v63  ;;  %v2215_v19 = vpop.f32.mrb[92].mxu0 }
 0x4bd   : > { %v2216_v37 = vadd.f32 %v2215_v19, %v10119_v60  ;;  %v2217_v11 = vpop.f32.mrb[93].mxu0 }
 0x4be   : > { %v2218_v59 = vadd.f32 %v2217_v11, %v10122_v62  ;;  %v2219_v61 = vpop.f32.mrb[94].mxu0  ;;  %7949 = vmatprep.mubr.msk.bf16.mxu1 %vm651_vm1, %v2345_v31 }
 0x4bf   : > { %v2220_v8 = vadd.f32 %v2219_v61, %v10119_v60  ;;  %v2221_v20 = vpop.f32.mrb[95].mxu0  ;;  %2548 = vmatmul.mubr.bf16.vlgmr.msra.gmra.mrb[152].mxu1 %v2344_v27  ;;  %v2308_v15 = vmax.f32 %v2216_v37, 0.0  ;;  %v8741_v61 = vld [vmem:[%s11938_s2 + $0x58] sm:$0xff]  }
 0x4c0   : > { %v2222_v9 = vadd.f32 %v2221_v20, %v10122_v62  ;;  %3011 = vmatpush1.bf16.msra.mxu1 %v8733_v34  ;;  %v2309_v17 = vmax.f32 %v2218_v59, 0.0  ;;  %2815 = vmatpush1.bf16.msra.mxu0 %v8741_v61 }
 0x4c1   : > { %v2310_v16 = vmax.f32 %v2220_v8, 0.0  ;;  %3012 = vmatprep.subr.bf16.mxu1 %v8738_v14  ;;  %2816 = vmatprep.subr.bf16.mxu0 %v9184_v2 }
 0x4c2   : > { %v2311_v54 = vmax.f32 %v2222_v9, 0.0 }
 0x4c3   : > { %v2346_v48 = vpack.c.bf16 %v2310_v16, %v2308_v15 }
 0x4c4   : > { %v2347_v22 = vpack.c.bf16 %v2311_v54, %v2309_v17  ;;  %v2225_v23 = vpop.f32.mrb[96].mxu0  ;;  %3013 = vmatpush1.bf16.msra.mxu1 %v8736_v47  ;;  %v8742_v47 = vld [vmem:[%s11938_s2 + $0x60] sm:$0xff]  }
 0x4c5   : > { %v2226_v24 = vadd.f32 %v2225_v23, %v10119_v60  ;;  %v2227_v12 = vpop.f32.mrb[97].mxu0  ;;  %2817 = vmatpush1.bf16.msra.mxu0 %v8742_v47 }
 0x4c6   : > { %v2228_v28 = vadd.f32 %v2227_v12, %v10122_v62  ;;  %v2229_v29 = vpop.f32.mrb[98].mxu0  ;;  %7950 = vmatprep.mubr.msk.bf16.mxu1 %vm651_vm1, %v2347_v22  ;;  %2818 = vmatprep.subr.bf16.mxu0 %v9184_v2 }
 0x4c7   : > { %v2230_v46 = vadd.f32 %v2229_v29, %v10119_v60  ;;  %v2231_v30 = vpop.f32.mrb[99].mxu0  ;;  %2558 = vmatmul.mubr.bf16.gmra.mrb[156].mxu1 %v2346_v48  ;;  %v2312_v36 = vmax.f32 %v2226_v24, 0.0  ;;  %v8743_v24 = vld [vmem:[%s11938_s2 + $0x68] sm:$0xff]  }
 0x4c8   : > { %v2232_v33 = vadd.f32 %v2231_v30, %v10122_v62  ;;  %v2313_v39 = vmax.f32 %v2228_v28, 0.0 }
 0x4c9   : > { %v2314_v52 = vmax.f32 %v2230_v46, 0.0  ;;  %2819 = vmatpush1.bf16.msra.mxu0 %v8743_v24 }
 0x4ca   : > { %v2315_v56 = vmax.f32 %v2232_v33, 0.0  ;;  %2820 = vmatprep.subr.bf16.mxu0 %v9184_v2 }
 0x4cb   : > { %v2348_v40 = vpack.c.bf16 %v2314_v52, %v2312_v36  ;;  %v8744_v36 = vld [vmem:[%s11938_s2 + $0x70] sm:$0xff]  }
 0x4cc   : > { %v2349_v1 = vpack.c.bf16 %v2315_v56, %v2313_v39  ;;  %v2235_v42 = vpop.f32.mrb[100].mxu0 }
 0x4cd   : > { %v2236_v41 = vadd.f32 %v2235_v42, %v10119_v60  ;;  %v2237_v21 = vpop.f32.mrb[101].mxu0  ;;  %2821 = vmatpush1.bf16.msra.mxu0 %v8744_v36 }
 0x4ce   : > { %v2238_v3 = vadd.f32 %v2237_v21, %v10122_v62  ;;  %v2239_v4 = vpop.f32.mrb[102].mxu0  ;;  %7951 = vmatprep.mubr.msk.bf16.mxu1 %vm651_vm1, %v2349_v1  ;;  %v8745_v21 = vld [vmem:[%s11938_s2 + $0x78] sm:$0xff]   ;;  %2822 = vmatprep.subr.bf16.mxu0 %v9184_v2 }
 0x4cf   : > { %v2240_v5 = vadd.f32 %v2239_v4, %v10119_v60  ;;  %v2241_v45 = vpop.f32.mrb[103].mxu0  ;;  %2568 = vmatmul.mubr.bf16.gmra.mrb[160].mxu1 %v2348_v40  ;;  %v2316_v10 = vmax.f32 %v2236_v41, 0.0 }
 0x4d0   : > { %v2242_v38 = vadd.f32 %v2241_v45, %v10122_v62  ;;  %v2317_v57 = vmax.f32 %v2238_v3, 0.0 }
 0x4d1   : > { %v2318_v18 = vmax.f32 %v2240_v5, 0.0  ;;  %2823 = vmatpush1.bf16.msra.mxu0 %v8745_v21 }
 0x4d2   : > { %v2319_v63 = vmax.f32 %v2242_v38, 0.0  ;;  %2824 = vmatprep.subr.bf16.mxu0 %v9184_v2 }
 0x4d3   : > { %v2350_v43 = vpack.c.bf16 %v2318_v18, %v2316_v10  ;;  %v8746_v18 = vld [vmem:[%s11938_s2 + $0x80] sm:$0xff]  }
 0x4d4   : > { %v2351_v27 = vpack.c.bf16 %v2319_v63, %v2317_v57  ;;  %v2245_v31 = vpop.f32.mrb[104].mxu0 }
 0x4d5   : > { %v2246_v19 = vadd.f32 %v2245_v31, %v10119_v60  ;;  %v2247_v34 = vpop.f32.mrb[105].mxu0  ;;  %2825 = vmatpush1.bf16.msra.mxu0 %v8746_v18 }
 0x4d6   : > { %v2248_v37 = vadd.f32 %v2247_v34, %v10122_v62  ;;  %v2249_v11 = vpop.f32.mrb[106].mxu0  ;;  %7952 = vmatprep.mubr.msk.bf16.mxu1 %vm651_vm1, %v2351_v27  ;;  %2826 = vmatprep.subr.bf16.mxu0 %v9184_v2 }
 0x4d7   : > { %v2250_v14 = vadd.f32 %v2249_v11, %v10119_v60  ;;  %v2251_v59 = vpop.f32.mrb[107].mxu0  ;;  %2578 = vmatmul.mubr.bf16.gmra.mrb[164].mxu1 %v2350_v43  ;;  %v2320_v20 = vmax.f32 %v2246_v19, 0.0 }
 0x4d8   : > { %v2252_v8 = vadd.f32 %v2251_v59, %v10122_v62  ;;  %v2321_v15 = vmax.f32 %v2248_v37, 0.0 }
 0x4d9   : > { %v2322_v9 = vmax.f32 %v2250_v14, 0.0 }
 0x4da   : > { %v2323_v16 = vmax.f32 %v2252_v8, 0.0 }
 0x4db   : > { %v2352_v17 = vpack.c.bf16 %v2322_v9, %v2320_v20 }
 0x4dc   : > { %v2353_v54 = vpack.c.bf16 %v2323_v16, %v2321_v15  ;;  %v2255_v48 = vpop.f32.mrb[108].mxu0 }
 0x4dd   : > { %v2256_v22 = vadd.f32 %v2255_v48, %v10119_v60  ;;  %v2257_v23 = vpop.f32.mrb[109].mxu0 }
 0x4de   : > { %v2258_v12 = vadd.f32 %v2257_v23, %v10122_v62  ;;  %v2259_v28 = vpop.f32.mrb[110].mxu0  ;;  %7953 = vmatprep.mubr.msk.bf16.mxu1 %vm651_vm1, %v2353_v54 }
 0x4df   : > { %v2260_v29 = vadd.f32 %v2259_v28, %v10119_v60  ;;  %v2261_v46 = vpop.f32.mrb[111].mxu0  ;;  %2588 = vmatmul.mubr.bf16.gmra.mrb[168].mxu1 %v2352_v17  ;;  %v2324_v32 = vmax.f32 %v2256_v22, 0.0 }
 0x4e0   : > { %v2262_v30 = vadd.f32 %v2261_v46, %v10122_v62  ;;  %v2325_v52 = vmax.f32 %v2258_v12, 0.0 }
 0x4e1   : > { %v2326_v33 = vmax.f32 %v2260_v29, 0.0 }
 0x4e2   : > { %v2327_v39 = vmax.f32 %v2262_v30, 0.0 }
 0x4e3   : > { %v2354_v56 = vpack.c.bf16 %v2326_v33, %v2324_v32 }
 0x4e4   : > { %v2355_v40 = vpack.c.bf16 %v2327_v39, %v2325_v52  ;;  %v2265_v1 = vpop.f32.mrb[112].mxu0 }
 0x4e5   : > { %v2266_v42 = vadd.f32 %v2265_v1, %v10119_v60  ;;  %v2267_v41 = vpop.f32.mrb[113].mxu0 }
 0x4e6   : > { %v2268_v3 = vadd.f32 %v2267_v41, %v10122_v62  ;;  %v2269_v4 = vpop.f32.mrb[114].mxu0  ;;  %7954 = vmatprep.mubr.msk.bf16.mxu1 %vm651_vm1, %v2355_v40 }
 0x4e7   : > { %v2270_v5 = vadd.f32 %v2269_v4, %v10119_v60  ;;  %v2271_v45 = vpop.f32.mrb[115].mxu0  ;;  %2598 = vmatmul.mubr.bf16.gmra.mrb[172].mxu1 %v2354_v56  ;;  %v2328_v38 = vmax.f32 %v2266_v42, 0.0 }
 0x4e8   : > { %v2272_v7 = vadd.f32 %v2271_v45, %v10122_v62  ;;  %v2329_v57 = vmax.f32 %v2268_v3, 0.0 }
 0x4e9   : > { %v2330_v10 = vmax.f32 %v2270_v5, 0.0 }
 0x4ea   : > { %v2331_v63 = vmax.f32 %v2272_v7, 0.0 }
 0x4eb   : > { %v2356_v43 = vpack.c.bf16 %v2330_v10, %v2328_v38  ;;  %v7930_v10 = vld [vmem:[%s11939_s3 + $0x11] ss:$8 sm:$0x3] }
 0x4ec   : > { %v2357_v27 = vpack.c.bf16 %v2331_v63, %v2329_v57  ;;  %v2275_v31 = vpop.f32.mrb[116].mxu0  ;;  %v10255_v18 = vrot.slane %v7930_v10, %v9458_v51  ;;  %v10258_v57 = vrot.slane %v7930_v10, %v9463_v53 }
 0x4ed   : > { %v2276_v19 = vadd.f32 %v2275_v31, %v10119_v60  ;;  %v2277_v34 = vpop.f32.mrb[117].mxu0 }
 0x4ee   : > { %v2278_v37 = vadd.f32 %v2277_v34, %v10122_v62  ;;  %v2279_v11 = vpop.f32.mrb[118].mxu0  ;;  %7955 = vmatprep.mubr.msk.bf16.mxu1 %vm651_vm1, %v2357_v27 }
 0x4ef   : > { %v2280_v14 = vadd.f32 %v2279_v11, %v10119_v60  ;;  %v2281_v59 = vpop.f32.mrb[119].mxu0  ;;  %2608 = vmatmul.mubr.bf16.gmra.mrb[176].mxu1 %v2356_v43  ;;  %v2332_v8 = vmax.f32 %v2276_v19, 0.0 }
 0x4f0   : > { %v2282_v61 = vadd.f32 %v2281_v59, %v10122_v62  ;;  %v2333_v9 = vmax.f32 %v2278_v37, 0.0 }
 0x4f1   : > { %v2334_v20 = vmax.f32 %v2280_v14, 0.0 }
 0x4f2   : > { %v2335_v47 = vmax.f32 %v2282_v61, 0.0 }
 0x4f3   : > { %v2358_v15 = vpack.c.bf16 %v2334_v20, %v2332_v8 }
 0x4f4   : > { %v2359_v16 = vpack.c.bf16 %v2335_v47, %v2333_v9  ;;  %v2285_v17 = vpop.f32.mrb[120].mxu0 }
 0x4f5   : > { %v2286_v54 = vadd.f32 %v2285_v17, %v10119_v60  ;;  %v2287_v48 = vpop.f32.mrb[121].mxu0 }
 0x4f6   : > { %v2288_v22 = vadd.f32 %v2287_v48, %v10122_v62  ;;  %v2289_v23 = vpop.f32.mrb[122].mxu0  ;;  %7956 = vmatprep.mubr.msk.bf16.mxu1 %vm651_vm1, %v2359_v16 }
 0x4f7   : > { %v2290_v24 = vadd.f32 %v2289_v23, %v10119_v60  ;;  %v2291_v12 = vpop.f32.mrb[123].mxu0  ;;  %2618 = vmatmul.mubr.bf16.gmra.mrb[180].mxu1 %v2358_v15  ;;  %v2336_v29 = vmax.f32 %v2286_v54, 0.0  ;;  %v8748_v15 = vld [vmem:[%s11937_s1 + $0x370] ss:$8 sps:$4 sm:$0xff]   ;;  %v8753_v54 = vld [vmem:[%s11937_s1 + $0x384] ss:$8 sps:$4 sm:$0xff]  }
 0x4f8   : > { %v2292_v28 = vadd.f32 %v2291_v12, %v10122_v62  ;;  %v2337_v30 = vmax.f32 %v2288_v22, 0.0 }
 0x4f9   : > { %v2338_v46 = vmax.f32 %v2290_v24, 0.0 }
 0x4fa   : > { %v2339_v32 = vmax.f32 %v2292_v28, 0.0  ;;  %v8751_v28 = vld [vmem:[%s11937_s1 + $0x380] ss:$8 sps:$4 sm:$0xff]  }
 0x4fb   : > { %v2360_v33 = vpack.c.bf16 %v2338_v46, %v2336_v29 }
 0x4fc   : > { %v2361_v36 = vpack.c.bf16 %v2339_v32, %v2337_v30  ;;  %v2295_v52 = vpop.f32.mrb[124].mxu0  ;;  %v8756_v30 = vld [vmem:[%s11937_s1 + $0x394] ss:$8 sps:$4 sm:$0xff]  }
 0x4fd   : > { %v2296_v39 = vadd.f32 %v2295_v52, %v10119_v60  ;;  %v2297_v56 = vpop.f32.mrb[125].mxu0 }
 0x4fe   : > { %v2298_v40 = vadd.f32 %v2297_v56, %v10122_v62  ;;  %v2299_v1 = vpop.f32.mrb[126].mxu0  ;;  %7957 = vmatprep.mubr.msk.bf16.mxu1 %vm651_vm1, %v2361_v36  ;;  %v8754_v56 = vld [vmem:[%s11937_s1 + $0x390] ss:$8 sps:$4 sm:$0xff]  }
 0x4ff   : > { %v2300_v42 = vadd.f32 %v2299_v1, %v10119_v60  ;;  %v2301_v41 = vpop.f32.mrb[127].mxu0  ;;  %2628 = vmatmul.mubr.bf16.gmra.mrb[184].mxu1 %v2360_v33  ;;  %v2340_v3 = vmax.f32 %v2296_v39, 0.0  ;;  %v8747_v60 = vld [vmem:[%s11938_s2 + $0x88] sm:$0xff]  }
 0x500   : > { %v2302_v21 = vadd.f32 %v2301_v41, %v10122_v62  ;;  %v2341_v5 = vmax.f32 %v2298_v40, 0.0  ;;  %2827 = vmatpush1.bf16.msra.mxu0 %v8747_v60  ;;  %v8750_v62 = vld [vmem:[%s11937_s1 + $0x374] ss:$8 sps:$4 sm:$0xff]  }
 0x501   : > { %v2342_v4 = vmax.f32 %v2300_v42, 0.0  ;;  %3354 = vmatprep.subr.bf16.mxu0 %v8750_v62  ;;  %v8759_v42 = vld [vmem:[%s11937_s1 + $0x3a4] ss:$8 sps:$4 sm:$0xff]   ;;  %v8762_v60 = vld [vmem:[%s11937_s1 + $0x3b4] ss:$8 sps:$4 sm:$0xff]  }
 0x502   : > { %v2343_v45 = vmax.f32 %v2302_v21, 0.0 }
 0x503   : > { %v2362_v7 = vpack.c.bf16 %v2342_v4, %v2340_v3 }
 0x504   : > { %v2363_v38 = vpack.c.bf16 %v2343_v45, %v2341_v5  ;;  %v8757_v45 = vld [vmem:[%s11937_s1 + $0x3a0] ss:$8 sps:$4 sm:$0xff]  }
 0x506   : > { %7958 = vmatprep.mubr.msk.bf16.mxu1 %vm651_vm1, %v2363_v38 }
 0x507   : > { %2638 = vmatmul.mubr.bf16.gmra.mrb[188].mxu1 %v2362_v7 }
 0x508   : > { %3042 = vmatprep.mubr.bf16.mxu1 %v9184_v2 }
 0x50f   : > { %7983 = vmatmul.mubr.msk.bf16.vlgmr.msra.gmra.mrb[192].mxu1 %vm306_vm0, %v9961_v55 }
 0x510   : > { %3052 = vmatprep.mubr.bf16.mxu1 %v9184_v2 }
 0x517   : > { %7984 = vmatmul.mubr.msk.bf16.gmra.mrb[196].mxu1 %vm306_vm0, %v9965_v26 }
 0x518   : > { %3062 = vmatprep.mubr.bf16.mxu1 %v9184_v2 }
 0x51f   : > { %7985 = vmatmul.mubr.msk.bf16.gmra.mrb[200].mxu1 %vm306_vm0, %v9969_v35 }
 0x520   : > { %3072 = vmatprep.mubr.bf16.mxu1 %v9184_v2 }
 0x527   : > { %7986 = vmatmul.mubr.msk.bf16.gmra.mrb[204].mxu1 %vm306_vm0, %v9973_v58 }
 0x528   : > { %3082 = vmatprep.mubr.bf16.mxu1 %v9184_v2 }
 0x52f   : > { %7987 = vmatmul.mubr.msk.bf16.gmra.mrb[208].mxu1 %vm306_vm0, %v9986_v44 }
 0x530   : > { %3092 = vmatprep.mubr.bf16.mxu1 %v9184_v2 }
 0x537   : > { %7988 = vmatmul.mubr.msk.bf16.gmra.mrb[212].mxu1 %vm306_vm0, %v10002_v6 }
 0x538   : > { %3102 = vmatprep.mubr.bf16.mxu1 %v9184_v2 }
 0x53f   : > { %7989 = vmatmul.mubr.msk.bf16.gmra.mrb[216].mxu1 %vm306_vm0, %v10018_v13 }
 0x540   : > { %3112 = vmatprep.mubr.bf16.mxu1 %v9184_v2 }
 0x547   : > { %7990 = vmatmul.mubr.msk.bf16.gmra.mrb[220].mxu1 %vm306_vm0, %v10034_v25 }
 0x548   : > { %3122 = vmatprep.mubr.bf16.mxu1 %v9184_v2 }
 0x54f   : > { %7991 = vmatmul.mubr.msk.bf16.gmra.mrb[224].mxu1 %vm306_vm0, %v10041_v50 }
 0x550   : > { %3132 = vmatprep.mubr.bf16.mxu1 %v9184_v2 }
 0x557   : > { %7992 = vmatmul.mubr.msk.bf16.gmra.mrb[228].mxu1 %vm306_vm0, %v10048_v0 }
 0x592   : > { %v2549_v63 = vpop.f32.mrb[152].mxu1 }
 0x593   : > { %v2550_v43 = vadd.f32 %v2549_v63, %v10255_v18  ;;  %v2551_v27 = vpop.f32.mrb[153].mxu1 }
 0x594   : > { %v2552_v31 = vadd.f32 %v2551_v27, %v10258_v57  ;;  %v2553_v19 = vpop.f32.mrb[154].mxu1 }
 0x595   : > { %v2554_v34 = vadd.f32 %v2553_v19, %v10255_v18  ;;  %v2555_v37 = vpop.f32.mrb[155].mxu1  ;;  %v2648_v14 = vmax.f32 %v2550_v43, 0.0 }
 0x596   : > { %v2556_v11 = vadd.f32 %v2555_v37, %v10258_v57  ;;  %v2649_v61 = vmax.f32 %v2552_v31, 0.0  ;;  %v8760_v31 = vld [vmem:[%s11937_s1 + $0x3b0] ss:$8 sps:$4 sm:$0xff]   ;;  %v8765_v37 = vld [vmem:[%s11937_s1 + $0x3c4] ss:$8 sps:$4 sm:$0xff]  }
 0x597   : > { %v2650_v59 = vmax.f32 %v2554_v34, 0.0 }
 0x598   : > { %v2651_v8 = vmax.f32 %v2556_v11, 0.0 }
 0x599   : > { %v2706_v20 = vpack.c.bf16 %v2650_v59, %v2648_v14 }
 0x59a   : > { %v2707_v9 = vpack.c.bf16 %v2651_v8, %v2649_v61  ;;  %v2559_v47 = vpop.f32.mrb[156].mxu1 }
 0x59b   : > { %v2560_v16 = vadd.f32 %v2559_v47, %v10255_v18  ;;  %v2561_v17 = vpop.f32.mrb[157].mxu1 }
 0x59c   : > { %v2562_v48 = vadd.f32 %v2561_v17, %v10258_v57  ;;  %v2563_v22 = vpop.f32.mrb[158].mxu1  ;;  %7968 = vmatprep.mubr.msk.bf16.mxu0 %vm651_vm1, %v2707_v9 }
 0x59d   : > { %v2564_v23 = vadd.f32 %v2563_v22, %v10255_v18  ;;  %v2565_v24 = vpop.f32.mrb[159].mxu1  ;;  %2843 = vmatmul.mubr.bf16.vlgmr.msra.gmra.mrb[128].mxu0 %v2706_v20  ;;  %v2652_v29 = vmax.f32 %v2560_v16, 0.0  ;;  %v8763_v20 = vld [vmem:[%s11937_s1 + $0x3c0] ss:$8 sps:$4 sm:$0xff]  }
 0x59e   : > { %v2566_v12 = vadd.f32 %v2565_v24, %v10258_v57  ;;  %3355 = vmatpush1.bf16.msra.mxu0 %v8748_v15  ;;  %v2653_v32 = vmax.f32 %v2562_v48, 0.0  ;;  %v8768_v15 = vld [vmem:[%s11937_s1 + $0x3d4] ss:$8 sps:$4 sm:$0xff]  }
 0x59f   : > { %v2654_v46 = vmax.f32 %v2564_v23, 0.0  ;;  %3356 = vmatprep.subr.bf16.mxu0 %v8753_v54  ;;  %v8766_v23 = vld [vmem:[%s11937_s1 + $0x3d0] ss:$8 sps:$4 sm:$0xff]  }
 0x5a0   : > { %v2655_v33 = vmax.f32 %v2566_v12, 0.0 }
 0x5a1   : > { %v2708_v36 = vpack.c.bf16 %v2654_v46, %v2652_v29 }
 0x5a2   : > { %v2709_v52 = vpack.c.bf16 %v2655_v33, %v2653_v32  ;;  %v2569_v39 = vpop.f32.mrb[160].mxu1  ;;  %3357 = vmatpush1.bf16.msra.mxu0 %v8751_v28  ;;  %v8771_v28 = vld [vmem:[%s11937_s1 + $0x3e4] ss:$8 sps:$4 sm:$0xff]   ;;  %v8775_v33 = vld [vmem:[%s11937_s1 + $0x400] ss:$8 sps:$4 sm:$0xff]  }
 0x5a3   : > { %v2570_v40 = vadd.f32 %v2569_v39, %v10255_v18  ;;  %v2571_v1 = vpop.f32.mrb[161].mxu1  ;;  %3358 = vmatprep.subr.bf16.mxu0 %v8756_v30  ;;  %v8769_v39 = vld [vmem:[%s11937_s1 + $0x3e0] ss:$8 sps:$4 sm:$0xff]  }
 0x5a4   : > { %v2572_v41 = vadd.f32 %v2571_v1, %v10258_v57  ;;  %v2573_v21 = vpop.f32.mrb[162].mxu1  ;;  %7969 = vmatprep.mubr.msk.bf16.mxu0 %vm651_vm1, %v2709_v52 }
 0x5a5   : > { %v2574_v3 = vadd.f32 %v2573_v21, %v10255_v18  ;;  %v2575_v4 = vpop.f32.mrb[163].mxu1  ;;  %2851 = vmatmul.mubr.bf16.gmra.mrb[132].mxu0 %v2708_v36  ;;  %v2656_v7 = vmax.f32 %v2570_v40, 0.0  ;;  %v8777_v36 = vld [vmem:[%s11937_s1 + $0x404] ss:$8 sps:$4 sm:$0xff]  }
 0x5a6   : > { %v2576_v5 = vadd.f32 %v2575_v4, %v10258_v57  ;;  %3359 = vmatpush1.bf16.msra.mxu0 %v8754_v56  ;;  %v2657_v62 = vmax.f32 %v2572_v41, 0.0  ;;  %v8780_v56 = vld [vmem:[%s11937_s1 + $0x414] ss:$8 sps:$4 sm:$0xff]   ;;  %3698 = vmatprep.subr.bf16.mxu1 %v8777_v36  ;;  %v8795_v36 = vld [vmem:[%s11937_s1 + $0x464] ss:$8 sps:$4 sm:$0xff]  }
 0x5a7   : > { %v2658_v38 = vmax.f32 %v2574_v3, 0.0  ;;  %3360 = vmatprep.subr.bf16.mxu0 %v8759_v42  ;;  %v8774_v42 = vld [vmem:[%s11937_s1 + $0x3f4] ss:$8 sps:$4 sm:$0xff]   ;;  %3699 = vmatpush1.bf16.msra.mxu1 %v8775_v33  ;;  %v8778_v3 = vld [vmem:[%s11937_s1 + $0x410] ss:$8 sps:$4 sm:$0xff]  }
 0x5a8   : > { %v2659_v10 = vmax.f32 %v2576_v5, 0.0  ;;  %3700 = vmatprep.subr.bf16.mxu1 %v8780_v56  ;;  %v8783_v5 = vld [vmem:[%s11937_s1 + $0x424] ss:$8 sps:$4 sm:$0xff]  }
 0x5a9   : > { %v2710_v63 = vpack.c.bf16 %v2658_v38, %v2656_v7  ;;  %v8772_v38 = vld [vmem:[%s11937_s1 + $0x3f0] ss:$8 sps:$4 sm:$0xff]  }
 0x5aa   : > { %v2711_v43 = vpack.c.bf16 %v2659_v10, %v2657_v62  ;;  %v2579_v27 = vpop.f32.mrb[164].mxu1  ;;  %3361 = vmatpush1.bf16.msra.mxu0 %v8757_v45 }
 0x5ab   : > { %v2580_v19 = vadd.f32 %v2579_v27, %v10255_v18  ;;  %v2581_v34 = vpop.f32.mrb[165].mxu1  ;;  %3362 = vmatprep.subr.bf16.mxu0 %v8762_v60  ;;  %3701 = vmatpush1.bf16.msra.mxu1 %v8778_v3 }
 0x5ac   : > { %v2582_v11 = vadd.f32 %v2581_v34, %v10258_v57  ;;  %v2583_v14 = vpop.f32.mrb[166].mxu1  ;;  %7970 = vmatprep.mubr.msk.bf16.mxu0 %vm651_vm1, %v2711_v43  ;;  %v8781_v43 = vld [vmem:[%s11937_s1 + $0x420] ss:$8 sps:$4 sm:$0xff]   ;;  %3702 = vmatprep.subr.bf16.mxu1 %v8783_v5 }
 0x5ad   : > { %v2584_v59 = vadd.f32 %v2583_v14, %v10255_v18  ;;  %v2585_v61 = vpop.f32.mrb[167].mxu1  ;;  %2859 = vmatmul.mubr.bf16.gmra.mrb[136].mxu0 %v2710_v63  ;;  %v2660_v9 = vmax.f32 %v2580_v19, 0.0  ;;  %v8786_v19 = vld [vmem:[%s11937_s1 + $0x434] ss:$8 sps:$4 sm:$0xff]  }
 0x5ae   : > { %v2586_v8 = vadd.f32 %v2585_v61, %v10258_v57  ;;  %3363 = vmatpush1.bf16.msra.mxu0 %v8760_v31  ;;  %v2661_v16 = vmax.f32 %v2582_v11, 0.0  ;;  %v8784_v61 = vld [vmem:[%s11937_s1 + $0x430] ss:$8 sps:$4 sm:$0xff]  }
 0x5af   : > { %v2662_v47 = vmax.f32 %v2584_v59, 0.0  ;;  %3364 = vmatprep.subr.bf16.mxu0 %v8765_v37  ;;  %3703 = vmatpush1.bf16.msra.mxu1 %v8781_v43 }
 0x5b0   : > { %v2663_v17 = vmax.f32 %v2586_v8, 0.0  ;;  %3704 = vmatprep.subr.bf16.mxu1 %v8786_v19 }
 0x5b1   : > { %v2712_v54 = vpack.c.bf16 %v2662_v47, %v2660_v9 }
 0x5b2   : > { %v2713_v48 = vpack.c.bf16 %v2663_v17, %v2661_v16  ;;  %v2589_v22 = vpop.f32.mrb[168].mxu1  ;;  %3365 = vmatpush1.bf16.msra.mxu0 %v8763_v20  ;;  %v8789_v20 = vld [vmem:[%s11937_s1 + $0x444] ss:$8 sps:$4 sm:$0xff]  }
 0x5b3   : > { %v2590_v24 = vadd.f32 %v2589_v22, %v10255_v18  ;;  %v2591_v12 = vpop.f32.mrb[169].mxu1  ;;  %3366 = vmatprep.subr.bf16.mxu0 %v8768_v15  ;;  %3705 = vmatpush1.bf16.msra.mxu1 %v8784_v61 }
 0x5b4   : > { %v2592_v29 = vadd.f32 %v2591_v12, %v10258_v57  ;;  %v2593_v46 = vpop.f32.mrb[170].mxu1  ;;  %7971 = vmatprep.mubr.msk.bf16.mxu0 %vm651_vm1, %v2713_v48  ;;  %v8787_v48 = vld [vmem:[%s11937_s1 + $0x440] ss:$8 sps:$4 sm:$0xff]   ;;  %3706 = vmatprep.subr.bf16.mxu1 %v8789_v20 }
 0x5b5   : > { %v2594_v30 = vadd.f32 %v2593_v46, %v10255_v18  ;;  %v2595_v32 = vpop.f32.mrb[171].mxu1  ;;  %2867 = vmatmul.mubr.bf16.gmra.mrb[140].mxu0 %v2712_v54  ;;  %v2664_v40 = vmax.f32 %v2590_v24, 0.0  ;;  %v8792_v24 = vld [vmem:[%s11937_s1 + $0x454] ss:$8 sps:$4 sm:$0xff]  }
 0x5b6   : > { %v2596_v52 = vadd.f32 %v2595_v32, %v10258_v57  ;;  %3367 = vmatpush1.bf16.msra.mxu0 %v8766_v23  ;;  %v2665_v41 = vmax.f32 %v2592_v29, 0.0  ;;  %v8790_v32 = vld [vmem:[%s11937_s1 + $0x450] ss:$8 sps:$4 sm:$0xff]  }
 0x5b7   : > { %v2666_v1 = vmax.f32 %v2594_v30, 0.0  ;;  %3368 = vmatprep.subr.bf16.mxu0 %v8771_v28  ;;  %3707 = vmatpush1.bf16.msra.mxu1 %v8787_v48 }
 0x5b8   : > { %v2667_v21 = vmax.f32 %v2596_v52, 0.0  ;;  %3708 = vmatprep.subr.bf16.mxu1 %v8792_v24 }
 0x5b9   : > { %v2714_v4 = vpack.c.bf16 %v2666_v1, %v2664_v40 }
 0x5ba   : > { %v2715_v45 = vpack.c.bf16 %v2667_v21, %v2665_v41  ;;  %v2599_v7 = vpop.f32.mrb[172].mxu1  ;;  %3369 = vmatpush1.bf16.msra.mxu0 %v8769_v39  ;;  %v8793_v41 = vld [vmem:[%s11937_s1 + $0x460] ss:$8 sps:$4 sm:$0xff]  }
 0x5bb   : > { %v2600_v60 = vadd.f32 %v2599_v7, %v10255_v18  ;;  %v2601_v62 = vpop.f32.mrb[173].mxu1  ;;  %3370 = vmatprep.subr.bf16.mxu0 %v8774_v42  ;;  %3709 = vmatpush1.bf16.msra.mxu1 %v8790_v32 }
 0x5bc   : > { %v2602_v10 = vadd.f32 %v2601_v62, %v10258_v57  ;;  %v2603_v63 = vpop.f32.mrb[174].mxu1  ;;  %7972 = vmatprep.mubr.msk.bf16.mxu0 %vm651_vm1, %v2715_v45  ;;  %3710 = vmatprep.subr.bf16.mxu1 %v8795_v36  ;;  %v8796_v62 = vld [vmem:[%s11937_s1 + $0x470] ss:$8 sps:$4 sm:$0xff]  }
 0x5bd   : > { %v2604_v27 = vadd.f32 %v2603_v63, %v10255_v18  ;;  %v2605_v31 = vpop.f32.mrb[175].mxu1  ;;  %2875 = vmatmul.mubr.bf16.gmra.mrb[144].mxu0 %v2714_v4  ;;  %v2668_v37 = vmax.f32 %v2600_v60, 0.0  ;;  %v8798_v4 = vld [vmem:[%s11937_s1 + $0x474] ss:$8 sps:$4 sm:$0xff]  }
 0x5be   : > { %v2606_v34 = vadd.f32 %v2605_v31, %v10258_v57  ;;  %3371 = vmatpush1.bf16.msra.mxu0 %v8772_v38  ;;  %v2669_v14 = vmax.f32 %v2602_v10, 0.0 }
 0x5bf   : > { %v2670_v11 = vmax.f32 %v2604_v27, 0.0  ;;  %3711 = vmatpush1.bf16.msra.mxu1 %v8793_v41 }
 0x5c0   : > { %v2671_v59 = vmax.f32 %v2606_v34, 0.0  ;;  %3712 = vmatprep.subr.bf16.mxu1 %v8798_v4 }
 0x5c1   : > { %v2716_v8 = vpack.c.bf16 %v2670_v11, %v2668_v37 }
 0x5c2   : > { %v2717_v9 = vpack.c.bf16 %v2671_v59, %v2669_v14  ;;  %v2609_v47 = vpop.f32.mrb[176].mxu1 }
 0x5c3   : > { %v2610_v15 = vadd.f32 %v2609_v47, %v10255_v18  ;;  %v2611_v16 = vpop.f32.mrb[177].mxu1  ;;  %3713 = vmatpush1.bf16.msra.mxu1 %v8796_v62 }
 0x5c4   : > { %v2612_v17 = vadd.f32 %v2611_v16, %v10258_v57  ;;  %v2613_v54 = vpop.f32.mrb[178].mxu1  ;;  %7973 = vmatprep.mubr.msk.bf16.mxu0 %vm651_vm1, %v2717_v9 }
 0x5c5   : > { %v2614_v22 = vadd.f32 %v2613_v54, %v10255_v18  ;;  %v2615_v23 = vpop.f32.mrb[179].mxu1  ;;  %2883 = vmatmul.mubr.bf16.gmra.mrb[148].mxu0 %v2716_v8  ;;  %v2672_v28 = vmax.f32 %v2610_v15, 0.0 }
 0x5c6   : > { %v2616_v12 = vadd.f32 %v2615_v23, %v10258_v57  ;;  %v2673_v46 = vmax.f32 %v2612_v17, 0.0 }
 0x5c7   : > { %v2674_v29 = vmax.f32 %v2614_v22, 0.0  ;;  %v7978_v22 = vld [vmem:[%s11939_s3 + $0x2] ss:$8 sm:$0x3] }
 0x5c8   : > { %v2675_v30 = vmax.f32 %v2616_v12, 0.0 }
 0x5c9   : > { %v2718_v33 = vpack.c.bf16 %v2674_v29, %v2672_v28 }
 0x5ca   : > { %v2719_v52 = vpack.c.bf16 %v2675_v30, %v2673_v46  ;;  %v2619_v39 = vpop.f32.mrb[180].mxu1  ;;  %v10412_v46 = vrot.slane %v7978_v22, %v9458_v51 }
 0x5cb   : > { %v2620_v56 = vadd.f32 %v2619_v39, %v10255_v18  ;;  %v2621_v40 = vpop.f32.mrb[181].mxu1 }
 0x5cc   : > { %v2622_v1 = vadd.f32 %v2621_v40, %v10258_v57  ;;  %v2623_v42 = vpop.f32.mrb[182].mxu1  ;;  %7974 = vmatprep.mubr.msk.bf16.mxu0 %vm651_vm1, %v2719_v52 }
 0x5cd   : > { %v2624_v21 = vadd.f32 %v2623_v42, %v10255_v18  ;;  %v2625_v3 = vpop.f32.mrb[183].mxu1  ;;  %2891 = vmatmul.mubr.bf16.gmra.mrb[152].mxu0 %v2718_v33  ;;  %v2676_v45 = vmax.f32 %v2620_v56, 0.0  ;;  %v10415_v33 = vrot.slane %v7978_v22, %v9463_v53 }
 0x5ce   : > { %v2626_v5 = vadd.f32 %v2625_v3, %v10258_v57  ;;  %v2677_v38 = vmax.f32 %v2622_v1, 0.0 }
 0x5cf   : > { %v2678_v7 = vmax.f32 %v2624_v21, 0.0 }
 0x5d0   : > { %v2679_v60 = vmax.f32 %v2626_v5, 0.0 }
 0x5d1   : > { %v2720_v10 = vpack.c.bf16 %v2678_v7, %v2676_v45 }
 0x5d2   : > { %v2721_v63 = vpack.c.bf16 %v2679_v60, %v2677_v38  ;;  %v2629_v43 = vpop.f32.mrb[184].mxu1 }
 0x5d3   : > { %v2630_v27 = vadd.f32 %v2629_v43, %v10255_v18  ;;  %v2631_v31 = vpop.f32.mrb[185].mxu1 }
 0x5d4   : > { %v2632_v19 = vadd.f32 %v2631_v31, %v10258_v57  ;;  %v2633_v34 = vpop.f32.mrb[186].mxu1  ;;  %7975 = vmatprep.mubr.msk.bf16.mxu0 %vm651_vm1, %v2721_v63 }
 0x5d5   : > { %v2634_v37 = vadd.f32 %v2633_v34, %v10255_v18  ;;  %v2635_v11 = vpop.f32.mrb[187].mxu1  ;;  %2899 = vmatmul.mubr.bf16.gmra.mrb[156].mxu0 %v2720_v10  ;;  %v2680_v59 = vmax.f32 %v2630_v27, 0.0 }
 0x5d6   : > { %v2636_v14 = vadd.f32 %v2635_v11, %v10258_v57  ;;  %v2681_v8 = vmax.f32 %v2632_v19, 0.0 }
 0x5d7   : > { %v2682_v61 = vmax.f32 %v2634_v37, 0.0 }
 0x5d8   : > { %v2683_v20 = vmax.f32 %v2636_v14, 0.0 }
 0x5d9   : > { %v2722_v9 = vpack.c.bf16 %v2682_v61, %v2680_v59 }
 0x5da   : > { %v2723_v47 = vpack.c.bf16 %v2683_v20, %v2681_v8  ;;  %v2639_v15 = vpop.f32.mrb[188].mxu1 }
 0x5db   : > { %v2640_v16 = vadd.f32 %v2639_v15, %v10255_v18  ;;  %v2641_v17 = vpop.f32.mrb[189].mxu1 }
 0x5dc   : > { %v2642_v54 = vadd.f32 %v2641_v17, %v10258_v57  ;;  %v2643_v48 = vpop.f32.mrb[190].mxu1  ;;  %7976 = vmatprep.mubr.msk.bf16.mxu0 %vm651_vm1, %v2723_v47 }
 0x5dd   : > { %v2644_v23 = vadd.f32 %v2643_v48, %v10255_v18  ;;  %v2645_v24 = vpop.f32.mrb[191].mxu1  ;;  %2907 = vmatmul.mubr.bf16.gmra.mrb[160].mxu0 %v2722_v9  ;;  %v2684_v28 = vmax.f32 %v2640_v16, 0.0 }
 0x5de   : > { %v2646_v12 = vadd.f32 %v2645_v24, %v10258_v57  ;;  %v2685_v30 = vmax.f32 %v2642_v54, 0.0 }
 0x5df   : > { %v2686_v29 = vmax.f32 %v2644_v23, 0.0 }
 0x5e0   : > { %v2687_v32 = vmax.f32 %v2646_v12, 0.0 }
 0x5e1   : > { %v2724_v36 = vpack.c.bf16 %v2686_v29, %v2684_v28 }
 0x5e2   : > { %v2725_v52 = vpack.c.bf16 %v2687_v32, %v2685_v30  ;;  %v3044_v39 = vpop.f32.mrb[192].mxu1 }
 0x5e3   : > { %v3045_v56 = vadd.f32 %v3044_v39, %v10412_v46  ;;  %v3046_v18 = vpop.f32.mrb[193].mxu1 }
 0x5e4   : > { %v3047_v40 = vadd.f32 %v3046_v18, %v10415_v33  ;;  %7977 = vmatprep.mubr.msk.bf16.mxu0 %vm651_vm1, %v2725_v52  ;;  %v3048_v57 = vpop.f32.mrb[194].mxu1 }
 0x5e5   : > { %v3049_v1 = vadd.f32 %v3048_v57, %v10412_v46  ;;  %2915 = vmatmul.mubr.bf16.gmra.mrb[164].mxu0 %v2724_v36  ;;  %v3050_v42 = vpop.f32.mrb[195].mxu1  ;;  %v3143_v21 = vmax.f32 %v3045_v56, 0.0 }
 0x5e6   : > { %v3051_v41 = vadd.f32 %v3050_v42, %v10415_v33  ;;  %v3144_v4 = vmax.f32 %v3047_v40, 0.0 }
 0x5e7   : > { %v3145_v3 = vmax.f32 %v3049_v1, 0.0 }
 0x5e8   : > { %v3146_v5 = vmax.f32 %v3051_v41, 0.0 }
 0x5e9   : > { %v3183_v45 = vpack.c.bf16 %v3145_v3, %v3143_v21 }
 0x5ea   : > { %v3184_v7 = vpack.c.bf16 %v3146_v5, %v3144_v4  ;;  %v3054_v38 = vpop.f32.mrb[196].mxu1 }
 0x5eb   : > { %v3055_v60 = vadd.f32 %v3054_v38, %v10412_v46  ;;  %v3056_v62 = vpop.f32.mrb[197].mxu1 }
 0x5ec   : > { %v3057_v10 = vadd.f32 %v3056_v62, %v10415_v33  ;;  %v3058_v63 = vpop.f32.mrb[198].mxu1  ;;  %8012 = vmatprep.mubr.msk.bf16.mxu0 %vm651_vm1, %v3184_v7 }
 0x5ed   : > { %v3059_v43 = vadd.f32 %v3058_v63, %v10412_v46  ;;  %v3060_v27 = vpop.f32.mrb[199].mxu1  ;;  %3387 = vmatmul.mubr.bf16.vlgmr.msra.gmra.mrb[168].mxu0 %v3183_v45  ;;  %v3147_v19 = vmax.f32 %v3055_v60, 0.0 }
 0x5ee   : > { %v3061_v31 = vadd.f32 %v3060_v27, %v10415_v33  ;;  %v3148_v37 = vmax.f32 %v3057_v10, 0.0 }
 0x5ef   : > { %v3149_v34 = vmax.f32 %v3059_v43, 0.0 }
 0x5f0   : > { %v3150_v11 = vmax.f32 %v3061_v31, 0.0 }
 0x5f1   : > { %v3185_v14 = vpack.c.bf16 %v3149_v34, %v3147_v19 }
 0x5f2   : > { %v3186_v59 = vpack.c.bf16 %v3150_v11, %v3148_v37  ;;  %v3064_v61 = vpop.f32.mrb[200].mxu1 }
 0x5f3   : > { %v3065_v8 = vadd.f32 %v3064_v61, %v10412_v46  ;;  %v3066_v20 = vpop.f32.mrb[201].mxu1 }
 0x5f4   : > { %v3067_v9 = vadd.f32 %v3066_v20, %v10415_v33  ;;  %v3068_v47 = vpop.f32.mrb[202].mxu1  ;;  %8013 = vmatprep.mubr.msk.bf16.mxu0 %vm651_vm1, %v3186_v59 }
 0x5f5   : > { %v3069_v15 = vadd.f32 %v3068_v47, %v10412_v46  ;;  %v3070_v16 = vpop.f32.mrb[203].mxu1  ;;  %3397 = vmatmul.mubr.bf16.gmra.mrb[172].mxu0 %v3185_v14  ;;  %v3151_v54 = vmax.f32 %v3065_v8, 0.0 }
 0x5f6   : > { %v3071_v17 = vadd.f32 %v3070_v16, %v10415_v33  ;;  %v3152_v22 = vmax.f32 %v3067_v9, 0.0 }
 0x5f7   : > { %v3153_v48 = vmax.f32 %v3069_v15, 0.0 }
 0x5f8   : > { %v3154_v23 = vmax.f32 %v3071_v17, 0.0 }
 0x5f9   : > { %v3187_v24 = vpack.c.bf16 %v3153_v48, %v3151_v54 }
 0x5fa   : > { %v3188_v12 = vpack.c.bf16 %v3154_v23, %v3152_v22  ;;  %v3074_v28 = vpop.f32.mrb[204].mxu1 }
 0x5fb   : > { %v3075_v29 = vadd.f32 %v3074_v28, %v10412_v46  ;;  %v3076_v30 = vpop.f32.mrb[205].mxu1 }
 0x5fc   : > { %v3077_v32 = vadd.f32 %v3076_v30, %v10415_v33  ;;  %v3078_v36 = vpop.f32.mrb[206].mxu1  ;;  %8014 = vmatprep.mubr.msk.bf16.mxu0 %vm651_vm1, %v3188_v12 }
 0x5fd   : > { %v3079_v52 = vadd.f32 %v3078_v36, %v10412_v46  ;;  %v3080_v39 = vpop.f32.mrb[207].mxu1  ;;  %3407 = vmatmul.mubr.bf16.gmra.mrb[176].mxu0 %v3187_v24  ;;  %v3155_v18 = vmax.f32 %v3075_v29, 0.0 }
 0x5fe   : > { %v3081_v56 = vadd.f32 %v3080_v39, %v10415_v33  ;;  %v3156_v57 = vmax.f32 %v3077_v32, 0.0 }
 0x5ff   : > { %v3157_v40 = vmax.f32 %v3079_v52, 0.0 }
 0x600   : > { %v3158_v1 = vmax.f32 %v3081_v56, 0.0 }
 0x601   : > { %v3189_v42 = vpack.c.bf16 %v3157_v40, %v3155_v18 }
 0x602   : > { %v3190_v41 = vpack.c.bf16 %v3158_v1, %v3156_v57  ;;  %v3084_v21 = vpop.f32.mrb[208].mxu1 }
 0x603   : > { %v3085_v3 = vadd.f32 %v3084_v21, %v10412_v46  ;;  %v3086_v4 = vpop.f32.mrb[209].mxu1 }
 0x604   : > { %v3087_v5 = vadd.f32 %v3086_v4, %v10415_v33  ;;  %v3088_v45 = vpop.f32.mrb[210].mxu1  ;;  %8015 = vmatprep.mubr.msk.bf16.mxu0 %vm651_vm1, %v3190_v41 }
 0x605   : > { %v3089_v7 = vadd.f32 %v3088_v45, %v10412_v46  ;;  %v3090_v38 = vpop.f32.mrb[211].mxu1  ;;  %3417 = vmatmul.mubr.bf16.gmra.mrb[180].mxu0 %v3189_v42  ;;  %v3159_v62 = vmax.f32 %v3085_v3, 0.0 }
 0x606   : > { %v3091_v60 = vadd.f32 %v3090_v38, %v10415_v33  ;;  %v3160_v63 = vmax.f32 %v3087_v5, 0.0 }
 0x607   : > { %v3161_v10 = vmax.f32 %v3089_v7, 0.0 }
 0x608   : > { %v3162_v43 = vmax.f32 %v3091_v60, 0.0 }
 0x609   : > { %v3191_v27 = vpack.c.bf16 %v3161_v10, %v3159_v62 }
 0x60a   : > { %v3192_v31 = vpack.c.bf16 %v3162_v43, %v3160_v63  ;;  %v3094_v19 = vpop.f32.mrb[212].mxu1 }
 0x60b   : > { %v3095_v34 = vadd.f32 %v3094_v19, %v10412_v46  ;;  %v3096_v37 = vpop.f32.mrb[213].mxu1 }
 0x60c   : > { %v3097_v11 = vadd.f32 %v3096_v37, %v10415_v33  ;;  %v3098_v14 = vpop.f32.mrb[214].mxu1  ;;  %8016 = vmatprep.mubr.msk.bf16.mxu0 %vm651_vm1, %v3192_v31 }
 0x60d   : > { %v3099_v59 = vadd.f32 %v3098_v14, %v10412_v46  ;;  %v3100_v61 = vpop.f32.mrb[215].mxu1  ;;  %3427 = vmatmul.mubr.bf16.gmra.mrb[184].mxu0 %v3191_v27  ;;  %v3163_v20 = vmax.f32 %v3095_v34, 0.0 }
 0x60e   : > { %v3101_v8 = vadd.f32 %v3100_v61, %v10415_v33  ;;  %v3164_v47 = vmax.f32 %v3097_v11, 0.0 }
 0x60f   : > { %v3165_v9 = vmax.f32 %v3099_v59, 0.0 }
 0x610   : > { %v3166_v15 = vmax.f32 %v3101_v8, 0.0 }
 0x611   : > { %v3193_v16 = vpack.c.bf16 %v3165_v9, %v3163_v20 }
 0x612   : > { %v3194_v17 = vpack.c.bf16 %v3166_v15, %v3164_v47  ;;  %v3104_v54 = vpop.f32.mrb[216].mxu1 }
 0x613   : > { %v3105_v48 = vadd.f32 %v3104_v54, %v10412_v46  ;;  %v3106_v22 = vpop.f32.mrb[217].mxu1 }
 0x614   : > { %v3107_v23 = vadd.f32 %v3106_v22, %v10415_v33  ;;  %v3108_v24 = vpop.f32.mrb[218].mxu1  ;;  %8017 = vmatprep.mubr.msk.bf16.mxu0 %vm651_vm1, %v3194_v17 }
 0x615   : > { %v3109_v12 = vadd.f32 %v3108_v24, %v10412_v46  ;;  %v3110_v28 = vpop.f32.mrb[219].mxu1  ;;  %3437 = vmatmul.mubr.bf16.gmra.mrb[188].mxu0 %v3193_v16  ;;  %v3167_v30 = vmax.f32 %v3105_v48, 0.0 }
 0x616   : > { %v3111_v29 = vadd.f32 %v3110_v28, %v10415_v33  ;;  %v3168_v36 = vmax.f32 %v3107_v23, 0.0 }
 0x617   : > { %v3169_v32 = vmax.f32 %v3109_v12, 0.0 }
 0x618   : > { %v3170_v52 = vmax.f32 %v3111_v29, 0.0 }
 0x619   : > { %v3195_v39 = vpack.c.bf16 %v3169_v32, %v3167_v30  ;;  %v8801_v30 = vld [vmem:[%s11937_s1 + $0x484] ss:$8 sps:$4 sm:$0xff]   ;;  %v7993_v32 = vld [vmem:[%s11939_s3 + $0x12] ss:$8 sm:$0x3] }
 0x61a   : > { %v3196_v56 = vpack.c.bf16 %v3170_v52, %v3168_v36  ;;  %v3114_v18 = vpop.f32.mrb[220].mxu1  ;;  %3714 = vmatprep.subr.bf16.mxu1 %v8801_v30  ;;  %v10481_v36 = vrot.slane %v7993_v32, %v9458_v51  ;;  %v10484_v52 = vrot.slane %v7993_v32, %v9463_v53 }
 0x61b   : > { %v3115_v40 = vadd.f32 %v3114_v18, %v10412_v46  ;;  %v3116_v57 = vpop.f32.mrb[221].mxu1 }
 0x61c   : > { %v3117_v1 = vadd.f32 %v3116_v57, %v10415_v33  ;;  %v3118_v42 = vpop.f32.mrb[222].mxu1  ;;  %8018 = vmatprep.mubr.msk.bf16.mxu0 %vm651_vm1, %v3196_v56 }
 0x61d   : > { %v3119_v41 = vadd.f32 %v3118_v42, %v10412_v46  ;;  %v3120_v21 = vpop.f32.mrb[223].mxu1  ;;  %3447 = vmatmul.mubr.bf16.gmra.mrb[192].mxu0 %v3195_v39  ;;  %v3171_v4 = vmax.f32 %v3115_v40, 0.0 }
 0x61e   : > { %v3121_v3 = vadd.f32 %v3120_v21, %v10415_v33  ;;  %v3172_v45 = vmax.f32 %v3117_v1, 0.0 }
 0x61f   : > { %v3173_v5 = vmax.f32 %v3119_v41, 0.0 }
 0x620   : > { %v3174_v7 = vmax.f32 %v3121_v3, 0.0 }
 0x621   : > { %v3197_v38 = vpack.c.bf16 %v3173_v5, %v3171_v4 }
 0x622   : > { %v3198_v60 = vpack.c.bf16 %v3174_v7, %v3172_v45  ;;  %v3124_v62 = vpop.f32.mrb[224].mxu1 }
 0x623   : > { %v3125_v10 = vadd.f32 %v3124_v62, %v10412_v46  ;;  %v3126_v63 = vpop.f32.mrb[225].mxu1 }
 0x624   : > { %v3127_v43 = vadd.f32 %v3126_v63, %v10415_v33  ;;  %v3128_v27 = vpop.f32.mrb[226].mxu1  ;;  %8019 = vmatprep.mubr.msk.bf16.mxu0 %vm651_vm1, %v3198_v60  ;;  %v8802_v60 = vld [vmem:[%s11937_s1 + $0x60] ss:$8 sps:$4 sm:$0xff]   ;;  %v8807_v63 = vld [vmem:[%s11937_s1 + $0x74] ss:$8 sps:$4 sm:$0xff]  }
 0x625   : > { %v3129_v31 = vadd.f32 %v3128_v27, %v10412_v46  ;;  %v3130_v19 = vpop.f32.mrb[227].mxu1  ;;  %3457 = vmatmul.mubr.bf16.gmra.mrb[196].mxu0 %v3197_v38  ;;  %v3175_v37 = vmax.f32 %v3125_v10, 0.0 }
 0x626   : > { %v3131_v34 = vadd.f32 %v3130_v19, %v10415_v33  ;;  %v3176_v14 = vmax.f32 %v3127_v43, 0.0 }
 0x627   : > { %v3177_v11 = vmax.f32 %v3129_v31, 0.0 }
 0x628   : > { %v3178_v59 = vmax.f32 %v3131_v34, 0.0 }
 0x629   : > { %v3199_v61 = vpack.c.bf16 %v3177_v11, %v3175_v37  ;;  %v8805_v37 = vld [vmem:[%s11937_s1 + $0x70] ss:$8 sps:$4 sm:$0xff]  }
 0x62a   : > { %v3200_v8 = vpack.c.bf16 %v3178_v59, %v3176_v14  ;;  %v3134_v20 = vpop.f32.mrb[228].mxu1 }
 0x62b   : > { %v3135_v9 = vadd.f32 %v3134_v20, %v10412_v46  ;;  %v3136_v47 = vpop.f32.mrb[229].mxu1 }
 0x62c   : > { %v3137_v15 = vadd.f32 %v3136_v47, %v10415_v33  ;;  %v3138_v16 = vpop.f32.mrb[230].mxu1  ;;  %8020 = vmatprep.mubr.msk.bf16.mxu0 %vm651_vm1, %v3200_v8 }
 0x62d   : > { %v3139_v17 = vadd.f32 %v3138_v16, %v10412_v46  ;;  %v3140_v54 = vpop.f32.mrb[231].mxu1  ;;  %3467 = vmatmul.mubr.bf16.gmra.mrb[200].mxu0 %v3199_v61  ;;  %v3179_v22 = vmax.f32 %v3135_v9, 0.0  ;;  %v8799_v46 = vld [vmem:[%s11937_s1 + $0x480] ss:$8 sps:$4 sm:$0xff]  }
 0x62e   : > { %v3141_v48 = vadd.f32 %v3140_v54, %v10415_v33  ;;  %v3180_v24 = vmax.f32 %v3137_v15, 0.0  ;;  %3715 = vmatpush1.bf16.msra.mxu1 %v8799_v46  ;;  %v8804_v33 = vld [vmem:[%s11937_s1 + $0x64] ss:$8 sps:$4 sm:$0xff]  }
 0x62f   : > { %v3181_v23 = vmax.f32 %v3139_v17, 0.0  ;;  %4507 = vmatprep.subr.bf16.mxu1 %v8804_v33 }
 0x630   : > { %v3182_v12 = vmax.f32 %v3141_v48, 0.0 }
 0x631   : > { %v3201_v28 = vpack.c.bf16 %v3181_v23, %v3179_v22  ;;  %v8808_v22 = vld [vmem:[%s11937_s1 + $0x490] ss:$8 sps:$4 sm:$0xff]   ;;  %v8810_v23 = vld [vmem:[%s11937_s1 + $0x494] ss:$8 sps:$4 sm:$0xff]  }
 0x632   : > { %v3202_v29 = vpack.c.bf16 %v3182_v12, %v3180_v24  ;;  %4042 = vmatprep.subr.bf16.mxu0 %v8810_v23  ;;  %v8820_v23 = vld [vmem:[%s11937_s1 + $0x4d0] ss:$8 sps:$4 sm:$0xff]  }
 0x633   : > { %4043 = vmatpush1.bf16.msra.mxu0 %v8808_v22 }
 0x634   : > { %8021 = vmatprep.mubr.msk.bf16.mxu0 %vm651_vm1, %v3202_v29 }
 0x635   : > { %3477 = vmatmul.mubr.bf16.gmra.mrb[204].mxu0 %v3201_v28 }
 0x6c0   : > { %v3388_v39 = vpop.f32.mrb[168].mxu0 }
 0x6c1   : > { %v3389_v56 = vadd.f32 %v3388_v39, %v10481_v36  ;;  %v3390_v18 = vpop.f32.mrb[169].mxu0 }
 0x6c2   : > { %v3391_v40 = vadd.f32 %v3390_v18, %v10484_v52  ;;  %v3392_v57 = vpop.f32.mrb[170].mxu0 }
 0x6c3   : > { %v3393_v1 = vadd.f32 %v3392_v57, %v10481_v36  ;;  %v3394_v42 = vpop.f32.mrb[171].mxu0  ;;  %v3487_v21 = vmax.f32 %v3389_v56, 0.0 }
 0x6c4   : > { %v3395_v41 = vadd.f32 %v3394_v42, %v10484_v52  ;;  %v3488_v4 = vmax.f32 %v3391_v40, 0.0  ;;  %v8811_v42 = vld [vmem:[%s11937_s1 + $0x4a0] ss:$8 sps:$4 sm:$0xff]  }
 0x6c5   : > { %v3489_v3 = vmax.f32 %v3393_v1, 0.0 }
 0x6c6   : > { %v3490_v5 = vmax.f32 %v3395_v41, 0.0  ;;  %v8813_v41 = vld [vmem:[%s11937_s1 + $0x4a4] ss:$8 sps:$4 sm:$0xff]  }
 0x6c7   : > { %v3527_v45 = vpack.c.bf16 %v3489_v3, %v3487_v21  ;;  %4044 = vmatprep.subr.bf16.mxu0 %v8813_v41 }
 0x6c8   : > { %v3528_v7 = vpack.c.bf16 %v3490_v5, %v3488_v4  ;;  %v3398_v38 = vpop.f32.mrb[172].mxu0  ;;  %4045 = vmatpush1.bf16.msra.mxu0 %v8811_v42 }
 0x6c9   : > { %v3399_v62 = vadd.f32 %v3398_v38, %v10481_v36  ;;  %v3400_v10 = vpop.f32.mrb[173].mxu0 }
 0x6ca   : > { %v3401_v43 = vadd.f32 %v3400_v10, %v10484_v52  ;;  %v3402_v27 = vpop.f32.mrb[174].mxu0  ;;  %8041 = vmatprep.mubr.msk.bf16.mxu1 %vm651_vm1, %v3528_v7 }
 0x6cb   : > { %v3403_v31 = vadd.f32 %v3402_v27, %v10481_v36  ;;  %v3404_v19 = vpop.f32.mrb[175].mxu0  ;;  %3731 = vmatmul.mubr.bf16.vlgmr.msra.gmra.mrb[232].mxu1 %v3527_v45  ;;  %v3491_v11 = vmax.f32 %v3399_v62, 0.0 }
 0x6cc   : > { %v3405_v34 = vadd.f32 %v3404_v19, %v10484_v52  ;;  %4508 = vmatpush1.bf16.msra.mxu1 %v8802_v60  ;;  %v3492_v59 = vmax.f32 %v3401_v43, 0.0  ;;  %v8814_v19 = vld [vmem:[%s11937_s1 + $0x4b0] ss:$8 sps:$4 sm:$0xff]  }
 0x6cd   : > { %v3493_v14 = vmax.f32 %v3403_v31, 0.0  ;;  %4509 = vmatprep.subr.bf16.mxu1 %v8807_v63 }
 0x6ce   : > { %v3494_v61 = vmax.f32 %v3405_v34, 0.0  ;;  %v8816_v34 = vld [vmem:[%s11937_s1 + $0x4b4] ss:$8 sps:$4 sm:$0xff]  }
 0x6cf   : > { %v3529_v8 = vpack.c.bf16 %v3493_v14, %v3491_v11  ;;  %v8819_v11 = vld [vmem:[%s11937_s1 + $0x4c4] ss:$8 sps:$4 sm:$0xff]   ;;  %4046 = vmatprep.subr.bf16.mxu0 %v8816_v34 }
 0x6d0   : > { %v3530_v20 = vpack.c.bf16 %v3494_v61, %v3492_v59  ;;  %v3408_v9 = vpop.f32.mrb[176].mxu0  ;;  %4510 = vmatpush1.bf16.msra.mxu1 %v8805_v37  ;;  %4047 = vmatpush1.bf16.msra.mxu0 %v8814_v19 }
 0x6d1   : > { %v3409_v47 = vadd.f32 %v3408_v9, %v10481_v36  ;;  %v3410_v15 = vpop.f32.mrb[177].mxu0  ;;  %4048 = vmatprep.subr.bf16.mxu0 %v8819_v11 }
 0x6d2   : > { %v3411_v16 = vadd.f32 %v3410_v15, %v10484_v52  ;;  %v3412_v17 = vpop.f32.mrb[178].mxu0  ;;  %8042 = vmatprep.mubr.msk.bf16.mxu1 %vm651_vm1, %v3530_v20  ;;  %v8817_v20 = vld [vmem:[%s11937_s1 + $0x4c0] ss:$8 sps:$4 sm:$0xff]  }
 0x6d3   : > { %v3413_v54 = vadd.f32 %v3412_v17, %v10481_v36  ;;  %v3414_v48 = vpop.f32.mrb[179].mxu0  ;;  %3741 = vmatmul.mubr.bf16.gmra.mrb[236].mxu1 %v3529_v8  ;;  %v3495_v12 = vmax.f32 %v3409_v47, 0.0  ;;  %v8822_v47 = vld [vmem:[%s11937_s1 + $0x4d4] ss:$8 sps:$4 sm:$0xff]  }
 0x6d4   : > { %v3415_v24 = vadd.f32 %v3414_v48, %v10484_v52  ;;  %v3496_v29 = vmax.f32 %v3411_v16, 0.0  ;;  %4049 = vmatpush1.bf16.msra.mxu0 %v8817_v20 }
 0x6d5   : > { %v3497_v28 = vmax.f32 %v3413_v54, 0.0  ;;  %4050 = vmatprep.subr.bf16.mxu0 %v8822_v47 }
 0x6d6   : > { %v3498_v30 = vmax.f32 %v3415_v24, 0.0 }
 0x6d7   : > { %v3531_v46 = vpack.c.bf16 %v3497_v28, %v3495_v12  ;;  %v8825_v28 = vld [vmem:[%s11937_s1 + $0x4e4] ss:$8 sps:$4 sm:$0xff]  }
 0x6d8   : > { %v3532_v33 = vpack.c.bf16 %v3498_v30, %v3496_v29  ;;  %v3418_v32 = vpop.f32.mrb[180].mxu0  ;;  %4051 = vmatpush1.bf16.msra.mxu0 %v8820_v23 }
 0x6d9   : > { %v3419_v39 = vadd.f32 %v3418_v32, %v10481_v36  ;;  %v3420_v56 = vpop.f32.mrb[181].mxu0  ;;  %4052 = vmatprep.subr.bf16.mxu0 %v8825_v28 }
 0x6da   : > { %v3421_v18 = vadd.f32 %v3420_v56, %v10484_v52  ;;  %v3422_v40 = vpop.f32.mrb[182].mxu0  ;;  %8043 = vmatprep.mubr.msk.bf16.mxu1 %vm651_vm1, %v3532_v33 }
 0x6db   : > { %v3423_v57 = vadd.f32 %v3422_v40, %v10481_v36  ;;  %v3424_v1 = vpop.f32.mrb[183].mxu0  ;;  %3751 = vmatmul.mubr.bf16.gmra.mrb[240].mxu1 %v3531_v46  ;;  %v3499_v3 = vmax.f32 %v3419_v39, 0.0  ;;  %v8823_v39 = vld [vmem:[%s11937_s1 + $0x4e0] ss:$8 sps:$4 sm:$0xff]  }
 0x6dc   : > { %v3425_v21 = vadd.f32 %v3424_v1, %v10484_v52  ;;  %v3500_v5 = vmax.f32 %v3421_v18, 0.0  ;;  %v8828_v18 = vld [vmem:[%s11937_s1 + $0x4f4] ss:$8 sps:$4 sm:$0xff]   ;;  %4053 = vmatpush1.bf16.msra.mxu0 %v8823_v39 }
 0x6dd   : > { %v3501_v4 = vmax.f32 %v3423_v57, 0.0  ;;  %4054 = vmatprep.subr.bf16.mxu0 %v8828_v18 }
 0x6de   : > { %v3502_v45 = vmax.f32 %v3425_v21, 0.0 }
 0x6df   : > { %v3533_v7 = vpack.c.bf16 %v3501_v4, %v3499_v3  ;;  %v8826_v3 = vld [vmem:[%s11937_s1 + $0x4f0] ss:$8 sps:$4 sm:$0xff]  }
 0x6e0   : > { %v3534_v38 = vpack.c.bf16 %v3502_v45, %v3500_v5  ;;  %v3428_v60 = vpop.f32.mrb[184].mxu0  ;;  %v8831_v45 = vld [vmem:[%s11937_s1 + $0x504] ss:$8 sps:$4 sm:$0xff]   ;;  %4055 = vmatpush1.bf16.msra.mxu0 %v8826_v3 }
 0x6e1   : > { %v3429_v62 = vadd.f32 %v3428_v60, %v10481_v36  ;;  %v3430_v10 = vpop.f32.mrb[185].mxu0  ;;  %4056 = vmatprep.subr.bf16.mxu0 %v8831_v45 }
 0x6e2   : > { %v3431_v63 = vadd.f32 %v3430_v10, %v10484_v52  ;;  %v3432_v43 = vpop.f32.mrb[186].mxu0  ;;  %8044 = vmatprep.mubr.msk.bf16.mxu1 %vm651_vm1, %v3534_v38 }
 0x6e3   : > { %v3433_v27 = vadd.f32 %v3432_v43, %v10481_v36  ;;  %v3434_v31 = vpop.f32.mrb[187].mxu0  ;;  %3761 = vmatmul.mubr.bf16.gmra.mrb[244].mxu1 %v3533_v7  ;;  %v3503_v14 = vmax.f32 %v3429_v62, 0.0 }
 0x6e4   : > { %v3435_v37 = vadd.f32 %v3434_v31, %v10484_v52  ;;  %v3504_v61 = vmax.f32 %v3431_v63, 0.0  ;;  %v8829_v63 = vld [vmem:[%s11937_s1 + $0x500] ss:$8 sps:$4 sm:$0xff]  }
 0x6e5   : > { %v3505_v59 = vmax.f32 %v3433_v27, 0.0  ;;  %4057 = vmatpush1.bf16.msra.mxu0 %v8829_v63  ;;  %v8840_v63 = vld [vmem:[%s11937_s1 + $0x534] ss:$8 sps:$4 sm:$0xff]  }
 0x6e6   : > { %v3506_v8 = vmax.f32 %v3435_v37, 0.0 }
 0x6e7   : > { %v3535_v9 = vpack.c.bf16 %v3505_v59, %v3503_v14 }
 0x6e8   : > { %v3536_v15 = vpack.c.bf16 %v3506_v8, %v3504_v61  ;;  %v3438_v16 = vpop.f32.mrb[188].mxu0 }
 0x6e9   : > { %v3439_v17 = vadd.f32 %v3438_v16, %v10481_v36  ;;  %v3440_v54 = vpop.f32.mrb[189].mxu0 }
 0x6ea   : > { %v3441_v48 = vadd.f32 %v3440_v54, %v10484_v52  ;;  %v3442_v22 = vpop.f32.mrb[190].mxu0  ;;  %8045 = vmatprep.mubr.msk.bf16.mxu1 %vm651_vm1, %v3536_v15 }
 0x6eb   : > { %v3443_v24 = vadd.f32 %v3442_v22, %v10481_v36  ;;  %v3444_v12 = vpop.f32.mrb[191].mxu0  ;;  %3771 = vmatmul.mubr.bf16.gmra.mrb[248].mxu1 %v3535_v9  ;;  %v3507_v30 = vmax.f32 %v3439_v17, 0.0 }
 0x6ec   : > { %v3445_v29 = vadd.f32 %v3444_v12, %v10484_v52  ;;  %v3508_v33 = vmax.f32 %v3441_v48, 0.0 }
 0x6ed   : > { %v3509_v46 = vmax.f32 %v3443_v24, 0.0 }
 0x6ee   : > { %v3510_v32 = vmax.f32 %v3445_v29, 0.0 }
 0x6ef   : > { %v3537_v56 = vpack.c.bf16 %v3509_v46, %v3507_v30 }
 0x6f0   : > { %v3538_v40 = vpack.c.bf16 %v3510_v32, %v3508_v33  ;;  %v3448_v57 = vpop.f32.mrb[192].mxu0 }
 0x6f1   : > { %v3449_v1 = vadd.f32 %v3448_v57, %v10481_v36  ;;  %v3450_v42 = vpop.f32.mrb[193].mxu0 }
 0x6f2   : > { %v3451_v41 = vadd.f32 %v3450_v42, %v10484_v52  ;;  %v3452_v21 = vpop.f32.mrb[194].mxu0  ;;  %8046 = vmatprep.mubr.msk.bf16.mxu1 %vm651_vm1, %v3538_v40 }
 0x6f3   : > { %v3453_v4 = vadd.f32 %v3452_v21, %v10481_v36  ;;  %v3454_v5 = vpop.f32.mrb[195].mxu0  ;;  %3781 = vmatmul.mubr.bf16.gmra.mrb[252].mxu1 %v3537_v56  ;;  %v3511_v38 = vmax.f32 %v3449_v1, 0.0 }
 0x6f4   : > { %v3455_v7 = vadd.f32 %v3454_v5, %v10484_v52  ;;  %v3512_v62 = vmax.f32 %v3451_v41, 0.0 }
 0x6f5   : > { %v3513_v60 = vmax.f32 %v3453_v4, 0.0 }
 0x6f6   : > { %v3514_v10 = vmax.f32 %v3455_v7, 0.0 }
 0x6f7   : > { %v3539_v43 = vpack.c.bf16 %v3513_v60, %v3511_v38  ;;  %v8835_v60 = vld [vmem:[%s11937_s1 + $0x520] ss:$8 sps:$4 sm:$0xff]  }
 0x6f8   : > { %v3540_v27 = vpack.c.bf16 %v3514_v10, %v3512_v62  ;;  %v3458_v31 = vpop.f32.mrb[196].mxu0  ;;  %v8837_v62 = vld [vmem:[%s11937_s1 + $0x524] ss:$8 sps:$4 sm:$0xff]   ;;  %v8838_v10 = vld [vmem:[%s11937_s1 + $0x530] ss:$8 sps:$4 sm:$0xff]  }
 0x6f9   : > { %v3459_v19 = vadd.f32 %v3458_v31, %v10481_v36  ;;  %v3460_v34 = vpop.f32.mrb[197].mxu0  ;;  %4851 = vmatprep.subr.bf16.mxu1 %v8837_v62  ;;  %v8844_v31 = vld [vmem:[%s11937_s1 + $0x550] ss:$8 sps:$4 sm:$0xff]  }
 0x6fa   : > { %v3461_v37 = vadd.f32 %v3460_v34, %v10484_v52  ;;  %v3462_v11 = vpop.f32.mrb[198].mxu0  ;;  %8047 = vmatprep.mubr.msk.bf16.mxu1 %vm651_vm1, %v3540_v27  ;;  %v8843_v27 = vld [vmem:[%s11937_s1 + $0x544] ss:$8 sps:$4 sm:$0xff]   ;;  %v8847_v34 = vld [vmem:[%s11937_s1 + $0x560] ss:$8 sps:$4 sm:$0xff]  }
 0x6fb   : > { %v3463_v14 = vadd.f32 %v3462_v11, %v10481_v36  ;;  %v3464_v59 = vpop.f32.mrb[199].mxu0  ;;  %3791 = vmatmul.mubr.bf16.gmra.mrb[0].mxu1 %v3539_v43  ;;  %v3515_v8 = vmax.f32 %v3459_v19, 0.0  ;;  %v8841_v43 = vld [vmem:[%s11937_s1 + $0x540] ss:$8 sps:$4 sm:$0xff]   ;;  %v8846_v19 = vld [vmem:[%s11937_s1 + $0x554] ss:$8 sps:$4 sm:$0xff]  }
 0x6fc   : > { %v3465_v61 = vadd.f32 %v3464_v59, %v10484_v52  ;;  %v3516_v9 = vmax.f32 %v3461_v37, 0.0  ;;  %v8849_v37 = vld [vmem:[%s11937_s1 + $0x564] ss:$8 sps:$4 sm:$0xff]   ;;  %v8850_v11 = vld [vmem:[%s11937_s1 + $0x570] ss:$8 sps:$4 sm:$0xff]  }
 0x6fd   : > { %v3517_v20 = vmax.f32 %v3463_v14, 0.0  ;;  %v8852_v14 = vld [vmem:[%s11937_s1 + $0x574] ss:$8 sps:$4 sm:$0xff]   ;;  %v8853_v59 = vld [vmem:[%s11937_s1 + $0x580] ss:$8 sps:$4 sm:$0xff]  }
 0x6fe   : > { %v3518_v47 = vmax.f32 %v3465_v61, 0.0  ;;  %v8855_v61 = vld [vmem:[%s11937_s1 + $0x584] ss:$8 sps:$4 sm:$0xff]  }
 0x6ff   : > { %v3541_v15 = vpack.c.bf16 %v3517_v20, %v3515_v8  ;;  %v8856_v8 = vld [vmem:[%s11937_s1 + $0x590] ss:$8 sps:$4 sm:$0xff]   ;;  %v8858_v20 = vld [vmem:[%s11937_s1 + $0x594] ss:$8 sps:$4 sm:$0xff]  }
 0x700   : > { %v3542_v16 = vpack.c.bf16 %v3518_v47, %v3516_v9  ;;  %v3468_v17 = vpop.f32.mrb[200].mxu0  ;;  %v8861_v9 = vld [vmem:[%s11937_s1 + $0x5a4] ss:$8 sps:$4 sm:$0xff]   ;;  %v8859_v47 = vld [vmem:[%s11937_s1 + $0x5a0] ss:$8 sps:$4 sm:$0xff]  }
 0x701   : > { %v3469_v54 = vadd.f32 %v3468_v17, %v10481_v36  ;;  %v3470_v48 = vpop.f32.mrb[201].mxu0 }
 0x702   : > { %v3471_v22 = vadd.f32 %v3470_v48, %v10484_v52  ;;  %v3472_v23 = vpop.f32.mrb[202].mxu0  ;;  %8048 = vmatprep.mubr.msk.bf16.mxu1 %vm651_vm1, %v3542_v16 }
 0x703   : > { %v3473_v24 = vadd.f32 %v3472_v23, %v10481_v36  ;;  %v3474_v12 = vpop.f32.mrb[203].mxu0  ;;  %3801 = vmatmul.mubr.bf16.gmra.mrb[4].mxu1 %v3541_v15  ;;  %v3519_v29 = vmax.f32 %v3469_v54, 0.0  ;;  %v8022_v15 = vld [vmem:[%s11939_s3 + $0x13] ss:$8 sm:$0x3] }
 0x704   : > { %v3475_v28 = vadd.f32 %v3474_v12, %v10484_v52  ;;  %v3520_v46 = vmax.f32 %v3471_v22, 0.0  ;;  %v10688_v16 = vrot.slane %v8022_v15, %v9458_v51  ;;  %v10691_v17 = vrot.slane %v8022_v15, %v9463_v53 }
 0x705   : > { %v3521_v30 = vmax.f32 %v3473_v24, 0.0 }
 0x706   : > { %v3522_v33 = vmax.f32 %v3475_v28, 0.0 }
 0x707   : > { %v3543_v32 = vpack.c.bf16 %v3521_v30, %v3519_v29 }
 0x708   : > { %v3544_v39 = vpack.c.bf16 %v3522_v33, %v3520_v46  ;;  %v3478_v56 = vpop.f32.mrb[204].mxu0 }
 0x709   : > { %v3479_v18 = vadd.f32 %v3478_v56, %v10481_v36  ;;  %v3480_v40 = vpop.f32.mrb[205].mxu0 }
 0x70a   : > { %v3481_v57 = vadd.f32 %v3480_v40, %v10484_v52  ;;  %v3482_v1 = vpop.f32.mrb[206].mxu0  ;;  %8049 = vmatprep.mubr.msk.bf16.mxu1 %vm651_vm1, %v3544_v39 }
 0x70b   : > { %v3483_v42 = vadd.f32 %v3482_v1, %v10481_v36  ;;  %v3484_v41 = vpop.f32.mrb[207].mxu0  ;;  %3811 = vmatmul.mubr.bf16.gmra.mrb[8].mxu1 %v3543_v32  ;;  %v3523_v3 = vmax.f32 %v3479_v18, 0.0  ;;  %v8834_v36 = vld [vmem:[%s11937_s1 + $0x514] ss:$8 sps:$4 sm:$0xff]  }
 0x70c   : > { %v3485_v21 = vadd.f32 %v3484_v41, %v10484_v52  ;;  %v3524_v5 = vmax.f32 %v3481_v57, 0.0  ;;  %v8832_v52 = vld [vmem:[%s11937_s1 + $0x510] ss:$8 sps:$4 sm:$0xff]   ;;  %4058 = vmatprep.subr.bf16.mxu0 %v8834_v36 }
 0x70d   : > { %v3525_v4 = vmax.f32 %v3483_v42, 0.0  ;;  %4059 = vmatpush1.bf16.msra.mxu0 %v8832_v52 }
 0x70e   : > { %v3526_v45 = vmax.f32 %v3485_v21, 0.0  ;;  %4337 = vmatprep.subr.bf16.mxu0 %v9184_v2 }
 0x70f   : > { %v3545_v7 = vpack.c.bf16 %v3525_v4, %v3523_v3 }
 0x710   : > { %v3546_v38 = vpack.c.bf16 %v3526_v45, %v3524_v5 }
 0x712   : > { %8050 = vmatprep.mubr.msk.bf16.mxu1 %vm651_vm1, %v3546_v38 }
 0x713   : > { %3821 = vmatmul.mubr.bf16.gmra.mrb[12].mxu1 %v3545_v7 }
 0x714   : > { %4539 = vmatprep.mubr.bf16.mxu1 %v9184_v2 }
 0x71b   : > { %8104 = vmatmul.mubr.msk.bf16.vlgmr.msra.gmra.mrb[16].mxu1 %vm306_vm0, %v9961_v55 }
 0x71c   : > { %4549 = vmatprep.mubr.bf16.mxu1 %v9184_v2  ;;  %4852 = vmatpush1.bf16.msra.mxu1 %v8835_v60 }
 0x71d   : > { %4853 = vmatprep.subr.bf16.mxu1 %v8840_v63 }
 0x720   : > { %4854 = vmatpush1.bf16.msra.mxu1 %v8838_v10 }
 0x721   : > { %4855 = vmatprep.subr.bf16.mxu1 %v8843_v27 }
 0x723   : > { %8105 = vmatmul.mubr.msk.bf16.gmra.mrb[20].mxu1 %vm306_vm0, %v9965_v26 }
 0x724   : > { %4559 = vmatprep.mubr.bf16.mxu1 %v9184_v2  ;;  %4856 = vmatpush1.bf16.msra.mxu1 %v8841_v43 }
 0x725   : > { %4857 = vmatprep.subr.bf16.mxu1 %v8846_v19 }
 0x728   : > { %4858 = vmatpush1.bf16.msra.mxu1 %v8844_v31 }
 0x729   : > { %4859 = vmatprep.subr.bf16.mxu1 %v8849_v37 }
 0x72b   : > { %8106 = vmatmul.mubr.msk.bf16.gmra.mrb[24].mxu1 %vm306_vm0, %v9969_v35 }
 0x72c   : > { %4569 = vmatprep.mubr.bf16.mxu1 %v9184_v2  ;;  %4860 = vmatpush1.bf16.msra.mxu1 %v8847_v34 }
 0x72d   : > { %4861 = vmatprep.subr.bf16.mxu1 %v8852_v14 }
 0x730   : > { %4862 = vmatpush1.bf16.msra.mxu1 %v8850_v11 }
 0x731   : > { %4863 = vmatprep.subr.bf16.mxu1 %v8855_v61 }
 0x733   : > { %8107 = vmatmul.mubr.msk.bf16.gmra.mrb[28].mxu1 %vm306_vm0, %v9973_v58 }
 0x734   : > { %4579 = vmatprep.mubr.bf16.mxu1 %v9184_v2  ;;  %4864 = vmatpush1.bf16.msra.mxu1 %v8853_v59 }
 0x735   : > { %4865 = vmatprep.subr.bf16.mxu1 %v8858_v20 }
 0x738   : > { %4866 = vmatpush1.bf16.msra.mxu1 %v8856_v8 }
 0x739   : > { %4867 = vmatprep.subr.bf16.mxu1 %v8861_v9 }
 0x73b   : > { %8108 = vmatmul.mubr.msk.bf16.gmra.mrb[32].mxu1 %vm306_vm0, %v9986_v44 }
 0x73c   : > { %4589 = vmatprep.mubr.bf16.mxu1 %v9184_v2  ;;  %4868 = vmatpush1.bf16.msra.mxu1 %v8859_v47 }
 0x743   : > { %8109 = vmatmul.mubr.msk.bf16.gmra.mrb[36].mxu1 %vm306_vm0, %v10002_v6 }
 0x744   : > { %4599 = vmatprep.mubr.bf16.mxu1 %v9184_v2 }
 0x74b   : > { %8110 = vmatmul.mubr.msk.bf16.gmra.mrb[40].mxu1 %vm306_vm0, %v10018_v13 }
 0x74c   : > { %4609 = vmatprep.mubr.bf16.mxu1 %v9184_v2 }
 0x753   : > { %8111 = vmatmul.mubr.msk.bf16.gmra.mrb[44].mxu1 %vm306_vm0, %v10034_v25 }
 0x754   : > { %4619 = vmatprep.mubr.bf16.mxu1 %v9184_v2 }
 0x75b   : > { %8112 = vmatmul.mubr.msk.bf16.gmra.mrb[48].mxu1 %vm306_vm0, %v10041_v50 }
 0x75c   : > { %4629 = vmatprep.mubr.bf16.mxu1 %v9184_v2 }
 0x763   : > { %8113 = vmatmul.mubr.msk.bf16.gmra.mrb[52].mxu1 %vm306_vm0, %v10048_v0 }
 0x79e   : > { %v3732_v54 = vpop.f32.mrb[232].mxu1 }
 0x79f   : > { %v3733_v48 = vadd.f32 %v3732_v54, %v10688_v16  ;;  %v3734_v22 = vpop.f32.mrb[233].mxu1 }
 0x7a0   : > { %v3735_v23 = vadd.f32 %v3734_v22, %v10691_v17  ;;  %v3736_v24 = vpop.f32.mrb[234].mxu1 }
 0x7a1   : > { %v3737_v12 = vadd.f32 %v3736_v24, %v10688_v16  ;;  %v3738_v28 = vpop.f32.mrb[235].mxu1  ;;  %v3831_v30 = vmax.f32 %v3733_v48, 0.0  ;;  %v8862_v48 = vld [vmem:[%s11938_s2 + $0x90] sm:$0xff]  }
 0x7a2   : > { %v3739_v29 = vadd.f32 %v3738_v28, %v10691_v17  ;;  %v3832_v33 = vmax.f32 %v3735_v23, 0.0 }
 0x7a3   : > { %v3833_v46 = vmax.f32 %v3737_v12, 0.0 }
 0x7a4   : > { %v3834_v32 = vmax.f32 %v3739_v29, 0.0 }
 0x7a5   : > { %v3871_v39 = vpack.c.bf16 %v3833_v46, %v3831_v30 }
 0x7a6   : > { %v3872_v56 = vpack.c.bf16 %v3834_v32, %v3832_v33  ;;  %v3742_v18 = vpop.f32.mrb[236].mxu1  ;;  %v8863_v33 = vld [vmem:[%s11938_s2 + $0x98] sm:$0xff]  }
 0x7a7   : > { %v3743_v40 = vadd.f32 %v3742_v18, %v10688_v16  ;;  %v3744_v57 = vpop.f32.mrb[237].mxu1 }
 0x7a8   : > { %v3745_v1 = vadd.f32 %v3744_v57, %v10691_v17  ;;  %v3746_v42 = vpop.f32.mrb[238].mxu1  ;;  %8070 = vmatprep.mubr.msk.bf16.mxu0 %vm651_vm1, %v3872_v56 }
 0x7a9   : > { %v3747_v41 = vadd.f32 %v3746_v42, %v10688_v16  ;;  %v3748_v21 = vpop.f32.mrb[239].mxu1  ;;  %4075 = vmatmul.mubr.bf16.vlgmr.msra.gmra.mrb[208].mxu0 %v3871_v39  ;;  %v3835_v4 = vmax.f32 %v3743_v40, 0.0 }
 0x7aa   : > { %v3749_v3 = vadd.f32 %v3748_v21, %v10691_v17  ;;  %v3836_v45 = vmax.f32 %v3745_v1, 0.0  ;;  %4338 = vmatpush1.bf16.msra.mxu0 %v8862_v48  ;;  %v8864_v1 = vld [vmem:[%s11938_s2 + $0xa0] sm:$0xff]  }
 0x7ab   : > { %v3837_v5 = vmax.f32 %v3747_v41, 0.0  ;;  %4339 = vmatprep.subr.bf16.mxu0 %v9184_v2 }
 0x7ac   : > { %v3838_v7 = vmax.f32 %v3749_v3, 0.0 }
 0x7ad   : > { %v3873_v38 = vpack.c.bf16 %v3837_v5, %v3835_v4  ;;  %v8865_v5 = vld [vmem:[%s11938_s2 + $0xa8] sm:$0xff]  }
 0x7ae   : > { %v3874_v36 = vpack.c.bf16 %v3838_v7, %v3836_v45  ;;  %v3752_v52 = vpop.f32.mrb[240].mxu1  ;;  %4340 = vmatpush1.bf16.msra.mxu0 %v8863_v33 }
 0x7af   : > { %v3753_v60 = vadd.f32 %v3752_v52, %v10688_v16  ;;  %v3754_v62 = vpop.f32.mrb[241].mxu1  ;;  %4341 = vmatprep.subr.bf16.mxu0 %v9184_v2 }
 0x7b0   : > { %v3755_v10 = vadd.f32 %v3754_v62, %v10691_v17  ;;  %v3756_v63 = vpop.f32.mrb[242].mxu1  ;;  %8071 = vmatprep.mubr.msk.bf16.mxu0 %vm651_vm1, %v3874_v36 }
 0x7b1   : > { %v3757_v43 = vadd.f32 %v3756_v63, %v10688_v16  ;;  %v3758_v27 = vpop.f32.mrb[243].mxu1  ;;  %4085 = vmatmul.mubr.bf16.gmra.mrb[212].mxu0 %v3873_v38  ;;  %v3839_v19 = vmax.f32 %v3753_v60, 0.0 }
 0x7b2   : > { %v3759_v31 = vadd.f32 %v3758_v27, %v10691_v17  ;;  %v3840_v37 = vmax.f32 %v3755_v10, 0.0  ;;  %4342 = vmatpush1.bf16.msra.mxu0 %v8864_v1  ;;  %v8866_v10 = vld [vmem:[%s11938_s2 + $0xb0] sm:$0xff]  }
 0x7b3   : > { %v3841_v34 = vmax.f32 %v3757_v43, 0.0  ;;  %4343 = vmatprep.subr.bf16.mxu0 %v9184_v2 }
 0x7b4   : > { %v3842_v11 = vmax.f32 %v3759_v31, 0.0 }
 0x7b5   : > { %v3875_v14 = vpack.c.bf16 %v3841_v34, %v3839_v19 }
 0x7b6   : > { %v3876_v59 = vpack.c.bf16 %v3842_v11, %v3840_v37  ;;  %v3762_v61 = vpop.f32.mrb[244].mxu1  ;;  %4344 = vmatpush1.bf16.msra.mxu0 %v8865_v5  ;;  %v8867_v11 = vld [vmem:[%s11938_s2 + $0xb8] sm:$0xff]  }
 0x7b7   : > { %v3763_v8 = vadd.f32 %v3762_v61, %v10688_v16  ;;  %v3764_v20 = vpop.f32.mrb[245].mxu1  ;;  %4345 = vmatprep.subr.bf16.mxu0 %v9184_v2 }
 0x7b8   : > { %v3765_v9 = vadd.f32 %v3764_v20, %v10691_v17  ;;  %v3766_v47 = vpop.f32.mrb[246].mxu1  ;;  %8072 = vmatprep.mubr.msk.bf16.mxu0 %vm651_vm1, %v3876_v59 }
 0x7b9   : > { %v3767_v15 = vadd.f32 %v3766_v47, %v10688_v16  ;;  %v3768_v54 = vpop.f32.mrb[247].mxu1  ;;  %4095 = vmatmul.mubr.bf16.gmra.mrb[216].mxu0 %v3875_v14  ;;  %v3843_v23 = vmax.f32 %v3763_v8, 0.0 }
 0x7ba   : > { %v3769_v22 = vadd.f32 %v3768_v54, %v10691_v17  ;;  %v3844_v12 = vmax.f32 %v3765_v9, 0.0  ;;  %4346 = vmatpush1.bf16.msra.mxu0 %v8866_v10 }
 0x7bb   : > { %v3845_v24 = vmax.f32 %v3767_v15, 0.0  ;;  %4347 = vmatprep.subr.bf16.mxu0 %v9184_v2  ;;  %v8868_v15 = vld [vmem:[%s11938_s2 + $0xc0] sm:$0xff]  }
 0x7bc   : > { %v3846_v28 = vmax.f32 %v3769_v22, 0.0 }
 0x7bd   : > { %v3877_v29 = vpack.c.bf16 %v3845_v24, %v3843_v23 }
 0x7be   : > { %v3878_v30 = vpack.c.bf16 %v3846_v28, %v3844_v12  ;;  %v3772_v46 = vpop.f32.mrb[248].mxu1  ;;  %4348 = vmatpush1.bf16.msra.mxu0 %v8867_v11 }
 0x7bf   : > { %v3773_v32 = vadd.f32 %v3772_v46, %v10688_v16  ;;  %v3774_v39 = vpop.f32.mrb[249].mxu1  ;;  %4349 = vmatprep.subr.bf16.mxu0 %v9184_v2 }
 0x7c0   : > { %v3775_v56 = vadd.f32 %v3774_v39, %v10691_v17  ;;  %v3776_v18 = vpop.f32.mrb[250].mxu1  ;;  %8073 = vmatprep.mubr.msk.bf16.mxu0 %vm651_vm1, %v3878_v30 }
 0x7c1   : > { %v3777_v40 = vadd.f32 %v3776_v18, %v10688_v16  ;;  %v3778_v57 = vpop.f32.mrb[251].mxu1  ;;  %4105 = vmatmul.mubr.bf16.gmra.mrb[220].mxu0 %v3877_v29  ;;  %v3847_v41 = vmax.f32 %v3773_v32, 0.0  ;;  %v8869_v29 = vld [vmem:[%s11938_s2 + $0xc8] sm:$0xff]  }
 0x7c2   : > { %v3779_v42 = vadd.f32 %v3778_v57, %v10691_v17  ;;  %v3848_v3 = vmax.f32 %v3775_v56, 0.0  ;;  %4350 = vmatpush1.bf16.msra.mxu0 %v8868_v15 }
 0x7c3   : > { %v3849_v21 = vmax.f32 %v3777_v40, 0.0  ;;  %4351 = vmatprep.subr.bf16.mxu0 %v9184_v2 }
 0x7c4   : > { %v3850_v4 = vmax.f32 %v3779_v42, 0.0 }
 0x7c5   : > { %v3879_v45 = vpack.c.bf16 %v3849_v21, %v3847_v41 }
 0x7c6   : > { %v3880_v7 = vpack.c.bf16 %v3850_v4, %v3848_v3  ;;  %v3782_v38 = vpop.f32.mrb[252].mxu1  ;;  %4352 = vmatpush1.bf16.msra.mxu0 %v8869_v29 }
 0x7c7   : > { %v3783_v36 = vadd.f32 %v3782_v38, %v10688_v16  ;;  %v3784_v52 = vpop.f32.mrb[253].mxu1  ;;  %4353 = vmatprep.subr.bf16.mxu0 %v9184_v2 }
 0x7c8   : > { %v3785_v60 = vadd.f32 %v3784_v52, %v10691_v17  ;;  %v3786_v62 = vpop.f32.mrb[254].mxu1  ;;  %8074 = vmatprep.mubr.msk.bf16.mxu0 %vm651_vm1, %v3880_v7 }
 0x7c9   : > { %v3787_v63 = vadd.f32 %v3786_v62, %v10688_v16  ;;  %v3788_v43 = vpop.f32.mrb[255].mxu1  ;;  %4115 = vmatmul.mubr.bf16.gmra.mrb[224].mxu0 %v3879_v45  ;;  %v3851_v31 = vmax.f32 %v3783_v36, 0.0 }
 0x7ca   : > { %v3789_v27 = vadd.f32 %v3788_v43, %v10691_v17  ;;  %v3852_v34 = vmax.f32 %v3785_v60, 0.0 }
 0x7cb   : > { %v3853_v19 = vmax.f32 %v3787_v63, 0.0 }
 0x7cc   : > { %v3854_v37 = vmax.f32 %v3789_v27, 0.0 }
 0x7cd   : > { %v3881_v14 = vpack.c.bf16 %v3853_v19, %v3851_v31 }
 0x7ce   : > { %v3882_v59 = vpack.c.bf16 %v3854_v37, %v3852_v34  ;;  %v3792_v61 = vpop.f32.mrb[0].mxu1 }
 0x7cf   : > { %v3793_v8 = vadd.f32 %v3792_v61, %v10688_v16  ;;  %v3794_v20 = vpop.f32.mrb[1].mxu1 }
 0x7d0   : > { %v3795_v9 = vadd.f32 %v3794_v20, %v10691_v17  ;;  %v3796_v47 = vpop.f32.mrb[2].mxu1  ;;  %8075 = vmatprep.mubr.msk.bf16.mxu0 %vm651_vm1, %v3882_v59 }
 0x7d1   : > { %v3797_v54 = vadd.f32 %v3796_v47, %v10688_v16  ;;  %v3798_v48 = vpop.f32.mrb[3].mxu1  ;;  %4125 = vmatmul.mubr.bf16.gmra.mrb[228].mxu0 %v3881_v14  ;;  %v3855_v23 = vmax.f32 %v3793_v8, 0.0  ;;  %v8099_v8 = vld [vmem:[%s11939_s3 + $0x3] ss:$8 sm:$0x3] }
 0x7d2   : > { %v3799_v22 = vadd.f32 %v3798_v48, %v10691_v17  ;;  %v3856_v12 = vmax.f32 %v3795_v9, 0.0  ;;  %v10778_v48 = vrot.slane %v8099_v8, %v9458_v51 }
 0x7d3   : > { %v3857_v24 = vmax.f32 %v3797_v54, 0.0 }
 0x7d4   : > { %v3858_v28 = vmax.f32 %v3799_v22, 0.0 }
 0x7d5   : > { %v3883_v30 = vpack.c.bf16 %v3857_v24, %v3855_v23  ;;  %v10781_v24 = vrot.slane %v8099_v8, %v9463_v53 }
 0x7d6   : > { %v3884_v46 = vpack.c.bf16 %v3858_v28, %v3856_v12  ;;  %v3802_v33 = vpop.f32.mrb[4].mxu1 }
 0x7d7   : > { %v3803_v32 = vadd.f32 %v3802_v33, %v10688_v16  ;;  %v3804_v39 = vpop.f32.mrb[5].mxu1 }
 0x7d8   : > { %v3805_v56 = vadd.f32 %v3804_v39, %v10691_v17  ;;  %v3806_v18 = vpop.f32.mrb[6].mxu1  ;;  %8076 = vmatprep.mubr.msk.bf16.mxu0 %vm651_vm1, %v3884_v46 }
 0x7d9   : > { %v3807_v40 = vadd.f32 %v3806_v18, %v10688_v16  ;;  %v3808_v57 = vpop.f32.mrb[7].mxu1  ;;  %4135 = vmatmul.mubr.bf16.gmra.mrb[232].mxu0 %v3883_v30  ;;  %v3859_v42 = vmax.f32 %v3803_v32, 0.0 }
 0x7da   : > { %v3809_v1 = vadd.f32 %v3808_v57, %v10691_v17  ;;  %v3860_v21 = vmax.f32 %v3805_v56, 0.0 }
 0x7db   : > { %v3861_v41 = vmax.f32 %v3807_v40, 0.0 }
 0x7dc   : > { %v3862_v3 = vmax.f32 %v3809_v1, 0.0 }
 0x7dd   : > { %v3885_v4 = vpack.c.bf16 %v3861_v41, %v3859_v42 }
 0x7de   : > { %v3886_v5 = vpack.c.bf16 %v3862_v3, %v3860_v21  ;;  %v3812_v45 = vpop.f32.mrb[8].mxu1 }
 0x7df   : > { %v3813_v7 = vadd.f32 %v3812_v45, %v10688_v16  ;;  %v3814_v38 = vpop.f32.mrb[9].mxu1 }
 0x7e0   : > { %v3815_v36 = vadd.f32 %v3814_v38, %v10691_v17  ;;  %v3816_v52 = vpop.f32.mrb[10].mxu1  ;;  %8077 = vmatprep.mubr.msk.bf16.mxu0 %vm651_vm1, %v3886_v5 }
 0x7e1   : > { %v3817_v60 = vadd.f32 %v3816_v52, %v10688_v16  ;;  %v3818_v62 = vpop.f32.mrb[11].mxu1  ;;  %4145 = vmatmul.mubr.bf16.gmra.mrb[236].mxu0 %v3885_v4  ;;  %v3863_v63 = vmax.f32 %v3813_v7, 0.0 }
 0x7e2   : > { %v3819_v10 = vadd.f32 %v3818_v62, %v10691_v17  ;;  %v3864_v27 = vmax.f32 %v3815_v36, 0.0 }
 0x7e3   : > { %v3865_v43 = vmax.f32 %v3817_v60, 0.0 }
 0x7e4   : > { %v3866_v31 = vmax.f32 %v3819_v10, 0.0 }
 0x7e5   : > { %v3887_v19 = vpack.c.bf16 %v3865_v43, %v3863_v63 }
 0x7e6   : > { %v3888_v34 = vpack.c.bf16 %v3866_v31, %v3864_v27  ;;  %v3822_v37 = vpop.f32.mrb[12].mxu1 }
 0x7e7   : > { %v3823_v11 = vadd.f32 %v3822_v37, %v10688_v16  ;;  %v3824_v14 = vpop.f32.mrb[13].mxu1 }
 0x7e8   : > { %v3825_v59 = vadd.f32 %v3824_v14, %v10691_v17  ;;  %v3826_v61 = vpop.f32.mrb[14].mxu1  ;;  %8078 = vmatprep.mubr.msk.bf16.mxu0 %vm651_vm1, %v3888_v34 }
 0x7e9   : > { %v3827_v20 = vadd.f32 %v3826_v61, %v10688_v16  ;;  %v3828_v9 = vpop.f32.mrb[15].mxu1  ;;  %4155 = vmatmul.mubr.bf16.gmra.mrb[240].mxu0 %v3887_v19  ;;  %v3867_v15 = vmax.f32 %v3823_v11, 0.0 }
 0x7ea   : > { %v3829_v47 = vadd.f32 %v3828_v9, %v10691_v17  ;;  %v3868_v22 = vmax.f32 %v3825_v59, 0.0  ;;  %v8870_v59 = vld [vmem:[%s11938_s2 + $0xd0] sm:$0xff]  }
 0x7eb   : > { %v3869_v54 = vmax.f32 %v3827_v20, 0.0  ;;  %4354 = vmatpush1.bf16.msra.mxu0 %v8870_v59 }
 0x7ec   : > { %v3870_v23 = vmax.f32 %v3829_v47, 0.0 }
 0x7ed   : > { %v3889_v12 = vpack.c.bf16 %v3869_v54, %v3867_v15 }
 0x7ee   : > { %v3890_v28 = vpack.c.bf16 %v3870_v23, %v3868_v22  ;;  %v4541_v29 = vpop.f32.mrb[16].mxu1 }
 0x7ef   : > { %v4542_v30 = vadd.f32 %v4541_v29, %v10778_v48  ;;  %v4543_v16 = vpop.f32.mrb[17].mxu1 }
 0x7f0   : > { %v4544_v46 = vadd.f32 %v4543_v16, %v10781_v24  ;;  %8079 = vmatprep.mubr.msk.bf16.mxu0 %vm651_vm1, %v3890_v28  ;;  %v4545_v17 = vpop.f32.mrb[18].mxu1 }
 0x7f1   : > { %v4546_v33 = vadd.f32 %v4545_v17, %v10778_v48  ;;  %4165 = vmatmul.mubr.bf16.gmra.mrb[244].mxu0 %v3889_v12  ;;  %v4547_v32 = vpop.f32.mrb[19].mxu1  ;;  %v4640_v56 = vmax.f32 %v4542_v30, 0.0 }
 0x7f2   : > { %v4548_v39 = vadd.f32 %v4547_v32, %v10781_v24  ;;  %v4641_v40 = vmax.f32 %v4544_v46, 0.0 }
 0x7f3   : > { %v4642_v18 = vmax.f32 %v4546_v33, 0.0  ;;  %v8873_v33 = vld [vmem:[%s11937_s1 + $0x5b4] ss:$8 sps:$4 sm:$0xff]  }
 0x7f4   : > { %v4643_v57 = vmax.f32 %v4548_v39, 0.0  ;;  %5195 = vmatprep.subr.bf16.mxu0 %v8873_v33 }
 0x7f5   : > { %v4680_v1 = vpack.c.bf16 %v4642_v18, %v4640_v56 }
 0x7f6   : > { %v4681_v42 = vpack.c.bf16 %v4643_v57, %v4641_v40  ;;  %v4551_v41 = vpop.f32.mrb[20].mxu1 }
 0x7f7   : > { %v4552_v21 = vadd.f32 %v4551_v41, %v10778_v48  ;;  %v4553_v3 = vpop.f32.mrb[21].mxu1 }
 0x7f8   : > { %v4554_v4 = vadd.f32 %v4553_v3, %v10781_v24  ;;  %v4555_v5 = vpop.f32.mrb[22].mxu1  ;;  %8133 = vmatprep.mubr.msk.bf16.mxu1 %vm651_vm1, %v4681_v42 }
 0x7f9   : > { %v4556_v45 = vadd.f32 %v4555_v5, %v10778_v48  ;;  %v4557_v7 = vpop.f32.mrb[23].mxu1  ;;  %4884 = vmatmul.mubr.bf16.vlgmr.msra.gmra.mrb[56].mxu1 %v4680_v1  ;;  %v4644_v36 = vmax.f32 %v4552_v21, 0.0 }
 0x7fa   : > { %v4558_v38 = vadd.f32 %v4557_v7, %v10781_v24  ;;  %v4645_v60 = vmax.f32 %v4554_v4, 0.0 }
 0x7fb   : > { %v4646_v52 = vmax.f32 %v4556_v45, 0.0 }
 0x7fc   : > { %v4647_v62 = vmax.f32 %v4558_v38, 0.0 }
 0x7fd   : > { %v4682_v10 = vpack.c.bf16 %v4646_v52, %v4644_v36 }
 0x7fe   : > { %v4683_v63 = vpack.c.bf16 %v4647_v62, %v4645_v60  ;;  %v4561_v43 = vpop.f32.mrb[24].mxu1 }
 0x7ff   : > { %v4562_v27 = vadd.f32 %v4561_v43, %v10778_v48  ;;  %v4563_v31 = vpop.f32.mrb[25].mxu1 }
 0x800   : > { %v4564_v19 = vadd.f32 %v4563_v31, %v10781_v24  ;;  %v4565_v34 = vpop.f32.mrb[26].mxu1  ;;  %8134 = vmatprep.mubr.msk.bf16.mxu1 %vm651_vm1, %v4683_v63 }
 0x801   : > { %v4566_v37 = vadd.f32 %v4565_v34, %v10778_v48  ;;  %v4567_v11 = vpop.f32.mrb[27].mxu1  ;;  %4894 = vmatmul.mubr.bf16.gmra.mrb[60].mxu1 %v4682_v10  ;;  %v4648_v61 = vmax.f32 %v4562_v27, 0.0 }
 0x802   : > { %v4568_v14 = vadd.f32 %v4567_v11, %v10781_v24  ;;  %v4649_v20 = vmax.f32 %v4564_v19, 0.0 }
 0x803   : > { %v4650_v8 = vmax.f32 %v4566_v37, 0.0 }
 0x804   : > { %v4651_v9 = vmax.f32 %v4568_v14, 0.0 }
 0x805   : > { %v4684_v47 = vpack.c.bf16 %v4650_v8, %v4648_v61 }
 0x806   : > { %v4685_v15 = vpack.c.bf16 %v4651_v9, %v4649_v20  ;;  %v4571_v54 = vpop.f32.mrb[28].mxu1 }
 0x807   : > { %v4572_v22 = vadd.f32 %v4571_v54, %v10778_v48  ;;  %v4573_v23 = vpop.f32.mrb[29].mxu1 }
 0x808   : > { %v4574_v12 = vadd.f32 %v4573_v23, %v10781_v24  ;;  %v4575_v28 = vpop.f32.mrb[30].mxu1  ;;  %8135 = vmatprep.mubr.msk.bf16.mxu1 %vm651_vm1, %v4685_v15 }
 0x809   : > { %v4576_v29 = vadd.f32 %v4575_v28, %v10778_v48  ;;  %v4577_v30 = vpop.f32.mrb[31].mxu1  ;;  %4904 = vmatmul.mubr.bf16.gmra.mrb[64].mxu1 %v4684_v47  ;;  %v4652_v46 = vmax.f32 %v4572_v22, 0.0 }
 0x80a   : > { %v4578_v16 = vadd.f32 %v4577_v30, %v10781_v24  ;;  %v4653_v32 = vmax.f32 %v4574_v12, 0.0 }
 0x80b   : > { %v4654_v17 = vmax.f32 %v4576_v29, 0.0 }
 0x80c   : > { %v4655_v39 = vmax.f32 %v4578_v16, 0.0 }
 0x80d   : > { %v4686_v56 = vpack.c.bf16 %v4654_v17, %v4652_v46 }
 0x80e   : > { %v4687_v18 = vpack.c.bf16 %v4655_v39, %v4653_v32  ;;  %v4581_v40 = vpop.f32.mrb[32].mxu1 }
 0x80f   : > { %v4582_v57 = vadd.f32 %v4581_v40, %v10778_v48  ;;  %v4583_v1 = vpop.f32.mrb[33].mxu1 }
 0x810   : > { %v4584_v42 = vadd.f32 %v4583_v1, %v10781_v24  ;;  %v4585_v41 = vpop.f32.mrb[34].mxu1  ;;  %8136 = vmatprep.mubr.msk.bf16.mxu1 %vm651_vm1, %v4687_v18 }
 0x811   : > { %v4586_v21 = vadd.f32 %v4585_v41, %v10778_v48  ;;  %v4587_v3 = vpop.f32.mrb[35].mxu1  ;;  %4914 = vmatmul.mubr.bf16.gmra.mrb[68].mxu1 %v4686_v56  ;;  %v4656_v5 = vmax.f32 %v4582_v57, 0.0 }
 0x812   : > { %v4588_v4 = vadd.f32 %v4587_v3, %v10781_v24  ;;  %v4657_v7 = vmax.f32 %v4584_v42, 0.0 }
 0x813   : > { %v4658_v45 = vmax.f32 %v4586_v21, 0.0 }
 0x814   : > { %v4659_v38 = vmax.f32 %v4588_v4, 0.0 }
 0x815   : > { %v4688_v36 = vpack.c.bf16 %v4658_v45, %v4656_v5 }
 0x816   : > { %v4689_v52 = vpack.c.bf16 %v4659_v38, %v4657_v7  ;;  %v4591_v60 = vpop.f32.mrb[36].mxu1 }
 0x817   : > { %v4592_v62 = vadd.f32 %v4591_v60, %v10778_v48  ;;  %v4593_v10 = vpop.f32.mrb[37].mxu1 }
 0x818   : > { %v4594_v63 = vadd.f32 %v4593_v10, %v10781_v24  ;;  %v4595_v43 = vpop.f32.mrb[38].mxu1  ;;  %8137 = vmatprep.mubr.msk.bf16.mxu1 %vm651_vm1, %v4689_v52 }
 0x819   : > { %v4596_v27 = vadd.f32 %v4595_v43, %v10778_v48  ;;  %v4597_v31 = vpop.f32.mrb[39].mxu1  ;;  %4924 = vmatmul.mubr.bf16.gmra.mrb[72].mxu1 %v4688_v36  ;;  %v4660_v34 = vmax.f32 %v4592_v62, 0.0 }
 0x81a   : > { %v4598_v19 = vadd.f32 %v4597_v31, %v10781_v24  ;;  %v4661_v11 = vmax.f32 %v4594_v63, 0.0 }
 0x81b   : > { %v4662_v37 = vmax.f32 %v4596_v27, 0.0 }
 0x81c   : > { %v4663_v14 = vmax.f32 %v4598_v19, 0.0 }
 0x81d   : > { %v4690_v59 = vpack.c.bf16 %v4662_v37, %v4660_v34 }
 0x81e   : > { %v4691_v61 = vpack.c.bf16 %v4663_v14, %v4661_v11  ;;  %v4601_v8 = vpop.f32.mrb[40].mxu1 }
 0x81f   : > { %v4602_v20 = vadd.f32 %v4601_v8, %v10778_v48  ;;  %v4603_v9 = vpop.f32.mrb[41].mxu1 }
 0x820   : > { %v4604_v47 = vadd.f32 %v4603_v9, %v10781_v24  ;;  %v4605_v15 = vpop.f32.mrb[42].mxu1  ;;  %8138 = vmatprep.mubr.msk.bf16.mxu1 %vm651_vm1, %v4691_v61 }
 0x821   : > { %v4606_v54 = vadd.f32 %v4605_v15, %v10778_v48  ;;  %v4607_v22 = vpop.f32.mrb[43].mxu1  ;;  %4934 = vmatmul.mubr.bf16.gmra.mrb[76].mxu1 %v4690_v59  ;;  %v4664_v12 = vmax.f32 %v4602_v20, 0.0 }
 0x822   : > { %v4608_v23 = vadd.f32 %v4607_v22, %v10781_v24  ;;  %v4665_v29 = vmax.f32 %v4604_v47, 0.0 }
 0x823   : > { %v4666_v28 = vmax.f32 %v4606_v54, 0.0 }
 0x824   : > { %v4667_v30 = vmax.f32 %v4608_v23, 0.0 }
 0x825   : > { %v4692_v16 = vpack.c.bf16 %v4666_v28, %v4664_v12  ;;  %v8051_v12 = vld [vmem:[%s11939_s3 + $0x14] ss:$8 sm:$0x3] }
 0x826   : > { %v4693_v46 = vpack.c.bf16 %v4667_v30, %v4665_v29  ;;  %v4611_v17 = vpop.f32.mrb[44].mxu1  ;;  %v10844_v28 = vrot.slane %v8051_v12, %v9458_v51 }
 0x827   : > { %v4612_v33 = vadd.f32 %v4611_v17, %v10778_v48  ;;  %v4613_v32 = vpop.f32.mrb[45].mxu1 }
 0x828   : > { %v4614_v39 = vadd.f32 %v4613_v32, %v10781_v24  ;;  %v4615_v56 = vpop.f32.mrb[46].mxu1  ;;  %8139 = vmatprep.mubr.msk.bf16.mxu1 %vm651_vm1, %v4693_v46 }
 0x829   : > { %v4616_v18 = vadd.f32 %v4615_v56, %v10778_v48  ;;  %v4617_v40 = vpop.f32.mrb[47].mxu1  ;;  %4944 = vmatmul.mubr.bf16.gmra.mrb[80].mxu1 %v4692_v16  ;;  %v4668_v1 = vmax.f32 %v4612_v33, 0.0 }
 0x82a   : > { %v4618_v57 = vadd.f32 %v4617_v40, %v10781_v24  ;;  %v4669_v41 = vmax.f32 %v4614_v39, 0.0 }
 0x82b   : > { %v4670_v42 = vmax.f32 %v4616_v18, 0.0 }
 0x82c   : > { %v4671_v21 = vmax.f32 %v4618_v57, 0.0 }
 0x82d   : > { %v4694_v3 = vpack.c.bf16 %v4670_v42, %v4668_v1 }
 0x82e   : > { %v4695_v4 = vpack.c.bf16 %v4671_v21, %v4669_v41  ;;  %v4621_v5 = vpop.f32.mrb[48].mxu1  ;;  %v8871_v41 = vld [vmem:[%s11937_s1 + $0x5b0] ss:$8 sps:$4 sm:$0xff]  }
 0x82f   : > { %v4622_v45 = vadd.f32 %v4621_v5, %v10778_v48  ;;  %v4623_v7 = vpop.f32.mrb[49].mxu1 }
 0x830   : > { %v4624_v38 = vadd.f32 %v4623_v7, %v10781_v24  ;;  %v4625_v36 = vpop.f32.mrb[50].mxu1  ;;  %8140 = vmatprep.mubr.msk.bf16.mxu1 %vm651_vm1, %v4695_v4  ;;  %v8876_v4 = vld [vmem:[%s11937_s1 + $0x5c4] ss:$8 sps:$4 sm:$0xff]  }
 0x831   : > { %v4626_v52 = vadd.f32 %v4625_v36, %v10778_v48  ;;  %v4627_v60 = vpop.f32.mrb[51].mxu1  ;;  %4954 = vmatmul.mubr.bf16.gmra.mrb[84].mxu1 %v4694_v3  ;;  %v4672_v10 = vmax.f32 %v4622_v45, 0.0 }
 0x832   : > { %v4628_v62 = vadd.f32 %v4627_v60, %v10781_v24  ;;  %v4673_v43 = vmax.f32 %v4624_v38, 0.0 }
 0x833   : > { %v4674_v63 = vmax.f32 %v4626_v52, 0.0  ;;  %v8874_v52 = vld [vmem:[%s11937_s1 + $0x5c0] ss:$8 sps:$4 sm:$0xff]  }
 0x834   : > { %v4675_v27 = vmax.f32 %v4628_v62, 0.0 }
 0x835   : > { %v4696_v31 = vpack.c.bf16 %v4674_v63, %v4672_v10  ;;  %v8879_v10 = vld [vmem:[%s11937_s1 + $0x5d4] ss:$8 sps:$4 sm:$0xff]  }
 0x836   : > { %v4697_v19 = vpack.c.bf16 %v4675_v27, %v4673_v43  ;;  %v4631_v34 = vpop.f32.mrb[52].mxu1 }
 0x837   : > { %v4632_v37 = vadd.f32 %v4631_v34, %v10778_v48  ;;  %v4633_v11 = vpop.f32.mrb[53].mxu1  ;;  %v8877_v34 = vld [vmem:[%s11937_s1 + $0x5d0] ss:$8 sps:$4 sm:$0xff]  }
 0x838   : > { %v4634_v14 = vadd.f32 %v4633_v11, %v10781_v24  ;;  %v4635_v59 = vpop.f32.mrb[54].mxu1  ;;  %8141 = vmatprep.mubr.msk.bf16.mxu1 %vm651_vm1, %v4697_v19 }
 0x839   : > { %v4636_v61 = vadd.f32 %v4635_v59, %v10778_v48  ;;  %v4637_v8 = vpop.f32.mrb[55].mxu1  ;;  %4964 = vmatmul.mubr.bf16.gmra.mrb[88].mxu1 %v4696_v31  ;;  %v4676_v9 = vmax.f32 %v4632_v37, 0.0  ;;  %v10847_v48 = vrot.slane %v8051_v12, %v9463_v53 }
 0x83a   : > { %v4638_v20 = vadd.f32 %v4637_v8, %v10781_v24  ;;  %v4677_v15 = vmax.f32 %v4634_v14, 0.0  ;;  %v8882_v14 = vld [vmem:[%s11937_s1 + $0x5e4] ss:$8 sps:$4 sm:$0xff]  }
 0x83b   : > { %v4678_v47 = vmax.f32 %v4636_v61, 0.0 }
 0x83c   : > { %v4679_v54 = vmax.f32 %v4638_v20, 0.0 }
 0x83d   : > { %v4698_v22 = vpack.c.bf16 %v4678_v47, %v4676_v9  ;;  %v8880_v47 = vld [vmem:[%s11937_s1 + $0x5e0] ss:$8 sps:$4 sm:$0xff]  }
 0x83e   : > { %v4699_v23 = vpack.c.bf16 %v4679_v54, %v4677_v15 }
 0x840   : > { %8142 = vmatprep.mubr.msk.bf16.mxu1 %vm651_vm1, %v4699_v23 }
 0x841   : > { %4974 = vmatmul.mubr.bf16.gmra.mrb[92].mxu1 %v4698_v22  ;;  %v8885_v22 = vld [vmem:[%s11937_s1 + $0x5f4] ss:$8 sps:$4 sm:$0xff]  }
 0x87c   : > { %v4076_v24 = vpop.f32.mrb[208].mxu0 }
 0x87d   : > { %v4077_v29 = vadd.f32 %v4076_v24, %v10844_v28  ;;  %v4078_v30 = vpop.f32.mrb[209].mxu0 }
 0x87e   : > { %v4079_v16 = vadd.f32 %v4078_v30, %v10847_v48  ;;  %v4080_v46 = vpop.f32.mrb[210].mxu0 }
 0x87f   : > { %v4081_v17 = vadd.f32 %v4080_v46, %v10844_v28  ;;  %v4082_v33 = vpop.f32.mrb[211].mxu0  ;;  %v4175_v39 = vmax.f32 %v4077_v29, 0.0 }
 0x880   : > { %v4083_v32 = vadd.f32 %v4082_v33, %v10847_v48  ;;  %v4176_v18 = vmax.f32 %v4079_v16, 0.0  ;;  %v8883_v16 = vld [vmem:[%s11937_s1 + $0x5f0] ss:$8 sps:$4 sm:$0xff]   ;;  %v8888_v33 = vld [vmem:[%s11937_s1 + $0x604] ss:$8 sps:$4 sm:$0xff]  }
 0x881   : > { %v4177_v56 = vmax.f32 %v4081_v17, 0.0 }
 0x882   : > { %v4178_v40 = vmax.f32 %v4083_v32, 0.0 }
 0x883   : > { %v4233_v57 = vpack.c.bf16 %v4177_v56, %v4175_v39 }
 0x884   : > { %v4234_v1 = vpack.c.bf16 %v4178_v40, %v4176_v18  ;;  %v4086_v42 = vpop.f32.mrb[212].mxu0 }
 0x885   : > { %v4087_v21 = vadd.f32 %v4086_v42, %v10844_v28  ;;  %v4088_v3 = vpop.f32.mrb[213].mxu0 }
 0x886   : > { %v4089_v5 = vadd.f32 %v4088_v3, %v10847_v48  ;;  %v4090_v45 = vpop.f32.mrb[214].mxu0  ;;  %8089 = vmatprep.mubr.msk.bf16.mxu0 %vm651_vm1, %v4234_v1 }
 0x887   : > { %v4091_v7 = vadd.f32 %v4090_v45, %v10844_v28  ;;  %v4092_v38 = vpop.f32.mrb[215].mxu0  ;;  %4370 = vmatmul.mubr.bf16.vlgmr.msra.gmra.mrb[128].mxu0 %v4233_v57  ;;  %v4179_v60 = vmax.f32 %v4087_v21, 0.0  ;;  %v8886_v57 = vld [vmem:[%s11937_s1 + $0x600] ss:$8 sps:$4 sm:$0xff]  }
 0x888   : > { %v4093_v36 = vadd.f32 %v4092_v38, %v10847_v48  ;;  %5196 = vmatpush1.bf16.msra.mxu0 %v8871_v41  ;;  %v4180_v63 = vmax.f32 %v4089_v5, 0.0  ;;  %v8891_v41 = vld [vmem:[%s11937_s1 + $0x614] ss:$8 sps:$4 sm:$0xff]  }
 0x889   : > { %v4181_v62 = vmax.f32 %v4091_v7, 0.0  ;;  %5197 = vmatprep.subr.bf16.mxu0 %v8876_v4  ;;  %v8889_v7 = vld [vmem:[%s11937_s1 + $0x610] ss:$8 sps:$4 sm:$0xff]  }
 0x88a   : > { %v4182_v43 = vmax.f32 %v4093_v36, 0.0 }
 0x88b   : > { %v4235_v27 = vpack.c.bf16 %v4181_v62, %v4179_v60 }
 0x88c   : > { %v4236_v31 = vpack.c.bf16 %v4182_v43, %v4180_v63  ;;  %v4096_v19 = vpop.f32.mrb[216].mxu0  ;;  %5198 = vmatpush1.bf16.msra.mxu0 %v8874_v52  ;;  %v8894_v52 = vld [vmem:[%s11937_s1 + $0x624] ss:$8 sps:$4 sm:$0xff]   ;;  %v8898_v43 = vld [vmem:[%s11937_s1 + $0x640] ss:$8 sps:$4 sm:$0xff]  }
 0x88d   : > { %v4097_v37 = vadd.f32 %v4096_v19, %v10844_v28  ;;  %v4098_v11 = vpop.f32.mrb[217].mxu0  ;;  %5199 = vmatprep.subr.bf16.mxu0 %v8879_v10  ;;  %v8892_v19 = vld [vmem:[%s11937_s1 + $0x620] ss:$8 sps:$4 sm:$0xff]  }
 0x88e   : > { %v4099_v59 = vadd.f32 %v4098_v11, %v10847_v48  ;;  %v4100_v61 = vpop.f32.mrb[218].mxu0  ;;  %8090 = vmatprep.mubr.msk.bf16.mxu0 %vm651_vm1, %v4236_v31 }
 0x88f   : > { %v4101_v8 = vadd.f32 %v4100_v61, %v10844_v28  ;;  %v4102_v20 = vpop.f32.mrb[219].mxu0  ;;  %4378 = vmatmul.mubr.bf16.gmra.mrb[132].mxu0 %v4235_v27  ;;  %v4183_v15 = vmax.f32 %v4097_v37, 0.0  ;;  %v8900_v27 = vld [vmem:[%s11937_s1 + $0x644] ss:$8 sps:$4 sm:$0xff]  }
 0x890   : > { %v4103_v9 = vadd.f32 %v4102_v20, %v10847_v48  ;;  %5200 = vmatpush1.bf16.msra.mxu0 %v8877_v34  ;;  %v4184_v23 = vmax.f32 %v4099_v59, 0.0  ;;  %v8903_v34 = vld [vmem:[%s11937_s1 + $0x654] ss:$8 sps:$4 sm:$0xff]   ;;  %5539 = vmatprep.subr.bf16.mxu1 %v8900_v27  ;;  %v8918_v27 = vld [vmem:[%s11937_s1 + $0x6a4] ss:$8 sps:$4 sm:$0xff]  }
 0x891   : > { %v4185_v54 = vmax.f32 %v4101_v8, 0.0  ;;  %5201 = vmatprep.subr.bf16.mxu0 %v8882_v14  ;;  %v8897_v14 = vld [vmem:[%s11937_s1 + $0x634] ss:$8 sps:$4 sm:$0xff]   ;;  %5540 = vmatpush1.bf16.msra.mxu1 %v8898_v43  ;;  %v8901_v8 = vld [vmem:[%s11937_s1 + $0x650] ss:$8 sps:$4 sm:$0xff]  }
 0x892   : > { %v4186_v12 = vmax.f32 %v4103_v9, 0.0  ;;  %5541 = vmatprep.subr.bf16.mxu1 %v8903_v34  ;;  %v8906_v9 = vld [vmem:[%s11937_s1 + $0x664] ss:$8 sps:$4 sm:$0xff]  }
 0x893   : > { %v4237_v24 = vpack.c.bf16 %v4185_v54, %v4183_v15  ;;  %v8895_v54 = vld [vmem:[%s11937_s1 + $0x630] ss:$8 sps:$4 sm:$0xff]  }
 0x894   : > { %v4238_v29 = vpack.c.bf16 %v4186_v12, %v4184_v23  ;;  %v4106_v30 = vpop.f32.mrb[220].mxu0  ;;  %5202 = vmatpush1.bf16.msra.mxu0 %v8880_v47 }
 0x895   : > { %v4107_v46 = vadd.f32 %v4106_v30, %v10844_v28  ;;  %v4108_v17 = vpop.f32.mrb[221].mxu0  ;;  %5203 = vmatprep.subr.bf16.mxu0 %v8885_v22  ;;  %5542 = vmatpush1.bf16.msra.mxu1 %v8901_v8 }
 0x896   : > { %v4109_v32 = vadd.f32 %v4108_v17, %v10847_v48  ;;  %v4110_v39 = vpop.f32.mrb[222].mxu0  ;;  %8091 = vmatprep.mubr.msk.bf16.mxu0 %vm651_vm1, %v4238_v29  ;;  %v8904_v29 = vld [vmem:[%s11937_s1 + $0x660] ss:$8 sps:$4 sm:$0xff]   ;;  %5543 = vmatprep.subr.bf16.mxu1 %v8906_v9 }
 0x897   : > { %v4111_v56 = vadd.f32 %v4110_v39, %v10844_v28  ;;  %v4112_v18 = vpop.f32.mrb[223].mxu0  ;;  %4386 = vmatmul.mubr.bf16.gmra.mrb[136].mxu0 %v4237_v24  ;;  %v4187_v1 = vmax.f32 %v4107_v46, 0.0  ;;  %v8909_v46 = vld [vmem:[%s11937_s1 + $0x674] ss:$8 sps:$4 sm:$0xff]  }
 0x898   : > { %v4113_v40 = vadd.f32 %v4112_v18, %v10847_v48  ;;  %5204 = vmatpush1.bf16.msra.mxu0 %v8883_v16  ;;  %v4188_v21 = vmax.f32 %v4109_v32, 0.0  ;;  %v8907_v18 = vld [vmem:[%s11937_s1 + $0x670] ss:$8 sps:$4 sm:$0xff]  }
 0x899   : > { %v4189_v42 = vmax.f32 %v4111_v56, 0.0  ;;  %5205 = vmatprep.subr.bf16.mxu0 %v8888_v33  ;;  %5544 = vmatpush1.bf16.msra.mxu1 %v8904_v29 }
 0x89a   : > { %v4190_v3 = vmax.f32 %v4113_v40, 0.0  ;;  %5545 = vmatprep.subr.bf16.mxu1 %v8909_v46 }
 0x89b   : > { %v4239_v4 = vpack.c.bf16 %v4189_v42, %v4187_v1 }
 0x89c   : > { %v4240_v5 = vpack.c.bf16 %v4190_v3, %v4188_v21  ;;  %v4116_v45 = vpop.f32.mrb[224].mxu0  ;;  %5206 = vmatpush1.bf16.msra.mxu0 %v8886_v57  ;;  %v8912_v57 = vld [vmem:[%s11937_s1 + $0x684] ss:$8 sps:$4 sm:$0xff]  }
 0x89d   : > { %v4117_v38 = vadd.f32 %v4116_v45, %v10844_v28  ;;  %v4118_v36 = vpop.f32.mrb[225].mxu0  ;;  %5207 = vmatprep.subr.bf16.mxu0 %v8891_v41  ;;  %5546 = vmatpush1.bf16.msra.mxu1 %v8907_v18 }
 0x89e   : > { %v4119_v60 = vadd.f32 %v4118_v36, %v10847_v48  ;;  %v4120_v62 = vpop.f32.mrb[226].mxu0  ;;  %8092 = vmatprep.mubr.msk.bf16.mxu0 %vm651_vm1, %v4240_v5  ;;  %v8910_v5 = vld [vmem:[%s11937_s1 + $0x680] ss:$8 sps:$4 sm:$0xff]   ;;  %5547 = vmatprep.subr.bf16.mxu1 %v8912_v57 }
 0x89f   : > { %v4121_v10 = vadd.f32 %v4120_v62, %v10844_v28  ;;  %v4122_v63 = vpop.f32.mrb[227].mxu0  ;;  %4394 = vmatmul.mubr.bf16.gmra.mrb[140].mxu0 %v4239_v4  ;;  %v4191_v37 = vmax.f32 %v4117_v38, 0.0  ;;  %v8915_v38 = vld [vmem:[%s11937_s1 + $0x694] ss:$8 sps:$4 sm:$0xff]  }
 0x8a0   : > { %v4123_v31 = vadd.f32 %v4122_v63, %v10847_v48  ;;  %5208 = vmatpush1.bf16.msra.mxu0 %v8889_v7  ;;  %v4192_v59 = vmax.f32 %v4119_v60, 0.0  ;;  %v8913_v63 = vld [vmem:[%s11937_s1 + $0x690] ss:$8 sps:$4 sm:$0xff]  }
 0x8a1   : > { %v4193_v11 = vmax.f32 %v4121_v10, 0.0  ;;  %5209 = vmatprep.subr.bf16.mxu0 %v8894_v52  ;;  %5548 = vmatpush1.bf16.msra.mxu1 %v8910_v5 }
 0x8a2   : > { %v4194_v61 = vmax.f32 %v4123_v31, 0.0  ;;  %5549 = vmatprep.subr.bf16.mxu1 %v8915_v38 }
 0x8a3   : > { %v4241_v20 = vpack.c.bf16 %v4193_v11, %v4191_v37 }
 0x8a4   : > { %v4242_v47 = vpack.c.bf16 %v4194_v61, %v4192_v59  ;;  %v4126_v15 = vpop.f32.mrb[228].mxu0  ;;  %5210 = vmatpush1.bf16.msra.mxu0 %v8892_v19  ;;  %v8916_v59 = vld [vmem:[%s11937_s1 + $0x6a0] ss:$8 sps:$4 sm:$0xff]  }
 0x8a5   : > { %v4127_v22 = vadd.f32 %v4126_v15, %v10844_v28  ;;  %v4128_v23 = vpop.f32.mrb[229].mxu0  ;;  %5211 = vmatprep.subr.bf16.mxu0 %v8897_v14  ;;  %5550 = vmatpush1.bf16.msra.mxu1 %v8913_v63 }
 0x8a6   : > { %v4129_v12 = vadd.f32 %v4128_v23, %v10847_v48  ;;  %v4130_v24 = vpop.f32.mrb[230].mxu0  ;;  %8093 = vmatprep.mubr.msk.bf16.mxu0 %vm651_vm1, %v4242_v47  ;;  %5551 = vmatprep.subr.bf16.mxu1 %v8918_v27  ;;  %v8919_v23 = vld [vmem:[%s11937_s1 + $0x6b0] ss:$8 sps:$4 sm:$0xff]  }
 0x8a7   : > { %v4131_v30 = vadd.f32 %v4130_v24, %v10844_v28  ;;  %v4132_v16 = vpop.f32.mrb[231].mxu0  ;;  %4402 = vmatmul.mubr.bf16.gmra.mrb[144].mxu0 %v4241_v20  ;;  %v4195_v33 = vmax.f32 %v4127_v22, 0.0  ;;  %v8921_v20 = vld [vmem:[%s11937_s1 + $0x6b4] ss:$8 sps:$4 sm:$0xff]  }
 0x8a8   : > { %v4133_v17 = vadd.f32 %v4132_v16, %v10847_v48  ;;  %5212 = vmatpush1.bf16.msra.mxu0 %v8895_v54  ;;  %v4196_v39 = vmax.f32 %v4129_v12, 0.0 }
 0x8a9   : > { %v4197_v32 = vmax.f32 %v4131_v30, 0.0  ;;  %5834 = vmatprep.subr.bf16.mxu0 %v9184_v2  ;;  %5552 = vmatpush1.bf16.msra.mxu1 %v8916_v59 }
 0x8aa   : > { %v4198_v56 = vmax.f32 %v4133_v17, 0.0  ;;  %5553 = vmatprep.subr.bf16.mxu1 %v8921_v20 }
 0x8ab   : > { %v4243_v40 = vpack.c.bf16 %v4197_v32, %v4195_v33 }
 0x8ac   : > { %v4244_v1 = vpack.c.bf16 %v4198_v56, %v4196_v39  ;;  %v4136_v42 = vpop.f32.mrb[232].mxu0 }
 0x8ad   : > { %v4137_v41 = vadd.f32 %v4136_v42, %v10844_v28  ;;  %v4138_v21 = vpop.f32.mrb[233].mxu0  ;;  %5554 = vmatpush1.bf16.msra.mxu1 %v8919_v23 }
 0x8ae   : > { %v4139_v3 = vadd.f32 %v4138_v21, %v10847_v48  ;;  %v4140_v4 = vpop.f32.mrb[234].mxu0  ;;  %8094 = vmatprep.mubr.msk.bf16.mxu0 %vm651_vm1, %v4244_v1 }
 0x8af   : > { %v4141_v45 = vadd.f32 %v4140_v4, %v10844_v28  ;;  %v4142_v7 = vpop.f32.mrb[235].mxu0  ;;  %4410 = vmatmul.mubr.bf16.gmra.mrb[148].mxu0 %v4243_v40  ;;  %v4199_v52 = vmax.f32 %v4137_v41, 0.0 }
 0x8b0   : > { %v4143_v36 = vadd.f32 %v4142_v7, %v10847_v48  ;;  %v4200_v62 = vmax.f32 %v4139_v3, 0.0 }
 0x8b1   : > { %v4201_v60 = vmax.f32 %v4141_v45, 0.0  ;;  %v8114_v45 = vld [vmem:[%s11939_s3 + $0x15] ss:$8 sm:$0x3] }
 0x8b2   : > { %v4202_v10 = vmax.f32 %v4143_v36, 0.0 }
 0x8b3   : > { %v4245_v43 = vpack.c.bf16 %v4201_v60, %v4199_v52 }
 0x8b4   : > { %v4246_v31 = vpack.c.bf16 %v4202_v10, %v4200_v62  ;;  %v4146_v19 = vpop.f32.mrb[236].mxu0  ;;  %v11002_v62 = vrot.slane %v8114_v45, %v9458_v51 }
 0x8b5   : > { %v4147_v34 = vadd.f32 %v4146_v19, %v10844_v28  ;;  %v4148_v37 = vpop.f32.mrb[237].mxu0 }
 0x8b6   : > { %v4149_v11 = vadd.f32 %v4148_v37, %v10847_v48  ;;  %v4150_v14 = vpop.f32.mrb[238].mxu0  ;;  %8095 = vmatprep.mubr.msk.bf16.mxu0 %vm651_vm1, %v4246_v31 }
 0x8b7   : > { %v4151_v61 = vadd.f32 %v4150_v14, %v10844_v28  ;;  %v4152_v8 = vpop.f32.mrb[239].mxu0  ;;  %4418 = vmatmul.mubr.bf16.gmra.mrb[152].mxu0 %v4245_v43  ;;  %v4203_v47 = vmax.f32 %v4147_v34, 0.0  ;;  %v11005_v43 = vrot.slane %v8114_v45, %v9463_v53 }
 0x8b8   : > { %v4153_v9 = vadd.f32 %v4152_v8, %v10847_v48  ;;  %v4204_v54 = vmax.f32 %v4149_v11, 0.0 }
 0x8b9   : > { %v4205_v15 = vmax.f32 %v4151_v61, 0.0 }
 0x8ba   : > { %v4206_v22 = vmax.f32 %v4153_v9, 0.0 }
 0x8bb   : > { %v4247_v12 = vpack.c.bf16 %v4205_v15, %v4203_v47 }
 0x8bc   : > { %v4248_v24 = vpack.c.bf16 %v4206_v22, %v4204_v54  ;;  %v4156_v29 = vpop.f32.mrb[240].mxu0 }
 0x8bd   : > { %v4157_v30 = vadd.f32 %v4156_v29, %v10844_v28  ;;  %v4158_v16 = vpop.f32.mrb[241].mxu0 }
 0x8be   : > { %v4159_v46 = vadd.f32 %v4158_v16, %v10847_v48  ;;  %v4160_v17 = vpop.f32.mrb[242].mxu0  ;;  %8096 = vmatprep.mubr.msk.bf16.mxu0 %vm651_vm1, %v4248_v24 }
 0x8bf   : > { %v4161_v33 = vadd.f32 %v4160_v17, %v10844_v28  ;;  %v4162_v32 = vpop.f32.mrb[243].mxu0  ;;  %4426 = vmatmul.mubr.bf16.gmra.mrb[156].mxu0 %v4247_v12  ;;  %v4207_v56 = vmax.f32 %v4157_v30, 0.0 }
 0x8c0   : > { %v4163_v39 = vadd.f32 %v4162_v32, %v10847_v48  ;;  %v4208_v40 = vmax.f32 %v4159_v46, 0.0 }
 0x8c1   : > { %v4209_v18 = vmax.f32 %v4161_v33, 0.0 }
 0x8c2   : > { %v4210_v57 = vmax.f32 %v4163_v39, 0.0 }
 0x8c3   : > { %v4249_v1 = vpack.c.bf16 %v4209_v18, %v4207_v56 }
 0x8c4   : > { %v4250_v42 = vpack.c.bf16 %v4210_v57, %v4208_v40  ;;  %v4166_v41 = vpop.f32.mrb[244].mxu0 }
 0x8c5   : > { %v4167_v21 = vadd.f32 %v4166_v41, %v10844_v28  ;;  %v4168_v3 = vpop.f32.mrb[245].mxu0 }
 0x8c6   : > { %v4169_v4 = vadd.f32 %v4168_v3, %v10847_v48  ;;  %v4170_v5 = vpop.f32.mrb[246].mxu0  ;;  %8097 = vmatprep.mubr.msk.bf16.mxu0 %vm651_vm1, %v4250_v42 }
 0x8c7   : > { %v4171_v7 = vadd.f32 %v4170_v5, %v10844_v28  ;;  %v4172_v38 = vpop.f32.mrb[247].mxu0  ;;  %4434 = vmatmul.mubr.bf16.gmra.mrb[160].mxu0 %v4249_v1  ;;  %v4211_v52 = vmax.f32 %v4167_v21, 0.0 }
 0x8c8   : > { %v4173_v36 = vadd.f32 %v4172_v38, %v10847_v48  ;;  %v4212_v10 = vmax.f32 %v4169_v4, 0.0 }
 0x8c9   : > { %v4213_v60 = vmax.f32 %v4171_v7, 0.0 }
 0x8ca   : > { %v4214_v63 = vmax.f32 %v4173_v36, 0.0 }
 0x8cb   : > { %v4251_v27 = vpack.c.bf16 %v4213_v60, %v4211_v52 }
 0x8cc   : > { %v4252_v31 = vpack.c.bf16 %v4214_v63, %v4212_v10  ;;  %v4885_v19 = vpop.f32.mrb[56].mxu1 }
 0x8cd   : > { %v4886_v34 = vadd.f32 %v4885_v19, %v11002_v62  ;;  %v4887_v28 = vpop.f32.mrb[57].mxu1 }
 0x8ce   : > { %v4888_v37 = vadd.f32 %v4887_v28, %v11005_v43  ;;  %8098 = vmatprep.mubr.msk.bf16.mxu0 %vm651_vm1, %v4252_v31  ;;  %v4889_v48 = vpop.f32.mrb[58].mxu1 }
 0x8cf   : > { %v4890_v11 = vadd.f32 %v4889_v48, %v11002_v62  ;;  %4442 = vmatmul.mubr.bf16.gmra.mrb[164].mxu0 %v4251_v27  ;;  %v4891_v14 = vpop.f32.mrb[59].mxu1  ;;  %v4984_v61 = vmax.f32 %v4886_v34, 0.0 }
 0x8d0   : > { %v4892_v59 = vadd.f32 %v4891_v14, %v11005_v43  ;;  %v4985_v20 = vmax.f32 %v4888_v37, 0.0 }
 0x8d1   : > { %v4986_v8 = vmax.f32 %v4890_v11, 0.0 }
 0x8d2   : > { %v4987_v9 = vmax.f32 %v4892_v59, 0.0 }
 0x8d3   : > { %v5024_v47 = vpack.c.bf16 %v4986_v8, %v4984_v61 }
 0x8d4   : > { %v5025_v15 = vpack.c.bf16 %v4987_v9, %v4985_v20  ;;  %v4895_v54 = vpop.f32.mrb[60].mxu1 }
 0x8d5   : > { %v4896_v22 = vadd.f32 %v4895_v54, %v11002_v62  ;;  %v4897_v23 = vpop.f32.mrb[61].mxu1 }
 0x8d6   : > { %v4898_v12 = vadd.f32 %v4897_v23, %v11005_v43  ;;  %v4899_v24 = vpop.f32.mrb[62].mxu1  ;;  %8162 = vmatprep.mubr.msk.bf16.mxu0 %vm651_vm1, %v5025_v15 }
 0x8d7   : > { %v4900_v29 = vadd.f32 %v4899_v24, %v11002_v62  ;;  %v4901_v30 = vpop.f32.mrb[63].mxu1  ;;  %5228 = vmatmul.mubr.bf16.vlgmr.msra.gmra.mrb[248].mxu0 %v5024_v47  ;;  %v4988_v46 = vmax.f32 %v4896_v22, 0.0 }
 0x8d8   : > { %v4902_v16 = vadd.f32 %v4901_v30, %v11005_v43  ;;  %v4989_v33 = vmax.f32 %v4898_v12, 0.0 }
 0x8d9   : > { %v4990_v17 = vmax.f32 %v4900_v29, 0.0 }
 0x8da   : > { %v4991_v32 = vmax.f32 %v4902_v16, 0.0 }
 0x8db   : > { %v5026_v39 = vpack.c.bf16 %v4990_v17, %v4988_v46 }
 0x8dc   : > { %v5027_v56 = vpack.c.bf16 %v4991_v32, %v4989_v33  ;;  %v4905_v18 = vpop.f32.mrb[64].mxu1 }
 0x8dd   : > { %v4906_v40 = vadd.f32 %v4905_v18, %v11002_v62  ;;  %v4907_v57 = vpop.f32.mrb[65].mxu1 }
 0x8de   : > { %v4908_v1 = vadd.f32 %v4907_v57, %v11005_v43  ;;  %v4909_v42 = vpop.f32.mrb[66].mxu1  ;;  %8163 = vmatprep.mubr.msk.bf16.mxu0 %vm651_vm1, %v5027_v56 }
 0x8df   : > { %v4910_v41 = vadd.f32 %v4909_v42, %v11002_v62  ;;  %v4911_v21 = vpop.f32.mrb[67].mxu1  ;;  %5238 = vmatmul.mubr.bf16.gmra.mrb[252].mxu0 %v5026_v39  ;;  %v4992_v4 = vmax.f32 %v4906_v40, 0.0 }
 0x8e0   : > { %v4912_v3 = vadd.f32 %v4911_v21, %v11005_v43  ;;  %v4993_v45 = vmax.f32 %v4908_v1, 0.0 }
 0x8e1   : > { %v4994_v5 = vmax.f32 %v4910_v41, 0.0 }
 0x8e2   : > { %v4995_v7 = vmax.f32 %v4912_v3, 0.0 }
 0x8e3   : > { %v5028_v38 = vpack.c.bf16 %v4994_v5, %v4992_v4 }
 0x8e4   : > { %v5029_v36 = vpack.c.bf16 %v4995_v7, %v4993_v45  ;;  %v4915_v52 = vpop.f32.mrb[68].mxu1 }
 0x8e5   : > { %v4916_v60 = vadd.f32 %v4915_v52, %v11002_v62  ;;  %v4917_v10 = vpop.f32.mrb[69].mxu1 }
 0x8e6   : > { %v4918_v63 = vadd.f32 %v4917_v10, %v11005_v43  ;;  %v4919_v27 = vpop.f32.mrb[70].mxu1  ;;  %8164 = vmatprep.mubr.msk.bf16.mxu0 %vm651_vm1, %v5029_v36 }
 0x8e7   : > { %v4920_v31 = vadd.f32 %v4919_v27, %v11002_v62  ;;  %v4921_v19 = vpop.f32.mrb[71].mxu1  ;;  %5248 = vmatmul.mubr.bf16.gmra.mrb[0].mxu0 %v5028_v38  ;;  %v4996_v28 = vmax.f32 %v4916_v60, 0.0 }
 0x8e8   : > { %v4922_v34 = vadd.f32 %v4921_v19, %v11005_v43  ;;  %v4997_v48 = vmax.f32 %v4918_v63, 0.0 }
 0x8e9   : > { %v4998_v37 = vmax.f32 %v4920_v31, 0.0 }
 0x8ea   : > { %v4999_v11 = vmax.f32 %v4922_v34, 0.0 }
 0x8eb   : > { %v5030_v14 = vpack.c.bf16 %v4998_v37, %v4996_v28 }
 0x8ec   : > { %v5031_v59 = vpack.c.bf16 %v4999_v11, %v4997_v48  ;;  %v4925_v61 = vpop.f32.mrb[72].mxu1 }
 0x8ed   : > { %v4926_v8 = vadd.f32 %v4925_v61, %v11002_v62  ;;  %v4927_v20 = vpop.f32.mrb[73].mxu1 }
 0x8ee   : > { %v4928_v9 = vadd.f32 %v4927_v20, %v11005_v43  ;;  %v4929_v47 = vpop.f32.mrb[74].mxu1  ;;  %8165 = vmatprep.mubr.msk.bf16.mxu0 %vm651_vm1, %v5031_v59 }
 0x8ef   : > { %v4930_v15 = vadd.f32 %v4929_v47, %v11002_v62  ;;  %v4931_v54 = vpop.f32.mrb[75].mxu1  ;;  %5258 = vmatmul.mubr.bf16.gmra.mrb[4].mxu0 %v5030_v14  ;;  %v5000_v23 = vmax.f32 %v4926_v8, 0.0 }
 0x8f0   : > { %v4932_v22 = vadd.f32 %v4931_v54, %v11005_v43  ;;  %v5001_v24 = vmax.f32 %v4928_v9, 0.0 }
 0x8f1   : > { %v5002_v12 = vmax.f32 %v4930_v15, 0.0 }
 0x8f2   : > { %v5003_v29 = vmax.f32 %v4932_v22, 0.0 }
 0x8f3   : > { %v5032_v30 = vpack.c.bf16 %v5002_v12, %v5000_v23 }
 0x8f4   : > { %v5033_v16 = vpack.c.bf16 %v5003_v29, %v5001_v24  ;;  %v4935_v46 = vpop.f32.mrb[76].mxu1 }
 0x8f5   : > { %v4936_v17 = vadd.f32 %v4935_v46, %v11002_v62  ;;  %v4937_v33 = vpop.f32.mrb[77].mxu1 }
 0x8f6   : > { %v4938_v32 = vadd.f32 %v4937_v33, %v11005_v43  ;;  %v4939_v39 = vpop.f32.mrb[78].mxu1  ;;  %8166 = vmatprep.mubr.msk.bf16.mxu0 %vm651_vm1, %v5033_v16 }
 0x8f7   : > { %v4940_v56 = vadd.f32 %v4939_v39, %v11002_v62  ;;  %v4941_v18 = vpop.f32.mrb[79].mxu1  ;;  %5268 = vmatmul.mubr.bf16.gmra.mrb[8].mxu0 %v5032_v30  ;;  %v5004_v57 = vmax.f32 %v4936_v17, 0.0 }
 0x8f8   : > { %v4942_v40 = vadd.f32 %v4941_v18, %v11005_v43  ;;  %v5005_v42 = vmax.f32 %v4938_v32, 0.0 }
 0x8f9   : > { %v5006_v1 = vmax.f32 %v4940_v56, 0.0 }
 0x8fa   : > { %v5007_v41 = vmax.f32 %v4942_v40, 0.0 }
 0x8fb   : > { %v5034_v21 = vpack.c.bf16 %v5006_v1, %v5004_v57 }
 0x8fc   : > { %v5035_v3 = vpack.c.bf16 %v5007_v41, %v5005_v42  ;;  %v4945_v4 = vpop.f32.mrb[80].mxu1 }
 0x8fd   : > { %v4946_v5 = vadd.f32 %v4945_v4, %v11002_v62  ;;  %v4947_v45 = vpop.f32.mrb[81].mxu1 }
 0x8fe   : > { %v4948_v7 = vadd.f32 %v4947_v45, %v11005_v43  ;;  %v4949_v38 = vpop.f32.mrb[82].mxu1  ;;  %8167 = vmatprep.mubr.msk.bf16.mxu0 %vm651_vm1, %v5035_v3 }
 0x8ff   : > { %v4950_v36 = vadd.f32 %v4949_v38, %v11002_v62  ;;  %v4951_v52 = vpop.f32.mrb[83].mxu1  ;;  %5278 = vmatmul.mubr.bf16.gmra.mrb[12].mxu0 %v5034_v21  ;;  %v5008_v10 = vmax.f32 %v4946_v5, 0.0 }
 0x900   : > { %v4952_v60 = vadd.f32 %v4951_v52, %v11005_v43  ;;  %v5009_v27 = vmax.f32 %v4948_v7, 0.0 }
 0x901   : > { %v5010_v63 = vmax.f32 %v4950_v36, 0.0 }
 0x902   : > { %v5011_v31 = vmax.f32 %v4952_v60, 0.0 }
 0x903   : > { %v5036_v19 = vpack.c.bf16 %v5010_v63, %v5008_v10  ;;  %v8924_v10 = vld [vmem:[%s11937_s1 + $0x6c4] ss:$8 sps:$4 sm:$0xff]   ;;  %v8143_v63 = vld [vmem:[%s11939_s3 + $0x16] ss:$8 sm:$0x3] }
 0x904   : > { %v5037_v34 = vpack.c.bf16 %v5011_v31, %v5009_v27  ;;  %v4955_v28 = vpop.f32.mrb[84].mxu1  ;;  %5555 = vmatprep.subr.bf16.mxu1 %v8924_v10  ;;  %v11071_v27 = vrot.slane %v8143_v63, %v9458_v51  ;;  %v11074_v31 = vrot.slane %v8143_v63, %v9463_v53 }
 0x905   : > { %v4956_v37 = vadd.f32 %v4955_v28, %v11002_v62  ;;  %v4957_v48 = vpop.f32.mrb[85].mxu1 }
 0x906   : > { %v4958_v11 = vadd.f32 %v4957_v48, %v11005_v43  ;;  %v4959_v14 = vpop.f32.mrb[86].mxu1  ;;  %8168 = vmatprep.mubr.msk.bf16.mxu0 %vm651_vm1, %v5037_v34 }
 0x907   : > { %v4960_v59 = vadd.f32 %v4959_v14, %v11002_v62  ;;  %v4961_v61 = vpop.f32.mrb[87].mxu1  ;;  %5288 = vmatmul.mubr.bf16.gmra.mrb[16].mxu0 %v5036_v19  ;;  %v5012_v20 = vmax.f32 %v4956_v37, 0.0 }
 0x908   : > { %v4962_v8 = vadd.f32 %v4961_v61, %v11005_v43  ;;  %v5013_v47 = vmax.f32 %v4958_v11, 0.0 }
 0x909   : > { %v5014_v9 = vmax.f32 %v4960_v59, 0.0 }
 0x90a   : > { %v5015_v15 = vmax.f32 %v4962_v8, 0.0 }
 0x90b   : > { %v5038_v54 = vpack.c.bf16 %v5014_v9, %v5012_v20 }
 0x90c   : > { %v5039_v22 = vpack.c.bf16 %v5015_v15, %v5013_v47  ;;  %v4965_v23 = vpop.f32.mrb[88].mxu1 }
 0x90d   : > { %v4966_v12 = vadd.f32 %v4965_v23, %v11002_v62  ;;  %v4967_v24 = vpop.f32.mrb[89].mxu1 }
 0x90e   : > { %v4968_v29 = vadd.f32 %v4967_v24, %v11005_v43  ;;  %v4969_v30 = vpop.f32.mrb[90].mxu1  ;;  %8169 = vmatprep.mubr.msk.bf16.mxu0 %vm651_vm1, %v5039_v22  ;;  %v8925_v22 = vld [vmem:[%s11937_s1 + $0x80] ss:$8 sps:$4 sm:$0xff]   ;;  %v8930_v24 = vld [vmem:[%s11937_s1 + $0x94] ss:$8 sps:$4 sm:$0xff]  }
 0x90f   : > { %v4970_v16 = vadd.f32 %v4969_v30, %v11002_v62  ;;  %v4971_v46 = vpop.f32.mrb[91].mxu1  ;;  %5298 = vmatmul.mubr.bf16.gmra.mrb[20].mxu0 %v5038_v54  ;;  %v5016_v33 = vmax.f32 %v4966_v12, 0.0 }
 0x910   : > { %v4972_v17 = vadd.f32 %v4971_v46, %v11005_v43  ;;  %v5017_v39 = vmax.f32 %v4968_v29, 0.0 }
 0x911   : > { %v5018_v32 = vmax.f32 %v4970_v16, 0.0 }
 0x912   : > { %v5019_v56 = vmax.f32 %v4972_v17, 0.0 }
 0x913   : > { %v5040_v18 = vpack.c.bf16 %v5018_v32, %v5016_v33  ;;  %v8928_v33 = vld [vmem:[%s11937_s1 + $0x90] ss:$8 sps:$4 sm:$0xff]  }
 0x914   : > { %v5041_v40 = vpack.c.bf16 %v5019_v56, %v5017_v39  ;;  %v4975_v57 = vpop.f32.mrb[92].mxu1 }
 0x915   : > { %v4976_v1 = vadd.f32 %v4975_v57, %v11002_v62  ;;  %v4977_v42 = vpop.f32.mrb[93].mxu1 }
 0x916   : > { %v4978_v41 = vadd.f32 %v4977_v42, %v11005_v43  ;;  %v4979_v21 = vpop.f32.mrb[94].mxu1  ;;  %8170 = vmatprep.mubr.msk.bf16.mxu0 %vm651_vm1, %v5041_v40 }
 0x917   : > { %v4980_v3 = vadd.f32 %v4979_v21, %v11002_v62  ;;  %v4981_v4 = vpop.f32.mrb[95].mxu1  ;;  %5308 = vmatmul.mubr.bf16.gmra.mrb[24].mxu0 %v5040_v18  ;;  %v5020_v45 = vmax.f32 %v4976_v1, 0.0  ;;  %v8922_v62 = vld [vmem:[%s11937_s1 + $0x6c0] ss:$8 sps:$4 sm:$0xff]  }
 0x918   : > { %v4982_v5 = vadd.f32 %v4981_v4, %v11005_v43  ;;  %v5021_v38 = vmax.f32 %v4978_v41, 0.0  ;;  %5556 = vmatpush1.bf16.msra.mxu1 %v8922_v62  ;;  %v8927_v43 = vld [vmem:[%s11937_s1 + $0x84] ss:$8 sps:$4 sm:$0xff]  }
 0x919   : > { %v5022_v7 = vmax.f32 %v4980_v3, 0.0  ;;  %6004 = vmatprep.subr.bf16.mxu1 %v8927_v43 }
 0x91a   : > { %v5023_v36 = vmax.f32 %v4982_v5, 0.0 }
 0x91b   : > { %v5042_v52 = vpack.c.bf16 %v5022_v7, %v5020_v45  ;;  %v8931_v45 = vld [vmem:[%s11938_s2 + $0xd8] sm:$0xff]  }
 0x91c   : > { %v5043_v60 = vpack.c.bf16 %v5023_v36, %v5021_v38  ;;  %5835 = vmatpush1.bf16.msra.mxu0 %v8931_v45 }
 0x91d   : > { %5836 = vmatprep.subr.bf16.mxu0 %v9184_v2 }
 0x91e   : > { %8171 = vmatprep.mubr.msk.bf16.mxu0 %vm651_vm1, %v5043_v60 }
 0x91f   : > { %5318 = vmatmul.mubr.bf16.gmra.mrb[28].mxu0 %v5042_v52 }
 0x9aa   : > { %v5229_v19 = vpop.f32.mrb[248].mxu0 }
 0x9ab   : > { %v5230_v34 = vadd.f32 %v5229_v19, %v11071_v27  ;;  %v5231_v28 = vpop.f32.mrb[249].mxu0 }
 0x9ac   : > { %v5232_v37 = vadd.f32 %v5231_v28, %v11074_v31  ;;  %v5233_v48 = vpop.f32.mrb[250].mxu0 }
 0x9ad   : > { %v5234_v11 = vadd.f32 %v5233_v48, %v11071_v27  ;;  %v5235_v14 = vpop.f32.mrb[251].mxu0  ;;  %v5328_v61 = vmax.f32 %v5230_v34, 0.0 }
 0x9ae   : > { %v5236_v59 = vadd.f32 %v5235_v14, %v11074_v31  ;;  %v5329_v20 = vmax.f32 %v5232_v37, 0.0 }
 0x9af   : > { %v5330_v8 = vmax.f32 %v5234_v11, 0.0  ;;  %v8932_v11 = vld [vmem:[%s11938_s2 + $0xe0] sm:$0xff]  }
 0x9b0   : > { %v5331_v9 = vmax.f32 %v5236_v59, 0.0  ;;  %5837 = vmatpush1.bf16.msra.mxu0 %v8932_v11 }
 0x9b1   : > { %v5368_v47 = vpack.c.bf16 %v5330_v8, %v5328_v61  ;;  %5838 = vmatprep.subr.bf16.mxu0 %v9184_v2 }
 0x9b2   : > { %v5369_v15 = vpack.c.bf16 %v5331_v9, %v5329_v20  ;;  %v5239_v54 = vpop.f32.mrb[252].mxu0 }
 0x9b3   : > { %v5240_v23 = vadd.f32 %v5239_v54, %v11071_v27  ;;  %v5241_v12 = vpop.f32.mrb[253].mxu0 }
 0x9b4   : > { %v5242_v29 = vadd.f32 %v5241_v12, %v11074_v31  ;;  %v5243_v30 = vpop.f32.mrb[254].mxu0  ;;  %8191 = vmatprep.mubr.msk.bf16.mxu1 %vm651_vm1, %v5369_v15 }
 0x9b5   : > { %v5244_v16 = vadd.f32 %v5243_v30, %v11071_v27  ;;  %v5245_v46 = vpop.f32.mrb[255].mxu0  ;;  %5572 = vmatmul.mubr.bf16.vlgmr.msra.gmra.mrb[96].mxu1 %v5368_v47  ;;  %v5332_v32 = vmax.f32 %v5240_v23, 0.0  ;;  %v8933_v30 = vld [vmem:[%s11938_s2 + $0xe8] sm:$0xff]  }
 0x9b6   : > { %v5246_v17 = vadd.f32 %v5245_v46, %v11074_v31  ;;  %6005 = vmatpush1.bf16.msra.mxu1 %v8925_v22  ;;  %v5333_v56 = vmax.f32 %v5242_v29, 0.0  ;;  %5839 = vmatpush1.bf16.msra.mxu0 %v8933_v30 }
 0x9b7   : > { %v5334_v39 = vmax.f32 %v5244_v16, 0.0  ;;  %6006 = vmatprep.subr.bf16.mxu1 %v8930_v24  ;;  %5840 = vmatprep.subr.bf16.mxu0 %v9184_v2 }
 0x9b8   : > { %v5335_v18 = vmax.f32 %v5246_v17, 0.0 }
 0x9b9   : > { %v5370_v40 = vpack.c.bf16 %v5334_v39, %v5332_v32 }
 0x9ba   : > { %v5371_v57 = vpack.c.bf16 %v5335_v18, %v5333_v56  ;;  %v5249_v1 = vpop.f32.mrb[0].mxu0  ;;  %6007 = vmatpush1.bf16.msra.mxu1 %v8928_v33  ;;  %v8934_v33 = vld [vmem:[%s11938_s2 + $0xf0] sm:$0xff]  }
 0x9bb   : > { %v5250_v42 = vadd.f32 %v5249_v1, %v11071_v27  ;;  %v5251_v41 = vpop.f32.mrb[1].mxu0  ;;  %5841 = vmatpush1.bf16.msra.mxu0 %v8934_v33 }
 0x9bc   : > { %v5252_v21 = vadd.f32 %v5251_v41, %v11074_v31  ;;  %v5253_v3 = vpop.f32.mrb[2].mxu0  ;;  %8192 = vmatprep.mubr.msk.bf16.mxu1 %vm651_vm1, %v5371_v57  ;;  %5842 = vmatprep.subr.bf16.mxu0 %v9184_v2 }
 0x9bd   : > { %v5254_v4 = vadd.f32 %v5253_v3, %v11071_v27  ;;  %v5255_v5 = vpop.f32.mrb[3].mxu0  ;;  %5582 = vmatmul.mubr.bf16.gmra.mrb[100].mxu1 %v5370_v40  ;;  %v5336_v38 = vmax.f32 %v5250_v42, 0.0  ;;  %v8935_v42 = vld [vmem:[%s11938_s2 + $0xf8] sm:$0xff]  }
 0x9be   : > { %v5256_v7 = vadd.f32 %v5255_v5, %v11074_v31  ;;  %v5337_v52 = vmax.f32 %v5252_v21, 0.0 }
 0x9bf   : > { %v5338_v36 = vmax.f32 %v5254_v4, 0.0  ;;  %5843 = vmatpush1.bf16.msra.mxu0 %v8935_v42 }
 0x9c0   : > { %v5339_v60 = vmax.f32 %v5256_v7, 0.0  ;;  %5844 = vmatprep.subr.bf16.mxu0 %v9184_v2 }
 0x9c1   : > { %v5372_v10 = vpack.c.bf16 %v5338_v36, %v5336_v38  ;;  %v8936_v38 = vld [vmem:[%s11938_s2 + $0x100] sm:$0xff]  }
 0x9c2   : > { %v5373_v62 = vpack.c.bf16 %v5339_v60, %v5337_v52  ;;  %v5259_v43 = vpop.f32.mrb[4].mxu0 }
 0x9c3   : > { %v5260_v63 = vadd.f32 %v5259_v43, %v11071_v27  ;;  %v5261_v19 = vpop.f32.mrb[5].mxu0  ;;  %5845 = vmatpush1.bf16.msra.mxu0 %v8936_v38 }
 0x9c4   : > { %v5262_v34 = vadd.f32 %v5261_v19, %v11074_v31  ;;  %v5263_v28 = vpop.f32.mrb[6].mxu0  ;;  %8193 = vmatprep.mubr.msk.bf16.mxu1 %vm651_vm1, %v5373_v62  ;;  %v8937_v19 = vld [vmem:[%s11938_s2 + $0x108] sm:$0xff]   ;;  %5846 = vmatprep.subr.bf16.mxu0 %v9184_v2 }
 0x9c5   : > { %v5264_v37 = vadd.f32 %v5263_v28, %v11071_v27  ;;  %v5265_v48 = vpop.f32.mrb[7].mxu0  ;;  %5592 = vmatmul.mubr.bf16.gmra.mrb[104].mxu1 %v5372_v10  ;;  %v5340_v59 = vmax.f32 %v5260_v63, 0.0 }
 0x9c6   : > { %v5266_v14 = vadd.f32 %v5265_v48, %v11074_v31  ;;  %v5341_v8 = vmax.f32 %v5262_v34, 0.0 }
 0x9c7   : > { %v5342_v61 = vmax.f32 %v5264_v37, 0.0  ;;  %5847 = vmatpush1.bf16.msra.mxu0 %v8937_v19 }
 0x9c8   : > { %v5343_v20 = vmax.f32 %v5266_v14, 0.0  ;;  %5848 = vmatprep.subr.bf16.mxu0 %v9184_v2 }
 0x9c9   : > { %v5374_v9 = vpack.c.bf16 %v5342_v61, %v5340_v59  ;;  %v8938_v61 = vld [vmem:[%s11938_s2 + $0x110] sm:$0xff]  }
 0x9ca   : > { %v5375_v47 = vpack.c.bf16 %v5343_v20, %v5341_v8  ;;  %v5269_v15 = vpop.f32.mrb[8].mxu0 }
 0x9cb   : > { %v5270_v54 = vadd.f32 %v5269_v15, %v11071_v27  ;;  %v5271_v22 = vpop.f32.mrb[9].mxu0  ;;  %5849 = vmatpush1.bf16.msra.mxu0 %v8938_v61 }
 0x9cc   : > { %v5272_v23 = vadd.f32 %v5271_v22, %v11074_v31  ;;  %v5273_v12 = vpop.f32.mrb[10].mxu0  ;;  %8194 = vmatprep.mubr.msk.bf16.mxu1 %vm651_vm1, %v5375_v47  ;;  %5850 = vmatprep.subr.bf16.mxu0 %v9184_v2 }
 0x9cd   : > { %v5274_v24 = vadd.f32 %v5273_v12, %v11071_v27  ;;  %v5275_v29 = vpop.f32.mrb[11].mxu0  ;;  %5602 = vmatmul.mubr.bf16.gmra.mrb[108].mxu1 %v5374_v9  ;;  %v5344_v46 = vmax.f32 %v5270_v54, 0.0 }
 0x9ce   : > { %v5276_v16 = vadd.f32 %v5275_v29, %v11074_v31  ;;  %v5345_v32 = vmax.f32 %v5272_v23, 0.0 }
 0x9cf   : > { %v5346_v17 = vmax.f32 %v5274_v24, 0.0 }
 0x9d0   : > { %v5347_v39 = vmax.f32 %v5276_v16, 0.0 }
 0x9d1   : > { %v5376_v56 = vpack.c.bf16 %v5346_v17, %v5344_v46 }
 0x9d2   : > { %v5377_v18 = vpack.c.bf16 %v5347_v39, %v5345_v32  ;;  %v5279_v40 = vpop.f32.mrb[12].mxu0 }
 0x9d3   : > { %v5280_v57 = vadd.f32 %v5279_v40, %v11071_v27  ;;  %v5281_v1 = vpop.f32.mrb[13].mxu0 }
 0x9d4   : > { %v5282_v41 = vadd.f32 %v5281_v1, %v11074_v31  ;;  %v5283_v21 = vpop.f32.mrb[14].mxu0  ;;  %8195 = vmatprep.mubr.msk.bf16.mxu1 %vm651_vm1, %v5377_v18 }
 0x9d5   : > { %v5284_v3 = vadd.f32 %v5283_v21, %v11071_v27  ;;  %v5285_v4 = vpop.f32.mrb[15].mxu0  ;;  %5612 = vmatmul.mubr.bf16.gmra.mrb[112].mxu1 %v5376_v56  ;;  %v5348_v45 = vmax.f32 %v5280_v57, 0.0 }
 0x9d6   : > { %v5286_v5 = vadd.f32 %v5285_v4, %v11074_v31  ;;  %v5349_v36 = vmax.f32 %v5282_v41, 0.0 }
 0x9d7   : > { %v5350_v7 = vmax.f32 %v5284_v3, 0.0 }
 0x9d8   : > { %v5351_v52 = vmax.f32 %v5286_v5, 0.0 }
 0x9d9   : > { %v5378_v60 = vpack.c.bf16 %v5350_v7, %v5348_v45 }
 0x9da   : > { %v5379_v10 = vpack.c.bf16 %v5351_v52, %v5349_v36  ;;  %v5289_v62 = vpop.f32.mrb[16].mxu0 }
 0x9db   : > { %v5290_v43 = vadd.f32 %v5289_v62, %v11071_v27  ;;  %v5291_v63 = vpop.f32.mrb[17].mxu0 }
 0x9dc   : > { %v5292_v34 = vadd.f32 %v5291_v63, %v11074_v31  ;;  %v5293_v28 = vpop.f32.mrb[18].mxu0  ;;  %8196 = vmatprep.mubr.msk.bf16.mxu1 %vm651_vm1, %v5379_v10 }
 0x9dd   : > { %v5294_v37 = vadd.f32 %v5293_v28, %v11071_v27  ;;  %v5295_v48 = vpop.f32.mrb[19].mxu0  ;;  %5622 = vmatmul.mubr.bf16.gmra.mrb[116].mxu1 %v5378_v60  ;;  %v5352_v14 = vmax.f32 %v5290_v43, 0.0 }
 0x9de   : > { %v5296_v11 = vadd.f32 %v5295_v48, %v11074_v31  ;;  %v5353_v8 = vmax.f32 %v5292_v34, 0.0 }
 0x9df   : > { %v5354_v59 = vmax.f32 %v5294_v37, 0.0 }
 0x9e0   : > { %v5355_v20 = vmax.f32 %v5296_v11, 0.0 }
 0x9e1   : > { %v5380_v9 = vpack.c.bf16 %v5354_v59, %v5352_v14 }
 0x9e2   : > { %v5381_v47 = vpack.c.bf16 %v5355_v20, %v5353_v8  ;;  %v5299_v15 = vpop.f32.mrb[20].mxu0 }
 0x9e3   : > { %v5300_v54 = vadd.f32 %v5299_v15, %v11071_v27  ;;  %v5301_v22 = vpop.f32.mrb[21].mxu0 }
 0x9e4   : > { %v5302_v23 = vadd.f32 %v5301_v22, %v11074_v31  ;;  %v5303_v12 = vpop.f32.mrb[22].mxu0  ;;  %8197 = vmatprep.mubr.msk.bf16.mxu1 %vm651_vm1, %v5381_v47  ;;  %v8940_v22 = vld [vmem:[%s11937_s1 + $0x6d0] ss:$8 sps:$4 sm:$0xff]  }
 0x9e5   : > { %v5304_v24 = vadd.f32 %v5303_v12, %v11071_v27  ;;  %v5305_v29 = vpop.f32.mrb[23].mxu0  ;;  %5632 = vmatmul.mubr.bf16.gmra.mrb[120].mxu1 %v5380_v9  ;;  %v5356_v16 = vmax.f32 %v5300_v54, 0.0 }
 0x9e6   : > { %v5306_v30 = vadd.f32 %v5305_v29, %v11074_v31  ;;  %v5357_v17 = vmax.f32 %v5302_v23, 0.0 }
 0x9e7   : > { %v5358_v46 = vmax.f32 %v5304_v24, 0.0  ;;  %v8945_v24 = vld [vmem:[%s11937_s1 + $0x6e4] ss:$8 sps:$4 sm:$0xff]  }
 0x9e8   : > { %v5359_v33 = vmax.f32 %v5306_v30, 0.0 }
 0x9e9   : > { %v5382_v32 = vpack.c.bf16 %v5358_v46, %v5356_v16 }
 0x9ea   : > { %v5383_v39 = vpack.c.bf16 %v5359_v33, %v5357_v17  ;;  %v5309_v56 = vpop.f32.mrb[24].mxu0  ;;  %v8943_v33 = vld [vmem:[%s11937_s1 + $0x6e0] ss:$8 sps:$4 sm:$0xff]  }
 0x9eb   : > { %v5310_v18 = vadd.f32 %v5309_v56, %v11071_v27  ;;  %v5311_v40 = vpop.f32.mrb[25].mxu0  ;;  %v8948_v56 = vld [vmem:[%s11937_s1 + $0x6f4] ss:$8 sps:$4 sm:$0xff]  }
 0x9ec   : > { %v5312_v57 = vadd.f32 %v5311_v40, %v11074_v31  ;;  %v5313_v1 = vpop.f32.mrb[26].mxu0  ;;  %8198 = vmatprep.mubr.msk.bf16.mxu1 %vm651_vm1, %v5383_v39 }
 0x9ed   : > { %v5314_v42 = vadd.f32 %v5313_v1, %v11071_v27  ;;  %v5315_v41 = vpop.f32.mrb[27].mxu0  ;;  %5642 = vmatmul.mubr.bf16.gmra.mrb[124].mxu1 %v5382_v32  ;;  %v5360_v3 = vmax.f32 %v5310_v18, 0.0 }
 0x9ee   : > { %v5316_v21 = vadd.f32 %v5315_v41, %v11074_v31  ;;  %v5361_v5 = vmax.f32 %v5312_v57, 0.0  ;;  %v8946_v41 = vld [vmem:[%s11937_s1 + $0x6f0] ss:$8 sps:$4 sm:$0xff]  }
 0x9ef   : > { %v5362_v4 = vmax.f32 %v5314_v42, 0.0 }
 0x9f0   : > { %v5363_v45 = vmax.f32 %v5316_v21, 0.0 }
 0x9f1   : > { %v5384_v7 = vpack.c.bf16 %v5362_v4, %v5360_v3  ;;  %v8951_v4 = vld [vmem:[%s11937_s1 + $0x704] ss:$8 sps:$4 sm:$0xff]  }
 0x9f2   : > { %v5385_v38 = vpack.c.bf16 %v5363_v45, %v5361_v5  ;;  %v5319_v36 = vpop.f32.mrb[28].mxu0 }
 0x9f3   : > { %v5320_v52 = vadd.f32 %v5319_v36, %v11071_v27  ;;  %v5321_v60 = vpop.f32.mrb[29].mxu0 }
 0x9f4   : > { %v5322_v10 = vadd.f32 %v5321_v60, %v11074_v31  ;;  %v5323_v62 = vpop.f32.mrb[30].mxu0  ;;  %8199 = vmatprep.mubr.msk.bf16.mxu1 %vm651_vm1, %v5385_v38 }
 0x9f5   : > { %v5324_v43 = vadd.f32 %v5323_v62, %v11071_v27  ;;  %v5325_v63 = vpop.f32.mrb[31].mxu0  ;;  %5652 = vmatmul.mubr.bf16.gmra.mrb[128].mxu1 %v5384_v7  ;;  %v5364_v34 = vmax.f32 %v5320_v52, 0.0  ;;  %v8939_v27 = vld [vmem:[%s11938_s2 + $0x118] sm:$0xff]   ;;  %v8949_v52 = vld [vmem:[%s11937_s1 + $0x700] ss:$8 sps:$4 sm:$0xff]  }
 0x9f6   : > { %v5326_v19 = vadd.f32 %v5325_v63, %v11074_v31  ;;  %v5365_v37 = vmax.f32 %v5322_v10, 0.0  ;;  %5851 = vmatpush1.bf16.msra.mxu0 %v8939_v27  ;;  %v8954_v62 = vld [vmem:[%s11937_s1 + $0x714] ss:$8 sps:$4 sm:$0xff]  }
 0x9f7   : > { %v5366_v28 = vmax.f32 %v5324_v43, 0.0 }
 0x9f8   : > { %v5367_v48 = vmax.f32 %v5326_v19, 0.0 }
 0x9f9   : > { %v5386_v11 = vpack.c.bf16 %v5366_v28, %v5364_v34 }
 0x9fa   : > { %v5387_v14 = vpack.c.bf16 %v5367_v48, %v5365_v37  ;;  %v8952_v37 = vld [vmem:[%s11937_s1 + $0x710] ss:$8 sps:$4 sm:$0xff]  }
 0x9fc   : > { %8200 = vmatprep.mubr.msk.bf16.mxu1 %vm651_vm1, %v5387_v14  ;;  %v8957_v14 = vld [vmem:[%s11937_s1 + $0x724] ss:$8 sps:$4 sm:$0xff]  }
 0x9fd   : > { %5662 = vmatmul.mubr.bf16.gmra.mrb[132].mxu1 %v5386_v11 }
 0x9fe   : > { %6036 = vmatprep.mubr.bf16.mxu1 %v9184_v2 }
 0xa05   : > { %8225 = vmatmul.mubr.msk.bf16.vlgmr.msra.gmra.mrb[136].mxu1 %vm306_vm0, %v9961_v55  ;;  %v8942_v55 = vld [vmem:[%s11937_s1 + $0x6d4] ss:$8 sps:$4 sm:$0xff]  }
 0xa06   : > { %6046 = vmatprep.mubr.bf16.mxu1 %v9184_v2  ;;  %6348 = vmatprep.subr.bf16.mxu0 %v8942_v55 }
 0xa0d   : > { %8226 = vmatmul.mubr.msk.bf16.gmra.mrb[140].mxu1 %vm306_vm0, %v9965_v26  ;;  %v8172_v26 = vld [vmem:[%s11939_s3 + $0x17] ss:$8 sm:$0x3] }
 0xa0e   : > { %6056 = vmatprep.mubr.bf16.mxu1 %v9184_v2 }
 0xa15   : > { %8227 = vmatmul.mubr.msk.bf16.gmra.mrb[144].mxu1 %vm306_vm0, %v9969_v35  ;;  %v11207_v35 = vrot.slane %v8172_v26, %v9458_v51 }
 0xa16   : > { %6066 = vmatprep.mubr.bf16.mxu1 %v9184_v2 }
 0xa1d   : > { %8228 = vmatmul.mubr.msk.bf16.gmra.mrb[148].mxu1 %vm306_vm0, %v9973_v58  ;;  %v11210_v58 = vrot.slane %v8172_v26, %v9463_v53 }
 0xa1e   : > { %6076 = vmatprep.mubr.bf16.mxu1 %v9184_v2 }
 0xa25   : > { %8229 = vmatmul.mubr.msk.bf16.gmra.mrb[152].mxu1 %vm306_vm0, %v9986_v44 }
 0xa26   : > { %6086 = vmatprep.mubr.bf16.mxu1 %v9184_v2 }
 0xa2d   : > { %8230 = vmatmul.mubr.msk.bf16.gmra.mrb[156].mxu1 %vm306_vm0, %v10002_v6 }
 0xa2e   : > { %6096 = vmatprep.mubr.bf16.mxu1 %v9184_v2 }
 0xa35   : > { %8231 = vmatmul.mubr.msk.bf16.gmra.mrb[160].mxu1 %vm306_vm0, %v10018_v13 }
 0xa36   : > { %6106 = vmatprep.mubr.bf16.mxu1 %v9184_v2 }
 0xa3d   : > { %8232 = vmatmul.mubr.msk.bf16.gmra.mrb[164].mxu1 %vm306_vm0, %v10034_v25 }
 0xa3e   : > { %6116 = vmatprep.mubr.bf16.mxu1 %v9184_v2 }
 0xa45   : > { %8233 = vmatmul.mubr.msk.bf16.gmra.mrb[168].mxu1 %vm306_vm0, %v10041_v50 }
 0xa46   : > { %6126 = vmatprep.mubr.bf16.mxu1 %v9184_v2 }
 0xa4d   : > { %8234 = vmatmul.mubr.msk.bf16.gmra.mrb[172].mxu1 %vm306_vm0, %v10048_v0 }
 0xa88   : > { %v5573_v44 = vpop.f32.mrb[96].mxu1 }
 0xa89   : > { %v5574_v6 = vadd.f32 %v5573_v44, %v11207_v35  ;;  %v5575_v13 = vpop.f32.mrb[97].mxu1 }
 0xa8a   : > { %v5576_v25 = vadd.f32 %v5575_v13, %v11210_v58  ;;  %v5577_v50 = vpop.f32.mrb[98].mxu1  ;;  %v8955_v13 = vld [vmem:[%s11937_s1 + $0x720] ss:$8 sps:$4 sm:$0xff]  }
 0xa8b   : > { %v5578_v31 = vadd.f32 %v5577_v50, %v11207_v35  ;;  %v5579_v0 = vpop.f32.mrb[99].mxu1  ;;  %v5672_v61 = vmax.f32 %v5574_v6, 0.0 }
 0xa8c   : > { %v5580_v59 = vadd.f32 %v5579_v0, %v11210_v58  ;;  %v5673_v20 = vmax.f32 %v5576_v25, 0.0 }
 0xa8d   : > { %v5674_v8 = vmax.f32 %v5578_v31, 0.0  ;;  %v8960_v31 = vld [vmem:[%s11937_s1 + $0x734] ss:$8 sps:$4 sm:$0xff]  }
 0xa8e   : > { %v5675_v9 = vmax.f32 %v5580_v59, 0.0 }
 0xa8f   : > { %v5730_v47 = vpack.c.bf16 %v5674_v8, %v5672_v61 }
 0xa90   : > { %v5731_v15 = vpack.c.bf16 %v5675_v9, %v5673_v20  ;;  %v5583_v54 = vpop.f32.mrb[100].mxu1  ;;  %v8958_v9 = vld [vmem:[%s11937_s1 + $0x730] ss:$8 sps:$4 sm:$0xff]  }
 0xa91   : > { %v5584_v23 = vadd.f32 %v5583_v54, %v11207_v35  ;;  %v5585_v12 = vpop.f32.mrb[101].mxu1  ;;  %v8963_v54 = vld [vmem:[%s11937_s1 + $0x744] ss:$8 sps:$4 sm:$0xff]  }
 0xa92   : > { %v5586_v29 = vadd.f32 %v5585_v12, %v11210_v58  ;;  %v5587_v30 = vpop.f32.mrb[102].mxu1  ;;  %8210 = vmatprep.mubr.msk.bf16.mxu0 %vm651_vm1, %v5731_v15 }
 0xa93   : > { %v5588_v16 = vadd.f32 %v5587_v30, %v11207_v35  ;;  %v5589_v46 = vpop.f32.mrb[103].mxu1  ;;  %5867 = vmatmul.mubr.bf16.vlgmr.msra.gmra.mrb[128].mxu0 %v5730_v47  ;;  %v5676_v32 = vmax.f32 %v5584_v23, 0.0  ;;  %v8969_v30 = vld [vmem:[%s11937_s1 + $0x764] ss:$8 sps:$4 sm:$0xff]  }
 0xa94   : > { %v5590_v17 = vadd.f32 %v5589_v46, %v11210_v58  ;;  %6349 = vmatpush1.bf16.msra.mxu0 %v8940_v22  ;;  %v5677_v18 = vmax.f32 %v5586_v29, 0.0  ;;  %v8967_v29 = vld [vmem:[%s11937_s1 + $0x760] ss:$8 sps:$4 sm:$0xff]   ;;  %6692 = vmatprep.subr.bf16.mxu1 %v8969_v30  ;;  %v8990_v30 = vld [vmem:[%s11937_s1 + $0x7d4] ss:$8 sps:$4 sm:$0xff]  }
 0xa95   : > { %v5678_v39 = vmax.f32 %v5588_v16, 0.0  ;;  %6350 = vmatprep.subr.bf16.mxu0 %v8945_v24  ;;  %v8961_v46 = vld [vmem:[%s11937_s1 + $0x740] ss:$8 sps:$4 sm:$0xff]   ;;  %6693 = vmatpush1.bf16.msra.mxu1 %v8967_v29 }
 0xa96   : > { %v5679_v40 = vmax.f32 %v5590_v17, 0.0  ;;  %v8972_v17 = vld [vmem:[%s11937_s1 + $0x774] ss:$8 sps:$4 sm:$0xff]  }
 0xa97   : > { %v5732_v57 = vpack.c.bf16 %v5678_v39, %v5676_v32  ;;  %v8966_v39 = vld [vmem:[%s11937_s1 + $0x754] ss:$8 sps:$4 sm:$0xff]   ;;  %6694 = vmatprep.subr.bf16.mxu1 %v8972_v17 }
 0xa98   : > { %v5733_v1 = vpack.c.bf16 %v5679_v40, %v5677_v18  ;;  %v5593_v42 = vpop.f32.mrb[104].mxu1  ;;  %6351 = vmatpush1.bf16.msra.mxu0 %v8943_v33  ;;  %v8970_v40 = vld [vmem:[%s11937_s1 + $0x770] ss:$8 sps:$4 sm:$0xff]  }
 0xa99   : > { %v5594_v21 = vadd.f32 %v5593_v42, %v11207_v35  ;;  %v5595_v3 = vpop.f32.mrb[105].mxu1  ;;  %6352 = vmatprep.subr.bf16.mxu0 %v8948_v56  ;;  %6695 = vmatpush1.bf16.msra.mxu1 %v8970_v40 }
 0xa9a   : > { %v5596_v5 = vadd.f32 %v5595_v3, %v11210_v58  ;;  %v5597_v45 = vpop.f32.mrb[106].mxu1  ;;  %8211 = vmatprep.mubr.msk.bf16.mxu0 %vm651_vm1, %v5733_v1  ;;  %v8975_v1 = vld [vmem:[%s11937_s1 + $0x784] ss:$8 sps:$4 sm:$0xff]  }
 0xa9b   : > { %v5598_v7 = vadd.f32 %v5597_v45, %v11207_v35  ;;  %v5599_v38 = vpop.f32.mrb[107].mxu1  ;;  %5875 = vmatmul.mubr.bf16.gmra.mrb[132].mxu0 %v5732_v57  ;;  %v5680_v60 = vmax.f32 %v5594_v21, 0.0  ;;  %v8964_v21 = vld [vmem:[%s11937_s1 + $0x750] ss:$8 sps:$4 sm:$0xff]   ;;  %6696 = vmatprep.subr.bf16.mxu1 %v8975_v1 }
 0xa9c   : > { %v5600_v36 = vadd.f32 %v5599_v38, %v11210_v58  ;;  %6353 = vmatpush1.bf16.msra.mxu0 %v8946_v41  ;;  %v5681_v43 = vmax.f32 %v5596_v5, 0.0 }
 0xa9d   : > { %v5682_v10 = vmax.f32 %v5598_v7, 0.0  ;;  %6354 = vmatprep.subr.bf16.mxu0 %v8951_v4  ;;  %v8973_v7 = vld [vmem:[%s11937_s1 + $0x780] ss:$8 sps:$4 sm:$0xff]  }
 0xa9e   : > { %v5683_v63 = vmax.f32 %v5600_v36, 0.0  ;;  %6697 = vmatpush1.bf16.msra.mxu1 %v8973_v7 }
 0xa9f   : > { %v5734_v19 = vpack.c.bf16 %v5682_v10, %v5680_v60 }
 0xaa0   : > { %v5735_v34 = vpack.c.bf16 %v5683_v63, %v5681_v43  ;;  %v5603_v28 = vpop.f32.mrb[108].mxu1  ;;  %6355 = vmatpush1.bf16.msra.mxu0 %v8949_v52  ;;  %v8978_v52 = vld [vmem:[%s11937_s1 + $0x794] ss:$8 sps:$4 sm:$0xff]  }
 0xaa1   : > { %v5604_v48 = vadd.f32 %v5603_v28, %v11207_v35  ;;  %v5605_v11 = vpop.f32.mrb[109].mxu1  ;;  %6356 = vmatprep.subr.bf16.mxu0 %v8954_v62  ;;  %6698 = vmatprep.subr.bf16.mxu1 %v8978_v52  ;;  %v8981_v28 = vld [vmem:[%s11937_s1 + $0x7a4] ss:$8 sps:$4 sm:$0xff]  }
 0xaa2   : > { %v5606_v27 = vadd.f32 %v5605_v11, %v11210_v58  ;;  %v5607_v55 = vpop.f32.mrb[110].mxu1  ;;  %8212 = vmatprep.mubr.msk.bf16.mxu0 %vm651_vm1, %v5735_v34 }
 0xaa3   : > { %v5608_v26 = vadd.f32 %v5607_v55, %v11207_v35  ;;  %v5609_v44 = vpop.f32.mrb[111].mxu1  ;;  %5883 = vmatmul.mubr.bf16.gmra.mrb[136].mxu0 %v5734_v19  ;;  %v5684_v25 = vmax.f32 %v5604_v48, 0.0  ;;  %v8976_v19 = vld [vmem:[%s11937_s1 + $0x790] ss:$8 sps:$4 sm:$0xff]  }
 0xaa4   : > { %v5610_v6 = vadd.f32 %v5609_v44, %v11210_v58  ;;  %6357 = vmatpush1.bf16.msra.mxu0 %v8952_v37  ;;  %v5685_v0 = vmax.f32 %v5606_v27, 0.0  ;;  %6699 = vmatpush1.bf16.msra.mxu1 %v8976_v19  ;;  %v8220_v19 = vld [vmem:[%s11939_s3 + $0x4] ss:$8 sm:$0x3] }
 0xaa5   : > { %v5686_v50 = vmax.f32 %v5608_v26, 0.0  ;;  %6358 = vmatprep.subr.bf16.mxu0 %v8957_v14  ;;  %v8979_v26 = vld [vmem:[%s11937_s1 + $0x7a0] ss:$8 sps:$4 sm:$0xff]   ;;  %6700 = vmatprep.subr.bf16.mxu1 %v8981_v28 }
 0xaa6   : > { %v5687_v59 = vmax.f32 %v5610_v6, 0.0 }
 0xaa7   : > { %v5736_v61 = vpack.c.bf16 %v5686_v50, %v5684_v25 }
 0xaa8   : > { %v5737_v8 = vpack.c.bf16 %v5687_v59, %v5685_v0  ;;  %v5613_v20 = vpop.f32.mrb[112].mxu1  ;;  %6359 = vmatpush1.bf16.msra.mxu0 %v8955_v13  ;;  %v8984_v13 = vld [vmem:[%s11937_s1 + $0x7b4] ss:$8 sps:$4 sm:$0xff]   ;;  %6701 = vmatpush1.bf16.msra.mxu1 %v8979_v26  ;;  %v11367_v26 = vrot.slane %v8220_v19, %v9463_v53 }
 0xaa9   : > { %v5614_v47 = vadd.f32 %v5613_v20, %v11207_v35  ;;  %v5615_v15 = vpop.f32.mrb[113].mxu1  ;;  %6360 = vmatprep.subr.bf16.mxu0 %v8960_v31  ;;  %6702 = vmatprep.subr.bf16.mxu1 %v8984_v13  ;;  %v8987_v20 = vld [vmem:[%s11937_s1 + $0x7c4] ss:$8 sps:$4 sm:$0xff]  }
 0xaaa   : > { %v5616_v22 = vadd.f32 %v5615_v15, %v11210_v58  ;;  %v5617_v23 = vpop.f32.mrb[114].mxu1  ;;  %8213 = vmatprep.mubr.msk.bf16.mxu0 %vm651_vm1, %v5737_v8 }
 0xaab   : > { %v5618_v12 = vadd.f32 %v5617_v23, %v11207_v35  ;;  %v5619_v24 = vpop.f32.mrb[115].mxu1  ;;  %5891 = vmatmul.mubr.bf16.gmra.mrb[140].mxu0 %v5736_v61  ;;  %v5688_v33 = vmax.f32 %v5614_v47, 0.0  ;;  %v8982_v61 = vld [vmem:[%s11937_s1 + $0x7b0] ss:$8 sps:$4 sm:$0xff]  }
 0xaac   : > { %v5620_v16 = vadd.f32 %v5619_v24, %v11210_v58  ;;  %6361 = vmatpush1.bf16.msra.mxu0 %v8958_v9  ;;  %v5689_v56 = vmax.f32 %v5616_v22, 0.0  ;;  %6703 = vmatpush1.bf16.msra.mxu1 %v8982_v61 }
 0xaad   : > { %v5690_v32 = vmax.f32 %v5618_v12, 0.0  ;;  %6362 = vmatprep.subr.bf16.mxu0 %v8963_v54  ;;  %v8985_v12 = vld [vmem:[%s11937_s1 + $0x7c0] ss:$8 sps:$4 sm:$0xff]   ;;  %6704 = vmatprep.subr.bf16.mxu1 %v8987_v20 }
 0xaae   : > { %v5691_v18 = vmax.f32 %v5620_v16, 0.0 }
 0xaaf   : > { %v5738_v57 = vpack.c.bf16 %v5690_v32, %v5688_v33 }
 0xab0   : > { %v5739_v42 = vpack.c.bf16 %v5691_v18, %v5689_v56  ;;  %v5623_v41 = vpop.f32.mrb[116].mxu1  ;;  %6363 = vmatpush1.bf16.msra.mxu0 %v8961_v46  ;;  %6705 = vmatpush1.bf16.msra.mxu1 %v8985_v12 }
 0xab1   : > { %v5624_v3 = vadd.f32 %v5623_v41, %v11207_v35  ;;  %v5625_v4 = vpop.f32.mrb[117].mxu1  ;;  %6364 = vmatprep.subr.bf16.mxu0 %v8966_v39  ;;  %v8988_v39 = vld [vmem:[%s11937_s1 + $0x7d0] ss:$8 sps:$4 sm:$0xff]   ;;  %6706 = vmatprep.subr.bf16.mxu1 %v8990_v30 }
 0xab2   : > { %v5626_v5 = vadd.f32 %v5625_v4, %v11210_v58  ;;  %v5627_v45 = vpop.f32.mrb[118].mxu1  ;;  %8214 = vmatprep.mubr.msk.bf16.mxu0 %vm651_vm1, %v5739_v42 }
 0xab3   : > { %v5628_v38 = vadd.f32 %v5627_v45, %v11207_v35  ;;  %v5629_v36 = vpop.f32.mrb[119].mxu1  ;;  %5899 = vmatmul.mubr.bf16.gmra.mrb[144].mxu0 %v5738_v57  ;;  %v5692_v10 = vmax.f32 %v5624_v3, 0.0 }
 0xab4   : > { %v5630_v60 = vadd.f32 %v5629_v36, %v11210_v58  ;;  %6365 = vmatpush1.bf16.msra.mxu0 %v8964_v21  ;;  %v5693_v43 = vmax.f32 %v5626_v5, 0.0  ;;  %6707 = vmatpush1.bf16.msra.mxu1 %v8988_v39 }
 0xab5   : > { %v5694_v62 = vmax.f32 %v5628_v38, 0.0 }
 0xab6   : > { %v5695_v63 = vmax.f32 %v5630_v60, 0.0 }
 0xab7   : > { %v5740_v34 = vpack.c.bf16 %v5694_v62, %v5692_v10 }
 0xab8   : > { %v5741_v37 = vpack.c.bf16 %v5695_v63, %v5693_v43  ;;  %v5633_v48 = vpop.f32.mrb[120].mxu1 }
 0xab9   : > { %v5634_v11 = vadd.f32 %v5633_v48, %v11207_v35  ;;  %v5635_v14 = vpop.f32.mrb[121].mxu1 }
 0xaba   : > { %v5636_v27 = vadd.f32 %v5635_v14, %v11210_v58  ;;  %v5637_v55 = vpop.f32.mrb[122].mxu1  ;;  %8215 = vmatprep.mubr.msk.bf16.mxu0 %vm651_vm1, %v5741_v37  ;;  %v11364_v14 = vrot.slane %v8220_v19, %v9458_v51 }
 0xabb   : > { %v5638_v44 = vadd.f32 %v5637_v55, %v11207_v35  ;;  %v5639_v6 = vpop.f32.mrb[123].mxu1  ;;  %5907 = vmatmul.mubr.bf16.gmra.mrb[148].mxu0 %v5740_v34  ;;  %v5696_v50 = vmax.f32 %v5634_v11, 0.0 }
 0xabc   : > { %v5640_v25 = vadd.f32 %v5639_v6, %v11210_v58  ;;  %v5697_v0 = vmax.f32 %v5636_v27, 0.0 }
 0xabd   : > { %v5698_v31 = vmax.f32 %v5638_v44, 0.0 }
 0xabe   : > { %v5699_v59 = vmax.f32 %v5640_v25, 0.0 }
 0xabf   : > { %v5742_v8 = vpack.c.bf16 %v5698_v31, %v5696_v50 }
 0xac0   : > { %v5743_v9 = vpack.c.bf16 %v5699_v59, %v5697_v0  ;;  %v5643_v47 = vpop.f32.mrb[124].mxu1 }
 0xac1   : > { %v5644_v15 = vadd.f32 %v5643_v47, %v11207_v35  ;;  %v5645_v54 = vpop.f32.mrb[125].mxu1 }
 0xac2   : > { %v5646_v22 = vadd.f32 %v5645_v54, %v11210_v58  ;;  %v5647_v23 = vpop.f32.mrb[126].mxu1  ;;  %8216 = vmatprep.mubr.msk.bf16.mxu0 %vm651_vm1, %v5743_v9 }
 0xac3   : > { %v5648_v24 = vadd.f32 %v5647_v23, %v11207_v35  ;;  %v5649_v29 = vpop.f32.mrb[127].mxu1  ;;  %5915 = vmatmul.mubr.bf16.gmra.mrb[152].mxu0 %v5742_v8  ;;  %v5700_v46 = vmax.f32 %v5644_v15, 0.0 }
 0xac4   : > { %v5650_v16 = vadd.f32 %v5649_v29, %v11210_v58  ;;  %v5701_v33 = vmax.f32 %v5646_v22, 0.0 }
 0xac5   : > { %v5702_v17 = vmax.f32 %v5648_v24, 0.0 }
 0xac6   : > { %v5703_v32 = vmax.f32 %v5650_v16, 0.0 }
 0xac7   : > { %v5744_v56 = vpack.c.bf16 %v5702_v17, %v5700_v46 }
 0xac8   : > { %v5745_v18 = vpack.c.bf16 %v5703_v32, %v5701_v33  ;;  %v5653_v40 = vpop.f32.mrb[128].mxu1 }
 0xac9   : > { %v5654_v57 = vadd.f32 %v5653_v40, %v11207_v35  ;;  %v5655_v1 = vpop.f32.mrb[129].mxu1 }
 0xaca   : > { %v5656_v42 = vadd.f32 %v5655_v1, %v11210_v58  ;;  %v5657_v41 = vpop.f32.mrb[130].mxu1  ;;  %8217 = vmatprep.mubr.msk.bf16.mxu0 %vm651_vm1, %v5745_v18 }
 0xacb   : > { %v5658_v21 = vadd.f32 %v5657_v41, %v11207_v35  ;;  %v5659_v3 = vpop.f32.mrb[131].mxu1  ;;  %5923 = vmatmul.mubr.bf16.gmra.mrb[156].mxu0 %v5744_v56  ;;  %v5704_v5 = vmax.f32 %v5654_v57, 0.0 }
 0xacc   : > { %v5660_v4 = vadd.f32 %v5659_v3, %v11210_v58  ;;  %v5705_v7 = vmax.f32 %v5656_v42, 0.0 }
 0xacd   : > { %v5706_v45 = vmax.f32 %v5658_v21, 0.0 }
 0xace   : > { %v5707_v38 = vmax.f32 %v5660_v4, 0.0 }
 0xacf   : > { %v5746_v36 = vpack.c.bf16 %v5706_v45, %v5704_v5 }
 0xad0   : > { %v5747_v52 = vpack.c.bf16 %v5707_v38, %v5705_v7  ;;  %v5663_v60 = vpop.f32.mrb[132].mxu1 }
 0xad1   : > { %v5664_v10 = vadd.f32 %v5663_v60, %v11207_v35  ;;  %v5665_v62 = vpop.f32.mrb[133].mxu1 }
 0xad2   : > { %v5666_v43 = vadd.f32 %v5665_v62, %v11210_v58  ;;  %v5667_v63 = vpop.f32.mrb[134].mxu1  ;;  %8218 = vmatprep.mubr.msk.bf16.mxu0 %vm651_vm1, %v5747_v52 }
 0xad3   : > { %v5668_v34 = vadd.f32 %v5667_v63, %v11207_v35  ;;  %v5669_v28 = vpop.f32.mrb[135].mxu1  ;;  %5931 = vmatmul.mubr.bf16.gmra.mrb[160].mxu0 %v5746_v36  ;;  %v5708_v48 = vmax.f32 %v5664_v10, 0.0 }
 0xad4   : > { %v5670_v37 = vadd.f32 %v5669_v28, %v11210_v58  ;;  %v5709_v27 = vmax.f32 %v5666_v43, 0.0 }
 0xad5   : > { %v5710_v11 = vmax.f32 %v5668_v34, 0.0 }
 0xad6   : > { %v5711_v55 = vmax.f32 %v5670_v37, 0.0 }
 0xad7   : > { %v5748_v44 = vpack.c.bf16 %v5710_v11, %v5708_v48 }
 0xad8   : > { %v5749_v6 = vpack.c.bf16 %v5711_v55, %v5709_v27  ;;  %v6038_v13 = vpop.f32.mrb[136].mxu1 }
 0xad9   : > { %v6039_v25 = vadd.f32 %v6038_v13, %v11364_v14  ;;  %v6040_v35 = vpop.f32.mrb[137].mxu1 }
 0xada   : > { %v6041_v50 = vadd.f32 %v6040_v35, %v11367_v26  ;;  %8219 = vmatprep.mubr.msk.bf16.mxu0 %vm651_vm1, %v5749_v6  ;;  %v6042_v58 = vpop.f32.mrb[138].mxu1 }
 0xadb   : > { %v6043_v31 = vadd.f32 %v6042_v58, %v11364_v14  ;;  %5939 = vmatmul.mubr.bf16.gmra.mrb[164].mxu0 %v5748_v44  ;;  %v6044_v0 = vpop.f32.mrb[139].mxu1  ;;  %v6137_v61 = vmax.f32 %v6039_v25, 0.0 }
 0xadc   : > { %v6045_v59 = vadd.f32 %v6044_v0, %v11367_v26  ;;  %v6138_v20 = vmax.f32 %v6041_v50, 0.0 }
 0xadd   : > { %v6139_v8 = vmax.f32 %v6043_v31, 0.0 }
 0xade   : > { %v6140_v9 = vmax.f32 %v6045_v59, 0.0 }
 0xadf   : > { %v6177_v47 = vpack.c.bf16 %v6139_v8, %v6137_v61 }
 0xae0   : > { %v6178_v15 = vpack.c.bf16 %v6140_v9, %v6138_v20  ;;  %v6048_v54 = vpop.f32.mrb[140].mxu1 }
 0xae1   : > { %v6049_v22 = vadd.f32 %v6048_v54, %v11364_v14  ;;  %v6050_v23 = vpop.f32.mrb[141].mxu1 }
 0xae2   : > { %v6051_v12 = vadd.f32 %v6050_v23, %v11367_v26  ;;  %v6052_v24 = vpop.f32.mrb[142].mxu1  ;;  %8254 = vmatprep.mubr.msk.bf16.mxu0 %vm651_vm1, %v6178_v15 }
 0xae3   : > { %v6053_v29 = vadd.f32 %v6052_v24, %v11364_v14  ;;  %v6054_v30 = vpop.f32.mrb[143].mxu1  ;;  %6381 = vmatmul.mubr.bf16.vlgmr.msra.gmra.mrb[32].mxu0 %v6177_v47  ;;  %v6141_v46 = vmax.f32 %v6049_v22, 0.0 }
 0xae4   : > { %v6055_v16 = vadd.f32 %v6054_v30, %v11367_v26  ;;  %v6142_v33 = vmax.f32 %v6051_v12, 0.0 }
 0xae5   : > { %v6143_v17 = vmax.f32 %v6053_v29, 0.0 }
 0xae6   : > { %v6144_v32 = vmax.f32 %v6055_v16, 0.0 }
 0xae7   : > { %v6179_v39 = vpack.c.bf16 %v6143_v17, %v6141_v46 }
 0xae8   : > { %v6180_v56 = vpack.c.bf16 %v6144_v32, %v6142_v33  ;;  %v6058_v18 = vpop.f32.mrb[144].mxu1 }
 0xae9   : > { %v6059_v40 = vadd.f32 %v6058_v18, %v11364_v14  ;;  %v6060_v57 = vpop.f32.mrb[145].mxu1 }
 0xaea   : > { %v6061_v1 = vadd.f32 %v6060_v57, %v11367_v26  ;;  %v6062_v42 = vpop.f32.mrb[146].mxu1  ;;  %8255 = vmatprep.mubr.msk.bf16.mxu0 %vm651_vm1, %v6180_v56 }
 0xaeb   : > { %v6063_v41 = vadd.f32 %v6062_v42, %v11364_v14  ;;  %v6064_v21 = vpop.f32.mrb[147].mxu1  ;;  %6391 = vmatmul.mubr.bf16.gmra.mrb[36].mxu0 %v6179_v39  ;;  %v6145_v4 = vmax.f32 %v6059_v40, 0.0 }
 0xaec   : > { %v6065_v3 = vadd.f32 %v6064_v21, %v11367_v26  ;;  %v6146_v45 = vmax.f32 %v6061_v1, 0.0 }
 0xaed   : > { %v6147_v5 = vmax.f32 %v6063_v41, 0.0 }
 0xaee   : > { %v6148_v7 = vmax.f32 %v6065_v3, 0.0 }
 0xaef   : > { %v6181_v38 = vpack.c.bf16 %v6147_v5, %v6145_v4 }
 0xaf0   : > { %v6182_v36 = vpack.c.bf16 %v6148_v7, %v6146_v45  ;;  %v6068_v52 = vpop.f32.mrb[148].mxu1 }
 0xaf1   : > { %v6069_v60 = vadd.f32 %v6068_v52, %v11364_v14  ;;  %v6070_v10 = vpop.f32.mrb[149].mxu1 }
 0xaf2   : > { %v6071_v62 = vadd.f32 %v6070_v10, %v11367_v26  ;;  %v6072_v43 = vpop.f32.mrb[150].mxu1  ;;  %8256 = vmatprep.mubr.msk.bf16.mxu0 %vm651_vm1, %v6182_v36 }
 0xaf3   : > { %v6073_v63 = vadd.f32 %v6072_v43, %v11364_v14  ;;  %v6074_v19 = vpop.f32.mrb[151].mxu1  ;;  %6401 = vmatmul.mubr.bf16.gmra.mrb[40].mxu0 %v6181_v38  ;;  %v6149_v28 = vmax.f32 %v6069_v60, 0.0 }
 0xaf4   : > { %v6075_v34 = vadd.f32 %v6074_v19, %v11367_v26  ;;  %v6150_v48 = vmax.f32 %v6071_v62, 0.0 }
 0xaf5   : > { %v6151_v37 = vmax.f32 %v6073_v63, 0.0 }
 0xaf6   : > { %v6152_v11 = vmax.f32 %v6075_v34, 0.0 }
 0xaf7   : > { %v6183_v27 = vpack.c.bf16 %v6151_v37, %v6149_v28 }
 0xaf8   : > { %v6184_v55 = vpack.c.bf16 %v6152_v11, %v6150_v48  ;;  %v6078_v44 = vpop.f32.mrb[152].mxu1 }
 0xaf9   : > { %v6079_v6 = vadd.f32 %v6078_v44, %v11364_v14  ;;  %v6080_v13 = vpop.f32.mrb[153].mxu1 }
 0xafa   : > { %v6081_v25 = vadd.f32 %v6080_v13, %v11367_v26  ;;  %v6082_v35 = vpop.f32.mrb[154].mxu1  ;;  %8257 = vmatprep.mubr.msk.bf16.mxu0 %vm651_vm1, %v6184_v55 }
 0xafb   : > { %v6083_v50 = vadd.f32 %v6082_v35, %v11364_v14  ;;  %v6084_v58 = vpop.f32.mrb[155].mxu1  ;;  %6411 = vmatmul.mubr.bf16.gmra.mrb[44].mxu0 %v6183_v27  ;;  %v6153_v0 = vmax.f32 %v6079_v6, 0.0 }
 0xafc   : > { %v6085_v31 = vadd.f32 %v6084_v58, %v11367_v26  ;;  %v6154_v61 = vmax.f32 %v6081_v25, 0.0 }
 0xafd   : > { %v6155_v59 = vmax.f32 %v6083_v50, 0.0 }
 0xafe   : > { %v6156_v8 = vmax.f32 %v6085_v31, 0.0 }
 0xaff   : > { %v6185_v20 = vpack.c.bf16 %v6155_v59, %v6153_v0 }
 0xb00   : > { %v6186_v9 = vpack.c.bf16 %v6156_v8, %v6154_v61  ;;  %v6088_v47 = vpop.f32.mrb[156].mxu1 }
 0xb01   : > { %v6089_v15 = vadd.f32 %v6088_v47, %v11364_v14  ;;  %v6090_v54 = vpop.f32.mrb[157].mxu1 }
 0xb02   : > { %v6091_v22 = vadd.f32 %v6090_v54, %v11367_v26  ;;  %v6092_v23 = vpop.f32.mrb[158].mxu1  ;;  %8258 = vmatprep.mubr.msk.bf16.mxu0 %vm651_vm1, %v6186_v9 }
 0xb03   : > { %v6093_v12 = vadd.f32 %v6092_v23, %v11364_v14  ;;  %v6094_v24 = vpop.f32.mrb[159].mxu1  ;;  %6421 = vmatmul.mubr.bf16.gmra.mrb[48].mxu0 %v6185_v20  ;;  %v6157_v30 = vmax.f32 %v6089_v15, 0.0 }
 0xb04   : > { %v6095_v29 = vadd.f32 %v6094_v24, %v11367_v26  ;;  %v6158_v46 = vmax.f32 %v6091_v22, 0.0 }
 0xb05   : > { %v6159_v16 = vmax.f32 %v6093_v12, 0.0 }
 0xb06   : > { %v6160_v17 = vmax.f32 %v6095_v29, 0.0 }
 0xb07   : > { %v6187_v33 = vpack.c.bf16 %v6159_v16, %v6157_v30 }
 0xb08   : > { %v6188_v32 = vpack.c.bf16 %v6160_v17, %v6158_v46  ;;  %v6098_v39 = vpop.f32.mrb[160].mxu1 }
 0xb09   : > { %v6099_v56 = vadd.f32 %v6098_v39, %v11364_v14  ;;  %v6100_v18 = vpop.f32.mrb[161].mxu1  ;;  %v8999_v39 = vld [vmem:[%s11937_s1 + $0x804] ss:$8 sps:$4 sm:$0xff]  }
 0xb0a   : > { %v6101_v40 = vadd.f32 %v6100_v18, %v11367_v26  ;;  %v6102_v57 = vpop.f32.mrb[162].mxu1  ;;  %8259 = vmatprep.mubr.msk.bf16.mxu0 %vm651_vm1, %v6188_v32  ;;  %v8996_v32 = vld [vmem:[%s11937_s1 + $0x7f4] ss:$8 sps:$4 sm:$0xff]  }
 0xb0b   : > { %v6103_v1 = vadd.f32 %v6102_v57, %v11364_v14  ;;  %v6104_v42 = vpop.f32.mrb[163].mxu1  ;;  %6431 = vmatmul.mubr.bf16.gmra.mrb[52].mxu0 %v6187_v33  ;;  %v6161_v21 = vmax.f32 %v6099_v56, 0.0  ;;  %v8993_v33 = vld [vmem:[%s11937_s1 + $0x7e4] ss:$8 sps:$4 sm:$0xff]   ;;  %7036 = vmatprep.subr.bf16.mxu0 %v8996_v32  ;;  %v8997_v56 = vld [vmem:[%s11937_s1 + $0x800] ss:$8 sps:$4 sm:$0xff]  }
 0xb0c   : > { %v6105_v41 = vadd.f32 %v6104_v42, %v11367_v26  ;;  %v6162_v4 = vmax.f32 %v6101_v40, 0.0  ;;  %6708 = vmatprep.subr.bf16.mxu1 %v8993_v33  ;;  %v9002_v18 = vld [vmem:[%s11937_s1 + $0x814] ss:$8 sps:$4 sm:$0xff]   ;;  %v9000_v40 = vld [vmem:[%s11937_s1 + $0x810] ss:$8 sps:$4 sm:$0xff]  }
 0xb0d   : > { %v6163_v3 = vmax.f32 %v6103_v1, 0.0  ;;  %v9005_v57 = vld [vmem:[%s11937_s1 + $0x824] ss:$8 sps:$4 sm:$0xff]   ;;  %v9003_v1 = vld [vmem:[%s11937_s1 + $0x820] ss:$8 sps:$4 sm:$0xff]  }
 0xb0e   : > { %v6164_v5 = vmax.f32 %v6105_v41, 0.0  ;;  %v9008_v42 = vld [vmem:[%s11937_s1 + $0x834] ss:$8 sps:$4 sm:$0xff]   ;;  %v9006_v41 = vld [vmem:[%s11937_s1 + $0x830] ss:$8 sps:$4 sm:$0xff]  }
 0xb0f   : > { %v6189_v45 = vpack.c.bf16 %v6163_v3, %v6161_v21  ;;  %v9011_v21 = vld [vmem:[%s11937_s1 + $0x844] ss:$8 sps:$4 sm:$0xff]   ;;  %v9009_v3 = vld [vmem:[%s11937_s1 + $0x840] ss:$8 sps:$4 sm:$0xff]  }
 0xb10   : > { %v6190_v7 = vpack.c.bf16 %v6164_v5, %v6162_v4  ;;  %v6108_v38 = vpop.f32.mrb[164].mxu1  ;;  %v9014_v4 = vld [vmem:[%s11937_s1 + $0x854] ss:$8 sps:$4 sm:$0xff]   ;;  %v9012_v5 = vld [vmem:[%s11937_s1 + $0x850] ss:$8 sps:$4 sm:$0xff]  }
 0xb11   : > { %v6109_v36 = vadd.f32 %v6108_v38, %v11364_v14  ;;  %v6110_v52 = vpop.f32.mrb[165].mxu1  ;;  %v8235_v38 = vld [vmem:[%s11939_s3 + $0x20] ss:$8 sm:$0x3] }
 0xb12   : > { %v6111_v60 = vadd.f32 %v6110_v52, %v11367_v26  ;;  %v6112_v10 = vpop.f32.mrb[166].mxu1  ;;  %8260 = vmatprep.mubr.msk.bf16.mxu0 %vm651_vm1, %v6190_v7  ;;  %v9015_v7 = vld [vmem:[%s11937_s1 + $0x860] ss:$8 sps:$4 sm:$0xff]   ;;  %v11481_v52 = vrot.slane %v8235_v38, %v9463_v53 }
 0xb13   : > { %v6113_v62 = vadd.f32 %v6112_v10, %v11364_v14  ;;  %v6114_v43 = vpop.f32.mrb[167].mxu1  ;;  %6441 = vmatmul.mubr.bf16.gmra.mrb[56].mxu0 %v6189_v45  ;;  %v6165_v19 = vmax.f32 %v6109_v36, 0.0  ;;  %v9017_v45 = vld [vmem:[%s11937_s1 + $0x864] ss:$8 sps:$4 sm:$0xff]   ;;  %v11478_v36 = vrot.slane %v8235_v38, %v9458_v51 }
 0xb14   : > { %v6115_v63 = vadd.f32 %v6114_v43, %v11367_v26  ;;  %v6166_v28 = vmax.f32 %v6111_v60, 0.0 }
 0xb15   : > { %v6167_v34 = vmax.f32 %v6113_v62, 0.0 }
 0xb16   : > { %v6168_v37 = vmax.f32 %v6115_v63, 0.0 }
 0xb17   : > { %v6191_v48 = vpack.c.bf16 %v6167_v34, %v6165_v19 }
 0xb18   : > { %v6192_v11 = vpack.c.bf16 %v6168_v37, %v6166_v28  ;;  %v6118_v27 = vpop.f32.mrb[168].mxu1 }
 0xb19   : > { %v6119_v55 = vadd.f32 %v6118_v27, %v11364_v14  ;;  %v6120_v44 = vpop.f32.mrb[169].mxu1 }
 0xb1a   : > { %v6121_v6 = vadd.f32 %v6120_v44, %v11367_v26  ;;  %v6122_v13 = vpop.f32.mrb[170].mxu1  ;;  %8261 = vmatprep.mubr.msk.bf16.mxu0 %vm651_vm1, %v6192_v11 }
 0xb1b   : > { %v6123_v25 = vadd.f32 %v6122_v13, %v11364_v14  ;;  %v6124_v35 = vpop.f32.mrb[171].mxu1  ;;  %6451 = vmatmul.mubr.bf16.gmra.mrb[60].mxu0 %v6191_v48  ;;  %v6169_v58 = vmax.f32 %v6119_v55, 0.0 }
 0xb1c   : > { %v6125_v50 = vadd.f32 %v6124_v35, %v11367_v26  ;;  %v6170_v0 = vmax.f32 %v6121_v6, 0.0 }
 0xb1d   : > { %v6171_v31 = vmax.f32 %v6123_v25, 0.0 }
 0xb1e   : > { %v6172_v59 = vmax.f32 %v6125_v50, 0.0 }
 0xb1f   : > { %v6193_v61 = vpack.c.bf16 %v6171_v31, %v6169_v58 }
 0xb20   : > { %v6194_v8 = vpack.c.bf16 %v6172_v59, %v6170_v0  ;;  %v6128_v20 = vpop.f32.mrb[172].mxu1 }
 0xb21   : > { %v6129_v9 = vadd.f32 %v6128_v20, %v11364_v14  ;;  %v6130_v47 = vpop.f32.mrb[173].mxu1 }
 0xb22   : > { %v6131_v15 = vadd.f32 %v6130_v47, %v11367_v26  ;;  %v6132_v54 = vpop.f32.mrb[174].mxu1  ;;  %8262 = vmatprep.mubr.msk.bf16.mxu0 %vm651_vm1, %v6194_v8 }
 0xb23   : > { %v6133_v22 = vadd.f32 %v6132_v54, %v11364_v14  ;;  %v6134_v23 = vpop.f32.mrb[175].mxu1  ;;  %6461 = vmatmul.mubr.bf16.gmra.mrb[64].mxu0 %v6193_v61  ;;  %v6173_v24 = vmax.f32 %v6129_v9, 0.0  ;;  %v8991_v14 = vld [vmem:[%s11937_s1 + $0x7e0] ss:$8 sps:$4 sm:$0xff]  }
 0xb24   : > { %v6135_v12 = vadd.f32 %v6134_v23, %v11367_v26  ;;  %v6174_v30 = vmax.f32 %v6131_v15, 0.0  ;;  %6709 = vmatpush1.bf16.msra.mxu1 %v8991_v14  ;;  %v8994_v26 = vld [vmem:[%s11937_s1 + $0x7f0] ss:$8 sps:$4 sm:$0xff]  }
 0xb25   : > { %v6175_v29 = vmax.f32 %v6133_v22, 0.0  ;;  %7037 = vmatpush1.bf16.msra.mxu0 %v8994_v26 }
 0xb26   : > { %v6176_v16 = vmax.f32 %v6135_v12, 0.0  ;;  %7038 = vmatprep.subr.bf16.mxu0 %v8999_v39 }
 0xb27   : > { %v6195_v46 = vpack.c.bf16 %v6175_v29, %v6173_v24 }
 0xb28   : > { %v6196_v17 = vpack.c.bf16 %v6176_v16, %v6174_v30 }
 0xb29   : > { %7039 = vmatpush1.bf16.msra.mxu0 %v8997_v56 }
 0xb2a   : > { %8263 = vmatprep.mubr.msk.bf16.mxu0 %vm651_vm1, %v6196_v17  ;;  %7040 = vmatprep.subr.bf16.mxu0 %v9002_v18 }
 0xb2b   : > { %6471 = vmatmul.mubr.bf16.gmra.mrb[68].mxu0 %v6195_v46 }
 0xb2d   : > { %7041 = vmatpush1.bf16.msra.mxu0 %v9000_v40 }
 0xb2e   : > { %7042 = vmatprep.subr.bf16.mxu0 %v9005_v57 }
 0xb31   : > { %7043 = vmatpush1.bf16.msra.mxu0 %v9003_v1 }
 0xb32   : > { %7044 = vmatprep.subr.bf16.mxu0 %v9008_v42 }
 0xb35   : > { %7045 = vmatpush1.bf16.msra.mxu0 %v9006_v41 }
 0xb36   : > { %7046 = vmatprep.subr.bf16.mxu0 %v9011_v21 }
 0xb39   : > { %7047 = vmatpush1.bf16.msra.mxu0 %v9009_v3 }
 0xb3a   : > { %7048 = vmatprep.subr.bf16.mxu0 %v9014_v4 }
 0xb3d   : > { %7049 = vmatpush1.bf16.msra.mxu0 %v9012_v5 }
 0xb3e   : > { %7050 = vmatprep.subr.bf16.mxu0 %v9017_v45 }
 0xb41   : > { %7051 = vmatpush1.bf16.msra.mxu0 %v9015_v7 }
 0xbb6   : > { %v6382_v60 = vpop.f32.mrb[32].mxu0 }
 0xbb7   : > { %v6383_v10 = vadd.f32 %v6382_v60, %v11478_v36  ;;  %v6384_v62 = vpop.f32.mrb[33].mxu0 }
 0xbb8   : > { %v6385_v43 = vadd.f32 %v6384_v62, %v11481_v52  ;;  %v6386_v63 = vpop.f32.mrb[34].mxu0 }
 0xbb9   : > { %v6387_v19 = vadd.f32 %v6386_v63, %v11478_v36  ;;  %v6388_v34 = vpop.f32.mrb[35].mxu0  ;;  %v6481_v37 = vmax.f32 %v6383_v10, 0.0 }
 0xbba   : > { %v6389_v28 = vadd.f32 %v6388_v34, %v11481_v52  ;;  %v6482_v11 = vmax.f32 %v6385_v43, 0.0 }
 0xbbb   : > { %v6483_v48 = vmax.f32 %v6387_v19, 0.0 }
 0xbbc   : > { %v6484_v27 = vmax.f32 %v6389_v28, 0.0 }
 0xbbd   : > { %v6521_v55 = vpack.c.bf16 %v6483_v48, %v6481_v37 }
 0xbbe   : > { %v6522_v44 = vpack.c.bf16 %v6484_v27, %v6482_v11  ;;  %v6392_v6 = vpop.f32.mrb[36].mxu0 }
 0xbbf   : > { %v6393_v13 = vadd.f32 %v6392_v6, %v11478_v36  ;;  %v6394_v25 = vpop.f32.mrb[37].mxu0 }
 0xbc0   : > { %v6395_v35 = vadd.f32 %v6394_v25, %v11481_v52  ;;  %v6396_v50 = vpop.f32.mrb[38].mxu0  ;;  %8283 = vmatprep.mubr.msk.bf16.mxu1 %vm651_vm1, %v6522_v44 }
 0xbc1   : > { %v6397_v58 = vadd.f32 %v6396_v50, %v11478_v36  ;;  %v6398_v31 = vpop.f32.mrb[39].mxu0  ;;  %6725 = vmatmul.mubr.bf16.vlgmr.msra.gmra.mrb[176].mxu1 %v6521_v55  ;;  %v6485_v59 = vmax.f32 %v6393_v13, 0.0 }
 0xbc2   : > { %v6399_v0 = vadd.f32 %v6398_v31, %v11481_v52  ;;  %v6486_v8 = vmax.f32 %v6395_v35, 0.0 }
 0xbc3   : > { %v6487_v61 = vmax.f32 %v6397_v58, 0.0 }
 0xbc4   : > { %v6488_v20 = vmax.f32 %v6399_v0, 0.0 }
 0xbc5   : > { %v6523_v9 = vpack.c.bf16 %v6487_v61, %v6485_v59 }
 0xbc6   : > { %v6524_v47 = vpack.c.bf16 %v6488_v20, %v6486_v8  ;;  %v6402_v15 = vpop.f32.mrb[40].mxu0 }
 0xbc7   : > { %v6403_v54 = vadd.f32 %v6402_v15, %v11478_v36  ;;  %v6404_v22 = vpop.f32.mrb[41].mxu0 }
 0xbc8   : > { %v6405_v23 = vadd.f32 %v6404_v22, %v11481_v52  ;;  %v6406_v12 = vpop.f32.mrb[42].mxu0  ;;  %8284 = vmatprep.mubr.msk.bf16.mxu1 %vm651_vm1, %v6524_v47 }
 0xbc9   : > { %v6407_v24 = vadd.f32 %v6406_v12, %v11478_v36  ;;  %v6408_v29 = vpop.f32.mrb[43].mxu0  ;;  %6735 = vmatmul.mubr.bf16.gmra.mrb[180].mxu1 %v6523_v9  ;;  %v6489_v16 = vmax.f32 %v6403_v54, 0.0 }
 0xbca   : > { %v6409_v30 = vadd.f32 %v6408_v29, %v11481_v52  ;;  %v6490_v17 = vmax.f32 %v6405_v23, 0.0 }
 0xbcb   : > { %v6491_v46 = vmax.f32 %v6407_v24, 0.0 }
 0xbcc   : > { %v6492_v33 = vmax.f32 %v6409_v30, 0.0 }
 0xbcd   : > { %v6525_v14 = vpack.c.bf16 %v6491_v46, %v6489_v16 }
 0xbce   : > { %v6526_v26 = vpack.c.bf16 %v6492_v33, %v6490_v17  ;;  %v6412_v32 = vpop.f32.mrb[44].mxu0 }
 0xbcf   : > { %v6413_v39 = vadd.f32 %v6412_v32, %v11478_v36  ;;  %v6414_v56 = vpop.f32.mrb[45].mxu0 }
 0xbd0   : > { %v6415_v18 = vadd.f32 %v6414_v56, %v11481_v52  ;;  %v6416_v40 = vpop.f32.mrb[46].mxu0  ;;  %8285 = vmatprep.mubr.msk.bf16.mxu1 %vm651_vm1, %v6526_v26 }
 0xbd1   : > { %v6417_v57 = vadd.f32 %v6416_v40, %v11478_v36  ;;  %v6418_v1 = vpop.f32.mrb[47].mxu0  ;;  %6745 = vmatmul.mubr.bf16.gmra.mrb[184].mxu1 %v6525_v14  ;;  %v6493_v41 = vmax.f32 %v6413_v39, 0.0 }
 0xbd2   : > { %v6419_v42 = vadd.f32 %v6418_v1, %v11481_v52  ;;  %v6494_v3 = vmax.f32 %v6415_v18, 0.0 }
 0xbd3   : > { %v6495_v21 = vmax.f32 %v6417_v57, 0.0 }
 0xbd4   : > { %v6496_v4 = vmax.f32 %v6419_v42, 0.0 }
 0xbd5   : > { %v6527_v5 = vpack.c.bf16 %v6495_v21, %v6493_v41 }
 0xbd6   : > { %v6528_v45 = vpack.c.bf16 %v6496_v4, %v6494_v3  ;;  %v6422_v7 = vpop.f32.mrb[48].mxu0 }
 0xbd7   : > { %v6423_v38 = vadd.f32 %v6422_v7, %v11478_v36  ;;  %v6424_v60 = vpop.f32.mrb[49].mxu0 }
 0xbd8   : > { %v6425_v10 = vadd.f32 %v6424_v60, %v11481_v52  ;;  %v6426_v62 = vpop.f32.mrb[50].mxu0  ;;  %8286 = vmatprep.mubr.msk.bf16.mxu1 %vm651_vm1, %v6528_v45 }
 0xbd9   : > { %v6427_v43 = vadd.f32 %v6426_v62, %v11478_v36  ;;  %v6428_v63 = vpop.f32.mrb[51].mxu0  ;;  %6755 = vmatmul.mubr.bf16.gmra.mrb[188].mxu1 %v6527_v5  ;;  %v6497_v34 = vmax.f32 %v6423_v38, 0.0 }
 0xbda   : > { %v6429_v19 = vadd.f32 %v6428_v63, %v11481_v52  ;;  %v6498_v37 = vmax.f32 %v6425_v10, 0.0 }
 0xbdb   : > { %v6499_v28 = vmax.f32 %v6427_v43, 0.0 }
 0xbdc   : > { %v6500_v48 = vmax.f32 %v6429_v19, 0.0 }
 0xbdd   : > { %v6529_v11 = vpack.c.bf16 %v6499_v28, %v6497_v34 }
 0xbde   : > { %v6530_v27 = vpack.c.bf16 %v6500_v48, %v6498_v37  ;;  %v6432_v55 = vpop.f32.mrb[52].mxu0 }
 0xbdf   : > { %v6433_v44 = vadd.f32 %v6432_v55, %v11478_v36  ;;  %v6434_v6 = vpop.f32.mrb[53].mxu0 }
 0xbe0   : > { %v6435_v13 = vadd.f32 %v6434_v6, %v11481_v52  ;;  %v6436_v25 = vpop.f32.mrb[54].mxu0  ;;  %8287 = vmatprep.mubr.msk.bf16.mxu1 %vm651_vm1, %v6530_v27 }
 0xbe1   : > { %v6437_v35 = vadd.f32 %v6436_v25, %v11478_v36  ;;  %v6438_v50 = vpop.f32.mrb[55].mxu0  ;;  %6765 = vmatmul.mubr.bf16.gmra.mrb[192].mxu1 %v6529_v11  ;;  %v6501_v31 = vmax.f32 %v6433_v44, 0.0 }
 0xbe2   : > { %v6439_v58 = vadd.f32 %v6438_v50, %v11481_v52  ;;  %v6502_v59 = vmax.f32 %v6435_v13, 0.0 }
 0xbe3   : > { %v6503_v0 = vmax.f32 %v6437_v35, 0.0 }
 0xbe4   : > { %v6504_v61 = vmax.f32 %v6439_v58, 0.0 }
 0xbe5   : > { %v6531_v8 = vpack.c.bf16 %v6503_v0, %v6501_v31 }
 0xbe6   : > { %v6532_v20 = vpack.c.bf16 %v6504_v61, %v6502_v59  ;;  %v6442_v9 = vpop.f32.mrb[56].mxu0 }
 0xbe7   : > { %v6443_v47 = vadd.f32 %v6442_v9, %v11478_v36  ;;  %v6444_v15 = vpop.f32.mrb[57].mxu0 }
 0xbe8   : > { %v6445_v54 = vadd.f32 %v6444_v15, %v11481_v52  ;;  %v6446_v22 = vpop.f32.mrb[58].mxu0  ;;  %8288 = vmatprep.mubr.msk.bf16.mxu1 %vm651_vm1, %v6532_v20 }
 0xbe9   : > { %v6447_v23 = vadd.f32 %v6446_v22, %v11478_v36  ;;  %v6448_v12 = vpop.f32.mrb[59].mxu0  ;;  %6775 = vmatmul.mubr.bf16.gmra.mrb[196].mxu1 %v6531_v8  ;;  %v6505_v29 = vmax.f32 %v6443_v47, 0.0  ;;  %v9020_v8 = vld [vmem:[%s11937_s1 + $0x874] ss:$8 sps:$4 sm:$0xff]  }
 0xbea   : > { %v6449_v24 = vadd.f32 %v6448_v12, %v11481_v52  ;;  %v6506_v16 = vmax.f32 %v6445_v54, 0.0  ;;  %7052 = vmatprep.subr.bf16.mxu0 %v9020_v8  ;;  %v9026_v8 = vld [vmem:[%s11938_s2 + $0x148] sm:$0xff]  }
 0xbeb   : > { %v6507_v30 = vmax.f32 %v6447_v23, 0.0 }
 0xbec   : > { %v6508_v46 = vmax.f32 %v6449_v24, 0.0 }
 0xbed   : > { %v6533_v17 = vpack.c.bf16 %v6507_v30, %v6505_v29 }
 0xbee   : > { %v6534_v33 = vpack.c.bf16 %v6508_v46, %v6506_v16  ;;  %v6452_v14 = vpop.f32.mrb[60].mxu0 }
 0xbef   : > { %v6453_v26 = vadd.f32 %v6452_v14, %v11478_v36  ;;  %v6454_v32 = vpop.f32.mrb[61].mxu0 }
 0xbf0   : > { %v6455_v39 = vadd.f32 %v6454_v32, %v11481_v52  ;;  %v6456_v56 = vpop.f32.mrb[62].mxu0  ;;  %8289 = vmatprep.mubr.msk.bf16.mxu1 %vm651_vm1, %v6534_v33  ;;  %v9021_v32 = vld [vmem:[%s11938_s2 + $0x120] sm:$0xff]  }
 0xbf1   : > { %v6457_v18 = vadd.f32 %v6456_v56, %v11478_v36  ;;  %v6458_v40 = vpop.f32.mrb[63].mxu0  ;;  %6785 = vmatmul.mubr.bf16.gmra.mrb[200].mxu1 %v6533_v17  ;;  %v6509_v1 = vmax.f32 %v6453_v26, 0.0 }
 0xbf2   : > { %v6459_v57 = vadd.f32 %v6458_v40, %v11481_v52  ;;  %v6510_v41 = vmax.f32 %v6455_v39, 0.0 }
 0xbf3   : > { %v6511_v42 = vmax.f32 %v6457_v18, 0.0 }
 0xbf4   : > { %v6512_v21 = vmax.f32 %v6459_v57, 0.0 }
 0xbf5   : > { %v6535_v3 = vpack.c.bf16 %v6511_v42, %v6509_v1 }
 0xbf6   : > { %v6536_v4 = vpack.c.bf16 %v6512_v21, %v6510_v41  ;;  %v6462_v5 = vpop.f32.mrb[64].mxu0  ;;  %v9022_v41 = vld [vmem:[%s11938_s2 + $0x128] sm:$0xff]  }
 0xbf7   : > { %v6463_v45 = vadd.f32 %v6462_v5, %v11478_v36  ;;  %v6464_v7 = vpop.f32.mrb[65].mxu0 }
 0xbf8   : > { %v6465_v38 = vadd.f32 %v6464_v7, %v11481_v52  ;;  %v6466_v60 = vpop.f32.mrb[66].mxu0  ;;  %8290 = vmatprep.mubr.msk.bf16.mxu1 %vm651_vm1, %v6536_v4 }
 0xbf9   : > { %v6467_v10 = vadd.f32 %v6466_v60, %v11478_v36  ;;  %v6468_v62 = vpop.f32.mrb[67].mxu0  ;;  %6795 = vmatmul.mubr.bf16.gmra.mrb[204].mxu1 %v6535_v3  ;;  %v6513_v63 = vmax.f32 %v6463_v45, 0.0  ;;  %v9023_v60 = vld [vmem:[%s11938_s2 + $0x130] sm:$0xff]  }
 0xbfa   : > { %v6469_v43 = vadd.f32 %v6468_v62, %v11481_v52  ;;  %v6514_v34 = vmax.f32 %v6465_v38, 0.0 }
 0xbfb   : > { %v6515_v19 = vmax.f32 %v6467_v10, 0.0 }
 0xbfc   : > { %v6516_v28 = vmax.f32 %v6469_v43, 0.0 }
 0xbfd   : > { %v6537_v37 = vpack.c.bf16 %v6515_v19, %v6513_v63 }
 0xbfe   : > { %v6538_v48 = vpack.c.bf16 %v6516_v28, %v6514_v34  ;;  %v6472_v11 = vpop.f32.mrb[68].mxu0 }
 0xbff   : > { %v6473_v27 = vadd.f32 %v6472_v11, %v11478_v36  ;;  %v6474_v55 = vpop.f32.mrb[69].mxu0 }
 0xc00   : > { %v6475_v44 = vadd.f32 %v6474_v55, %v11481_v52  ;;  %v6476_v6 = vpop.f32.mrb[70].mxu0  ;;  %8291 = vmatprep.mubr.msk.bf16.mxu1 %vm651_vm1, %v6538_v48 }
 0xc01   : > { %v6477_v13 = vadd.f32 %v6476_v6, %v11478_v36  ;;  %v6478_v25 = vpop.f32.mrb[71].mxu0  ;;  %6805 = vmatmul.mubr.bf16.gmra.mrb[208].mxu1 %v6537_v37  ;;  %v6517_v50 = vmax.f32 %v6473_v27, 0.0  ;;  %v9018_v36 = vld [vmem:[%s11937_s1 + $0x870] ss:$8 sps:$4 sm:$0xff]  }
 0xc02   : > { %v6479_v35 = vadd.f32 %v6478_v25, %v11481_v52  ;;  %v6518_v31 = vmax.f32 %v6475_v44, 0.0  ;;  %7053 = vmatpush1.bf16.msra.mxu0 %v9018_v36  ;;  %v8264_v52 = vld [vmem:[%s11939_s3 + $0x21] ss:$8 sm:$0x3]  ;;  %v9024_v37 = vld [vmem:[%s11938_s2 + $0x138] sm:$0xff]  }
 0xc03   : > { %v6519_v58 = vmax.f32 %v6477_v13, 0.0  ;;  %7331 = vmatprep.subr.bf16.mxu0 %v9184_v2  ;;  %v11544_v20 = vrot.slane %v8264_v52, %v9458_v51  ;;  %v11547_v9 = vrot.slane %v8264_v52, %v9463_v53  ;;  %v9025_v25 = vld [vmem:[%s11938_s2 + $0x140] sm:$0xff]  }
 0xc04   : > { %v6520_v0 = vmax.f32 %v6479_v35, 0.0 }
 0xc05   : > { %v6539_v59 = vpack.c.bf16 %v6519_v58, %v6517_v50 }
 0xc06   : > { %v6540_v61 = vpack.c.bf16 %v6520_v0, %v6518_v31 }
 0xc08   : > { %8292 = vmatprep.mubr.msk.bf16.mxu1 %vm651_vm1, %v6540_v61 }
 0xc09   : > { %6815 = vmatmul.mubr.bf16.gmra.mrb[212].mxu1 %v6539_v59 }
 0xc94   : > { %v6726_v47 = vpop.f32.mrb[176].mxu1 }
 0xc95   : > { %v6727_v15 = vadd.f32 %v6726_v47, %v11544_v20  ;;  %v6728_v54 = vpop.f32.mrb[177].mxu1 }
 0xc96   : > { %v6729_v22 = vadd.f32 %v6728_v54, %v11547_v9  ;;  %v6730_v23 = vpop.f32.mrb[178].mxu1 }
 0xc97   : > { %v6731_v12 = vadd.f32 %v6730_v23, %v11544_v20  ;;  %v6732_v24 = vpop.f32.mrb[179].mxu1  ;;  %v6825_v30 = vmax.f32 %v6727_v15, 0.0 }
 0xc98   : > { %v6733_v29 = vadd.f32 %v6732_v24, %v11547_v9  ;;  %v6826_v46 = vmax.f32 %v6729_v22, 0.0 }
 0xc99   : > { %v6827_v16 = vmax.f32 %v6731_v12, 0.0  ;;  %v9027_v12 = vld [vmem:[%s11938_s2 + $0x150] sm:$0xff]  }
 0xc9a   : > { %v6828_v17 = vmax.f32 %v6733_v29, 0.0 }
 0xc9b   : > { %v6865_v33 = vpack.c.bf16 %v6827_v16, %v6825_v30 }
 0xc9c   : > { %v6866_v14 = vpack.c.bf16 %v6828_v17, %v6826_v46  ;;  %v6736_v26 = vpop.f32.mrb[180].mxu1 }
 0xc9d   : > { %v6737_v39 = vadd.f32 %v6736_v26, %v11544_v20  ;;  %v6738_v56 = vpop.f32.mrb[181].mxu1 }
 0xc9e   : > { %v6739_v18 = vadd.f32 %v6738_v56, %v11547_v9  ;;  %v6740_v40 = vpop.f32.mrb[182].mxu1  ;;  %8312 = vmatprep.mubr.msk.bf16.mxu0 %vm651_vm1, %v6866_v14  ;;  %v9028_v14 = vld [vmem:[%s11938_s2 + $0x158] sm:$0xff]  }
 0xc9f   : > { %v6741_v57 = vadd.f32 %v6740_v40, %v11544_v20  ;;  %v6742_v1 = vpop.f32.mrb[183].mxu1  ;;  %7069 = vmatmul.mubr.bf16.vlgmr.msra.gmra.mrb[72].mxu0 %v6865_v33  ;;  %v6829_v21 = vmax.f32 %v6737_v39, 0.0 }
 0xca0   : > { %v6743_v42 = vadd.f32 %v6742_v1, %v11547_v9  ;;  %7332 = vmatpush1.bf16.msra.mxu0 %v9021_v32  ;;  %v6830_v4 = vmax.f32 %v6739_v18, 0.0 }
 0xca1   : > { %v6831_v3 = vmax.f32 %v6741_v57, 0.0  ;;  %7333 = vmatprep.subr.bf16.mxu0 %v9184_v2 }
 0xca2   : > { %v6832_v5 = vmax.f32 %v6743_v42, 0.0 }
 0xca3   : > { %v6867_v45 = vpack.c.bf16 %v6831_v3, %v6829_v21 }
 0xca4   : > { %v6868_v7 = vpack.c.bf16 %v6832_v5, %v6830_v4  ;;  %v6746_v38 = vpop.f32.mrb[184].mxu1  ;;  %7334 = vmatpush1.bf16.msra.mxu0 %v9022_v41 }
 0xca5   : > { %v6747_v10 = vadd.f32 %v6746_v38, %v11544_v20  ;;  %v6748_v62 = vpop.f32.mrb[185].mxu1  ;;  %7335 = vmatprep.subr.bf16.mxu0 %v9184_v2 }
 0xca6   : > { %v6749_v43 = vadd.f32 %v6748_v62, %v11547_v9  ;;  %v6750_v63 = vpop.f32.mrb[186].mxu1  ;;  %8313 = vmatprep.mubr.msk.bf16.mxu0 %vm651_vm1, %v6868_v7 }
 0xca7   : > { %v6751_v19 = vadd.f32 %v6750_v63, %v11544_v20  ;;  %v6752_v34 = vpop.f32.mrb[187].mxu1  ;;  %7079 = vmatmul.mubr.bf16.gmra.mrb[76].mxu0 %v6867_v45  ;;  %v6833_v48 = vmax.f32 %v6747_v10, 0.0 }
 0xca8   : > { %v6753_v28 = vadd.f32 %v6752_v34, %v11547_v9  ;;  %7336 = vmatpush1.bf16.msra.mxu0 %v9023_v60  ;;  %v6834_v27 = vmax.f32 %v6749_v43, 0.0 }
 0xca9   : > { %v6835_v11 = vmax.f32 %v6751_v19, 0.0  ;;  %7337 = vmatprep.subr.bf16.mxu0 %v9184_v2 }
 0xcaa   : > { %v6836_v55 = vmax.f32 %v6753_v28, 0.0 }
 0xcab   : > { %v6869_v44 = vpack.c.bf16 %v6835_v11, %v6833_v48 }
 0xcac   : > { %v6870_v6 = vpack.c.bf16 %v6836_v55, %v6834_v27  ;;  %v6756_v13 = vpop.f32.mrb[188].mxu1  ;;  %7338 = vmatpush1.bf16.msra.mxu0 %v9024_v37 }
 0xcad   : > { %v6757_v35 = vadd.f32 %v6756_v13, %v11544_v20  ;;  %v6758_v50 = vpop.f32.mrb[189].mxu1  ;;  %7339 = vmatprep.subr.bf16.mxu0 %v9184_v2 }
 0xcae   : > { %v6759_v58 = vadd.f32 %v6758_v50, %v11547_v9  ;;  %v6760_v31 = vpop.f32.mrb[190].mxu1  ;;  %8314 = vmatprep.mubr.msk.bf16.mxu0 %vm651_vm1, %v6870_v6 }
 0xcaf   : > { %v6761_v0 = vadd.f32 %v6760_v31, %v11544_v20  ;;  %v6762_v59 = vpop.f32.mrb[191].mxu1  ;;  %7089 = vmatmul.mubr.bf16.gmra.mrb[80].mxu0 %v6869_v44  ;;  %v6837_v36 = vmax.f32 %v6757_v35, 0.0 }
 0xcb0   : > { %v6763_v61 = vadd.f32 %v6762_v59, %v11547_v9  ;;  %7340 = vmatpush1.bf16.msra.mxu0 %v9025_v25  ;;  %v6838_v47 = vmax.f32 %v6759_v58, 0.0 }
 0xcb1   : > { %v6839_v52 = vmax.f32 %v6761_v0, 0.0  ;;  %7341 = vmatprep.subr.bf16.mxu0 %v9184_v2 }
 0xcb2   : > { %v6840_v15 = vmax.f32 %v6763_v61, 0.0 }
 0xcb3   : > { %v6871_v54 = vpack.c.bf16 %v6839_v52, %v6837_v36 }
 0xcb4   : > { %v6872_v22 = vpack.c.bf16 %v6840_v15, %v6838_v47  ;;  %v6766_v23 = vpop.f32.mrb[192].mxu1  ;;  %7342 = vmatpush1.bf16.msra.mxu0 %v9026_v8 }
 0xcb5   : > { %v6767_v24 = vadd.f32 %v6766_v23, %v11544_v20  ;;  %v6768_v29 = vpop.f32.mrb[193].mxu1  ;;  %7343 = vmatprep.subr.bf16.mxu0 %v9184_v2 }
 0xcb6   : > { %v6769_v30 = vadd.f32 %v6768_v29, %v11547_v9  ;;  %v6770_v16 = vpop.f32.mrb[194].mxu1  ;;  %8315 = vmatprep.mubr.msk.bf16.mxu0 %vm651_vm1, %v6872_v22 }
 0xcb7   : > { %v6771_v46 = vadd.f32 %v6770_v16, %v11544_v20  ;;  %v6772_v17 = vpop.f32.mrb[195].mxu1  ;;  %7099 = vmatmul.mubr.bf16.gmra.mrb[84].mxu0 %v6871_v54  ;;  %v6841_v26 = vmax.f32 %v6767_v24, 0.0 }
 0xcb8   : > { %v6773_v33 = vadd.f32 %v6772_v17, %v11547_v9  ;;  %7344 = vmatpush1.bf16.msra.mxu0 %v9027_v12  ;;  %v6842_v39 = vmax.f32 %v6769_v30, 0.0 }
 0xcb9   : > { %v6843_v32 = vmax.f32 %v6771_v46, 0.0  ;;  %7345 = vmatprep.subr.bf16.mxu0 %v9184_v2 }
 0xcba   : > { %v6844_v56 = vmax.f32 %v6773_v33, 0.0 }
 0xcbb   : > { %v6873_v18 = vpack.c.bf16 %v6843_v32, %v6841_v26 }
 0xcbc   : > { %v6874_v40 = vpack.c.bf16 %v6844_v56, %v6842_v39  ;;  %v6776_v57 = vpop.f32.mrb[196].mxu1  ;;  %7346 = vmatpush1.bf16.msra.mxu0 %v9028_v14 }
 0xcbd   : > { %v6777_v1 = vadd.f32 %v6776_v57, %v11544_v20  ;;  %v6778_v42 = vpop.f32.mrb[197].mxu1  ;;  %7347 = vmatprep.subr.bf16.mxu0 %v9184_v2 }
 0xcbe   : > { %v6779_v41 = vadd.f32 %v6778_v42, %v11547_v9  ;;  %v6780_v21 = vpop.f32.mrb[198].mxu1  ;;  %8316 = vmatprep.mubr.msk.bf16.mxu0 %vm651_vm1, %v6874_v40 }
 0xcbf   : > { %v6781_v3 = vadd.f32 %v6780_v21, %v11544_v20  ;;  %v6782_v4 = vpop.f32.mrb[199].mxu1  ;;  %7109 = vmatmul.mubr.bf16.gmra.mrb[88].mxu0 %v6873_v18  ;;  %v6845_v45 = vmax.f32 %v6777_v1, 0.0 }
 0xcc0   : > { %v6783_v5 = vadd.f32 %v6782_v4, %v11547_v9  ;;  %v6846_v38 = vmax.f32 %v6779_v41, 0.0 }
 0xcc1   : > { %v6847_v7 = vmax.f32 %v6781_v3, 0.0 }
 0xcc2   : > { %v6848_v60 = vmax.f32 %v6783_v5, 0.0 }
 0xcc3   : > { %v6875_v10 = vpack.c.bf16 %v6847_v7, %v6845_v45 }
 0xcc4   : > { %v6876_v62 = vpack.c.bf16 %v6848_v60, %v6846_v38  ;;  %v6786_v43 = vpop.f32.mrb[200].mxu1  ;;  %v9029_v60 = vld [vmem:[%s11938_s2 + $0x160] sm:$0xff]  }
 0xcc5   : > { %v6787_v2 = vadd.f32 %v6786_v43, %v11544_v20  ;;  %v6788_v63 = vpop.f32.mrb[201].mxu1  ;;  %7348 = vmatpush1.bf16.msra.mxu0 %v9029_v60 }
 0xcc6   : > { %v6789_v19 = vadd.f32 %v6788_v63, %v11547_v9  ;;  %v6790_v34 = vpop.f32.mrb[202].mxu1  ;;  %8317 = vmatprep.mubr.msk.bf16.mxu0 %vm651_vm1, %v6876_v62 }
 0xcc7   : > { %v6791_v28 = vadd.f32 %v6790_v34, %v11544_v20  ;;  %v6792_v37 = vpop.f32.mrb[203].mxu1  ;;  %7119 = vmatmul.mubr.bf16.gmra.mrb[92].mxu0 %v6875_v10  ;;  %v6849_v11 = vmax.f32 %v6787_v2, 0.0 }
 0xcc8   : > { %v6793_v48 = vadd.f32 %v6792_v37, %v11547_v9  ;;  %v6850_v55 = vmax.f32 %v6789_v19, 0.0 }
 0xcc9   : > { %v6851_v27 = vmax.f32 %v6791_v28, 0.0 }
 0xcca   : > { %v6852_v44 = vmax.f32 %v6793_v48, 0.0 }
 0xccb   : > { %v6877_v6 = vpack.c.bf16 %v6851_v27, %v6849_v11 }
 0xccc   : > { %v6878_v13 = vpack.c.bf16 %v6852_v44, %v6850_v55  ;;  %v6796_v25 = vpop.f32.mrb[204].mxu1 }
 0xccd   : > { %v6797_v35 = vadd.f32 %v6796_v25, %v11544_v20  ;;  %v6798_v50 = vpop.f32.mrb[205].mxu1 }
 0xcce   : > { %v6799_v58 = vadd.f32 %v6798_v50, %v11547_v9  ;;  %v6800_v31 = vpop.f32.mrb[206].mxu1  ;;  %8318 = vmatprep.mubr.msk.bf16.mxu0 %vm651_vm1, %v6878_v13 }
 0xccf   : > { %v6801_v0 = vadd.f32 %v6800_v31, %v11544_v20  ;;  %v6802_v59 = vpop.f32.mrb[207].mxu1  ;;  %7129 = vmatmul.mubr.bf16.gmra.mrb[96].mxu0 %v6877_v6  ;;  %v6853_v8 = vmax.f32 %v6797_v35, 0.0 }
 0xcd0   : > { %v6803_v61 = vadd.f32 %v6802_v59, %v11547_v9  ;;  %v6854_v52 = vmax.f32 %v6799_v58, 0.0 }
 0xcd1   : > { %v6855_v36 = vmax.f32 %v6801_v0, 0.0 }
 0xcd2   : > { %v6856_v47 = vmax.f32 %v6803_v61, 0.0 }
 0xcd3   : > { %v6879_v15 = vpack.c.bf16 %v6855_v36, %v6853_v8 }
 0xcd4   : > { %v6880_v54 = vpack.c.bf16 %v6856_v47, %v6854_v52  ;;  %v6806_v22 = vpop.f32.mrb[208].mxu1 }
 0xcd5   : > { %v6807_v23 = vadd.f32 %v6806_v22, %v11544_v20  ;;  %v6808_v12 = vpop.f32.mrb[209].mxu1 }
 0xcd6   : > { %v6809_v24 = vadd.f32 %v6808_v12, %v11547_v9  ;;  %v6810_v29 = vpop.f32.mrb[210].mxu1  ;;  %8319 = vmatprep.mubr.msk.bf16.mxu0 %vm651_vm1, %v6880_v54 }
 0xcd7   : > { %v6811_v30 = vadd.f32 %v6810_v29, %v11544_v20  ;;  %v6812_v16 = vpop.f32.mrb[211].mxu1  ;;  %7139 = vmatmul.mubr.bf16.gmra.mrb[100].mxu0 %v6879_v15  ;;  %v6857_v17 = vmax.f32 %v6807_v23, 0.0 }
 0xcd8   : > { %v6813_v46 = vadd.f32 %v6812_v16, %v11547_v9  ;;  %v6858_v14 = vmax.f32 %v6809_v24, 0.0 }
 0xcd9   : > { %v6859_v33 = vmax.f32 %v6811_v30, 0.0 }
 0xcda   : > { %v6860_v26 = vmax.f32 %v6813_v46, 0.0 }
 0xcdb   : > { %v6881_v32 = vpack.c.bf16 %v6859_v33, %v6857_v17 }
 0xcdc   : > { %v6882_v39 = vpack.c.bf16 %v6860_v26, %v6858_v14  ;;  %v6816_v56 = vpop.f32.mrb[212].mxu1 }
 0xcdd   : > { %v6817_v18 = vadd.f32 %v6816_v56, %v11544_v20  ;;  %v6818_v40 = vpop.f32.mrb[213].mxu1 }
 0xcde   : > { %v6819_v57 = vadd.f32 %v6818_v40, %v11547_v9  ;;  %v6820_v1 = vpop.f32.mrb[214].mxu1  ;;  %8320 = vmatprep.mubr.msk.bf16.mxu0 %vm651_vm1, %v6882_v39 }
 0xcdf   : > { %v6821_v42 = vadd.f32 %v6820_v1, %v11544_v20  ;;  %v6822_v41 = vpop.f32.mrb[215].mxu1  ;;  %7149 = vmatmul.mubr.bf16.gmra.mrb[104].mxu0 %v6881_v32  ;;  %v6861_v3 = vmax.f32 %v6817_v18, 0.0  ;;  %v8293_v20 = vld [vmem:[%s11939_s3 + $0x22] ss:$8 sm:$0x3] }
 0xce0   : > { %v6823_v21 = vadd.f32 %v6822_v41, %v11547_v9  ;;  %v6862_v5 = vmax.f32 %v6819_v57, 0.0  ;;  %v11638_v9 = vrot.slane %v8293_v20, %v9458_v51  ;;  %v11641_v10 = vrot.slane %v8293_v20, %v9463_v53 }
 0xce1   : > { %v6863_v4 = vmax.f32 %v6821_v42, 0.0 }
 0xce2   : > { %v6864_v45 = vmax.f32 %v6823_v21, 0.0 }
 0xce3   : > { %v6883_v7 = vpack.c.bf16 %v6863_v4, %v6861_v3 }
 0xce4   : > { %v6884_v38 = vpack.c.bf16 %v6864_v45, %v6862_v5 }
 0xce6   : > { %8321 = vmatprep.mubr.msk.bf16.mxu0 %vm651_vm1, %v6884_v38 }
 0xce7   : > { %7159 = vmatmul.mubr.bf16.gmra.mrb[108].mxu0 %v6883_v7 }
 0xd72   : > { %v7070_v62 = vpop.f32.mrb[72].mxu0 }
 0xd73   : > { %v7071_v43 = vadd.f32 %v7070_v62, %v11638_v9  ;;  %v7072_v2 = vpop.f32.mrb[73].mxu0 }
 0xd74   : > { %v7073_v63 = vadd.f32 %v7072_v2, %v11641_v10  ;;  %v7074_v19 = vpop.f32.mrb[74].mxu0 }
 0xd75   : > { %v7075_v34 = vadd.f32 %v7074_v19, %v11638_v9  ;;  %v7076_v28 = vpop.f32.mrb[75].mxu0  ;;  %v7169_v48 = vmax.f32 %v7071_v43, 0.0 }
 0xd76   : > { %v7077_v37 = vadd.f32 %v7076_v28, %v11641_v10  ;;  %v7170_v27 = vmax.f32 %v7073_v63, 0.0 }
 0xd77   : > { %v7171_v11 = vmax.f32 %v7075_v34, 0.0 }
 0xd78   : > { %v7172_v51 = vmax.f32 %v7077_v37, 0.0 }
 0xd79   : > { %v7227_v55 = vpack.c.bf16 %v7171_v11, %v7169_v48 }
 0xd7a   : > { %v7228_v44 = vpack.c.bf16 %v7172_v51, %v7170_v27  ;;  %v7080_v53 = vpop.f32.mrb[76].mxu0 }
 0xd7b   : > { %v7081_v6 = vadd.f32 %v7080_v53, %v11638_v9  ;;  %v7082_v13 = vpop.f32.mrb[77].mxu0 }
 0xd7c   : > { %v7083_v25 = vadd.f32 %v7082_v13, %v11641_v10  ;;  %v7084_v35 = vpop.f32.mrb[78].mxu0  ;;  %8331 = vmatprep.mubr.msk.bf16.mxu0 %vm651_vm1, %v7228_v44 }
 0xd7d   : > { %v7085_v50 = vadd.f32 %v7084_v35, %v11638_v9  ;;  %v7086_v58 = vpop.f32.mrb[79].mxu0  ;;  %7364 = vmatmul.mubr.bf16.vlgmr.msra.gmra.mrb[128].mxu0 %v7227_v55  ;;  %v7173_v0 = vmax.f32 %v7081_v6, 0.0 }
 0xd7e   : > { %v7087_v31 = vadd.f32 %v7086_v58, %v11641_v10  ;;  %v7174_v61 = vmax.f32 %v7083_v25, 0.0 }
 0xd7f   : > { %v7175_v59 = vmax.f32 %v7085_v50, 0.0 }
 0xd80   : > { %v7176_v8 = vmax.f32 %v7087_v31, 0.0 }
 0xd81   : > { %v7229_v36 = vpack.c.bf16 %v7175_v59, %v7173_v0 }
 0xd82   : > { %v7230_v52 = vpack.c.bf16 %v7176_v8, %v7174_v61  ;;  %v7090_v47 = vpop.f32.mrb[80].mxu0 }
 0xd83   : > { %v7091_v15 = vadd.f32 %v7090_v47, %v11638_v9  ;;  %v7092_v54 = vpop.f32.mrb[81].mxu0 }
 0xd84   : > { %v7093_v22 = vadd.f32 %v7092_v54, %v11641_v10  ;;  %v7094_v23 = vpop.f32.mrb[82].mxu0  ;;  %8332 = vmatprep.mubr.msk.bf16.mxu0 %vm651_vm1, %v7230_v52 }
 0xd85   : > { %v7095_v12 = vadd.f32 %v7094_v23, %v11638_v9  ;;  %v7096_v24 = vpop.f32.mrb[83].mxu0  ;;  %7372 = vmatmul.mubr.bf16.gmra.mrb[132].mxu0 %v7229_v36  ;;  %v7177_v30 = vmax.f32 %v7091_v15, 0.0 }
 0xd86   : > { %v7097_v29 = vadd.f32 %v7096_v24, %v11641_v10  ;;  %v7178_v46 = vmax.f32 %v7093_v22, 0.0 }
 0xd87   : > { %v7179_v16 = vmax.f32 %v7095_v12, 0.0 }
 0xd88   : > { %v7180_v17 = vmax.f32 %v7097_v29, 0.0 }
 0xd89   : > { %v7231_v33 = vpack.c.bf16 %v7179_v16, %v7177_v30 }
 0xd8a   : > { %v7232_v14 = vpack.c.bf16 %v7180_v17, %v7178_v46  ;;  %v7100_v26 = vpop.f32.mrb[84].mxu0 }
 0xd8b   : > { %v7101_v32 = vadd.f32 %v7100_v26, %v11638_v9  ;;  %v7102_v39 = vpop.f32.mrb[85].mxu0 }
 0xd8c   : > { %v7103_v56 = vadd.f32 %v7102_v39, %v11641_v10  ;;  %v7104_v18 = vpop.f32.mrb[86].mxu0  ;;  %8333 = vmatprep.mubr.msk.bf16.mxu0 %vm651_vm1, %v7232_v14 }
 0xd8d   : > { %v7105_v40 = vadd.f32 %v7104_v18, %v11638_v9  ;;  %v7106_v57 = vpop.f32.mrb[87].mxu0  ;;  %7380 = vmatmul.mubr.bf16.gmra.mrb[136].mxu0 %v7231_v33  ;;  %v7181_v42 = vmax.f32 %v7101_v32, 0.0 }
 0xd8e   : > { %v7107_v1 = vadd.f32 %v7106_v57, %v11641_v10  ;;  %v7182_v21 = vmax.f32 %v7103_v56, 0.0 }
 0xd8f   : > { %v7183_v41 = vmax.f32 %v7105_v40, 0.0 }
 0xd90   : > { %v7184_v3 = vmax.f32 %v7107_v1, 0.0 }
 0xd91   : > { %v7233_v4 = vpack.c.bf16 %v7183_v41, %v7181_v42 }
 0xd92   : > { %v7234_v5 = vpack.c.bf16 %v7184_v3, %v7182_v21  ;;  %v7110_v45 = vpop.f32.mrb[88].mxu0 }
 0xd93   : > { %v7111_v7 = vadd.f32 %v7110_v45, %v11638_v9  ;;  %v7112_v38 = vpop.f32.mrb[89].mxu0 }
 0xd94   : > { %v7113_v60 = vadd.f32 %v7112_v38, %v11641_v10  ;;  %v7114_v20 = vpop.f32.mrb[90].mxu0  ;;  %8334 = vmatprep.mubr.msk.bf16.mxu0 %vm651_vm1, %v7234_v5 }
 0xd95   : > { %v7115_v62 = vadd.f32 %v7114_v20, %v11638_v9  ;;  %v7116_v43 = vpop.f32.mrb[91].mxu0  ;;  %7388 = vmatmul.mubr.bf16.gmra.mrb[140].mxu0 %v7233_v4  ;;  %v7185_v63 = vmax.f32 %v7111_v7, 0.0 }
 0xd96   : > { %v7117_v2 = vadd.f32 %v7116_v43, %v11641_v10  ;;  %v7186_v34 = vmax.f32 %v7113_v60, 0.0 }
 0xd97   : > { %v7187_v19 = vmax.f32 %v7115_v62, 0.0 }
 0xd98   : > { %v7188_v28 = vmax.f32 %v7117_v2, 0.0 }
 0xd99   : > { %v7235_v37 = vpack.c.bf16 %v7187_v19, %v7185_v63 }
 0xd9a   : > { %v7236_v48 = vpack.c.bf16 %v7188_v28, %v7186_v34  ;;  %v7120_v11 = vpop.f32.mrb[92].mxu0 }
 0xd9b   : > { %v7121_v27 = vadd.f32 %v7120_v11, %v11638_v9  ;;  %v7122_v51 = vpop.f32.mrb[93].mxu0 }
 0xd9c   : > { %v7123_v55 = vadd.f32 %v7122_v51, %v11641_v10  ;;  %v7124_v44 = vpop.f32.mrb[94].mxu0  ;;  %8335 = vmatprep.mubr.msk.bf16.mxu0 %vm651_vm1, %v7236_v48 }
 0xd9d   : > { %v7125_v53 = vadd.f32 %v7124_v44, %v11638_v9  ;;  %v7126_v6 = vpop.f32.mrb[95].mxu0  ;;  %7396 = vmatmul.mubr.bf16.gmra.mrb[144].mxu0 %v7235_v37  ;;  %v7189_v25 = vmax.f32 %v7121_v27, 0.0 }
 0xd9e   : > { %v7127_v13 = vadd.f32 %v7126_v6, %v11641_v10  ;;  %v7190_v50 = vmax.f32 %v7123_v55, 0.0 }
 0xd9f   : > { %v7191_v35 = vmax.f32 %v7125_v53, 0.0 }
 0xda0   : > { %v7192_v58 = vmax.f32 %v7127_v13, 0.0 }
 0xda1   : > { %v7237_v31 = vpack.c.bf16 %v7191_v35, %v7189_v25  ;;  %v11696_v35 = vld [vmem:[%s11939_s3 + $0x24] ss:$0 sm:$0xff] }
 0xda2   : > { %v7238_v0 = vpack.c.bf16 %v7192_v58, %v7190_v50  ;;  %v7130_v59 = vpop.f32.mrb[96].mxu0 }
 0xda3   : > { %v7131_v61 = vadd.f32 %v7130_v59, %v11638_v9  ;;  %v7132_v8 = vpop.f32.mrb[97].mxu0 }
 0xda4   : > { %v7133_v36 = vadd.f32 %v7132_v8, %v11641_v10  ;;  %v7134_v52 = vpop.f32.mrb[98].mxu0  ;;  %8336 = vmatprep.mubr.msk.bf16.mxu0 %vm651_vm1, %v7238_v0 }
 0xda5   : > { %v7135_v47 = vadd.f32 %v7134_v52, %v11638_v9  ;;  %v7136_v15 = vpop.f32.mrb[99].mxu0  ;;  %7404 = vmatmul.mubr.bf16.gmra.mrb[148].mxu0 %v7237_v31  ;;  %v7193_v22 = vmax.f32 %v7131_v61, 0.0 }
 0xda6   : > { %v7137_v54 = vadd.f32 %v7136_v15, %v11641_v10  ;;  %v7194_v12 = vmax.f32 %v7133_v36, 0.0 }
 0xda7   : > { %v7195_v23 = vmax.f32 %v7135_v47, 0.0 }
 0xda8   : > { %v7196_v24 = vmax.f32 %v7137_v54, 0.0 }
 0xda9   : > { %v7239_v29 = vpack.c.bf16 %v7195_v23, %v7193_v22 }
 0xdaa   : > { %v7240_v30 = vpack.c.bf16 %v7196_v24, %v7194_v12  ;;  %v7140_v16 = vpop.f32.mrb[100].mxu0  ;;  %v11714_v24 = vand.u32 127, %v226_v49 }
 0xdab   : > { %v7141_v46 = vadd.f32 %v7140_v16, %v11638_v9  ;;  %v7142_v17 = vpop.f32.mrb[101].mxu0 }
 0xdac   : > { %v7143_v33 = vadd.f32 %v7142_v17, %v11641_v10  ;;  %v7144_v14 = vpop.f32.mrb[102].mxu0  ;;  %8337 = vmatprep.mubr.msk.bf16.mxu0 %vm651_vm1, %v7240_v30  ;;  %vm7467_vm2 = vcmp.ge.s32.totalorder %v11714_v24, 18  ;;  %vm7468_vm3 = vcmp.lt.s32.totalorder %v11714_v24, 20  ;;  %vm7466_vm5 = vcmp.eq.s32.totalorder %v11714_v24, 17 }
 0xdad   : > { %v7145_v26 = vadd.f32 %v7144_v14, %v11638_v9  ;;  %v7146_v32 = vpop.f32.mrb[103].mxu0  ;;  %7412 = vmatmul.mubr.bf16.gmra.mrb[152].mxu0 %v7239_v29  ;;  %v7197_v56 = vmax.f32 %v7141_v46, 0.0  ;;  %vm7469_vm4 = vmand %vm7467_vm2, %vm7468_vm3  ;;  %vm7472_vm6 = vcmp.eq.s32.totalorder %v11714_v24, 16 }
 0xdae   : > { %v7147_v39 = vadd.f32 %v7146_v32, %v11641_v10  ;;  %v7198_v40 = vmax.f32 %v7143_v33, 0.0 }
 0xdaf   : > { %v7199_v18 = vmax.f32 %v7145_v26, 0.0 }
 0xdb0   : > { %v7200_v57 = vmax.f32 %v7147_v39, 0.0 }
 0xdb1   : > { %v7241_v1 = vpack.c.bf16 %v7199_v18, %v7197_v56 }
 0xdb2   : > { %v7242_v42 = vpack.c.bf16 %v7200_v57, %v7198_v40  ;;  %v7150_v41 = vpop.f32.mrb[104].mxu0 }
 0xdb3   : > { %v7151_v21 = vadd.f32 %v7150_v41, %v11638_v9  ;;  %v7152_v3 = vpop.f32.mrb[105].mxu0 }
 0xdb4   : > { %v7153_v4 = vadd.f32 %v7152_v3, %v11641_v10  ;;  %v7154_v5 = vpop.f32.mrb[106].mxu0  ;;  %8338 = vmatprep.mubr.msk.bf16.mxu0 %vm651_vm1, %v7242_v42  ;;  %v9185_v42 = vmov 1.0  }
 0xdb5   : > { %v7155_v45 = vadd.f32 %v7154_v5, %v11638_v9  ;;  %v7156_v7 = vpop.f32.mrb[107].mxu0  ;;  %7420 = vmatmul.mubr.bf16.gmra.mrb[156].mxu0 %v7241_v1  ;;  %v7201_v60 = vmax.f32 %v7151_v21, 0.0  ;;  %v7470_v41 = vsel %vm7469_vm4, 0.5, %v9185_v42 }
 0xdb6   : > { %v7157_v38 = vadd.f32 %v7156_v7, %v11641_v10  ;;  %v7202_v62 = vmax.f32 %v7153_v4, 0.0  ;;  %v11734_v7 = vsel %vm7466_vm5, 6.2831855, %v7470_v41 }
 0xdb7   : > { %v7203_v20 = vmax.f32 %v7155_v45, 0.0 }
 0xdb8   : > { %v7204_v43 = vmax.f32 %v7157_v38, 0.0 }
 0xdb9   : > { %v7243_v2 = vpack.c.bf16 %v7203_v20, %v7201_v60 }
 0xdba   : > { %v7244_v63 = vpack.c.bf16 %v7204_v43, %v7202_v62  ;;  %v7160_v19 = vpop.f32.mrb[108].mxu0 }
 0xdbb   : > { %v7161_v34 = vadd.f32 %v7160_v19, %v11638_v9  ;;  %v7162_v28 = vpop.f32.mrb[109].mxu0 }
 0xdbc   : > { %v7163_v37 = vadd.f32 %v7162_v28, %v11641_v10  ;;  %v7164_v48 = vpop.f32.mrb[110].mxu0  ;;  %8339 = vmatprep.mubr.msk.bf16.mxu0 %vm651_vm1, %v7244_v63 }
 0xdbd   : > { %v7165_v11 = vadd.f32 %v7164_v48, %v11638_v9  ;;  %v7166_v27 = vpop.f32.mrb[111].mxu0  ;;  %7428 = vmatmul.mubr.bf16.gmra.mrb[160].mxu0 %v7243_v2  ;;  %v7205_v55 = vmax.f32 %v7161_v34, 0.0 }
 0xdbe   : > { %v7167_v51 = vadd.f32 %v7166_v27, %v11641_v10  ;;  %v7206_v53 = vmax.f32 %v7163_v37, 0.0 }
 0xdbf   : > { %v7207_v44 = vmax.f32 %v7165_v11, 0.0 }
 0xdc0   : > { %v7208_v6 = vmax.f32 %v7167_v51, 0.0 }
 0xdc1   : > { %v7245_v13 = vpack.c.bf16 %v7207_v44, %v7205_v55 }
 0xdc2   : > { %v7246_v25 = vpack.c.bf16 %v7208_v6, %v7206_v53 }
 0xdc4   : > { %8340 = vmatprep.mubr.msk.bf16.mxu0 %vm651_vm1, %v7246_v25 }
 0xdc5   : > { %7436 = vmatmul.mubr.bf16.gmra.mrb[164].mxu0 %v7245_v13 }
 0xe50   : > { %v7365_v50 = vpop.f32.mrb[128].mxu0 }
 0xe51   : > { %v11699_v9 = vadd.f32 %v7365_v50, %v11696_v35  ;;  %v7367_v58 = vpop.f32.mrb[129].mxu0 }
 0xe52   : > { %v7368_v10 = vpop.f32.mrb[130].mxu0 }
 0xe53   : > { %v8341_v31 = vmul.f32 -3.0, %v11699_v9  ;;  %v11703_v0 = vadd.f32 %v7368_v10, %v11696_v35  ;;  %v7370_v59 = vpop.f32.mrb[131].mxu0  ;;  %v7613_v19 = vmul.f32 %v11699_v9, %v11734_v7 }
 0xe55   : > { %v7513_v61 = vmul.f32 1.442695, %v8341_v31  ;;  %v8342_v8 = vmul.f32 -3.0, %v11703_v0  ;;  %v7614_v11 = vmul.f32 %v11703_v0, %v11734_v7 }
 0xe57   : > { %9030 = vpow2.f32 %v7513_v61  ;;  %v7515_v36 = vmul.f32 1.442695, %v8342_v8 }
 0xe58   : > { %v7373_v52 = vpop.f32.mrb[132].mxu0 }
 0xe59   : > { %9032 = vpow2.f32 %v7515_v36  ;;  %v11707_v47 = vadd.f32 %v7373_v52, %v11696_v35  ;;  %v7375_v15 = vpop.f32.mrb[133].mxu0 }
 0xe5a   : > { %v7376_v54 = vpop.f32.mrb[134].mxu0 }
 0xe5b   : > { %v8343_v22 = vmul.f32 -3.0, %v11707_v47  ;;  %v11711_v23 = vadd.f32 %v7376_v54, %v11696_v35  ;;  %v7378_v12 = vpop.f32.mrb[135].mxu0  ;;  %v7615_v59 = vmul.f32 %v11707_v47, %v11734_v7 }
 0xe5d   : > { %v7517_v29 = vmul.f32 1.442695, %v8343_v22  ;;  %v8344_v30 = vmul.f32 -3.0, %v11711_v23  ;;  %v7616_v15 = vmul.f32 %v11711_v23, %v11734_v7 }
 0xe5f   : > { %9034 = vpow2.f32 %v7517_v29  ;;  %v7519_v16 = vmul.f32 1.442695, %v8344_v30 }
 0xe60   : > { %v7381_v46 = vpop.f32.mrb[136].mxu0 }
 0xe61   : > { %v9031_v17 = vpop.eup %9030  ;;  %9036 = vpow2.f32 %v7519_v16  ;;  %v11720_v33 = vadd.f32 %v7381_v46, %v11696_v35  ;;  %v7383_v14 = vpop.f32.mrb[137].mxu0 }
 0xe62   : > { %v7553_v26 = vadd.f32 1.0, %v9031_v17  ;;  %v7384_v49 = vpop.f32.mrb[138].mxu0 }
 0xe63   : > { %v9033_v32 = vpop.eup %9032  ;;  %v8345_v39 = vmul.f32 -3.0, %v11720_v33  ;;  %v11724_v56 = vadd.f32 %v7384_v49, %v11696_v35  ;;  %v7386_v18 = vpop.f32.mrb[139].mxu0 }
 0xe64   : > { %9038 = vrcp.f32 %v7553_v26  ;;  %v7554_v40 = vadd.f32 1.0, %v9033_v32 }
 0xe65   : > { %v7521_v57 = vmul.f32 1.442695, %v8345_v39  ;;  %v8346_v1 = vmul.f32 -3.0, %v11724_v56  ;;  %v7617_v39 = vmul.f32 %v11720_v33, %v11734_v7  ;;  %v7618_v42 = vmul.f32 %v11724_v56, %v11734_v7 }
 0xe66   : > { %9040 = vrcp.f32 %v7554_v40 }
 0xe67   : > { %9042 = vpow2.f32 %v7521_v57  ;;  %v7523_v21 = vmul.f32 1.442695, %v8346_v1 }
 0xe68   : > { %v7389_v3 = vpop.f32.mrb[140].mxu0 }
 0xe69   : > { %v9035_v4 = vpop.eup %9034  ;;  %9044 = vpow2.f32 %v7523_v21  ;;  %v11732_v5 = vadd.f32 %v7389_v3, %v11696_v35  ;;  %v7391_v45 = vpop.f32.mrb[141].mxu0 }
 0xe6a   : > { %v7555_v38 = vadd.f32 1.0, %v9035_v4  ;;  %v7392_v60 = vpop.f32.mrb[142].mxu0 }
 0xe6b   : > { %v9037_v20 = vpop.eup %9036  ;;  %v8347_v62 = vmul.f32 -3.0, %v11732_v5  ;;  %v11738_v43 = vadd.f32 %v7392_v60, %v11696_v35  ;;  %v7394_v2 = vpop.f32.mrb[143].mxu0 }
 0xe6c   : > { %9046 = vrcp.f32 %v7555_v38  ;;  %v7556_v63 = vadd.f32 1.0, %v9037_v20 }
 0xe6d   : > { %v7525_v34 = vmul.f32 1.442695, %v8347_v62  ;;  %v8348_v28 = vmul.f32 -3.0, %v11738_v43 }
 0xe6e   : > { %v9039_v37 = vpop.eup %9038  ;;  %9048 = vrcp.f32 %v7556_v63 }
 0xe6f   : > { %v7635_v48 = vsel %vm7472_vm6, %v9039_v37, %v7613_v19  ;;  %9050 = vpow2.f32 %v7525_v34  ;;  %v7527_v27 = vmul.f32 1.442695, %v8348_v28  ;;  %v7619_v34 = vmul.f32 %v11732_v5, %v11734_v7 }
 0xe70   : > { %v9041_v51 = vpop.eup %9040  ;;  %7655 = vst [vmem:[%s11748_s9] sm:$0xff] %v7635_v48  ;;  %v7397_v55 = vpop.f32.mrb[144].mxu0 }
 0xe71   : > { %v9043_v44 = vpop.eup %9042  ;;  %v7636_v53 = vsel %vm7472_vm6, %v9041_v51, %v7614_v11  ;;  %9052 = vpow2.f32 %v7527_v27  ;;  %v11754_v6 = vadd.f32 %v7397_v55, %v11696_v35  ;;  %v7399_v13 = vpop.f32.mrb[145].mxu0  ;;  %v7620_v27 = vmul.f32 %v11738_v43, %v11734_v7 }
 0xe72   : > { %7656 = vst [vmem:[%s11748_s9 + $0x8] sm:$0xff] %v7636_v53  ;;  %v7557_v25 = vadd.f32 1.0, %v9043_v44  ;;  %v7400_v50 = vpop.f32.mrb[146].mxu0 }
 0xe73   : > { %v9045_v9 = vpop.eup %9044  ;;  %v8349_v58 = vmul.f32 -3.0, %v11754_v6  ;;  %v11759_v10 = vadd.f32 %v7400_v50, %v11696_v35  ;;  %v7402_v31 = vpop.f32.mrb[147].mxu0 }
 0xe74   : > { %9054 = vrcp.f32 %v7557_v25  ;;  %v7558_v0 = vadd.f32 1.0, %v9045_v9 }
 0xe75   : > { %v7529_v61 = vmul.f32 1.442695, %v8349_v58  ;;  %v8350_v8 = vmul.f32 -3.0, %v11759_v10 }
 0xe76   : > { %v9047_v36 = vpop.eup %9046  ;;  %9056 = vrcp.f32 %v7558_v0 }
 0xe77   : > { %v7637_v52 = vsel %vm7472_vm6, %v9047_v36, %v7615_v59  ;;  %9058 = vpow2.f32 %v7529_v61  ;;  %v7531_v54 = vmul.f32 1.442695, %v8350_v8  ;;  %v7621_v61 = vmul.f32 %v11754_v6, %v11734_v7 }
 0xe78   : > { %v9049_v22 = vpop.eup %9048  ;;  %7657 = vst [vmem:[%s11748_s9 + $0x10] sm:$0xff] %v7637_v52  ;;  %v7405_v12 = vpop.f32.mrb[148].mxu0 }
 0xe79   : > { %v9051_v29 = vpop.eup %9050  ;;  %v7638_v47 = vsel %vm7472_vm6, %v9049_v22, %v7616_v15  ;;  %9060 = vpow2.f32 %v7531_v54  ;;  %v11772_v30 = vadd.f32 %v7405_v12, %v11696_v35  ;;  %v7407_v16 = vpop.f32.mrb[149].mxu0  ;;  %v7622_v54 = vmul.f32 %v11759_v10, %v11734_v7 }
 0xe7a   : > { %7658 = vst [vmem:[%s11748_s9 + $0x18] sm:$0xff] %v7638_v47  ;;  %v7559_v46 = vadd.f32 1.0, %v9051_v29  ;;  %v7408_v17 = vpop.f32.mrb[150].mxu0 }
 0xe7b   : > { %v9053_v14 = vpop.eup %9052  ;;  %v8351_v23 = vmul.f32 -3.0, %v11772_v30  ;;  %v11777_v26 = vadd.f32 %v7408_v17, %v11696_v35  ;;  %v7410_v49 = vpop.f32.mrb[151].mxu0 }
 0xe7c   : > { %9062 = vrcp.f32 %v7559_v46  ;;  %v7560_v32 = vadd.f32 1.0, %v9053_v14 }
 0xe7d   : > { %v7533_v18 = vmul.f32 1.442695, %v8351_v23  ;;  %v8352_v40 = vmul.f32 -3.0, %v11777_v26 }
 0xe7e   : > { %v9055_v57 = vpop.eup %9054  ;;  %9064 = vrcp.f32 %v7560_v32 }
 0xe7f   : > { %v7639_v1 = vsel %vm7472_vm6, %v9055_v57, %v7617_v39  ;;  %9066 = vpow2.f32 %v7533_v18  ;;  %v7535_v41 = vmul.f32 1.442695, %v8352_v40  ;;  %v7623_v18 = vmul.f32 %v11772_v30, %v11734_v7 }
 0xe80   : > { %v9057_v21 = vpop.eup %9056  ;;  %7659 = vst [vmem:[%s11748_s9 + $0x20] sm:$0xff] %v7639_v1  ;;  %v7413_v3 = vpop.f32.mrb[152].mxu0 }
 0xe81   : > { %v9059_v4 = vpop.eup %9058  ;;  %v7640_v33 = vsel %vm7472_vm6, %v9057_v21, %v7618_v42  ;;  %9068 = vpow2.f32 %v7535_v41  ;;  %v11790_v45 = vadd.f32 %v7413_v3, %v11696_v35  ;;  %v7415_v38 = vpop.f32.mrb[153].mxu0  ;;  %v7624_v41 = vmul.f32 %v11777_v26, %v11734_v7 }
 0xe82   : > { %7660 = vst [vmem:[%s11748_s9 + $0x28] sm:$0xff] %v7640_v33  ;;  %v7561_v60 = vadd.f32 1.0, %v9059_v4  ;;  %v7416_v20 = vpop.f32.mrb[154].mxu0 }
 0xe83   : > { %v9061_v62 = vpop.eup %9060  ;;  %v8353_v56 = vmul.f32 -3.0, %v11790_v45  ;;  %v11795_v2 = vadd.f32 %v7416_v20, %v11696_v35  ;;  %v7418_v63 = vpop.f32.mrb[155].mxu0 }
 0xe84   : > { %9070 = vrcp.f32 %v7561_v60  ;;  %v7562_v19 = vadd.f32 1.0, %v9061_v62 }
 0xe85   : > { %v7537_v28 = vmul.f32 1.442695, %v8353_v56  ;;  %v8354_v37 = vmul.f32 -3.0, %v11795_v2 }
 0xe86   : > { %v9063_v48 = vpop.eup %9062  ;;  %9072 = vrcp.f32 %v7562_v19 }
 0xe87   : > { %v7641_v11 = vsel %vm7472_vm6, %v9063_v48, %v7619_v34  ;;  %9074 = vpow2.f32 %v7537_v28  ;;  %v7539_v51 = vmul.f32 1.442695, %v8354_v37  ;;  %v7625_v28 = vmul.f32 %v11790_v45, %v11734_v7 }
 0xe88   : > { %v9065_v55 = vpop.eup %9064  ;;  %7661 = vst [vmem:[%s11748_s9 + $0x30] sm:$0xff] %v7641_v11  ;;  %v7421_v44 = vpop.f32.mrb[156].mxu0 }
 0xe89   : > { %v9067_v53 = vpop.eup %9066  ;;  %v7642_v5 = vsel %vm7472_vm6, %v9065_v55, %v7620_v27  ;;  %9076 = vpow2.f32 %v7539_v51  ;;  %v11808_v13 = vadd.f32 %v7421_v44, %v11696_v35  ;;  %v7423_v25 = vpop.f32.mrb[157].mxu0  ;;  %v7626_v51 = vmul.f32 %v11795_v2, %v11734_v7 }
 0xe8a   : > { %7662 = vst [vmem:[%s11748_s9 + $0x38] sm:$0xff] %v7642_v5  ;;  %v7563_v50 = vadd.f32 1.0, %v9067_v53  ;;  %v7424_v9 = vpop.f32.mrb[158].mxu0 }
 0xe8b   : > { %v9069_v58 = vpop.eup %9068  ;;  %v8355_v43 = vmul.f32 -3.0, %v11808_v13  ;;  %v11813_v31 = vadd.f32 %v7424_v9, %v11696_v35  ;;  %v7426_v0 = vpop.f32.mrb[159].mxu0 }
 0xe8c   : > { %9078 = vrcp.f32 %v7563_v50  ;;  %v7564_v59 = vadd.f32 1.0, %v9069_v58  ;;  %v7627_v50 = vmul.f32 %v11808_v13, %v11734_v7 }
 0xe8d   : > { %v7541_v8 = vmul.f32 1.442695, %v8355_v43  ;;  %v8356_v36 = vmul.f32 -3.0, %v11813_v31  ;;  %v7628_v58 = vmul.f32 %v11813_v31, %v11734_v7 }
 0xe8e   : > { %v9071_v52 = vpop.eup %9070  ;;  %9080 = vrcp.f32 %v7564_v59 }
 0xe8f   : > { %v7643_v15 = vsel %vm7472_vm6, %v9071_v52, %v7621_v61  ;;  %9082 = vpow2.f32 %v7541_v8  ;;  %v7543_v22 = vmul.f32 1.442695, %v8356_v36 }
 0xe90   : > { %v9073_v12 = vpop.eup %9072  ;;  %7663 = vst [vmem:[%s11748_s9 + $0x40] sm:$0xff] %v7643_v15  ;;  %v7429_v29 = vpop.f32.mrb[160].mxu0 }
 0xe91   : > { %v9075_v47 = vpop.eup %9074  ;;  %v7644_v6 = vsel %vm7472_vm6, %v9073_v12, %v7622_v54  ;;  %9084 = vpow2.f32 %v7543_v22  ;;  %v11826_v16 = vadd.f32 %v7429_v29, %v11696_v35  ;;  %v7431_v46 = vpop.f32.mrb[161].mxu0 }
 0xe92   : > { %7664 = vst [vmem:[%s11748_s9 + $0x48] sm:$0xff] %v7644_v6  ;;  %v7565_v17 = vadd.f32 1.0, %v9075_v47  ;;  %v7432_v14 = vpop.f32.mrb[162].mxu0 }
 0xe93   : > { %v9077_v23 = vpop.eup %9076  ;;  %v8357_v10 = vmul.f32 -3.0, %v11826_v16  ;;  %v11831_v49 = vadd.f32 %v7432_v14, %v11696_v35  ;;  %v7434_v32 = vpop.f32.mrb[163].mxu0  ;;  %v7629_v36 = vmul.f32 %v11826_v16, %v11734_v7 }
 0xe94   : > { %9086 = vrcp.f32 %v7565_v17  ;;  %v7566_v39 = vadd.f32 1.0, %v9077_v23 }
 0xe95   : > { %v7545_v40 = vmul.f32 1.442695, %v8357_v10  ;;  %v8358_v57 = vmul.f32 -3.0, %v11831_v49  ;;  %v7630_v15 = vmul.f32 %v11831_v49, %v11734_v7 }
 0xe96   : > { %v9079_v1 = vpop.eup %9078  ;;  %9088 = vrcp.f32 %v7566_v39 }
 0xe97   : > { %v7645_v42 = vsel %vm7472_vm6, %v9079_v1, %v7623_v18  ;;  %9090 = vpow2.f32 %v7545_v40  ;;  %v7547_v21 = vmul.f32 1.442695, %v8358_v57 }
 0xe98   : > { %v9081_v3 = vpop.eup %9080  ;;  %7665 = vst [vmem:[%s11748_s9 + $0x50] sm:$0xff] %v7645_v42  ;;  %v7437_v4 = vpop.f32.mrb[164].mxu0 }
 0xe99   : > { %v9083_v33 = vpop.eup %9082  ;;  %v7646_v30 = vsel %vm7472_vm6, %v9081_v3, %v7624_v41  ;;  %9092 = vpow2.f32 %v7547_v21  ;;  %v8401_v38 = vadd.f32 %v7437_v4, %v11696_v35  ;;  %v7439_v60 = vpop.f32.mrb[165].mxu0 }
 0xe9a   : > { %7666 = vst [vmem:[%s11748_s9 + $0x58] sm:$0xff] %v7646_v30  ;;  %v7567_v20 = vadd.f32 1.0, %v9083_v33  ;;  %v7440_v62 = vpop.f32.mrb[166].mxu0 }
 0xe9b   : > { %v9085_v56 = vpop.eup %9084  ;;  %v8359_v63 = vmul.f32 -3.0, %v8401_v38  ;;  %v8402_v26 = vadd.f32 %v7440_v62, %v11696_v35  ;;  %v7442_v19 = vpop.f32.mrb[167].mxu0  ;;  %v7631_v12 = vmul.f32 %v8401_v38, %v11734_v7 }
 0xe9c   : > { %9094 = vrcp.f32 %v7567_v20  ;;  %v7568_v34 = vadd.f32 1.0, %v9085_v56 }
 0xe9d   : > { %v7549_v37 = vmul.f32 1.442695, %v8359_v63  ;;  %v8360_v48 = vmul.f32 -3.0, %v8402_v26  ;;  %v7632_v6 = vmul.f32 %v8402_v26, %v11734_v7 }
 0xe9e   : > { %v9087_v11 = vpop.eup %9086  ;;  %9096 = vrcp.f32 %v7568_v34 }
 0xe9f   : > { %v7647_v27 = vsel %vm7472_vm6, %v9087_v11, %v7625_v28  ;;  %9098 = vpow2.f32 %v7549_v37  ;;  %v7551_v55 = vmul.f32 1.442695, %v8360_v48 }
 0xea0   : > { %v9089_v35 = vpop.eup %9088  ;;  %7667 = vst [vmem:[%s11748_s9 + $0x60] sm:$0xff] %v7647_v27 }
 0xea1   : > { %v9091_v44 = vpop.eup %9090  ;;  %v7648_v53 = vsel %vm7472_vm6, %v9089_v35, %v7626_v51  ;;  %9100 = vpow2.f32 %v7551_v55 }
 0xea2   : > { %7668 = vst [vmem:[%s11748_s9 + $0x68] sm:$0xff] %v7648_v53  ;;  %v7569_v45 = vadd.f32 1.0, %v9091_v44 }
 0xea3   : > { %v9093_v5 = vpop.eup %9092 }
 0xea4   : > { %9102 = vrcp.f32 %v7569_v45  ;;  %v7570_v25 = vadd.f32 1.0, %v9093_v5 }
 0xea6   : > { %v9095_v2 = vpop.eup %9094  ;;  %9104 = vrcp.f32 %v7570_v25 }
 0xea7   : > { %v7649_v9 = vsel %vm7472_vm6, %v9095_v2, %v7627_v50 }
 0xea8   : > { %v9097_v43 = vpop.eup %9096  ;;  %7669 = vst [vmem:[%s11748_s9 + $0x70] sm:$0xff] %v7649_v9 }
 0xea9   : > { %v9099_v0 = vpop.eup %9098  ;;  %v7650_v59 = vsel %vm7472_vm6, %v9097_v43, %v7628_v58 }
 0xeaa   : > { %7670 = vst [vmem:[%s11748_s9 + $0x78] sm:$0xff] %v7650_v59  ;;  %v7571_v13 = vadd.f32 1.0, %v9099_v0 }
 0xeab   : > { %v9101_v61 = vpop.eup %9100 }
 0xeac   : > { %9106 = vrcp.f32 %v7571_v13  ;;  %v7572_v8 = vadd.f32 1.0, %v9101_v61 }
 0xeae   : > { %v9103_v52 = vpop.eup %9102  ;;  %9108 = vrcp.f32 %v7572_v8 }
 0xeaf   : > { %v7651_v31 = vsel %vm7472_vm6, %v9103_v52, %v7629_v36 }
 0xeb0   : > { %v9105_v54 = vpop.eup %9104  ;;  %7671 = vst [vmem:[%s11748_s9 + $0x80] sm:$0xff] %v7651_v31 }
 0xeb1   : > { %v7652_v22 = vsel %vm7472_vm6, %v9105_v54, %v7630_v15 }
 0xeb2   : > { %7672 = vst [vmem:[%s11748_s9 + $0x88] sm:$0xff] %v7652_v22 }
 0xeb6   : > { %v9107_v29 = vpop.eup %9106 }
 0xeb7   : > { %v7653_v47 = vsel %vm7472_vm6, %v9107_v29, %v7631_v12 }
 0xeb8   : > { %v9109_v16 = vpop.eup %9108  ;;  %7673 = vst [vmem:[%s11748_s9 + $0x90] sm:$0xff] %v7653_v47 }
 0xeb9   : > { %v7654_v46 = vsel %vm7472_vm6, %v9109_v16, %v7632_v6 }
 0xeba   : > { %7674 = vst [vmem:[%s11748_s9 + $0x98] sm:$0xff] %v7654_v46 }
 0xebb   : > { %9133 = shalt.err (!%p9130_p3)
}
 0xebc   : > { %s9134_s28 = scalar_lea.hbm %s11885_s14, 2560  ;;  %s9138_s7 = scalar_lea.hbm %s11940_s4, 5120 }
 0xebd   : > { %p9135_p4 = scmp.ne.s32.totalorder %s11885_s14, %s9134_s28  ;;  %p9139_p9 = scmp.lt.u32.totalorder %s11885_s14, %s11940_s4 }
 0xebe   : > { %p9140_p10 = scmp.lt.u32.totalorder %s9138_s7, %s9134_s28  ;;  %p9142_p12 = scmp.lt.u32.totalorder %s9134_s28, %s11885_s14 }
 0xebf   : > { %p9136_p7 = pnand %p9135_p4, %p9252_p5 }
 0xec0   : > { %p9141_p11 = por %p9140_p10, %p9139_p9 }
 0xec1   : > { %p9137_p8 = pneg %p9136_p7 }
 0xec2   : > { %p9143_p13 = por %p9142_p12, %p9141_p11 }
 0xec4   : > { %p9144_p0 = pnand %p9143_p13, %p9137_p8 }
 0xec6   : > { %9147 = shalt.err (!%p9144_p0)
}
 0xec7   : > { %s9187_s8 = smov 128   ;;  %s9188_s9 = smov 8  }
 0xec8   : > { %8524 = dma.vmem_to_hbm [thread:$0]  (%p9252_p5), %s11887_s11, 2560, %s11885_s14, %s11895_s19, %s9187_s8, %s9187_s8, %s9188_s9  }
 0xec9 PF: > { %p8530_p1 = scmp.ge.s32.totalorder %s9182_s18, 2  ;;  %s7704_s10 = sand.u32 1, %s9170_s15  }
 0xeca   : > { %s7705_s12 = scalar_lea.sflag [#allocation3], %s7704_s10 }
 0xecb   : > { %p8527_p2 = pnand %p8530_p1, %p9256_p6 }
 0xecd   : > { %9165 = dma.done.wait (!%p8527_p2), %s7705_s12, 2560  }
 0xece   : > { %9167 = vsyncadd (!%p8527_p2), %s7705_s12, 4294964736  ;;  %p14_p3 = scmp.ge.s32.totalorder %s9239_s21, 4   ;;  %s11943_s15 = smov %s9174_s16 }
 0xecf   : > { %s11944_s16 = smov %s9178_s17  ;;  %s11945_s17 = smov %s9250_s24 }
 0xed0   : > { %s11946_s18 = smov %s9239_s21  ;;  %16 = sbr.rel (!%p14_p3) target bundleno = 3 (0x3), region = 89 }
 0xed7   :  { %7710 = vsyncpa [#allocation3], 1 }
 0xed8   :  { %7712 = vsyncpa [#allocation3 + $0x1], 1 }

</bundles_post_ra>
